<compile_context>
chip_gen: v5e
topology: v5e:2x2
jax: 0.10.0
libtpu: 0.0.40
codegen_flags: <defaults>
</compile_context>

<pallas_src>
import functools

import jax
import jax.numpy as jnp
from jax.experimental import pallas as pl
from jax.experimental.pallas import tpu as pltpu

LANE = 128
MXU_DTYPE = jnp.bfloat16            # MXU inputs bf16 on v5e/v6e/v7x; accum f32


def _round_up(x, m):
    return ((x + m - 1) // m) * m


def _pick_tile(n, prefs):
    for p in prefs:
        if n >= p and n % p == 0:
            return p
    return n


@functools.lru_cache(maxsize=1)
def _tpu_config():
    """Per-generation tiling / VMEM knobs (v5e,v6e: 128 MiB VMEM; v7x: 64 MiB/TC)."""
    try:
        kind = jax.devices()[0].device_kind.lower()
    except Exception:
        kind = ""
    if "v5 lite" in kind or "v5e" in kind or "v5litepod" in kind:
        gen = "v5e"
    elif "v6" in kind:
        gen = "v6e"
    elif "v7" in kind:
        gen = "v7x"
    else:
        gen = "other"
    if gen == "v5e":
        return dict(gen=gen, vmem_limit=64 << 20, tm_cap=128,
                    tn_prefs=(256, 128), tk_prefs=(512, 256, 128),
                    vocab_w_buffers=3, lstm_batch_split=1)
    if gen == "v6e":
        return dict(gen=gen, vmem_limit=64 << 20, tm_cap=256,
                    tn_prefs=(512, 256, 128), tk_prefs=(1024, 512, 256, 128),
                    vocab_w_buffers=None, lstm_batch_split=1)
    if gen == "v7x":
        return dict(gen=gen, vmem_limit=32 << 20, tm_cap=256,
                    tn_prefs=(512, 256, 128), tk_prefs=(1024, 512, 256, 128),
                    vocab_w_buffers=None, lstm_batch_split=2)
    return dict(gen=gen, vmem_limit=32 << 20, tm_cap=128,
                tn_prefs=(256, 128), tk_prefs=(512, 256, 128),
                vocab_w_buffers=None, lstm_batch_split=1)


def _maybe_buffered_spec(shape, index_map, buffer_count):
    """BlockSpec with optional deeper weight-stream pipelining (v5e vocab proj)."""
    if buffer_count is not None and hasattr(pl, "Buffered"):
        try:
            return pl.BlockSpec(shape, index_map,
                                pipeline_mode=pl.Buffered(buffer_count))
        except Exception:
            pass
    return pl.BlockSpec(shape, index_map)


# ----------------------------- Pallas kernels -----------------------------

def _matmul_kernel(x_ref, w_ref, b_ref, o_ref, acc_ref, *, relu):
    """Tiled y = act(x @ w + b); f32 accumulator, bias+act fused at last K step."""
    @pl.when(pl.program_id(2) == 0)
    def _():
        acc_ref[...] = jnp.zeros_like(acc_ref)

    acc_ref[...] += jnp.dot(x_ref[...], w_ref[...],
                            preferred_element_type=jnp.float32)

    @pl.when(pl.program_id(2) == pl.num_programs(2) - 1)
    def _():
        y = acc_ref[...] + b_ref[...]
        if relu:
            y = jnp.maximum(y, 0.0)
        o_ref[...] = y.astype(o_ref.dtype)


def pallas_linear(x, w, b, relu=False, w_buffers=None):
    """y = act(x @ w + b).  x:(M,K) float, w:(K,N) bf16, b:(1,N) f32, N % 128 == 0."""
    cfg = _tpu_config()
    M, K = x.shape
    K2, N = w.shape
    assert K == K2 and b.shape == (1, N) and N % LANE == 0

    Mp16 = _round_up(M, 16)                       # bf16 sublane tile is (16, 128)
    tm = Mp16 if Mp16 <= 256 else cfg["tm_cap"]
    Mp = _round_up(M, tm)
    tn = _pick_tile(N, cfg["tn_prefs"])
    tk = _pick_tile(K, cfg["tk_prefs"]) if K % LANE == 0 else K

    xp = x.astype(MXU_DTYPE)
    if Mp != M:
        xp = jnp.zeros((Mp, K), MXU_DTYPE).at[:M].set(xp)

    grid = (Mp // tm, N // tn, K // tk)
    bytes_accessed = (xp.size * 2 * grid[1] + w.size * 2 * grid[0]
                      + b.size * 4 * grid[0] + Mp * N * 4)
    out = pl.pallas_call(
        functools.partial(_matmul_kernel, relu=relu),
        out_shape=jax.ShapeDtypeStruct((Mp, N), jnp.float32),
        grid=grid,
        in_specs=[
            pl.BlockSpec((tm, tk), lambda i, j, k: (i, k)),
            _maybe_buffered_spec((tk, tn), lambda i, j, k: (k, j), w_buffers),
            pl.BlockSpec((1, tn), lambda i, j, k: (0, j)),
        ],
        out_specs=pl.BlockSpec((tm, tn), lambda i, j, k: (i, j)),
        scratch_shapes=[pltpu.VMEM((tm, tn), jnp.float32)],
        compiler_params=pltpu.CompilerParams(
            dimension_semantics=("parallel", "parallel", "arbitrary"),
            vmem_limit_bytes=cfg["vmem_limit"]),
        cost_estimate=pl.CostEstimate(
            flops=2 * Mp * N * K, transcendentals=0,
            bytes_accessed=int(bytes_accessed)),
    )(xp, w, b)
    return out[:M] if Mp != M else out


def _conv_gap_kernel(p_ref, w_ref, b_ref, o_ref, *, inv_hw):
    """Fused 3x3-conv-as-matmul + ReLU + global average pool.

    Grid = (HW tiles,).  The dense (Bp, Cp) output block is resident across the
    HW axis and accumulates per-batch ReLU row-sums; it is scaled by 1/HW at
    the last HW step.  Batch is folded into the contraction, not the grid.
    """
    s = pl.program_id(0)

    @pl.when(s == 0)
    def _():
        o_ref[...] = jnp.zeros_like(o_ref)

    x = p_ref[...]                                              # (Bp, thw, Kp) bf16
    y = jnp.einsum("btk,kc->btc", x, w_ref[...],
                   preferred_element_type=jnp.float32) + b_ref[...]
    y = jnp.maximum(y, 0.0)                                     # fused ReLU
    o_ref[...] += jnp.sum(y, axis=1)                            # per-batch sums

    @pl.when(s == pl.num_programs(0) - 1)
    def _():
        o_ref[...] *= inv_hw


def pallas_conv_gap(patches, w, b):
    """patches:(Bp,HW,Kp) bf16, w:(Kp,Cp) bf16, b:(1,Cp) f32 -> pooled (Bp,Cp) f32."""
    cfg = _tpu_config()
    Bp, HW, Kp = patches.shape
    _, Cp = w.shape
    thw = HW
    for cand in (512, 256, 128, 64, 32, 16, 8):
        if HW % cand == 0 and Bp * cand <= 2048:
            thw = cand
            break
    ns = HW // thw
    out = pl.pallas_call(
        functools.partial(_conv_gap_kernel, inv_hw=1.0 / HW),
        out_shape=jax.ShapeDtypeStruct((Bp, Cp), jnp.float32),
        grid=(ns,),
        in_specs=[
            pl.BlockSpec((Bp, thw, Kp), lambda s: (0, s, 0)),
            pl.BlockSpec((Kp, Cp), lambda s: (0, 0)),
            pl.BlockSpec((1, Cp), lambda s: (0, 0)),
        ],
        out_specs=pl.BlockSpec((Bp, Cp), lambda s: (0, 0)),
        compiler_params=pltpu.CompilerParams(
            dimension_semantics=("arbitrary",),
            vmem_limit_bytes=cfg["vmem_limit"]),
        cost_estimate=pl.CostEstimate(
            flops=2 * Bp * HW * Kp * Cp, transcendentals=0,
            bytes_accessed=int(patches.size * 2 + w.size * 2 * ns
                               + b.size * 4 * ns + Bp * Cp * 4)),
    )(patches, w, b)
    return out


def _lstm_kernel(gx_ref, whh_ref, h_out_ref, h_scr, c_scr, *, Tc, Hp, T_actual):
    """Recurrence only: gates = gx[t] + h_prev @ w_hh (input projection hoisted).

    Gate order (PyTorch): i, f, g, o.  Hp is a multiple of 128 so each gate
    slice is whole-vreg lane-aligned.  MXU inputs bf16, gate math/state f32.
    Grid = (batch blocks [parallel], time chunks [arbitrary]); state in VMEM.
    """
    ch = pl.program_id(1)

    @pl.when(ch == 0)
    def _():
        h_scr[...] = jnp.zeros_like(h_scr)
        c_scr[...] = jnp.zeros_like(c_scr)

    whh = whh_ref[...]

    def step(t, carry):
        @pl.when(ch * Tc + t < T_actual)        # skip zero-padded tail timesteps
        def _():
            gates = gx_ref[t] + jnp.dot(h_scr[...].astype(whh.dtype), whh,
                                        preferred_element_type=jnp.float32)
            i_g = jax.nn.sigmoid(gates[:, 0 * Hp:1 * Hp])
            f_g = jax.nn.sigmoid(gates[:, 1 * Hp:2 * Hp])
            g_g = jnp.tanh(gates[:, 2 * Hp:3 * Hp])
            o_g = jax.nn.sigmoid(gates[:, 3 * Hp:4 * Hp])
            c = f_g * c_scr[...] + i_g * g_g
            h = o_g * jnp.tanh(c)
            c_scr[...] = c
            h_scr[...] = h
            h_out_ref[t] = h.astype(h_out_ref.dtype)
        return carry

    jax.lax.fori_loop(0, Tc, step, 0, unroll=True)


def pallas_lstm(gates_x, w_hh, *, tc_max=16):
    """gates_x: (T, Bp, 4*Hp) f32 time-major (x @ w_ih + b precomputed).

    Returns hidden states (T, Bp, Hp) bf16.  Only the h_prev @ w_hh matmul and
    the gate element-wise math remain on the serial recurrent critical path.
    """
    cfg = _tpu_config()
    Tt, Bp, H4 = gates_x.shape
    Hp = H4 // 4
    tc = min(tc_max, Tt)
    Tp = _round_up(Tt, tc)
    if Tp != Tt:
        gates_x = jnp.zeros((Tp, Bp, H4), gates_x.dtype).at[:Tt].set(gates_x)

    nb = cfg["lstm_batch_split"]                 # 2 on v7x (2 TCs), else 1
    if nb < 1 or Bp % nb != 0 or (Bp // nb) % 8 != 0:
        nb = 1
    Bs = Bp // nb

    out = pl.pallas_call(
        functools.partial(_lstm_kernel, Tc=tc, Hp=Hp, T_actual=Tt),
        out_shape=jax.ShapeDtypeStruct((Tp, Bp, Hp), jnp.bfloat16),
        grid=(nb, Tp // tc),
        in_specs=[
            pl.BlockSpec((tc, Bs, H4), lambda bb, ch: (ch, bb, 0)),
            pl.BlockSpec((Hp, H4), lambda bb, ch: (0, 0)),
        ],
        out_specs=pl.BlockSpec((tc, Bs, Hp), lambda bb, ch: (ch, bb, 0)),
        scratch_shapes=[pltpu.VMEM((Bs, Hp), jnp.float32),
                        pltpu.VMEM((Bs, Hp), jnp.float32)],
        compiler_params=pltpu.CompilerParams(
            # batch axis is independent -> megacore-parallel on v7x; the
            # time-chunk axis carries the recurrence -> arbitrary.
            dimension_semantics=("parallel", "arbitrary"),
            vmem_limit_bytes=cfg["vmem_limit"]),
        cost_estimate=pl.CostEstimate(
            flops=2 * Tp * Bp * Hp * H4 + 12 * Tp * Bp * Hp,
            transcendentals=4 * Tp * Bp * Hp,
            bytes_accessed=int(gates_x.size * 4 + w_hh.size * 2 * nb
                               + Tp * Bp * Hp * 2)),
    )(gates_x, w_hh)
    return out[:Tt]


# ------------------------------- JAX glue ---------------------------------

def im2col_3x3(x_nhwc):
    """Extract 3x3 (pad=1) patches: (B,H,W,C) -> (B, H*W, 9*C)."""
    B, H, W, C = x_nhwc.shape
    xp = jnp.pad(x_nhwc, ((0, 0), (1, 1), (1, 1), (0, 0)))
    patches = [xp[:, di:di + H, dj:dj + W, :] for di in range(3) for dj in range(3)]
    p = jnp.concatenate(patches, axis=-1)                       # (B, H, W, 9*C)
    return p.reshape(B, H * W, 9 * C)


def image_captioning_forward(pp, images_nchw, captions, lengths, *, V):
    # TODO(synk): pack_padded_sequence has no static-shape Pallas equivalent;
    # padded logits (B, T+1, V) are returned, mask with `lengths` downstream.
    del lengths
    cfg = _tpu_config()
    B, Cin, Hs, Ws = images_nchw.shape
    T = captions.shape[1]
    Tt = T + 1
    Bp = _round_up(B, 16)               # bf16 sublane tile (16,128): full M tiles

    # ---- encoder: fused conv(3x3)+ReLU+GAP kernel, then FC ----
    x = jnp.transpose(images_nchw, (0, 2, 3, 1))                # NCHW -> NHWC
    if Bp != B:
        x = jnp.zeros((Bp, Hs, Ws, Cin), x.dtype).at[:B].set(x)
    # TODO(synk): im2col is still materialized by XLA; doing the 9 shifted loads
    # inside the conv kernel would cut conv input HBM traffic ~9x.
    patches = im2col_3x3(x)                                     # (Bp, HW, 9*Cin)
    Kp = pp["w_conv"].shape[0]                                  # 9*Cin lane-padded
    if patches.shape[-1] != Kp:
        patches = jnp.pad(patches, ((0, 0), (0, 0), (0, Kp - patches.shape[-1])))
    patches = patches.astype(MXU_DTYPE)
    pooled = pallas_conv_gap(patches, pp["w_conv"], pp["b_conv"])       # (Bp, Cp)
    features = pallas_linear(pooled, pp["w_enc"], pp["b_enc"])          # (Bp, Ep)

    # ---- decoder: embedding (XLA gather) + hoisted gates + LSTM + vocab proj ----
    cap_p = captions if Bp == B else jnp.zeros((Bp, T), captions.dtype).at[:B].set(captions)
    emb = jnp.take(pp["emb"], cap_p.T, axis=0)                  # (T, Bp, Ep) time-major
    x_seq = jnp.concatenate([features[None], emb], axis=0)      # (T+1, Bp, Ep)

    # Input projection hoisted off the recurrent critical path: one big matmul
    # over all timesteps; only h_prev @ w_hh stays inside the LSTM loop.
    Ep = x_seq.shape[-1]
    H4 = pp["w_ih"].shape[1]
    gates_x = pallas_linear(x_seq.reshape(Tt * Bp, Ep), pp["w_ih"], pp["b_lstm"])
    gates_x = gates_x.reshape(Tt, Bp, H4)                       # (T+1, Bp, 4*Hp)
    hiddens = pallas_lstm(gates_x, pp["w_hh"])                  # (T+1, Bp, Hp) bf16

    # Batch-major flatten before the vocab projection so logits come out already
    # in (Bp, T+1, Vp) layout; only this small Hp-wide transpose remains (the
    # Vp-wide logits transpose is eliminated).
    Hp = hiddens.shape[-1]
    Vp = pp["w_out"].shape[1]
    hid = jnp.transpose(hiddens, (1, 0, 2)).reshape(Bp * Tt, Hp)
    logits = pallas_linear(hid, pp["w_out"], pp["b_out"],
                           w_buffers=cfg["vocab_w_buffers"])    # (Bp*Tt, Vp)
    logits = logits.reshape(Bp, Tt, Vp)                         # free reshape
    return logits[:B, :, :V]


# ------------------------ parameters & padding ------------------------------

def init_params(key, Cin, Cout, E, H, V):
    ks = jax.random.split(key, 6)
    s = 0.1
    return {
        "w_conv": s * jax.random.normal(ks[0], (9 * Cin, Cout), jnp.float32),
        "b_conv": 0.01 * jnp.ones((1, Cout), jnp.float32),
        "w_enc": s * jax.random.normal(ks[1], (Cout, E), jnp.float32),
        "b_enc": 0.01 * jnp.ones((1, E), jnp.float32),
        "emb": s * jax.random.normal(ks[2], (V, E), jnp.float32),
        "w_ih": s * jax.random.normal(ks[3], (E, 4 * H), jnp.float32),
        "w_hh": s * jax.random.normal(ks[4], (H, 4 * H), jnp.float32),
        # combined bias_ih + bias_hh (PyTorch keeps two; their sum is equivalent)
        "b_lstm": 0.01 * jnp.ones((1, 4 * H), jnp.float32),
        "w_out": s * jax.random.normal(ks[5], (H, V), jnp.float32),
        "b_out": 0.01 * jnp.ones((1, V), jnp.float32),
    }


def _pad2d(a, rows, cols, dtype):
    out = jnp.zeros((rows, cols), dtype)
    return out.at[:a.shape[0], :a.shape[1]].set(a.astype(dtype))


def _pad_gate_cols(a, H, Hp, dtype):
    """(rows, 4H) gate-blocked [i|f|g|o] -> (rows, 4Hp) with each gate padded."""
    rows = a.shape[0]
    out = jnp.zeros((rows, 4 * Hp), dtype)
    for g in range(4):
        out = out.at[:, g * Hp:g * Hp + H].set(a[:, g * H:(g + 1) * H].astype(dtype))
    return out


def pad_params(params, Cin, Cout, E, H, V):
    """Zero-pad all matmul dims to 128 lanes; cast MXU weights to bf16.

    Zero padding is exact: padded channels/features/gates stay identically zero
    through ReLU/GAP/LSTM, and padded vocab columns are sliced off at the end.
    """
    Kp = _round_up(9 * Cin, LANE)
    Cp, Ep = _round_up(Cout, LANE), _round_up(E, LANE)
    Hp, Vp = _round_up(H, LANE), _round_up(V, LANE)
    return {
        "w_conv": _pad2d(params["w_conv"], Kp, Cp, MXU_DTYPE),
        "b_conv": _pad2d(params["b_conv"], 1, Cp, jnp.float32),
        "w_enc": _pad2d(params["w_enc"], Cp, Ep, MXU_DTYPE),
        "b_enc": _pad2d(params["b_enc"], 1, Ep, jnp.float32),
        "emb": _pad2d(params["emb"], V, Ep, jnp.float32),
        "w_ih": _pad2d(_pad_gate_cols(params["w_ih"], H, Hp, jnp.float32),
                       Ep, 4 * Hp, MXU_DTYPE),
        "w_hh": _pad2d(_pad_gate_cols(params["w_hh"], H, Hp, jnp.float32),
                       Hp, 4 * Hp, MXU_DTYPE),
        "b_lstm": _pad_gate_cols(params["b_lstm"], H, Hp, jnp.float32),
        "w_out": _pad2d(params["w_out"], Hp, Vp, MXU_DTYPE),
        "b_out": _pad2d(params["b_out"], 1, Vp, jnp.float32),
    }


# ----------------------------- f32 reference --------------------------------

def reference_forward(params, images_nchw, captions):
    B = images_nchw.shape[0]
    T = captions.shape[1]
    x = jnp.transpose(images_nchw, (0, 2, 3, 1))
    patches = im2col_3x3(x)                                     # (B, HW, 9*Cin)
    conv = jnp.maximum(jnp.einsum("bpk,kc->bpc", patches, params["w_conv"])
                       + params["b_conv"], 0.0)
    pooled = jnp.mean(conv, axis=1)                             # (B, Cout)
    features = pooled @ params["w_enc"] + params["b_enc"]       # (B, E)
    emb = jnp.take(params["emb"], captions, axis=0)             # (B, T, E)
    x_seq = jnp.concatenate([features[:, None, :], emb], axis=1)
    H = params["w_hh"].shape[0]
    h = jnp.zeros((B, H), jnp.float32)
    c = jnp.zeros((B, H), jnp.float32)
    outs = []
    for t in range(T + 1):
        g = x_seq[:, t] @ params["w_ih"] + h @ params["w_hh"] + params["b_lstm"]
        i_g = jax.nn.sigmoid(g[:, :H])
        f_g = jax.nn.sigmoid(g[:, H:2 * H])
        g_g = jnp.tanh(g[:, 2 * H:3 * H])
        o_g = jax.nn.sigmoid(g[:, 3 * H:4 * H])
        c = f_g * c + i_g * g_g
        h = o_g * jnp.tanh(c)
        outs.append(h)
    hs = jnp.stack(outs, axis=1)                                # (B, T+1, H)
    return hs @ params["w_out"] + params["b_out"]               # (B, T+1, V)


# --------------------------------- main ------------------------------------

if __name__ == "__main__":
    B, Cin, Hs, Ws = 2, 4, 16, 16
    Cout, E, H, V, T = 8, 32, 32, 64, 8

    key = jax.random.PRNGKey(0)
    k_img, k_cap, k_par = jax.random.split(key, 3)

    images = jax.random.normal(k_img, (B, Cin, Hs, Ws), jnp.float32)   # NCHW
    captions = jax.random.randint(k_cap, (B, T), 0, V, jnp.int32)
    lengths = jnp.array([T + 1, T], jnp.int32)

    params = init_params(k_par, Cin, Cout, E, H, V)
    pp = pad_params(params, Cin, Cout, E, H, V)

    fwd = jax.jit(functools.partial(image_captioning_forward, V=V))
    outputs = fwd(pp, images, captions, lengths)
    jax.block_until_ready(outputs)

    assert outputs.shape == (B, T + 1, V)
    assert bool(jnp.all(jnp.isfinite(outputs)))

    # Correctness vs. pure-f32 reference (tolerance covers bf16 MXU inputs).
    ref = reference_forward(params, images, captions)
    err = float(jnp.max(jnp.abs(outputs - ref)))
    assert err < 5e-2, f"mismatch vs f32 reference: max abs err = {err}"
    print("KERNEL_OK")
</pallas_src>

<mosaic_0001>
module attributes {stable_mosaic.version = 11 : i64} {
  func.func @_conv_gap_kernel(%arg0: i32, %arg1: memref<16x128x128xbf16, #tpu.memory_space<vmem>>, %arg2: memref<128x128xbf16, #tpu.memory_space<vmem>>, %arg3: memref<1x128xf32, #tpu.memory_space<vmem>>, %arg4: memref<16x128xf32, #tpu.memory_space<vmem>>) attributes {dimension_semantics = [#tpu.dimension_semantics<arbitrary>], iteration_bounds = array<i64: 2>, scalar_prefetch = 0 : i64, scratch_operands = 0 : i64, tpu.core_type = #tpu.core_type<tc>, window_params = [{transform_indices = @transform_0, window_bounds = array<i64: 16, 128, 128>}, {pipeline_mode = #tpu.pipeline_mode<synchronous>, transform_indices = @transform_1, window_bounds = array<i64: 128, 128>}, {pipeline_mode = #tpu.pipeline_mode<synchronous>, transform_indices = @transform_2, window_bounds = array<i64: 1, 128>}, {pipeline_mode = #tpu.pipeline_mode<synchronous>, transform_indices = @transform_3, window_bounds = array<i64: 16, 128>}]} {
    %c0_i32 = arith.constant 0 : i32
    %0 = arith.cmpi eq, %arg0, %c0_i32 : i32
    %1 = arith.extui %0 : i1 to i32
    %c0_i32_0 = arith.constant 0 : i32
    %2 = arith.cmpi ne, %1, %c0_i32_0 : i32
    scf.if %2 {
      %cst_14 = arith.constant 0.000000e+00 : f32
      %19 = vector.broadcast %cst_14 : f32 to vector<16x128xf32>
      %c0_15 = arith.constant 0 : index
      %c0_16 = arith.constant 0 : index
      %20 = vector.load %arg4[%c0_15, %c0_16] : memref<16x128xf32, #tpu.memory_space<vmem>>, vector<16x128xf32>
      tpu.vector_store %arg4[%c0_15, %c0_16], %19 {strides = array<i32>} : memref<16x128xf32, #tpu.memory_space<vmem>>, vector<16x128xf32>,
    } else {
    }
    %c0 = arith.constant 0 : index
    %c0_1 = arith.constant 0 : index
    %c0_2 = arith.constant 0 : index
    %3 = vector.load %arg1[%c0, %c0_1, %c0_2] : memref<16x128x128xbf16, #tpu.memory_space<vmem>>, vector<16x128x128xbf16>
    %c0_3 = arith.constant 0 : index
    %c0_4 = arith.constant 0 : index
    %4 = vector.load %arg2[%c0_3, %c0_4] : memref<128x128xbf16, #tpu.memory_space<vmem>>, vector<128x128xbf16>
    "tpu.trace_start"() <{level = 10 : i32, message = "btk,kc->btc"}> : () -> ()
    %cst = arith.constant dense<0.000000e+00> : vector<16x128x128xf32>
    %5 = tpu.matmul %3, %4, %cst {dimension_numbers = #tpu.dot_dimension_numbers<[2], [0], [0, 1], [1], [0, 0, 0, 1, 1, 1], [], []>} : vector<16x128x128xbf16>, vector<128x128xbf16>, vector<16x128x128xf32> -> vector<16x128x128xf32>
    "tpu.trace_stop"() : () -> ()
    %c0_5 = arith.constant 0 : index
    %c0_6 = arith.constant 0 : index
    %6 = vector.load %arg3[%c0_5, %c0_6] : memref<1x128xf32, #tpu.memory_space<vmem>>, vector<1x128xf32>
    %7 = vector.shape_cast %6 : vector<1x128xf32> to vector<1x1x128xf32>
    %8 = vector.broadcast %7 : vector<1x1x128xf32> to vector<16x128x128xf32>
    %9 = arith.addf %5, %8 : vector<16x128x128xf32>
    %cst_7 = arith.constant 0.000000e+00 : f32
    %10 = vector.broadcast %cst_7 : f32 to vector<16x128x128xf32>
    %11 = arith.maximumf %9, %10 : vector<16x128x128xf32>
    %c0_8 = arith.constant 0 : index
    %c0_9 = arith.constant 0 : index
    %12 = vector.load %arg4[%c0_8, %c0_9] : memref<16x128xf32, #tpu.memory_space<vmem>>, vector<16x128xf32>
    %cst_10 = arith.constant dense<0.000000e+00> : vector<16x128xf32>
    %13 = vector.multi_reduction <add>, %11, %cst_10 [1] : vector<16x128x128xf32> to vector<16x128xf32>
    %14 = arith.addf %12, %13 : vector<16x128xf32>
    %c0_11 = arith.constant 0 : index
    %c0_12 = arith.constant 0 : index
    %15 = vector.load %arg4[%c0_11, %c0_12] : memref<16x128xf32, #tpu.memory_space<vmem>>, vector<16x128xf32>
    tpu.vector_store %arg4[%c0_11, %c0_12], %14 {strides = array<i32>} : memref<16x128xf32, #tpu.memory_space<vmem>>, vector<16x128xf32>,
    %c1_i32 = arith.constant 1 : i32
    %16 = arith.cmpi eq, %arg0, %c1_i32 : i32
    %17 = arith.extui %16 : i1 to i32
    %c0_i32_13 = arith.constant 0 : i32
    %18 = arith.cmpi ne, %17, %c0_i32_13 : i32
    scf.if %18 {
      %c0_14 = arith.constant 0 : index
      %c0_15 = arith.constant 0 : index
      %19 = vector.load %arg4[%c0_14, %c0_15] : memref<16x128xf32, #tpu.memory_space<vmem>>, vector<16x128xf32>
      %cst_16 = arith.constant 3.906250e-03 : f32
      %20 = vector.broadcast %cst_16 : f32 to vector<16x128xf32>
      %21 = arith.mulf %19, %20 : vector<16x128xf32>
      %c0_17 = arith.constant 0 : index
      %c0_18 = arith.constant 0 : index
      %22 = vector.load %arg4[%c0_17, %c0_18] : memref<16x128xf32, #tpu.memory_space<vmem>>, vector<16x128xf32>
      tpu.vector_store %arg4[%c0_17, %c0_18], %21 {strides = array<i32>} : memref<16x128xf32, #tpu.memory_space<vmem>>, vector<16x128xf32>,
    } else {
    }
    return
  }
  func.func @transform_0(%arg0: i32) -> (i32, i32, i32) {
    %c0_i32 = arith.constant 0 : i32
    %c0_i32_0 = arith.constant 0 : i32
    %c0_i32_1 = arith.constant 0 : i32
    return %c0_i32, %arg0, %c0_i32_0 : i32, i32, i32
  }
  func.func @transform_1(%arg0: i32) -> (i32, i32) {
    %c0_i32 = arith.constant 0 : i32
    %c0_i32_0 = arith.constant 0 : i32
    %c0_i32_1 = arith.constant 0 : i32
    return %c0_i32, %c0_i32_0 : i32, i32
  }
  func.func @transform_2(%arg0: i32) -> (i32, i32) {
    %c0_i32 = arith.constant 0 : i32
    %c0_i32_0 = arith.constant 0 : i32
    %c0_i32_1 = arith.constant 0 : i32
    return %c0_i32, %c0_i32_0 : i32, i32
  }
  func.func @transform_3(%arg0: i32) -> (i32, i32) {
    %c0_i32 = arith.constant 0 : i32
    %c0_i32_0 = arith.constant 0 : i32
    %c0_i32_1 = arith.constant 0 : i32
    return %c0_i32, %c0_i32_0 : i32, i32
  }
}

module attributes {stable_mosaic.version = 11 : i64} {
  func.func @_matmul_kernel(%arg0: i32, %arg1: i32, %arg2: i32, %arg3: memref<16x128xbf16, #tpu.memory_space<vmem>>, %arg4: memref<128x128xbf16, #tpu.memory_space<vmem>>, %arg5: memref<1x128xf32, #tpu.memory_space<vmem>>, %arg6: memref<16x128xf32, #tpu.memory_space<vmem>>, %arg7: memref<16x128xf32, #tpu.memory_space<vmem>>) attributes {dimension_semantics = [#tpu.dimension_semantics<parallel>, #tpu.dimension_semantics<parallel>, #tpu.dimension_semantics<arbitrary>], iteration_bounds = array<i64: 1, 1, 1>, scalar_prefetch = 0 : i64, scratch_operands = 1 : i64, tpu.core_type = #tpu.core_type<tc>, window_params = [{transform_indices = @transform_0, window_bounds = array<i64: 16, 128>}, {transform_indices = @transform_1, window_bounds = array<i64: 128, 128>}, {transform_indices = @transform_2, window_bounds = array<i64: 1, 128>}, {transform_indices = @transform_3, window_bounds = array<i64: 16, 128>}]} {
    %c0_i32 = arith.constant 0 : i32
    %0 = arith.cmpi eq, %arg2, %c0_i32 : i32
    %1 = arith.extui %0 : i1 to i32
    %c0_i32_0 = arith.constant 0 : i32
    %2 = arith.cmpi ne, %1, %c0_i32_0 : i32
    scf.if %2 {
      %cst_10 = arith.constant 0.000000e+00 : f32
      %12 = vector.broadcast %cst_10 : f32 to vector<16x128xf32>
      %c0_11 = arith.constant 0 : index
      %c0_12 = arith.constant 0 : index
      %13 = vector.load %arg7[%c0_11, %c0_12] : memref<16x128xf32, #tpu.memory_space<vmem>>, vector<16x128xf32>
      tpu.vector_store %arg7[%c0_11, %c0_12], %12 {strides = array<i32>} : memref<16x128xf32, #tpu.memory_space<vmem>>, vector<16x128xf32>,
    } else {
    }
    %c0 = arith.constant 0 : index
    %c0_1 = arith.constant 0 : index
    %3 = vector.load %arg7[%c0, %c0_1] : memref<16x128xf32, #tpu.memory_space<vmem>>, vector<16x128xf32>
    %c0_2 = arith.constant 0 : index
    %c0_3 = arith.constant 0 : index
    %4 = vector.load %arg3[%c0_2, %c0_3] : memref<16x128xbf16, #tpu.memory_space<vmem>>, vector<16x128xbf16>
    %c0_4 = arith.constant 0 : index
    %c0_5 = arith.constant 0 : index
    %5 = vector.load %arg4[%c0_4, %c0_5] : memref<128x128xbf16, #tpu.memory_space<vmem>>, vector<128x128xbf16>
    %cst = arith.constant dense<0.000000e+00> : vector<16x128xf32>
    %6 = tpu.matmul %4, %5, %cst {dimension_numbers = #tpu.dot_dimension_numbers<[1], [0], [0], [1], [0, 0, 1, 1], [], []>} : vector<16x128xbf16>, vector<128x128xbf16>, vector<16x128xf32> -> vector<16x128xf32>
    %7 = arith.addf %3, %6 : vector<16x128xf32>
    %c0_6 = arith.constant 0 : index
    %c0_7 = arith.constant 0 : index
    %8 = vector.load %arg7[%c0_6, %c0_7] : memref<16x128xf32, #tpu.memory_space<vmem>>, vector<16x128xf32>
    tpu.vector_store %arg7[%c0_6, %c0_7], %7 {strides = array<i32>} : memref<16x128xf32, #tpu.memory_space<vmem>>, vector<16x128xf32>,
    %c0_i32_8 = arith.constant 0 : i32
    %9 = arith.cmpi eq, %arg2, %c0_i32_8 : i32
    %10 = arith.extui %9 : i1 to i32
    %c0_i32_9 = arith.constant 0 : i32
    %11 = arith.cmpi ne, %10, %c0_i32_9 : i32
    scf.if %11 {
      %c0_10 = arith.constant 0 : index
      %c0_11 = arith.constant 0 : index
      %12 = vector.load %arg7[%c0_10, %c0_11] : memref<16x128xf32, #tpu.memory_space<vmem>>, vector<16x128xf32>
      %c0_12 = arith.constant 0 : index
      %c0_13 = arith.constant 0 : index
      %13 = vector.load %arg5[%c0_12, %c0_13] : memref<1x128xf32, #tpu.memory_space<vmem>>, vector<1x128xf32>
      %14 = vector.broadcast %13 : vector<1x128xf32> to vector<16x128xf32>
      %15 = arith.addf %12, %14 : vector<16x128xf32>
      %c0_14 = arith.constant 0 : index
      %c0_15 = arith.constant 0 : index
      %16 = vector.load %arg6[%c0_14, %c0_15] : memref<16x128xf32, #tpu.memory_space<vmem>>, vector<16x128xf32>
      tpu.vector_store %arg6[%c0_14, %c0_15], %15 {strides = array<i32>} : memref<16x128xf32, #tpu.memory_space<vmem>>, vector<16x128xf32>,
    } else {
    }
    return
  }
  func.func @transform_0(%arg0: i32, %arg1: i32, %arg2: i32) -> (i32, i32) {
    %c0_i32 = arith.constant 0 : i32
    return %arg0, %arg2 : i32, i32
  }
  func.func @transform_1(%arg0: i32, %arg1: i32, %arg2: i32) -> (i32, i32) {
    %c0_i32 = arith.constant 0 : i32
    return %arg2, %arg1 : i32, i32
  }
  func.func @transform_2(%arg0: i32, %arg1: i32, %arg2: i32) -> (i32, i32) {
    %c0_i32 = arith.constant 0 : i32
    %c0_i32_0 = arith.constant 0 : i32
    return %c0_i32, %arg1 : i32, i32
  }
  func.func @transform_3(%arg0: i32, %arg1: i32, %arg2: i32) -> (i32, i32) {
    %c0_i32 = arith.constant 0 : i32
    return %arg0, %arg1 : i32, i32
  }
}

module attributes {stable_mosaic.version = 11 : i64} {
  func.func @_lstm_kernel(%arg0: i32, %arg1: i32, %arg2: memref<9x16x512xf32, #tpu.memory_space<vmem>>, %arg3: memref<128x512xbf16, #tpu.memory_space<vmem>>, %arg4: memref<9x16x128xbf16, #tpu.memory_space<vmem>>, %arg5: memref<16x128xf32, #tpu.memory_space<vmem>>, %arg6: memref<16x128xf32, #tpu.memory_space<vmem>>) attributes {dimension_semantics = [#tpu.dimension_semantics<parallel>, #tpu.dimension_semantics<arbitrary>], iteration_bounds = array<i64: 1, 1>, scalar_prefetch = 0 : i64, scratch_operands = 2 : i64, tpu.core_type = #tpu.core_type<tc>, window_params = [{transform_indices = @transform_0, window_bounds = array<i64: 9, 16, 512>}, {pipeline_mode = #tpu.pipeline_mode<synchronous>, transform_indices = @transform_1, window_bounds = array<i64: 128, 512>}, {transform_indices = @transform_2, window_bounds = array<i64: 9, 16, 128>}]} {
    %c0_i32 = arith.constant 0 : i32
    %0 = arith.cmpi eq, %arg1, %c0_i32 : i32
    %1 = arith.extui %0 : i1 to i32
    %c0_i32_0 = arith.constant 0 : i32
    %2 = arith.cmpi ne, %1, %c0_i32_0 : i32
    scf.if %2 {
      %cst = arith.constant 0.000000e+00 : f32
      %49 = vector.broadcast %cst : f32 to vector<16x128xf32>
      %c0_30 = arith.constant 0 : index
      %c0_31 = arith.constant 0 : index
      %50 = vector.load %arg5[%c0_30, %c0_31] : memref<16x128xf32, #tpu.memory_space<vmem>>, vector<16x128xf32>
      tpu.vector_store %arg5[%c0_30, %c0_31], %49 {strides = array<i32>} : memref<16x128xf32, #tpu.memory_space<vmem>>, vector<16x128xf32>,
      %cst_32 = arith.constant 0.000000e+00 : f32
      %51 = vector.broadcast %cst_32 : f32 to vector<16x128xf32>
      %c0_33 = arith.constant 0 : index
      %c0_34 = arith.constant 0 : index
      %52 = vector.load %arg6[%c0_33, %c0_34] : memref<16x128xf32, #tpu.memory_space<vmem>>, vector<16x128xf32>
      tpu.vector_store %arg6[%c0_33, %c0_34], %51 {strides = array<i32>} : memref<16x128xf32, #tpu.memory_space<vmem>>, vector<16x128xf32>,
    } else {
    }
    %c0 = arith.constant 0 : index
    %c0_1 = arith.constant 0 : index
    %3 = vector.load %arg3[%c0, %c0_1] : memref<128x512xbf16, #tpu.memory_space<vmem>>, vector<128x512xbf16>
    %c0_i32_2 = arith.constant 0 : i32
    %c9_i32 = arith.constant 9 : i32
    %4 = arith.muli %arg1, %c9_i32 : i32
    %5 = arith.addi %4, %c0_i32_2 : i32
    %c9_i32_3 = arith.constant 9 : i32
    %6 = arith.cmpi slt, %5, %c9_i32_3 : i32
    %7 = arith.extui %6 : i1 to i32
    %c0_i32_4 = arith.constant 0 : i32
    %8 = arith.cmpi ne, %7, %c0_i32_4 : i32
    scf.if %8 {
      %49 = arith.index_cast %c0_i32_2 : i32 to index
      %c0_30 = arith.constant 0 : index
      %c0_31 = arith.constant 0 : index
      %50 = vector.load %arg2[%49, %c0_30, %c0_31] : memref<9x16x512xf32, #tpu.memory_space<vmem>>, vector<1x16x512xf32>
      %51 = vector.shape_cast %50 : vector<1x16x512xf32> to vector<16x512xf32>
      %c0_32 = arith.constant 0 : index
      %c0_33 = arith.constant 0 : index
      %52 = vector.load %arg5[%c0_32, %c0_33] : memref<16x128xf32, #tpu.memory_space<vmem>>, vector<16x128xf32>
      %53 = arith.truncf %52 : vector<16x128xf32> to vector<16x128xbf16>
      %cst = arith.constant dense<0.000000e+00> : vector<16x512xf32>
      %54 = tpu.matmul %53, %3, %cst {dimension_numbers = #tpu.dot_dimension_numbers<[1], [0], [0], [1], [0, 0, 1, 1], [], []>} : vector<16x128xbf16>, vector<128x512xbf16>, vector<16x512xf32> -> vector<16x512xf32>
      %55 = arith.addf %51, %54 : vector<16x512xf32>
      %56 = vector.extract_strided_slice %55 {offsets = [0, 0], sizes = [16, 128], strides = [1, 1]} : vector<16x512xf32> to vector<16x128xf32>
      %57 = arith.negf %56 : vector<16x128xf32>
      %58 = math.exp %57 : vector<16x128xf32>
      %cst_34 = arith.constant 1.000000e+00 : f32
      %59 = vector.broadcast %cst_34 : f32 to vector<16x128xf32>
      %60 = arith.addf %59, %58 : vector<16x128xf32>
      %61 = arith.divf %59, %60 : vector<16x128xf32>
      %62 = vector.extract_strided_slice %55 {offsets = [0, 128], sizes = [16, 128], strides = [1, 1]} : vector<16x512xf32> to vector<16x128xf32>
      %63 = arith.negf %62 : vector<16x128xf32>
      %64 = math.exp %63 : vector<16x128xf32>
      %cst_35 = arith.constant 1.000000e+00 : f32
      %65 = vector.broadcast %cst_35 : f32 to vector<16x128xf32>
      %66 = arith.addf %65, %64 : vector<16x128xf32>
      %67 = arith.divf %65, %66 : vector<16x128xf32>
      %68 = vector.extract_strided_slice %55 {offsets = [0, 256], sizes = [16, 128], strides = [1, 1]} : vector<16x512xf32> to vector<16x128xf32>
      %69 = math.tanh %68 : vector<16x128xf32>
      %70 = vector.extract_strided_slice %55 {offsets = [0, 384], sizes = [16, 128], strides = [1, 1]} : vector<16x512xf32> to vector<16x128xf32>
      %71 = arith.negf %70 : vector<16x128xf32>
      %72 = math.exp %71 : vector<16x128xf32>
      %cst_36 = arith.constant 1.000000e+00 : f32
      %73 = vector.broadcast %cst_36 : f32 to vector<16x128xf32>
      %74 = arith.addf %73, %72 : vector<16x128xf32>
      %75 = arith.divf %73, %74 : vector<16x128xf32>
      %c0_37 = arith.constant 0 : index
      %c0_38 = arith.constant 0 : index
      %76 = vector.load %arg6[%c0_37, %c0_38] : memref<16x128xf32, #tpu.memory_space<vmem>>, vector<16x128xf32>
      %77 = arith.mulf %67, %76 : vector<16x128xf32>
      %78 = arith.mulf %61, %69 : vector<16x128xf32>
      %79 = arith.addf %77, %78 : vector<16x128xf32>
      %80 = math.tanh %79 : vector<16x128xf32>
      %81 = arith.mulf %75, %80 : vector<16x128xf32>
      %c0_39 = arith.constant 0 : index
      %c0_40 = arith.constant 0 : index
      %82 = vector.load %arg6[%c0_39, %c0_40] : memref<16x128xf32, #tpu.memory_space<vmem>>, vector<16x128xf32>
      tpu.vector_store %arg6[%c0_39, %c0_40], %79 {strides = array<i32>} : memref<16x128xf32, #tpu.memory_space<vmem>>, vector<16x128xf32>,
      %c0_41 = arith.constant 0 : index
      %c0_42 = arith.constant 0 : index
      %83 = vector.load %arg5[%c0_41, %c0_42] : memref<16x128xf32, #tpu.memory_space<vmem>>, vector<16x128xf32>
      tpu.vector_store %arg5[%c0_41, %c0_42], %81 {strides = array<i32>} : memref<16x128xf32, #tpu.memory_space<vmem>>, vector<16x128xf32>,
      %84 = arith.truncf %81 : vector<16x128xf32> to vector<16x128xbf16>
      %85 = arith.index_cast %c0_i32_2 : i32 to index
      %c0_43 = arith.constant 0 : index
      %c0_44 = arith.constant 0 : index
      %86 = vector.load %arg4[%85, %c0_43, %c0_44] : memref<9x16x128xbf16, #tpu.memory_space<vmem>>, vector<1x16x128xbf16>
      %87 = vector.shape_cast %86 : vector<1x16x128xbf16> to vector<16x128xbf16>
      %88 = vector.shape_cast %84 : vector<16x128xbf16> to vector<1x16x128xbf16>
      tpu.vector_store %arg4[%85, %c0_43, %c0_44], %88 {strides = array<i32>} : memref<9x16x128xbf16, #tpu.memory_space<vmem>>, vector<1x16x128xbf16>,
    } else {
    }
    %c1_i32 = arith.constant 1 : i32
    %c9_i32_5 = arith.constant 9 : i32
    %9 = arith.muli %arg1, %c9_i32_5 : i32
    %10 = arith.addi %9, %c1_i32 : i32
    %c9_i32_6 = arith.constant 9 : i32
    %11 = arith.cmpi slt, %10, %c9_i32_6 : i32
    %12 = arith.extui %11 : i1 to i32
    %c0_i32_7 = arith.constant 0 : i32
    %13 = arith.cmpi ne, %12, %c0_i32_7 : i32
    scf.if %13 {
      %49 = arith.index_cast %c1_i32 : i32 to index
      %c0_30 = arith.constant 0 : index
      %c0_31 = arith.constant 0 : index
      %50 = vector.load %arg2[%49, %c0_30, %c0_31] : memref<9x16x512xf32, #tpu.memory_space<vmem>>, vector<1x16x512xf32>
      %51 = vector.shape_cast %50 : vector<1x16x512xf32> to vector<16x512xf32>
      %c0_32 = arith.constant 0 : index
      %c0_33 = arith.constant 0 : index
      %52 = vector.load %arg5[%c0_32, %c0_33] : memref<16x128xf32, #tpu.memory_space<vmem>>, vector<16x128xf32>
      %53 = arith.truncf %52 : vector<16x128xf32> to vector<16x128xbf16>
      %cst = arith.constant dense<0.000000e+00> : vector<16x512xf32>
      %54 = tpu.matmul %53, %3, %cst {dimension_numbers = #tpu.dot_dimension_numbers<[1], [0], [0], [1], [0, 0, 1, 1], [], []>} : vector<16x128xbf16>, vector<128x512xbf16>, vector<16x512xf32> -> vector<16x512xf32>
      %55 = arith.addf %51, %54 : vector<16x512xf32>
      %56 = vector.extract_strided_slice %55 {offsets = [0, 0], sizes = [16, 128], strides = [1, 1]} : vector<16x512xf32> to vector<16x128xf32>
      %57 = arith.negf %56 : vector<16x128xf32>
      %58 = math.exp %57 : vector<16x128xf32>
      %cst_34 = arith.constant 1.000000e+00 : f32
      %59 = vector.broadcast %cst_34 : f32 to vector<16x128xf32>
      %60 = arith.addf %59, %58 : vector<16x128xf32>
      %61 = arith.divf %59, %60 : vector<16x128xf32>
      %62 = vector.extract_strided_slice %55 {offsets = [0, 128], sizes = [16, 128], strides = [1, 1]} : vector<16x512xf32> to vector<16x128xf32>
      %63 = arith.negf %62 : vector<16x128xf32>
      %64 = math.exp %63 : vector<16x128xf32>
      %cst_35 = arith.constant 1.000000e+00 : f32
      %65 = vector.broadcast %cst_35 : f32 to vector<16x128xf32>
      %66 = arith.addf %65, %64 : vector<16x128xf32>
      %67 = arith.divf %65, %66 : vector<16x128xf32>
      %68 = vector.extract_strided_slice %55 {offsets = [0, 256], sizes = [16, 128], strides = [1, 1]} : vector<16x512xf32> to vector<16x128xf32>
      %69 = math.tanh %68 : vector<16x128xf32>
      %70 = vector.extract_strided_slice %55 {offsets = [0, 384], sizes = [16, 128], strides = [1, 1]} : vector<16x512xf32> to vector<16x128xf32>
      %71 = arith.negf %70 : vector<16x128xf32>
      %72 = math.exp %71 : vector<16x128xf32>
      %cst_36 = arith.constant 1.000000e+00 : f32
      %73 = vector.broadcast %cst_36 : f32 to vector<16x128xf32>
      %74 = arith.addf %73, %72 : vector<16x128xf32>
      %75 = arith.divf %73, %74 : vector<16x128xf32>
      %c0_37 = arith.constant 0 : index
      %c0_38 = arith.constant 0 : index
      %76 = vector.load %arg6[%c0_37, %c0_38] : memref<16x128xf32, #tpu.memory_space<vmem>>, vector<16x128xf32>
      %77 = arith.mulf %67, %76 : vector<16x128xf32>
      %78 = arith.mulf %61, %69 : vector<16x128xf32>
      %79 = arith.addf %77, %78 : vector<16x128xf32>
      %80 = math.tanh %79 : vector<16x128xf32>
      %81 = arith.mulf %75, %80 : vector<16x128xf32>
      %c0_39 = arith.constant 0 : index
      %c0_40 = arith.constant 0 : index
      %82 = vector.load %arg6[%c0_39, %c0_40] : memref<16x128xf32, #tpu.memory_space<vmem>>, vector<16x128xf32>
      tpu.vector_store %arg6[%c0_39, %c0_40], %79 {strides = array<i32>} : memref<16x128xf32, #tpu.memory_space<vmem>>, vector<16x128xf32>,
      %c0_41 = arith.constant 0 : index
      %c0_42 = arith.constant 0 : index
      %83 = vector.load %arg5[%c0_41, %c0_42] : memref<16x128xf32, #tpu.memory_space<vmem>>, vector<16x128xf32>
      tpu.vector_store %arg5[%c0_41, %c0_42], %81 {strides = array<i32>} : memref<16x128xf32, #tpu.memory_space<vmem>>, vector<16x128xf32>,
      %84 = arith.truncf %81 : vector<16x128xf32> to vector<16x128xbf16>
      %85 = arith.index_cast %c1_i32 : i32 to index
      %c0_43 = arith.constant 0 : index
      %c0_44 = arith.constant 0 : index
      %86 = vector.load %arg4[%85, %c0_43, %c0_44] : memref<9x16x128xbf16, #tpu.memory_space<vmem>>, vector<1x16x128xbf16>
      %87 = vector.shape_cast %86 : vector<1x16x128xbf16> to vector<16x128xbf16>
      %88 = vector.shape_cast %84 : vector<16x128xbf16> to vector<1x16x128xbf16>
      tpu.vector_store %arg4[%85, %c0_43, %c0_44], %88 {strides = array<i32>} : memref<9x16x128xbf16, #tpu.memory_space<vmem>>, vector<1x16x128xbf16>,
    } else {
    }
    %c2_i32 = arith.constant 2 : i32
    %c9_i32_8 = arith.constant 9 : i32
    %14 = arith.muli %arg1, %c9_i32_8 : i32
    %15 = arith.addi %14, %c2_i32 : i32
    %c9_i32_9 = arith.constant 9 : i32
    %16 = arith.cmpi slt, %15, %c9_i32_9 : i32
    %17 = arith.extui %16 : i1 to i32
    %c0_i32_10 = arith.constant 0 : i32
    %18 = arith.cmpi ne, %17, %c0_i32_10 : i32
    scf.if %18 {
      %49 = arith.index_cast %c2_i32 : i32 to index
      %c0_30 = arith.constant 0 : index
      %c0_31 = arith.constant 0 : index
      %50 = vector.load %arg2[%49, %c0_30, %c0_31] : memref<9x16x512xf32, #tpu.memory_space<vmem>>, vector<1x16x512xf32>
      %51 = vector.shape_cast %50 : vector<1x16x512xf32> to vector<16x512xf32>
      %c0_32 = arith.constant 0 : index
      %c0_33 = arith.constant 0 : index
      %52 = vector.load %arg5[%c0_32, %c0_33] : memref<16x128xf32, #tpu.memory_space<vmem>>, vector<16x128xf32>
      %53 = arith.truncf %52 : vector<16x128xf32> to vector<16x128xbf16>
      %cst = arith.constant dense<0.000000e+00> : vector<16x512xf32>
      %54 = tpu.matmul %53, %3, %cst {dimension_numbers = #tpu.dot_dimension_numbers<[1], [0], [0], [1], [0, 0, 1, 1], [], []>} : vector<16x128xbf16>, vector<128x512xbf16>, vector<16x512xf32> -> vector<16x512xf32>
      %55 = arith.addf %51, %54 : vector<16x512xf32>
      %56 = vector.extract_strided_slice %55 {offsets = [0, 0], sizes = [16, 128], strides = [1, 1]} : vector<16x512xf32> to vector<16x128xf32>
      %57 = arith.negf %56 : vector<16x128xf32>
      %58 = math.exp %57 : vector<16x128xf32>
      %cst_34 = arith.constant 1.000000e+00 : f32
      %59 = vector.broadcast %cst_34 : f32 to vector<16x128xf32>
      %60 = arith.addf %59, %58 : vector<16x128xf32>
      %61 = arith.divf %59, %60 : vector<16x128xf32>
      %62 = vector.extract_strided_slice %55 {offsets = [0, 128], sizes = [16, 128], strides = [1, 1]} : vector<16x512xf32> to vector<16x128xf32>
      %63 = arith.negf %62 : vector<16x128xf32>
      %64 = math.exp %63 : vector<16x128xf32>
      %cst_35 = arith.constant 1.000000e+00 : f32
      %65 = vector.broadcast %cst_35 : f32 to vector<16x128xf32>
      %66 = arith.addf %65, %64 : vector<16x128xf32>
      %67 = arith.divf %65, %66 : vector<16x128xf32>
      %68 = vector.extract_strided_slice %55 {offsets = [0, 256], sizes = [16, 128], strides = [1, 1]} : vector<16x512xf32> to vector<16x128xf32>
      %69 = math.tanh %68 : vector<16x128xf32>
      %70 = vector.extract_strided_slice %55 {offsets = [0, 384], sizes = [16, 128], strides = [1, 1]} : vector<16x512xf32> to vector<16x128xf32>
      %71 = arith.negf %70 : vector<16x128xf32>
      %72 = math.exp %71 : vector<16x128xf32>
      %cst_36 = arith.constant 1.000000e+00 : f32
      %73 = vector.broadcast %cst_36 : f32 to vector<16x128xf32>
      %74 = arith.addf %73, %72 : vector<16x128xf32>
      %75 = arith.divf %73, %74 : vector<16x128xf32>
      %c0_37 = arith.constant 0 : index
      %c0_38 = arith.constant 0 : index
      %76 = vector.load %arg6[%c0_37, %c0_38] : memref<16x128xf32, #tpu.memory_space<vmem>>, vector<16x128xf32>
      %77 = arith.mulf %67, %76 : vector<16x128xf32>
      %78 = arith.mulf %61, %69 : vector<16x128xf32>
      %79 = arith.addf %77, %78 : vector<16x128xf32>
      %80 = math.tanh %79 : vector<16x128xf32>
      %81 = arith.mulf %75, %80 : vector<16x128xf32>
      %c0_39 = arith.constant 0 : index
      %c0_40 = arith.constant 0 : index
      %82 = vector.load %arg6[%c0_39, %c0_40] : memref<16x128xf32, #tpu.memory_space<vmem>>, vector<16x128xf32>
      tpu.vector_store %arg6[%c0_39, %c0_40], %79 {strides = array<i32>} : memref<16x128xf32, #tpu.memory_space<vmem>>, vector<16x128xf32>,
      %c0_41 = arith.constant 0 : index
      %c0_42 = arith.constant 0 : index
      %83 = vector.load %arg5[%c0_41, %c0_42] : memref<16x128xf32, #tpu.memory_space<vmem>>, vector<16x128xf32>
      tpu.vector_store %arg5[%c0_41, %c0_42], %81 {strides = array<i32>} : memref<16x128xf32, #tpu.memory_space<vmem>>, vector<16x128xf32>,
      %84 = arith.truncf %81 : vector<16x128xf32> to vector<16x128xbf16>
      %85 = arith.index_cast %c2_i32 : i32 to index
      %c0_43 = arith.constant 0 : index
      %c0_44 = arith.constant 0 : index
      %86 = vector.load %arg4[%85, %c0_43, %c0_44] : memref<9x16x128xbf16, #tpu.memory_space<vmem>>, vector<1x16x128xbf16>
      %87 = vector.shape_cast %86 : vector<1x16x128xbf16> to vector<16x128xbf16>
      %88 = vector.shape_cast %84 : vector<16x128xbf16> to vector<1x16x128xbf16>
      tpu.vector_store %arg4[%85, %c0_43, %c0_44], %88 {strides = array<i32>} : memref<9x16x128xbf16, #tpu.memory_space<vmem>>, vector<1x16x128xbf16>,
    } else {
    }
    %c3_i32 = arith.constant 3 : i32
    %c9_i32_11 = arith.constant 9 : i32
    %19 = arith.muli %arg1, %c9_i32_11 : i32
    %20 = arith.addi %19, %c3_i32 : i32
    %c9_i32_12 = arith.constant 9 : i32
    %21 = arith.cmpi slt, %20, %c9_i32_12 : i32
    %22 = arith.extui %21 : i1 to i32
    %c0_i32_13 = arith.constant 0 : i32
    %23 = arith.cmpi ne, %22, %c0_i32_13 : i32
    scf.if %23 {
      %49 = arith.index_cast %c3_i32 : i32 to index
      %c0_30 = arith.constant 0 : index
      %c0_31 = arith.constant 0 : index
      %50 = vector.load %arg2[%49, %c0_30, %c0_31] : memref<9x16x512xf32, #tpu.memory_space<vmem>>, vector<1x16x512xf32>
      %51 = vector.shape_cast %50 : vector<1x16x512xf32> to vector<16x512xf32>
      %c0_32 = arith.constant 0 : index
      %c0_33 = arith.constant 0 : index
      %52 = vector.load %arg5[%c0_32, %c0_33] : memref<16x128xf32, #tpu.memory_space<vmem>>, vector<16x128xf32>
      %53 = arith.truncf %52 : vector<16x128xf32> to vector<16x128xbf16>
      %cst = arith.constant dense<0.000000e+00> : vector<16x512xf32>
      %54 = tpu.matmul %53, %3, %cst {dimension_numbers = #tpu.dot_dimension_numbers<[1], [0], [0], [1], [0, 0, 1, 1], [], []>} : vector<16x128xbf16>, vector<128x512xbf16>, vector<16x512xf32> -> vector<16x512xf32>
      %55 = arith.addf %51, %54 : vector<16x512xf32>
      %56 = vector.extract_strided_slice %55 {offsets = [0, 0], sizes = [16, 128], strides = [1, 1]} : vector<16x512xf32> to vector<16x128xf32>
      %57 = arith.negf %56 : vector<16x128xf32>
      %58 = math.exp %57 : vector<16x128xf32>
      %cst_34 = arith.constant 1.000000e+00 : f32
      %59 = vector.broadcast %cst_34 : f32 to vector<16x128xf32>
      %60 = arith.addf %59, %58 : vector<16x128xf32>
      %61 = arith.divf %59, %60 : vector<16x128xf32>
      %62 = vector.extract_strided_slice %55 {offsets = [0, 128], sizes = [16, 128], strides = [1, 1]} : vector<16x512xf32> to vector<16x128xf32>
      %63 = arith.negf %62 : vector<16x128xf32>
      %64 = math.exp %63 : vector<16x128xf32>
      %cst_35 = arith.constant 1.000000e+00 : f32
      %65 = vector.broadcast %cst_35 : f32 to vector<16x128xf32>
      %66 = arith.addf %65, %64 : vector<16x128xf32>
      %67 = arith.divf %65, %66 : vector<16x128xf32>
      %68 = vector.extract_strided_slice %55 {offsets = [0, 256], sizes = [16, 128], strides = [1, 1]} : vector<16x512xf32> to vector<16x128xf32>
      %69 = math.tanh %68 : vector<16x128xf32>
      %70 = vector.extract_strided_slice %55 {offsets = [0, 384], sizes = [16, 128], strides = [1, 1]} : vector<16x512xf32> to vector<16x128xf32>
      %71 = arith.negf %70 : vector<16x128xf32>
      %72 = math.exp %71 : vector<16x128xf32>
      %cst_36 = arith.constant 1.000000e+00 : f32
      %73 = vector.broadcast %cst_36 : f32 to vector<16x128xf32>
      %74 = arith.addf %73, %72 : vector<16x128xf32>
      %75 = arith.divf %73, %74 : vector<16x128xf32>
      %c0_37 = arith.constant 0 : index
      %c0_38 = arith.constant 0 : index
      %76 = vector.load %arg6[%c0_37, %c0_38] : memref<16x128xf32, #tpu.memory_space<vmem>>, vector<16x128xf32>
      %77 = arith.mulf %67, %76 : vector<16x128xf32>
      %78 = arith.mulf %61, %69 : vector<16x128xf32>
      %79 = arith.addf %77, %78 : vector<16x128xf32>
      %80 = math.tanh %79 : vector<16x128xf32>
      %81 = arith.mulf %75, %80 : vector<16x128xf32>
      %c0_39 = arith.constant 0 : index
      %c0_40 = arith.constant 0 : index
      %82 = vector.load %arg6[%c0_39, %c0_40] : memref<16x128xf32, #tpu.memory_space<vmem>>, vector<16x128xf32>
      tpu.vector_store %arg6[%c0_39, %c0_40], %79 {strides = array<i32>} : memref<16x128xf32, #tpu.memory_space<vmem>>, vector<16x128xf32>,
      %c0_41 = arith.constant 0 : index
      %c0_42 = arith.constant 0 : index
      %83 = vector.load %arg5[%c0_41, %c0_42] : memref<16x128xf32, #tpu.memory_space<vmem>>, vector<16x128xf32>
      tpu.vector_store %arg5[%c0_41, %c0_42], %81 {strides = array<i32>} : memref<16x128xf32, #tpu.memory_space<vmem>>, vector<16x128xf32>,
      %84 = arith.truncf %81 : vector<16x128xf32> to vector<16x128xbf16>
      %85 = arith.index_cast %c3_i32 : i32 to index
      %c0_43 = arith.constant 0 : index
      %c0_44 = arith.constant 0 : index
      %86 = vector.load %arg4[%85, %c0_43, %c0_44] : memref<9x16x128xbf16, #tpu.memory_space<vmem>>, vector<1x16x128xbf16>
      %87 = vector.shape_cast %86 : vector<1x16x128xbf16> to vector<16x128xbf16>
      %88 = vector.shape_cast %84 : vector<16x128xbf16> to vector<1x16x128xbf16>
      tpu.vector_store %arg4[%85, %c0_43, %c0_44], %88 {strides = array<i32>} : memref<9x16x128xbf16, #tpu.memory_space<vmem>>, vector<1x16x128xbf16>,
    } else {
    }
    %c4_i32 = arith.constant 4 : i32
    %c9_i32_14 = arith.constant 9 : i32
    %24 = arith.muli %arg1, %c9_i32_14 : i32
    %25 = arith.addi %24, %c4_i32 : i32
    %c9_i32_15 = arith.constant 9 : i32
    %26 = arith.cmpi slt, %25, %c9_i32_15 : i32
    %27 = arith.extui %26 : i1 to i32
    %c0_i32_16 = arith.constant 0 : i32
    %28 = arith.cmpi ne, %27, %c0_i32_16 : i32
    scf.if %28 {
      %49 = arith.index_cast %c4_i32 : i32 to index
      %c0_30 = arith.constant 0 : index
      %c0_31 = arith.constant 0 : index
      %50 = vector.load %arg2[%49, %c0_30, %c0_31] : memref<9x16x512xf32, #tpu.memory_space<vmem>>, vector<1x16x512xf32>
      %51 = vector.shape_cast %50 : vector<1x16x512xf32> to vector<16x512xf32>
      %c0_32 = arith.constant 0 : index
      %c0_33 = arith.constant 0 : index
      %52 = vector.load %arg5[%c0_32, %c0_33] : memref<16x128xf32, #tpu.memory_space<vmem>>, vector<16x128xf32>
      %53 = arith.truncf %52 : vector<16x128xf32> to vector<16x128xbf16>
      %cst = arith.constant dense<0.000000e+00> : vector<16x512xf32>
      %54 = tpu.matmul %53, %3, %cst {dimension_numbers = #tpu.dot_dimension_numbers<[1], [0], [0], [1], [0, 0, 1, 1], [], []>} : vector<16x128xbf16>, vector<128x512xbf16>, vector<16x512xf32> -> vector<16x512xf32>
      %55 = arith.addf %51, %54 : vector<16x512xf32>
      %56 = vector.extract_strided_slice %55 {offsets = [0, 0], sizes = [16, 128], strides = [1, 1]} : vector<16x512xf32> to vector<16x128xf32>
      %57 = arith.negf %56 : vector<16x128xf32>
      %58 = math.exp %57 : vector<16x128xf32>
      %cst_34 = arith.constant 1.000000e+00 : f32
      %59 = vector.broadcast %cst_34 : f32 to vector<16x128xf32>
      %60 = arith.addf %59, %58 : vector<16x128xf32>
      %61 = arith.divf %59, %60 : vector<16x128xf32>
      %62 = vector.extract_strided_slice %55 {offsets = [0, 128], sizes = [16, 128], strides = [1, 1]} : vector<16x512xf32> to vector<16x128xf32>
      %63 = arith.negf %62 : vector<16x128xf32>
      %64 = math.exp %63 : vector<16x128xf32>
      %cst_35 = arith.constant 1.000000e+00 : f32
      %65 = vector.broadcast %cst_35 : f32 to vector<16x128xf32>
      %66 = arith.addf %65, %64 : vector<16x128xf32>
      %67 = arith.divf %65, %66 : vector<16x128xf32>
      %68 = vector.extract_strided_slice %55 {offsets = [0, 256], sizes = [16, 128], strides = [1, 1]} : vector<16x512xf32> to vector<16x128xf32>
      %69 = math.tanh %68 : vector<16x128xf32>
      %70 = vector.extract_strided_slice %55 {offsets = [0, 384], sizes = [16, 128], strides = [1, 1]} : vector<16x512xf32> to vector<16x128xf32>
      %71 = arith.negf %70 : vector<16x128xf32>
      %72 = math.exp %71 : vector<16x128xf32>
      %cst_36 = arith.constant 1.000000e+00 : f32
      %73 = vector.broadcast %cst_36 : f32 to vector<16x128xf32>
      %74 = arith.addf %73, %72 : vector<16x128xf32>
      %75 = arith.divf %73, %74 : vector<16x128xf32>
      %c0_37 = arith.constant 0 : index
      %c0_38 = arith.constant 0 : index
      %76 = vector.load %arg6[%c0_37, %c0_38] : memref<16x128xf32, #tpu.memory_space<vmem>>, vector<16x128xf32>
      %77 = arith.mulf %67, %76 : vector<16x128xf32>
      %78 = arith.mulf %61, %69 : vector<16x128xf32>
      %79 = arith.addf %77, %78 : vector<16x128xf32>
      %80 = math.tanh %79 : vector<16x128xf32>
      %81 = arith.mulf %75, %80 : vector<16x128xf32>
      %c0_39 = arith.constant 0 : index
      %c0_40 = arith.constant 0 : index
      %82 = vector.load %arg6[%c0_39, %c0_40] : memref<16x128xf32, #tpu.memory_space<vmem>>, vector<16x128xf32>
      tpu.vector_store %arg6[%c0_39, %c0_40], %79 {strides = array<i32>} : memref<16x128xf32, #tpu.memory_space<vmem>>, vector<16x128xf32>,
      %c0_41 = arith.constant 0 : index
      %c0_42 = arith.constant 0 : index
      %83 = vector.load %arg5[%c0_41, %c0_42] : memref<16x128xf32, #tpu.memory_space<vmem>>, vector<16x128xf32>
      tpu.vector_store %arg5[%c0_41, %c0_42], %81 {strides = array<i32>} : memref<16x128xf32, #tpu.memory_space<vmem>>, vector<16x128xf32>,
      %84 = arith.truncf %81 : vector<16x128xf32> to vector<16x128xbf16>
      %85 = arith.index_cast %c4_i32 : i32 to index
      %c0_43 = arith.constant 0 : index
      %c0_44 = arith.constant 0 : index
      %86 = vector.load %arg4[%85, %c0_43, %c0_44] : memref<9x16x128xbf16, #tpu.memory_space<vmem>>, vector<1x16x128xbf16>
      %87 = vector.shape_cast %86 : vector<1x16x128xbf16> to vector<16x128xbf16>
      %88 = vector.shape_cast %84 : vector<16x128xbf16> to vector<1x16x128xbf16>
      tpu.vector_store %arg4[%85, %c0_43, %c0_44], %88 {strides = array<i32>} : memref<9x16x128xbf16, #tpu.memory_space<vmem>>, vector<1x16x128xbf16>,
    } else {
    }
    %c5_i32 = arith.constant 5 : i32
    %c9_i32_17 = arith.constant 9 : i32
    %29 = arith.muli %arg1, %c9_i32_17 : i32
    %30 = arith.addi %29, %c5_i32 : i32
    %c9_i32_18 = arith.constant 9 : i32
    %31 = arith.cmpi slt, %30, %c9_i32_18 : i32
    %32 = arith.extui %31 : i1 to i32
    %c0_i32_19 = arith.constant 0 : i32
    %33 = arith.cmpi ne, %32, %c0_i32_19 : i32
    scf.if %33 {
      %49 = arith.index_cast %c5_i32 : i32 to index
      %c0_30 = arith.constant 0 : index
      %c0_31 = arith.constant 0 : index
      %50 = vector.load %arg2[%49, %c0_30, %c0_31] : memref<9x16x512xf32, #tpu.memory_space<vmem>>, vector<1x16x512xf32>
      %51 = vector.shape_cast %50 : vector<1x16x512xf32> to vector<16x512xf32>
      %c0_32 = arith.constant 0 : index
      %c0_33 = arith.constant 0 : index
      %52 = vector.load %arg5[%c0_32, %c0_33] : memref<16x128xf32, #tpu.memory_space<vmem>>, vector<16x128xf32>
      %53 = arith.truncf %52 : vector<16x128xf32> to vector<16x128xbf16>
      %cst = arith.constant dense<0.000000e+00> : vector<16x512xf32>
      %54 = tpu.matmul %53, %3, %cst {dimension_numbers = #tpu.dot_dimension_numbers<[1], [0], [0], [1], [0, 0, 1, 1], [], []>} : vector<16x128xbf16>, vector<128x512xbf16>, vector<16x512xf32> -> vector<16x512xf32>
      %55 = arith.addf %51, %54 : vector<16x512xf32>
      %56 = vector.extract_strided_slice %55 {offsets = [0, 0], sizes = [16, 128], strides = [1, 1]} : vector<16x512xf32> to vector<16x128xf32>
      %57 = arith.negf %56 : vector<16x128xf32>
      %58 = math.exp %57 : vector<16x128xf32>
      %cst_34 = arith.constant 1.000000e+00 : f32
      %59 = vector.broadcast %cst_34 : f32 to vector<16x128xf32>
      %60 = arith.addf %59, %58 : vector<16x128xf32>
      %61 = arith.divf %59, %60 : vector<16x128xf32>
      %62 = vector.extract_strided_slice %55 {offsets = [0, 128], sizes = [16, 128], strides = [1, 1]} : vector<16x512xf32> to vector<16x128xf32>
      %63 = arith.negf %62 : vector<16x128xf32>
      %64 = math.exp %63 : vector<16x128xf32>
      %cst_35 = arith.constant 1.000000e+00 : f32
      %65 = vector.broadcast %cst_35 : f32 to vector<16x128xf32>
      %66 = arith.addf %65, %64 : vector<16x128xf32>
      %67 = arith.divf %65, %66 : vector<16x128xf32>
      %68 = vector.extract_strided_slice %55 {offsets = [0, 256], sizes = [16, 128], strides = [1, 1]} : vector<16x512xf32> to vector<16x128xf32>
      %69 = math.tanh %68 : vector<16x128xf32>
      %70 = vector.extract_strided_slice %55 {offsets = [0, 384], sizes = [16, 128], strides = [1, 1]} : vector<16x512xf32> to vector<16x128xf32>
      %71 = arith.negf %70 : vector<16x128xf32>
      %72 = math.exp %71 : vector<16x128xf32>
      %cst_36 = arith.constant 1.000000e+00 : f32
      %73 = vector.broadcast %cst_36 : f32 to vector<16x128xf32>
      %74 = arith.addf %73, %72 : vector<16x128xf32>
      %75 = arith.divf %73, %74 : vector<16x128xf32>
      %c0_37 = arith.constant 0 : index
      %c0_38 = arith.constant 0 : index
      %76 = vector.load %arg6[%c0_37, %c0_38] : memref<16x128xf32, #tpu.memory_space<vmem>>, vector<16x128xf32>
      %77 = arith.mulf %67, %76 : vector<16x128xf32>
      %78 = arith.mulf %61, %69 : vector<16x128xf32>
      %79 = arith.addf %77, %78 : vector<16x128xf32>
      %80 = math.tanh %79 : vector<16x128xf32>
      %81 = arith.mulf %75, %80 : vector<16x128xf32>
      %c0_39 = arith.constant 0 : index
      %c0_40 = arith.constant 0 : index
      %82 = vector.load %arg6[%c0_39, %c0_40] : memref<16x128xf32, #tpu.memory_space<vmem>>, vector<16x128xf32>
      tpu.vector_store %arg6[%c0_39, %c0_40], %79 {strides = array<i32>} : memref<16x128xf32, #tpu.memory_space<vmem>>, vector<16x128xf32>,
      %c0_41 = arith.constant 0 : index
      %c0_42 = arith.constant 0 : index
      %83 = vector.load %arg5[%c0_41, %c0_42] : memref<16x128xf32, #tpu.memory_space<vmem>>, vector<16x128xf32>
      tpu.vector_store %arg5[%c0_41, %c0_42], %81 {strides = array<i32>} : memref<16x128xf32, #tpu.memory_space<vmem>>, vector<16x128xf32>,
      %84 = arith.truncf %81 : vector<16x128xf32> to vector<16x128xbf16>
      %85 = arith.index_cast %c5_i32 : i32 to index
      %c0_43 = arith.constant 0 : index
      %c0_44 = arith.constant 0 : index
      %86 = vector.load %arg4[%85, %c0_43, %c0_44] : memref<9x16x128xbf16, #tpu.memory_space<vmem>>, vector<1x16x128xbf16>
      %87 = vector.shape_cast %86 : vector<1x16x128xbf16> to vector<16x128xbf16>
      %88 = vector.shape_cast %84 : vector<16x128xbf16> to vector<1x16x128xbf16>
      tpu.vector_store %arg4[%85, %c0_43, %c0_44], %88 {strides = array<i32>} : memref<9x16x128xbf16, #tpu.memory_space<vmem>>, vector<1x16x128xbf16>,
    } else {
    }
    %c6_i32 = arith.constant 6 : i32
    %c9_i32_20 = arith.constant 9 : i32
    %34 = arith.muli %arg1, %c9_i32_20 : i32
    %35 = arith.addi %34, %c6_i32 : i32
    %c9_i32_21 = arith.constant 9 : i32
    %36 = arith.cmpi slt, %35, %c9_i32_21 : i32
    %37 = arith.extui %36 : i1 to i32
    %c0_i32_22 = arith.constant 0 : i32
    %38 = arith.cmpi ne, %37, %c0_i32_22 : i32
    scf.if %38 {
      %49 = arith.index_cast %c6_i32 : i32 to index
      %c0_30 = arith.constant 0 : index
      %c0_31 = arith.constant 0 : index
      %50 = vector.load %arg2[%49, %c0_30, %c0_31] : memref<9x16x512xf32, #tpu.memory_space<vmem>>, vector<1x16x512xf32>
      %51 = vector.shape_cast %50 : vector<1x16x512xf32> to vector<16x512xf32>
      %c0_32 = arith.constant 0 : index
      %c0_33 = arith.constant 0 : index
      %52 = vector.load %arg5[%c0_32, %c0_33] : memref<16x128xf32, #tpu.memory_space<vmem>>, vector<16x128xf32>
      %53 = arith.truncf %52 : vector<16x128xf32> to vector<16x128xbf16>
      %cst = arith.constant dense<0.000000e+00> : vector<16x512xf32>
      %54 = tpu.matmul %53, %3, %cst {dimension_numbers = #tpu.dot_dimension_numbers<[1], [0], [0], [1], [0, 0, 1, 1], [], []>} : vector<16x128xbf16>, vector<128x512xbf16>, vector<16x512xf32> -> vector<16x512xf32>
      %55 = arith.addf %51, %54 : vector<16x512xf32>
      %56 = vector.extract_strided_slice %55 {offsets = [0, 0], sizes = [16, 128], strides = [1, 1]} : vector<16x512xf32> to vector<16x128xf32>
      %57 = arith.negf %56 : vector<16x128xf32>
      %58 = math.exp %57 : vector<16x128xf32>
      %cst_34 = arith.constant 1.000000e+00 : f32
      %59 = vector.broadcast %cst_34 : f32 to vector<16x128xf32>
      %60 = arith.addf %59, %58 : vector<16x128xf32>
      %61 = arith.divf %59, %60 : vector<16x128xf32>
      %62 = vector.extract_strided_slice %55 {offsets = [0, 128], sizes = [16, 128], strides = [1, 1]} : vector<16x512xf32> to vector<16x128xf32>
      %63 = arith.negf %62 : vector<16x128xf32>
      %64 = math.exp %63 : vector<16x128xf32>
      %cst_35 = arith.constant 1.000000e+00 : f32
      %65 = vector.broadcast %cst_35 : f32 to vector<16x128xf32>
      %66 = arith.addf %65, %64 : vector<16x128xf32>
      %67 = arith.divf %65, %66 : vector<16x128xf32>
      %68 = vector.extract_strided_slice %55 {offsets = [0, 256], sizes = [16, 128], strides = [1, 1]} : vector<16x512xf32> to vector<16x128xf32>
      %69 = math.tanh %68 : vector<16x128xf32>
      %70 = vector.extract_strided_slice %55 {offsets = [0, 384], sizes = [16, 128], strides = [1, 1]} : vector<16x512xf32> to vector<16x128xf32>
      %71 = arith.negf %70 : vector<16x128xf32>
      %72 = math.exp %71 : vector<16x128xf32>
      %cst_36 = arith.constant 1.000000e+00 : f32
      %73 = vector.broadcast %cst_36 : f32 to vector<16x128xf32>
      %74 = arith.addf %73, %72 : vector<16x128xf32>
      %75 = arith.divf %73, %74 : vector<16x128xf32>
      %c0_37 = arith.constant 0 : index
      %c0_38 = arith.constant 0 : index
      %76 = vector.load %arg6[%c0_37, %c0_38] : memref<16x128xf32, #tpu.memory_space<vmem>>, vector<16x128xf32>
      %77 = arith.mulf %67, %76 : vector<16x128xf32>
      %78 = arith.mulf %61, %69 : vector<16x128xf32>
      %79 = arith.addf %77, %78 : vector<16x128xf32>
      %80 = math.tanh %79 : vector<16x128xf32>
      %81 = arith.mulf %75, %80 : vector<16x128xf32>
      %c0_39 = arith.constant 0 : index
      %c0_40 = arith.constant 0 : index
      %82 = vector.load %arg6[%c0_39, %c0_40] : memref<16x128xf32, #tpu.memory_space<vmem>>, vector<16x128xf32>
      tpu.vector_store %arg6[%c0_39, %c0_40], %79 {strides = array<i32>} : memref<16x128xf32, #tpu.memory_space<vmem>>, vector<16x128xf32>,
      %c0_41 = arith.constant 0 : index
      %c0_42 = arith.constant 0 : index
      %83 = vector.load %arg5[%c0_41, %c0_42] : memref<16x128xf32, #tpu.memory_space<vmem>>, vector<16x128xf32>
      tpu.vector_store %arg5[%c0_41, %c0_42], %81 {strides = array<i32>} : memref<16x128xf32, #tpu.memory_space<vmem>>, vector<16x128xf32>,
      %84 = arith.truncf %81 : vector<16x128xf32> to vector<16x128xbf16>
      %85 = arith.index_cast %c6_i32 : i32 to index
      %c0_43 = arith.constant 0 : index
      %c0_44 = arith.constant 0 : index
      %86 = vector.load %arg4[%85, %c0_43, %c0_44] : memref<9x16x128xbf16, #tpu.memory_space<vmem>>, vector<1x16x128xbf16>
      %87 = vector.shape_cast %86 : vector<1x16x128xbf16> to vector<16x128xbf16>
      %88 = vector.shape_cast %84 : vector<16x128xbf16> to vector<1x16x128xbf16>
      tpu.vector_store %arg4[%85, %c0_43, %c0_44], %88 {strides = array<i32>} : memref<9x16x128xbf16, #tpu.memory_space<vmem>>, vector<1x16x128xbf16>,
    } else {
    }
    %c7_i32 = arith.constant 7 : i32
    %c9_i32_23 = arith.constant 9 : i32
    %39 = arith.muli %arg1, %c9_i32_23 : i32
    %40 = arith.addi %39, %c7_i32 : i32
    %c9_i32_24 = arith.constant 9 : i32
    %41 = arith.cmpi slt, %40, %c9_i32_24 : i32
    %42 = arith.extui %41 : i1 to i32
    %c0_i32_25 = arith.constant 0 : i32
    %43 = arith.cmpi ne, %42, %c0_i32_25 : i32
    scf.if %43 {
      %49 = arith.index_cast %c7_i32 : i32 to index
      %c0_30 = arith.constant 0 : index
      %c0_31 = arith.constant 0 : index
      %50 = vector.load %arg2[%49, %c0_30, %c0_31] : memref<9x16x512xf32, #tpu.memory_space<vmem>>, vector<1x16x512xf32>
      %51 = vector.shape_cast %50 : vector<1x16x512xf32> to vector<16x512xf32>
      %c0_32 = arith.constant 0 : index
      %c0_33 = arith.constant 0 : index
      %52 = vector.load %arg5[%c0_32, %c0_33] : memref<16x128xf32, #tpu.memory_space<vmem>>, vector<16x128xf32>
      %53 = arith.truncf %52 : vector<16x128xf32> to vector<16x128xbf16>
      %cst = arith.constant dense<0.000000e+00> : vector<16x512xf32>
      %54 = tpu.matmul %53, %3, %cst {dimension_numbers = #tpu.dot_dimension_numbers<[1], [0], [0], [1], [0, 0, 1, 1], [], []>} : vector<16x128xbf16>, vector<128x512xbf16>, vector<16x512xf32> -> vector<16x512xf32>
      %55 = arith.addf %51, %54 : vector<16x512xf32>
      %56 = vector.extract_strided_slice %55 {offsets = [0, 0], sizes = [16, 128], strides = [1, 1]} : vector<16x512xf32> to vector<16x128xf32>
      %57 = arith.negf %56 : vector<16x128xf32>
      %58 = math.exp %57 : vector<16x128xf32>
      %cst_34 = arith.constant 1.000000e+00 : f32
      %59 = vector.broadcast %cst_34 : f32 to vector<16x128xf32>
      %60 = arith.addf %59, %58 : vector<16x128xf32>
      %61 = arith.divf %59, %60 : vector<16x128xf32>
      %62 = vector.extract_strided_slice %55 {offsets = [0, 128], sizes = [16, 128], strides = [1, 1]} : vector<16x512xf32> to vector<16x128xf32>
      %63 = arith.negf %62 : vector<16x128xf32>
      %64 = math.exp %63 : vector<16x128xf32>
      %cst_35 = arith.constant 1.000000e+00 : f32
      %65 = vector.broadcast %cst_35 : f32 to vector<16x128xf32>
      %66 = arith.addf %65, %64 : vector<16x128xf32>
      %67 = arith.divf %65, %66 : vector<16x128xf32>
      %68 = vector.extract_strided_slice %55 {offsets = [0, 256], sizes = [16, 128], strides = [1, 1]} : vector<16x512xf32> to vector<16x128xf32>
      %69 = math.tanh %68 : vector<16x128xf32>
      %70 = vector.extract_strided_slice %55 {offsets = [0, 384], sizes = [16, 128], strides = [1, 1]} : vector<16x512xf32> to vector<16x128xf32>
      %71 = arith.negf %70 : vector<16x128xf32>
      %72 = math.exp %71 : vector<16x128xf32>
      %cst_36 = arith.constant 1.000000e+00 : f32
      %73 = vector.broadcast %cst_36 : f32 to vector<16x128xf32>
      %74 = arith.addf %73, %72 : vector<16x128xf32>
      %75 = arith.divf %73, %74 : vector<16x128xf32>
      %c0_37 = arith.constant 0 : index
      %c0_38 = arith.constant 0 : index
      %76 = vector.load %arg6[%c0_37, %c0_38] : memref<16x128xf32, #tpu.memory_space<vmem>>, vector<16x128xf32>
      %77 = arith.mulf %67, %76 : vector<16x128xf32>
      %78 = arith.mulf %61, %69 : vector<16x128xf32>
      %79 = arith.addf %77, %78 : vector<16x128xf32>
      %80 = math.tanh %79 : vector<16x128xf32>
      %81 = arith.mulf %75, %80 : vector<16x128xf32>
      %c0_39 = arith.constant 0 : index
      %c0_40 = arith.constant 0 : index
      %82 = vector.load %arg6[%c0_39, %c0_40] : memref<16x128xf32, #tpu.memory_space<vmem>>, vector<16x128xf32>
      tpu.vector_store %arg6[%c0_39, %c0_40], %79 {strides = array<i32>} : memref<16x128xf32, #tpu.memory_space<vmem>>, vector<16x128xf32>,
      %c0_41 = arith.constant 0 : index
      %c0_42 = arith.constant 0 : index
      %83 = vector.load %arg5[%c0_41, %c0_42] : memref<16x128xf32, #tpu.memory_space<vmem>>, vector<16x128xf32>
      tpu.vector_store %arg5[%c0_41, %c0_42], %81 {strides = array<i32>} : memref<16x128xf32, #tpu.memory_space<vmem>>, vector<16x128xf32>,
      %84 = arith.truncf %81 : vector<16x128xf32> to vector<16x128xbf16>
      %85 = arith.index_cast %c7_i32 : i32 to index
      %c0_43 = arith.constant 0 : index
      %c0_44 = arith.constant 0 : index
      %86 = vector.load %arg4[%85, %c0_43, %c0_44] : memref<9x16x128xbf16, #tpu.memory_space<vmem>>, vector<1x16x128xbf16>
      %87 = vector.shape_cast %86 : vector<1x16x128xbf16> to vector<16x128xbf16>
      %88 = vector.shape_cast %84 : vector<16x128xbf16> to vector<1x16x128xbf16>
      tpu.vector_store %arg4[%85, %c0_43, %c0_44], %88 {strides = array<i32>} : memref<9x16x128xbf16, #tpu.memory_space<vmem>>, vector<1x16x128xbf16>,
    } else {
    }
    %c8_i32 = arith.constant 8 : i32
    %c9_i32_26 = arith.constant 9 : i32
    %44 = arith.muli %arg1, %c9_i32_26 : i32
    %45 = arith.addi %44, %c8_i32 : i32
    %c9_i32_27 = arith.constant 9 : i32
    %46 = arith.cmpi slt, %45, %c9_i32_27 : i32
    %47 = arith.extui %46 : i1 to i32
    %c0_i32_28 = arith.constant 0 : i32
    %48 = arith.cmpi ne, %47, %c0_i32_28 : i32
    scf.if %48 {
      %49 = arith.index_cast %c8_i32 : i32 to index
      %c0_30 = arith.constant 0 : index
      %c0_31 = arith.constant 0 : index
      %50 = vector.load %arg2[%49, %c0_30, %c0_31] : memref<9x16x512xf32, #tpu.memory_space<vmem>>, vector<1x16x512xf32>
      %51 = vector.shape_cast %50 : vector<1x16x512xf32> to vector<16x512xf32>
      %c0_32 = arith.constant 0 : index
      %c0_33 = arith.constant 0 : index
      %52 = vector.load %arg5[%c0_32, %c0_33] : memref<16x128xf32, #tpu.memory_space<vmem>>, vector<16x128xf32>
      %53 = arith.truncf %52 : vector<16x128xf32> to vector<16x128xbf16>
      %cst = arith.constant dense<0.000000e+00> : vector<16x512xf32>
      %54 = tpu.matmul %53, %3, %cst {dimension_numbers = #tpu.dot_dimension_numbers<[1], [0], [0], [1], [0, 0, 1, 1], [], []>} : vector<16x128xbf16>, vector<128x512xbf16>, vector<16x512xf32> -> vector<16x512xf32>
      %55 = arith.addf %51, %54 : vector<16x512xf32>
      %56 = vector.extract_strided_slice %55 {offsets = [0, 0], sizes = [16, 128], strides = [1, 1]} : vector<16x512xf32> to vector<16x128xf32>
      %57 = arith.negf %56 : vector<16x128xf32>
      %58 = math.exp %57 : vector<16x128xf32>
      %cst_34 = arith.constant 1.000000e+00 : f32
      %59 = vector.broadcast %cst_34 : f32 to vector<16x128xf32>
      %60 = arith.addf %59, %58 : vector<16x128xf32>
      %61 = arith.divf %59, %60 : vector<16x128xf32>
      %62 = vector.extract_strided_slice %55 {offsets = [0, 128], sizes = [16, 128], strides = [1, 1]} : vector<16x512xf32> to vector<16x128xf32>
      %63 = arith.negf %62 : vector<16x128xf32>
      %64 = math.exp %63 : vector<16x128xf32>
      %cst_35 = arith.constant 1.000000e+00 : f32
      %65 = vector.broadcast %cst_35 : f32 to vector<16x128xf32>
      %66 = arith.addf %65, %64 : vector<16x128xf32>
      %67 = arith.divf %65, %66 : vector<16x128xf32>
      %68 = vector.extract_strided_slice %55 {offsets = [0, 256], sizes = [16, 128], strides = [1, 1]} : vector<16x512xf32> to vector<16x128xf32>
      %69 = math.tanh %68 : vector<16x128xf32>
      %70 = vector.extract_strided_slice %55 {offsets = [0, 384], sizes = [16, 128], strides = [1, 1]} : vector<16x512xf32> to vector<16x128xf32>
      %71 = arith.negf %70 : vector<16x128xf32>
      %72 = math.exp %71 : vector<16x128xf32>
      %cst_36 = arith.constant 1.000000e+00 : f32
      %73 = vector.broadcast %cst_36 : f32 to vector<16x128xf32>
      %74 = arith.addf %73, %72 : vector<16x128xf32>
      %75 = arith.divf %73, %74 : vector<16x128xf32>
      %c0_37 = arith.constant 0 : index
      %c0_38 = arith.constant 0 : index
      %76 = vector.load %arg6[%c0_37, %c0_38] : memref<16x128xf32, #tpu.memory_space<vmem>>, vector<16x128xf32>
      %77 = arith.mulf %67, %76 : vector<16x128xf32>
      %78 = arith.mulf %61, %69 : vector<16x128xf32>
      %79 = arith.addf %77, %78 : vector<16x128xf32>
      %80 = math.tanh %79 : vector<16x128xf32>
      %81 = arith.mulf %75, %80 : vector<16x128xf32>
      %c0_39 = arith.constant 0 : index
      %c0_40 = arith.constant 0 : index
      %82 = vector.load %arg6[%c0_39, %c0_40] : memref<16x128xf32, #tpu.memory_space<vmem>>, vector<16x128xf32>
      tpu.vector_store %arg6[%c0_39, %c0_40], %79 {strides = array<i32>} : memref<16x128xf32, #tpu.memory_space<vmem>>, vector<16x128xf32>,
      %c0_41 = arith.constant 0 : index
      %c0_42 = arith.constant 0 : index
      %83 = vector.load %arg5[%c0_41, %c0_42] : memref<16x128xf32, #tpu.memory_space<vmem>>, vector<16x128xf32>
      tpu.vector_store %arg5[%c0_41, %c0_42], %81 {strides = array<i32>} : memref<16x128xf32, #tpu.memory_space<vmem>>, vector<16x128xf32>,
      %84 = arith.truncf %81 : vector<16x128xf32> to vector<16x128xbf16>
      %85 = arith.index_cast %c8_i32 : i32 to index
      %c0_43 = arith.constant 0 : index
      %c0_44 = arith.constant 0 : index
      %86 = vector.load %arg4[%85, %c0_43, %c0_44] : memref<9x16x128xbf16, #tpu.memory_space<vmem>>, vector<1x16x128xbf16>
      %87 = vector.shape_cast %86 : vector<1x16x128xbf16> to vector<16x128xbf16>
      %88 = vector.shape_cast %84 : vector<16x128xbf16> to vector<1x16x128xbf16>
      tpu.vector_store %arg4[%85, %c0_43, %c0_44], %88 {strides = array<i32>} : memref<9x16x128xbf16, #tpu.memory_space<vmem>>, vector<1x16x128xbf16>,
    } else {
    }
    %c9_i32_29 = arith.constant 9 : i32
    return
  }
  func.func @transform_0(%arg0: i32, %arg1: i32) -> (i32, i32, i32) {
    %c0_i32 = arith.constant 0 : i32
    %c0_i32_0 = arith.constant 0 : i32
    return %arg1, %arg0, %c0_i32 : i32, i32, i32
  }
  func.func @transform_1(%arg0: i32, %arg1: i32) -> (i32, i32) {
    %c0_i32 = arith.constant 0 : i32
    %c0_i32_0 = arith.constant 0 : i32
    %c0_i32_1 = arith.constant 0 : i32
    return %c0_i32, %c0_i32_0 : i32, i32
  }
  func.func @transform_2(%arg0: i32, %arg1: i32) -> (i32, i32, i32) {
    %c0_i32 = arith.constant 0 : i32
    %c0_i32_0 = arith.constant 0 : i32
    return %arg1, %arg0, %c0_i32 : i32, i32, i32
  }
}

module attributes {stable_mosaic.version = 11 : i64} {
  func.func @_matmul_kernel(%arg0: i32, %arg1: i32, %arg2: i32, %arg3: memref<144x128xbf16, #tpu.memory_space<vmem>>, %arg4: memref<128x256xbf16, #tpu.memory_space<vmem>>, %arg5: memref<1x256xf32, #tpu.memory_space<vmem>>, %arg6: memref<144x256xf32, #tpu.memory_space<vmem>>, %arg7: memref<144x256xf32, #tpu.memory_space<vmem>>) attributes {dimension_semantics = [#tpu.dimension_semantics<parallel>, #tpu.dimension_semantics<parallel>, #tpu.dimension_semantics<arbitrary>], iteration_bounds = array<i64: 1, 2, 1>, scalar_prefetch = 0 : i64, scratch_operands = 1 : i64, tpu.core_type = #tpu.core_type<tc>, window_params = [{transform_indices = @transform_0, window_bounds = array<i64: 144, 128>}, {transform_indices = @transform_1, window_bounds = array<i64: 128, 256>}, {transform_indices = @transform_2, window_bounds = array<i64: 1, 256>}, {transform_indices = @transform_3, window_bounds = array<i64: 144, 256>}]} {
    %c0_i32 = arith.constant 0 : i32
    %0 = arith.cmpi eq, %arg2, %c0_i32 : i32
    %1 = arith.extui %0 : i1 to i32
    %c0_i32_0 = arith.constant 0 : i32
    %2 = arith.cmpi ne, %1, %c0_i32_0 : i32
    scf.if %2 {
      %cst_10 = arith.constant 0.000000e+00 : f32
      %12 = vector.broadcast %cst_10 : f32 to vector<144x256xf32>
      %c0_11 = arith.constant 0 : index
      %c0_12 = arith.constant 0 : index
      %13 = vector.load %arg7[%c0_11, %c0_12] : memref<144x256xf32, #tpu.memory_space<vmem>>, vector<144x256xf32>
      tpu.vector_store %arg7[%c0_11, %c0_12], %12 {strides = array<i32>} : memref<144x256xf32, #tpu.memory_space<vmem>>, vector<144x256xf32>,
    } else {
    }
    %c0 = arith.constant 0 : index
    %c0_1 = arith.constant 0 : index
    %3 = vector.load %arg7[%c0, %c0_1] : memref<144x256xf32, #tpu.memory_space<vmem>>, vector<144x256xf32>
    %c0_2 = arith.constant 0 : index
    %c0_3 = arith.constant 0 : index
    %4 = vector.load %arg3[%c0_2, %c0_3] : memref<144x128xbf16, #tpu.memory_space<vmem>>, vector<144x128xbf16>
    %c0_4 = arith.constant 0 : index
    %c0_5 = arith.constant 0 : index
    %5 = vector.load %arg4[%c0_4, %c0_5] : memref<128x256xbf16, #tpu.memory_space<vmem>>, vector<128x256xbf16>
    %cst = arith.constant dense<0.000000e+00> : vector<144x256xf32>
    %6 = tpu.matmul %4, %5, %cst {dimension_numbers = #tpu.dot_dimension_numbers<[1], [0], [0], [1], [0, 0, 1, 1], [], []>} : vector<144x128xbf16>, vector<128x256xbf16>, vector<144x256xf32> -> vector<144x256xf32>
    %7 = arith.addf %3, %6 : vector<144x256xf32>
    %c0_6 = arith.constant 0 : index
    %c0_7 = arith.constant 0 : index
    %8 = vector.load %arg7[%c0_6, %c0_7] : memref<144x256xf32, #tpu.memory_space<vmem>>, vector<144x256xf32>
    tpu.vector_store %arg7[%c0_6, %c0_7], %7 {strides = array<i32>} : memref<144x256xf32, #tpu.memory_space<vmem>>, vector<144x256xf32>,
    %c0_i32_8 = arith.constant 0 : i32
    %9 = arith.cmpi eq, %arg2, %c0_i32_8 : i32
    %10 = arith.extui %9 : i1 to i32
    %c0_i32_9 = arith.constant 0 : i32
    %11 = arith.cmpi ne, %10, %c0_i32_9 : i32
    scf.if %11 {
      %c0_10 = arith.constant 0 : index
      %c0_11 = arith.constant 0 : index
      %12 = vector.load %arg7[%c0_10, %c0_11] : memref<144x256xf32, #tpu.memory_space<vmem>>, vector<144x256xf32>
      %c0_12 = arith.constant 0 : index
      %c0_13 = arith.constant 0 : index
      %13 = vector.load %arg5[%c0_12, %c0_13] : memref<1x256xf32, #tpu.memory_space<vmem>>, vector<1x256xf32>
      %14 = vector.broadcast %13 : vector<1x256xf32> to vector<144x256xf32>
      %15 = arith.addf %12, %14 : vector<144x256xf32>
      %c0_14 = arith.constant 0 : index
      %c0_15 = arith.constant 0 : index
      %16 = vector.load %arg6[%c0_14, %c0_15] : memref<144x256xf32, #tpu.memory_space<vmem>>, vector<144x256xf32>
      tpu.vector_store %arg6[%c0_14, %c0_15], %15 {strides = array<i32>} : memref<144x256xf32, #tpu.memory_space<vmem>>, vector<144x256xf32>,
    } else {
    }
    return
  }
  func.func @transform_0(%arg0: i32, %arg1: i32, %arg2: i32) -> (i32, i32) {
    %c0_i32 = arith.constant 0 : i32
    return %arg0, %arg2 : i32, i32
  }
  func.func @transform_1(%arg0: i32, %arg1: i32, %arg2: i32) -> (i32, i32) {
    %c0_i32 = arith.constant 0 : i32
    return %arg2, %arg1 : i32, i32
  }
  func.func @transform_2(%arg0: i32, %arg1: i32, %arg2: i32) -> (i32, i32) {
    %c0_i32 = arith.constant 0 : i32
    %c0_i32_0 = arith.constant 0 : i32
    return %c0_i32, %arg1 : i32, i32
  }
  func.func @transform_3(%arg0: i32, %arg1: i32, %arg2: i32) -> (i32, i32) {
    %c0_i32 = arith.constant 0 : i32
    return %arg0, %arg1 : i32, i32
  }
}

module attributes {stable_mosaic.version = 11 : i64} {
  func.func @_matmul_kernel(%arg0: i32, %arg1: i32, %arg2: i32, %arg3: memref<144x128xbf16, #tpu.memory_space<vmem>>, %arg4: memref<128x128xbf16, #tpu.memory_space<vmem>>, %arg5: memref<1x128xf32, #tpu.memory_space<vmem>>, %arg6: memref<144x128xf32, #tpu.memory_space<vmem>>, %arg7: memref<144x128xf32, #tpu.memory_space<vmem>>) attributes {dimension_semantics = [#tpu.dimension_semantics<parallel>, #tpu.dimension_semantics<parallel>, #tpu.dimension_semantics<arbitrary>], iteration_bounds = array<i64: 1, 1, 1>, scalar_prefetch = 0 : i64, scratch_operands = 1 : i64, tpu.core_type = #tpu.core_type<tc>, window_params = [{transform_indices = @transform_0, window_bounds = array<i64: 144, 128>}, {transform_indices = @transform_1, window_bounds = array<i64: 128, 128>}, {transform_indices = @transform_2, window_bounds = array<i64: 1, 128>}, {transform_indices = @transform_3, window_bounds = array<i64: 144, 128>}]} {
    %c0_i32 = arith.constant 0 : i32
    %0 = arith.cmpi eq, %arg2, %c0_i32 : i32
    %1 = arith.extui %0 : i1 to i32
    %c0_i32_0 = arith.constant 0 : i32
    %2 = arith.cmpi ne, %1, %c0_i32_0 : i32
    scf.if %2 {
      %cst_10 = arith.constant 0.000000e+00 : f32
      %12 = vector.broadcast %cst_10 : f32 to vector<144x128xf32>
      %c0_11 = arith.constant 0 : index
      %c0_12 = arith.constant 0 : index
      %13 = vector.load %arg7[%c0_11, %c0_12] : memref<144x128xf32, #tpu.memory_space<vmem>>, vector<144x128xf32>
      tpu.vector_store %arg7[%c0_11, %c0_12], %12 {strides = array<i32>} : memref<144x128xf32, #tpu.memory_space<vmem>>, vector<144x128xf32>,
    } else {
    }
    %c0 = arith.constant 0 : index
    %c0_1 = arith.constant 0 : index
    %3 = vector.load %arg7[%c0, %c0_1] : memref<144x128xf32, #tpu.memory_space<vmem>>, vector<144x128xf32>
    %c0_2 = arith.constant 0 : index
    %c0_3 = arith.constant 0 : index
    %4 = vector.load %arg3[%c0_2, %c0_3] : memref<144x128xbf16, #tpu.memory_space<vmem>>, vector<144x128xbf16>
    %c0_4 = arith.constant 0 : index
    %c0_5 = arith.constant 0 : index
    %5 = vector.load %arg4[%c0_4, %c0_5] : memref<128x128xbf16, #tpu.memory_space<vmem>>, vector<128x128xbf16>
    %cst = arith.constant dense<0.000000e+00> : vector<144x128xf32>
    %6 = tpu.matmul %4, %5, %cst {dimension_numbers = #tpu.dot_dimension_numbers<[1], [0], [0], [1], [0, 0, 1, 1], [], []>} : vector<144x128xbf16>, vector<128x128xbf16>, vector<144x128xf32> -> vector<144x128xf32>
    %7 = arith.addf %3, %6 : vector<144x128xf32>
    %c0_6 = arith.constant 0 : index
    %c0_7 = arith.constant 0 : index
    %8 = vector.load %arg7[%c0_6, %c0_7] : memref<144x128xf32, #tpu.memory_space<vmem>>, vector<144x128xf32>
    tpu.vector_store %arg7[%c0_6, %c0_7], %7 {strides = array<i32>} : memref<144x128xf32, #tpu.memory_space<vmem>>, vector<144x128xf32>,
    %c0_i32_8 = arith.constant 0 : i32
    %9 = arith.cmpi eq, %arg2, %c0_i32_8 : i32
    %10 = arith.extui %9 : i1 to i32
    %c0_i32_9 = arith.constant 0 : i32
    %11 = arith.cmpi ne, %10, %c0_i32_9 : i32
    scf.if %11 {
      %c0_10 = arith.constant 0 : index
      %c0_11 = arith.constant 0 : index
      %12 = vector.load %arg7[%c0_10, %c0_11] : memref<144x128xf32, #tpu.memory_space<vmem>>, vector<144x128xf32>
      %c0_12 = arith.constant 0 : index
      %c0_13 = arith.constant 0 : index
      %13 = vector.load %arg5[%c0_12, %c0_13] : memref<1x128xf32, #tpu.memory_space<vmem>>, vector<1x128xf32>
      %14 = vector.broadcast %13 : vector<1x128xf32> to vector<144x128xf32>
      %15 = arith.addf %12, %14 : vector<144x128xf32>
      %c0_14 = arith.constant 0 : index
      %c0_15 = arith.constant 0 : index
      %16 = vector.load %arg6[%c0_14, %c0_15] : memref<144x128xf32, #tpu.memory_space<vmem>>, vector<144x128xf32>
      tpu.vector_store %arg6[%c0_14, %c0_15], %15 {strides = array<i32>} : memref<144x128xf32, #tpu.memory_space<vmem>>, vector<144x128xf32>,
    } else {
    }
    return
  }
  func.func @transform_0(%arg0: i32, %arg1: i32, %arg2: i32) -> (i32, i32) {
    %c0_i32 = arith.constant 0 : i32
    return %arg0, %arg2 : i32, i32
  }
  func.func @transform_1(%arg0: i32, %arg1: i32, %arg2: i32) -> (i32, i32) {
    %c0_i32 = arith.constant 0 : i32
    return %arg2, %arg1 : i32, i32
  }
  func.func @transform_2(%arg0: i32, %arg1: i32, %arg2: i32) -> (i32, i32) {
    %c0_i32 = arith.constant 0 : i32
    %c0_i32_0 = arith.constant 0 : i32
    return %c0_i32, %arg1 : i32, i32
  }
  func.func @transform_3(%arg0: i32, %arg1: i32, %arg2: i32) -> (i32, i32) {
    %c0_i32 = arith.constant 0 : i32
    return %arg0, %arg1 : i32, i32
  }
}

</mosaic_0001>

<bundles_post_ra>
// kernel: image_captioning_forward.6
= control target key start
LH: loop header
LB: loop body
LE: loop exit
PB: predicated region body
PF: predicated region fallthrough
CT: control target
= control target key end

     0   :  { %s231_s1 = inlined_call_operand.vmem [shape: bf16[128,128], index: 1, kind: input, shape index: {}]   ;;  %s232_s2 = inlined_call_operand.vmem [shape: f32[1,128], index: 2, kind: input, shape index: {}]   ;;  %s233_s0 = inlined_call_operand.vmem [shape: bf16[16,128], index: 0, kind: input, shape index: {}]   ;;  %s234_s3 = inlined_call_operand.vmem [shape: f32[16,128], index: 3, kind: output, shape index: {}]  }
   0x1   :  { %v173_v0 = vld [vmem:[%s231_s1 + $0x38] sm:$0xff]  ;;  %v172_v1 = vld [vmem:[%s231_s1 + $0x30] sm:$0xff]  ;;  %v171_v2 = vld [vmem:[%s231_s1 + $0x28] sm:$0xff] }
   0x2   :  { %94 = vmatpush.bf16.msra.mxu0 %v173_v0  ;;  %v170_v3 = vld [vmem:[%s231_s1 + $0x20] sm:$0xff]  ;;  %v169_v4 = vld [vmem:[%s231_s1 + $0x18] sm:$0xff]  ;;  %v168_v5 = vld [vmem:[%s231_s1 + $0x10] sm:$0xff] }
   0x3   :  { %v167_v6 = vld [vmem:[%s231_s1 + $0x8] sm:$0xff]  ;;  %v166_v7 = vld [vmem:[%s231_s1] sm:$0xff] }
   0x4   :  { %v165_v8 = vld [vmem:[%s233_s0] sm:$0xff] }
   0x5   :  { %v174_v9 = vld [vmem:[%s232_s2] ss:$0 sm:$0xff] }
   0x6   :  { %95 = vmatpush.bf16.msra.mxu0 %v172_v1 }
   0xa   :  { %96 = vmatpush.bf16.msra.mxu0 %v171_v2 }
   0xe   :  { %97 = vmatpush.bf16.msra.mxu0 %v170_v3 }
  0x12   :  { %98 = vmatpush.bf16.msra.mxu0 %v169_v4 }
  0x16   :  { %99 = vmatpush.bf16.msra.mxu0 %v168_v5 }
  0x1a   :  { %100 = vmatpush.bf16.msra.mxu0 %v167_v6 }
  0x1e   :  { %101 = vmatpush.bf16.msra.mxu0 %v166_v7 }
  0x21   :  { %102 = vmatmul.bf16.vlgmr.msra.gmra.mxu0 %v165_v8 }
  0x9e   :  { %v103_v10 = vpop.f32.mrf.mxu0 }
  0x9f   :  { %v121_v11 = vadd.f32 %v174_v9, %v103_v10 }
  0xa1   :  { %123 = vst [vmem:[%s234_s3] sm:$0xff] %v121_v11 }
  0xa6   :  { %v105_v12 = vpop.f32.mrf.mxu0 }
  0xa7   :  { %v122_v13 = vadd.f32 %v174_v9, %v105_v12 }
  0xa9   :  { %124 = vst [vmem:[%s234_s3 + $0x8] sm:$0xff] %v122_v13 }

// kernel: image_captioning_forward.5
= control target key start
LH: loop header
LB: loop body
LE: loop exit
PB: predicated region body
PF: predicated region fallthrough
CT: control target
= control target key end

     0   :  { %s5497_s12 = smov 0   ;;  %s5499_s13 = smov 0   ;;  %s6393_s0 = inlined_call_operand.vmem [shape: bf16[16,256,128], index: 0, kind: input, shape index: {}]   ;;  %s6394_s1 = inlined_call_operand.vmem [shape: bf16[128,128], index: 1, kind: input, shape index: {}]   ;;  %s6395_s2 = inlined_call_operand.vmem [shape: f32[1,128], index: 2, kind: input, shape index: {}]   ;;  %s6396_s3 = inlined_call_operand.vmem [shape: f32[16,128], index: 3, kind: output, shape index: {}]  }
   0x1   :  { %s5501_s14 = smov 0  }
   0x2 LB: > { %s4707_s15 = sadd.s32 4294967295, %s5474_s14   ;;  %s5514_s16 = sadd.s32 1, %s5474_s14   ;;  %s5474_s14 = sphi %s5501_s14, %s6399_s14   ;;  %s5470_s13 = sphi %s5499_s13, %s6398_s13   ;;  %s5466_s12 = sphi %s5497_s12, %s6397_s12  }
   0x3   : > { %s17_s17 = ssub.s32 %s5474_s14, %s5514_s16  ;;  %s20_s18 = sadd.s32 1, %s5470_s13 }
   0x4   : > { %p18_p0 = scmp.eq.s32.totalorder %s17_s17, 0  ;;  %p27_p1 = scmp.ne.s32.totalorder %s5470_s13, %s5466_s12 }
   0x5   : > { %p28_p2 = scmp.eq.s32.totalorder %s5474_s14, 0  ;;  %p4709_p4 = scmp.ge.s32.totalorder %s5474_s14, 2 }
   0x6   : > { %s5523_s19 = scalar_select %p18_p0, %s5470_s13, %s20_s18  }
   0x7   : > { %p29_p3 = por %p28_p2, %p27_p1  ;;  %122 = sbr.rel (%p4709_p4) target bundleno = 144 (0x90), region = 24 }
   0xc   : > { %125 = sbr.rel (!%p29_p3) target bundleno = 144 (0x90), region = 28  ;;  %s127_s20 = sand.u32 (%p29_p3), 1, %s5470_s13  }
   0xd   : > { %s5263_s21 = sshll.u32 (%p29_p3), %s5474_s14, 6  ;;  %s4710_s22 = sshll.u32 (%p29_p3), %s127_s20, 10 }
   0xe   : > { %s5531_s25 = scalar_lea.vmem (%p29_p3), %s6393_s0, %s5263_s21  ;;  %s5536_s26 = scalar_lea.vmem (%p29_p3), [#allocation2], %s4710_s22 }
   0xf   : > { %v149_v0 = vld [vmem:[%s5531_s25] sm:$0xff] (%p29_p3)   ;;  %v153_v1 = vld [vmem:[%s5531_s25 + $0x8] sm:$0xff] (%p29_p3)   ;;  %v157_v2 = vld [vmem:[%s5531_s25 + $0x10] sm:$0xff] (%p29_p3)  }
  0x10   : > { %150 = vst [vmem:[%s5536_s26] sm:$0xff] (%p29_p3), %v149_v0   ;;  %v161_v3 = vld [vmem:[%s5531_s25 + $0x18] sm:$0xff] (%p29_p3)   ;;  %v165_v4 = vld [vmem:[%s5531_s25 + $0x20] sm:$0xff] (%p29_p3)   ;;  %v169_v5 = vld [vmem:[%s5531_s25 + $0x28] sm:$0xff] (%p29_p3)  }
  0x11   : > { %154 = vst [vmem:[%s5536_s26 + $0x8] sm:$0xff] %v153_v1   ;;  %v173_v6 = vld [vmem:[%s5531_s25 + $0x30] sm:$0xff]   ;;  %v177_v7 = vld [vmem:[%s5531_s25 + $0x38] sm:$0xff]   ;;  %v181_v8 = vld [vmem:[%s5531_s25 + $0x80] sm:$0xff]  }
  0x12   : > { %158 = vst [vmem:[%s5536_s26 + $0x10] sm:$0xff] %v157_v2   ;;  %v185_v9 = vld [vmem:[%s5531_s25 + $0x88] sm:$0xff]   ;;  %v189_v10 = vld [vmem:[%s5531_s25 + $0x90] sm:$0xff]   ;;  %v193_v11 = vld [vmem:[%s5531_s25 + $0x98] sm:$0xff]  }
  0x13   : > { %162 = vst [vmem:[%s5536_s26 + $0x18] sm:$0xff] %v161_v3   ;;  %v197_v12 = vld [vmem:[%s5531_s25 + $0xa0] sm:$0xff]   ;;  %v201_v13 = vld [vmem:[%s5531_s25 + $0xa8] sm:$0xff]   ;;  %v205_v14 = vld [vmem:[%s5531_s25 + $0xb0] sm:$0xff]  }
  0x14   : > { %166 = vst [vmem:[%s5536_s26 + $0x20] sm:$0xff] %v165_v4   ;;  %v209_v15 = vld [vmem:[%s5531_s25 + $0xb8] sm:$0xff]   ;;  %v213_v16 = vld [vmem:[%s5531_s25 + $0x100] sm:$0xff]   ;;  %v217_v17 = vld [vmem:[%s5531_s25 + $0x108] sm:$0xff]  }
  0x15   : > { %170 = vst [vmem:[%s5536_s26 + $0x28] sm:$0xff] %v169_v5   ;;  %v221_v18 = vld [vmem:[%s5531_s25 + $0x110] sm:$0xff]   ;;  %v225_v19 = vld [vmem:[%s5531_s25 + $0x118] sm:$0xff]   ;;  %v229_v20 = vld [vmem:[%s5531_s25 + $0x120] sm:$0xff]  }
  0x16   : > { %174 = vst [vmem:[%s5536_s26 + $0x30] sm:$0xff] %v173_v6   ;;  %v233_v21 = vld [vmem:[%s5531_s25 + $0x128] sm:$0xff]   ;;  %v237_v22 = vld [vmem:[%s5531_s25 + $0x130] sm:$0xff]   ;;  %v241_v23 = vld [vmem:[%s5531_s25 + $0x138] sm:$0xff]  }
  0x17   : > { %178 = vst [vmem:[%s5536_s26 + $0x38] sm:$0xff] %v177_v7   ;;  %v245_v24 = vld [vmem:[%s5531_s25 + $0x180] sm:$0xff]   ;;  %v249_v25 = vld [vmem:[%s5531_s25 + $0x188] sm:$0xff]   ;;  %v253_v26 = vld [vmem:[%s5531_s25 + $0x190] sm:$0xff]  }
  0x18   : > { %182 = vst [vmem:[%s5536_s26 + $0x40] sm:$0xff] %v181_v8   ;;  %v257_v27 = vld [vmem:[%s5531_s25 + $0x198] sm:$0xff]   ;;  %v261_v28 = vld [vmem:[%s5531_s25 + $0x1a0] sm:$0xff]   ;;  %v265_v29 = vld [vmem:[%s5531_s25 + $0x1a8] sm:$0xff]  }
  0x19   : > { %186 = vst [vmem:[%s5536_s26 + $0x48] sm:$0xff] %v185_v9   ;;  %v269_v30 = vld [vmem:[%s5531_s25 + $0x1b0] sm:$0xff]   ;;  %v273_v31 = vld [vmem:[%s5531_s25 + $0x1b8] sm:$0xff]   ;;  %v277_v32 = vld [vmem:[%s5531_s25 + $0x200] sm:$0xff]  }
  0x1a   : > { %190 = vst [vmem:[%s5536_s26 + $0x50] sm:$0xff] %v189_v10   ;;  %v281_v33 = vld [vmem:[%s5531_s25 + $0x208] sm:$0xff]   ;;  %v285_v34 = vld [vmem:[%s5531_s25 + $0x210] sm:$0xff]   ;;  %v289_v35 = vld [vmem:[%s5531_s25 + $0x218] sm:$0xff]  }
  0x1b   : > { %194 = vst [vmem:[%s5536_s26 + $0x58] sm:$0xff] %v193_v11   ;;  %v293_v36 = vld [vmem:[%s5531_s25 + $0x220] sm:$0xff]   ;;  %v297_v37 = vld [vmem:[%s5531_s25 + $0x228] sm:$0xff]   ;;  %v301_v38 = vld [vmem:[%s5531_s25 + $0x230] sm:$0xff]  }
  0x1c   : > { %198 = vst [vmem:[%s5536_s26 + $0x60] sm:$0xff] %v197_v12   ;;  %v305_v39 = vld [vmem:[%s5531_s25 + $0x238] sm:$0xff]   ;;  %v309_v40 = vld [vmem:[%s5531_s25 + $0x280] sm:$0xff]   ;;  %v313_v41 = vld [vmem:[%s5531_s25 + $0x288] sm:$0xff]  }
  0x1d   : > { %202 = vst [vmem:[%s5536_s26 + $0x68] sm:$0xff] %v201_v13   ;;  %v317_v42 = vld [vmem:[%s5531_s25 + $0x290] sm:$0xff]   ;;  %v321_v43 = vld [vmem:[%s5531_s25 + $0x298] sm:$0xff]   ;;  %v325_v44 = vld [vmem:[%s5531_s25 + $0x2a0] sm:$0xff]  }
  0x1e   : > { %206 = vst [vmem:[%s5536_s26 + $0x70] sm:$0xff] %v205_v14   ;;  %v329_v45 = vld [vmem:[%s5531_s25 + $0x2a8] sm:$0xff]   ;;  %v333_v46 = vld [vmem:[%s5531_s25 + $0x2b0] sm:$0xff]   ;;  %v337_v47 = vld [vmem:[%s5531_s25 + $0x2b8] sm:$0xff]  }
  0x1f   : > { %210 = vst [vmem:[%s5536_s26 + $0x78] sm:$0xff] %v209_v15   ;;  %v341_v48 = vld [vmem:[%s5531_s25 + $0x300] sm:$0xff]   ;;  %v345_v49 = vld [vmem:[%s5531_s25 + $0x308] sm:$0xff]   ;;  %v349_v50 = vld [vmem:[%s5531_s25 + $0x310] sm:$0xff]  }
  0x20   : > { %214 = vst [vmem:[%s5536_s26 + $0x80] sm:$0xff] %v213_v16   ;;  %v353_v51 = vld [vmem:[%s5531_s25 + $0x318] sm:$0xff]   ;;  %v357_v52 = vld [vmem:[%s5531_s25 + $0x320] sm:$0xff]   ;;  %v361_v53 = vld [vmem:[%s5531_s25 + $0x328] sm:$0xff]  }
  0x21   : > { %218 = vst [vmem:[%s5536_s26 + $0x88] sm:$0xff] %v217_v17   ;;  %v365_v54 = vld [vmem:[%s5531_s25 + $0x330] sm:$0xff]   ;;  %v369_v55 = vld [vmem:[%s5531_s25 + $0x338] sm:$0xff]   ;;  %v373_v56 = vld [vmem:[%s5531_s25 + $0x380] sm:$0xff]  }
  0x22   : > { %222 = vst [vmem:[%s5536_s26 + $0x90] sm:$0xff] %v221_v18   ;;  %v377_v57 = vld [vmem:[%s5531_s25 + $0x388] sm:$0xff]   ;;  %v381_v58 = vld [vmem:[%s5531_s25 + $0x390] sm:$0xff]   ;;  %v385_v59 = vld [vmem:[%s5531_s25 + $0x398] sm:$0xff]  }
  0x23   : > { %226 = vst [vmem:[%s5536_s26 + $0x98] sm:$0xff] %v225_v19   ;;  %v389_v60 = vld [vmem:[%s5531_s25 + $0x3a0] sm:$0xff]   ;;  %v393_v61 = vld [vmem:[%s5531_s25 + $0x3a8] sm:$0xff]   ;;  %v397_v62 = vld [vmem:[%s5531_s25 + $0x3b0] sm:$0xff]  }
  0x24   : > { %230 = vst [vmem:[%s5536_s26 + $0xa0] sm:$0xff] %v229_v20   ;;  %v401_v63 = vld [vmem:[%s5531_s25 + $0x3b8] sm:$0xff]   ;;  %v405_v0 = vld [vmem:[%s5531_s25 + $0x400] sm:$0xff]   ;;  %v409_v1 = vld [vmem:[%s5531_s25 + $0x408] sm:$0xff]  }
  0x25   : > { %234 = vst [vmem:[%s5536_s26 + $0xa8] sm:$0xff] %v233_v21   ;;  %v413_v2 = vld [vmem:[%s5531_s25 + $0x410] sm:$0xff]   ;;  %v417_v3 = vld [vmem:[%s5531_s25 + $0x418] sm:$0xff]   ;;  %v421_v4 = vld [vmem:[%s5531_s25 + $0x420] sm:$0xff]  }
  0x26   : > { %238 = vst [vmem:[%s5536_s26 + $0xb0] sm:$0xff] %v237_v22   ;;  %v425_v5 = vld [vmem:[%s5531_s25 + $0x428] sm:$0xff]   ;;  %v429_v6 = vld [vmem:[%s5531_s25 + $0x430] sm:$0xff]   ;;  %v433_v7 = vld [vmem:[%s5531_s25 + $0x438] sm:$0xff]  }
  0x27   : > { %242 = vst [vmem:[%s5536_s26 + $0xb8] sm:$0xff] %v241_v23   ;;  %v437_v8 = vld [vmem:[%s5531_s25 + $0x480] sm:$0xff]   ;;  %v441_v9 = vld [vmem:[%s5531_s25 + $0x488] sm:$0xff]   ;;  %v445_v10 = vld [vmem:[%s5531_s25 + $0x490] sm:$0xff]  }
  0x28   : > { %246 = vst [vmem:[%s5536_s26 + $0xc0] sm:$0xff] %v245_v24   ;;  %v449_v11 = vld [vmem:[%s5531_s25 + $0x498] sm:$0xff]   ;;  %v453_v12 = vld [vmem:[%s5531_s25 + $0x4a0] sm:$0xff]   ;;  %v457_v13 = vld [vmem:[%s5531_s25 + $0x4a8] sm:$0xff]  }
  0x29   : > { %250 = vst [vmem:[%s5536_s26 + $0xc8] sm:$0xff] %v249_v25   ;;  %v461_v14 = vld [vmem:[%s5531_s25 + $0x4b0] sm:$0xff]   ;;  %v465_v15 = vld [vmem:[%s5531_s25 + $0x4b8] sm:$0xff]   ;;  %v469_v16 = vld [vmem:[%s5531_s25 + $0x500] sm:$0xff]  }
  0x2a   : > { %254 = vst [vmem:[%s5536_s26 + $0xd0] sm:$0xff] %v253_v26   ;;  %v473_v17 = vld [vmem:[%s5531_s25 + $0x508] sm:$0xff]   ;;  %v477_v18 = vld [vmem:[%s5531_s25 + $0x510] sm:$0xff]   ;;  %v481_v19 = vld [vmem:[%s5531_s25 + $0x518] sm:$0xff]  }
  0x2b   : > { %258 = vst [vmem:[%s5536_s26 + $0xd8] sm:$0xff] %v257_v27   ;;  %v485_v20 = vld [vmem:[%s5531_s25 + $0x520] sm:$0xff]   ;;  %v489_v21 = vld [vmem:[%s5531_s25 + $0x528] sm:$0xff]   ;;  %v493_v22 = vld [vmem:[%s5531_s25 + $0x530] sm:$0xff]  }
  0x2c   : > { %262 = vst [vmem:[%s5536_s26 + $0xe0] sm:$0xff] %v261_v28   ;;  %v497_v23 = vld [vmem:[%s5531_s25 + $0x538] sm:$0xff]   ;;  %v501_v24 = vld [vmem:[%s5531_s25 + $0x580] sm:$0xff]   ;;  %v505_v25 = vld [vmem:[%s5531_s25 + $0x588] sm:$0xff]  }
  0x2d   : > { %266 = vst [vmem:[%s5536_s26 + $0xe8] sm:$0xff] %v265_v29   ;;  %v509_v26 = vld [vmem:[%s5531_s25 + $0x590] sm:$0xff]   ;;  %v513_v27 = vld [vmem:[%s5531_s25 + $0x598] sm:$0xff]   ;;  %v517_v28 = vld [vmem:[%s5531_s25 + $0x5a0] sm:$0xff]  }
  0x2e   : > { %270 = vst [vmem:[%s5536_s26 + $0xf0] sm:$0xff] %v269_v30   ;;  %v521_v29 = vld [vmem:[%s5531_s25 + $0x5a8] sm:$0xff]   ;;  %v525_v30 = vld [vmem:[%s5531_s25 + $0x5b0] sm:$0xff]  }
  0x2f   : > { %274 = vst [vmem:[%s5536_s26 + $0xf8] sm:$0xff] %v273_v31   ;;  %v529_v31 = vld [vmem:[%s5531_s25 + $0x5b8] sm:$0xff]  }
  0x30   : > { %278 = vst [vmem:[%s5536_s26 + $0x100] sm:$0xff] %v277_v32   ;;  %v533_v32 = vld [vmem:[%s5531_s25 + $0x600] sm:$0xff]  }
  0x31   : > { %282 = vst [vmem:[%s5536_s26 + $0x108] sm:$0xff] %v281_v33   ;;  %v537_v33 = vld [vmem:[%s5531_s25 + $0x608] sm:$0xff]  }
  0x32   : > { %286 = vst [vmem:[%s5536_s26 + $0x110] sm:$0xff] %v285_v34   ;;  %v541_v34 = vld [vmem:[%s5531_s25 + $0x610] sm:$0xff]  }
  0x33   : > { %290 = vst [vmem:[%s5536_s26 + $0x118] sm:$0xff] %v289_v35   ;;  %v545_v35 = vld [vmem:[%s5531_s25 + $0x618] sm:$0xff]  }
  0x34   : > { %294 = vst [vmem:[%s5536_s26 + $0x120] sm:$0xff] %v293_v36   ;;  %v549_v36 = vld [vmem:[%s5531_s25 + $0x620] sm:$0xff]  }
  0x35   : > { %298 = vst [vmem:[%s5536_s26 + $0x128] sm:$0xff] %v297_v37   ;;  %v553_v37 = vld [vmem:[%s5531_s25 + $0x628] sm:$0xff]  }
  0x36   : > { %302 = vst [vmem:[%s5536_s26 + $0x130] sm:$0xff] %v301_v38   ;;  %v557_v38 = vld [vmem:[%s5531_s25 + $0x630] sm:$0xff]  }
  0x37   : > { %306 = vst [vmem:[%s5536_s26 + $0x138] sm:$0xff] %v305_v39   ;;  %v561_v39 = vld [vmem:[%s5531_s25 + $0x638] sm:$0xff]  }
  0x38   : > { %310 = vst [vmem:[%s5536_s26 + $0x140] sm:$0xff] %v309_v40   ;;  %v565_v40 = vld [vmem:[%s5531_s25 + $0x680] sm:$0xff]  }
  0x39   : > { %314 = vst [vmem:[%s5536_s26 + $0x148] sm:$0xff] %v313_v41   ;;  %v569_v41 = vld [vmem:[%s5531_s25 + $0x688] sm:$0xff]  }
  0x3a   : > { %318 = vst [vmem:[%s5536_s26 + $0x150] sm:$0xff] %v317_v42   ;;  %v573_v42 = vld [vmem:[%s5531_s25 + $0x690] sm:$0xff]  }
  0x3b   : > { %322 = vst [vmem:[%s5536_s26 + $0x158] sm:$0xff] %v321_v43   ;;  %v577_v43 = vld [vmem:[%s5531_s25 + $0x698] sm:$0xff]  }
  0x3c   : > { %326 = vst [vmem:[%s5536_s26 + $0x160] sm:$0xff] %v325_v44   ;;  %v581_v44 = vld [vmem:[%s5531_s25 + $0x6a0] sm:$0xff]  }
  0x3d   : > { %330 = vst [vmem:[%s5536_s26 + $0x168] sm:$0xff] %v329_v45   ;;  %v585_v45 = vld [vmem:[%s5531_s25 + $0x6a8] sm:$0xff]  }
  0x3e   : > { %334 = vst [vmem:[%s5536_s26 + $0x170] sm:$0xff] %v333_v46   ;;  %v589_v46 = vld [vmem:[%s5531_s25 + $0x6b0] sm:$0xff]  }
  0x3f   : > { %338 = vst [vmem:[%s5536_s26 + $0x178] sm:$0xff] %v337_v47   ;;  %v593_v47 = vld [vmem:[%s5531_s25 + $0x6b8] sm:$0xff]  }
  0x40   : > { %342 = vst [vmem:[%s5536_s26 + $0x180] sm:$0xff] %v341_v48   ;;  %v597_v48 = vld [vmem:[%s5531_s25 + $0x700] sm:$0xff]  }
  0x41   : > { %346 = vst [vmem:[%s5536_s26 + $0x188] sm:$0xff] %v345_v49   ;;  %v601_v49 = vld [vmem:[%s5531_s25 + $0x708] sm:$0xff]  }
  0x42   : > { %350 = vst [vmem:[%s5536_s26 + $0x190] sm:$0xff] %v349_v50   ;;  %v605_v50 = vld [vmem:[%s5531_s25 + $0x710] sm:$0xff]  }
  0x43   : > { %354 = vst [vmem:[%s5536_s26 + $0x198] sm:$0xff] %v353_v51   ;;  %v609_v51 = vld [vmem:[%s5531_s25 + $0x718] sm:$0xff]  }
  0x44   : > { %358 = vst [vmem:[%s5536_s26 + $0x1a0] sm:$0xff] %v357_v52   ;;  %v613_v52 = vld [vmem:[%s5531_s25 + $0x720] sm:$0xff]  }
  0x45   : > { %362 = vst [vmem:[%s5536_s26 + $0x1a8] sm:$0xff] %v361_v53   ;;  %v617_v53 = vld [vmem:[%s5531_s25 + $0x728] sm:$0xff]  }
  0x46   : > { %366 = vst [vmem:[%s5536_s26 + $0x1b0] sm:$0xff] %v365_v54   ;;  %v621_v54 = vld [vmem:[%s5531_s25 + $0x730] sm:$0xff]  }
  0x47   : > { %370 = vst [vmem:[%s5536_s26 + $0x1b8] sm:$0xff] %v369_v55   ;;  %v625_v55 = vld [vmem:[%s5531_s25 + $0x738] sm:$0xff]  }
  0x48   : > { %374 = vst [vmem:[%s5536_s26 + $0x1c0] sm:$0xff] %v373_v56   ;;  %v629_v56 = vld [vmem:[%s5531_s25 + $0x780] sm:$0xff]  }
  0x49   : > { %378 = vst [vmem:[%s5536_s26 + $0x1c8] sm:$0xff] %v377_v57   ;;  %v633_v57 = vld [vmem:[%s5531_s25 + $0x788] sm:$0xff]  }
  0x4a   : > { %382 = vst [vmem:[%s5536_s26 + $0x1d0] sm:$0xff] %v381_v58   ;;  %v637_v58 = vld [vmem:[%s5531_s25 + $0x790] sm:$0xff]  }
  0x4b   : > { %386 = vst [vmem:[%s5536_s26 + $0x1d8] sm:$0xff] %v385_v59   ;;  %v641_v59 = vld [vmem:[%s5531_s25 + $0x798] sm:$0xff]  }
  0x4c   : > { %390 = vst [vmem:[%s5536_s26 + $0x1e0] sm:$0xff] %v389_v60   ;;  %v645_v60 = vld [vmem:[%s5531_s25 + $0x7a0] sm:$0xff]  }
  0x4d   : > { %394 = vst [vmem:[%s5536_s26 + $0x1e8] sm:$0xff] %v393_v61   ;;  %v649_v61 = vld [vmem:[%s5531_s25 + $0x7a8] sm:$0xff]  }
  0x4e   : > { %398 = vst [vmem:[%s5536_s26 + $0x1f0] sm:$0xff] %v397_v62   ;;  %v653_v62 = vld [vmem:[%s5531_s25 + $0x7b0] sm:$0xff]  }
  0x4f   : > { %402 = vst [vmem:[%s5536_s26 + $0x1f8] sm:$0xff] %v401_v63   ;;  %v657_v63 = vld [vmem:[%s5531_s25 + $0x7b8] sm:$0xff]  }
  0x50   : > { %406 = vst [vmem:[%s5536_s26 + $0x200] sm:$0xff] %v405_v0  }
  0x51   : > { %410 = vst [vmem:[%s5536_s26 + $0x208] sm:$0xff] %v409_v1  }
  0x52   : > { %414 = vst [vmem:[%s5536_s26 + $0x210] sm:$0xff] %v413_v2  }
  0x53   : > { %418 = vst [vmem:[%s5536_s26 + $0x218] sm:$0xff] %v417_v3  }
  0x54   : > { %422 = vst [vmem:[%s5536_s26 + $0x220] sm:$0xff] %v421_v4  }
  0x55   : > { %426 = vst [vmem:[%s5536_s26 + $0x228] sm:$0xff] %v425_v5  }
  0x56   : > { %430 = vst [vmem:[%s5536_s26 + $0x230] sm:$0xff] %v429_v6  }
  0x57   : > { %434 = vst [vmem:[%s5536_s26 + $0x238] sm:$0xff] %v433_v7  }
  0x58   : > { %438 = vst [vmem:[%s5536_s26 + $0x240] sm:$0xff] %v437_v8  }
  0x59   : > { %442 = vst [vmem:[%s5536_s26 + $0x248] sm:$0xff] %v441_v9  }
  0x5a   : > { %446 = vst [vmem:[%s5536_s26 + $0x250] sm:$0xff] %v445_v10  }
  0x5b   : > { %450 = vst [vmem:[%s5536_s26 + $0x258] sm:$0xff] %v449_v11  }
  0x5c   : > { %454 = vst [vmem:[%s5536_s26 + $0x260] sm:$0xff] %v453_v12  }
  0x5d   : > { %458 = vst [vmem:[%s5536_s26 + $0x268] sm:$0xff] %v457_v13  }
  0x5e   : > { %462 = vst [vmem:[%s5536_s26 + $0x270] sm:$0xff] %v461_v14  }
  0x5f   : > { %466 = vst [vmem:[%s5536_s26 + $0x278] sm:$0xff] %v465_v15  }
  0x60   : > { %470 = vst [vmem:[%s5536_s26 + $0x280] sm:$0xff] %v469_v16  }
  0x61   : > { %474 = vst [vmem:[%s5536_s26 + $0x288] sm:$0xff] %v473_v17  }
  0x62   : > { %478 = vst [vmem:[%s5536_s26 + $0x290] sm:$0xff] %v477_v18  }
  0x63   : > { %482 = vst [vmem:[%s5536_s26 + $0x298] sm:$0xff] %v481_v19  }
  0x64   : > { %486 = vst [vmem:[%s5536_s26 + $0x2a0] sm:$0xff] %v485_v20  }
  0x65   : > { %490 = vst [vmem:[%s5536_s26 + $0x2a8] sm:$0xff] %v489_v21  }
  0x66   : > { %494 = vst [vmem:[%s5536_s26 + $0x2b0] sm:$0xff] %v493_v22  }
  0x67   : > { %498 = vst [vmem:[%s5536_s26 + $0x2b8] sm:$0xff] %v497_v23  }
  0x68   : > { %502 = vst [vmem:[%s5536_s26 + $0x2c0] sm:$0xff] %v501_v24  }
  0x69   : > { %506 = vst [vmem:[%s5536_s26 + $0x2c8] sm:$0xff] %v505_v25  }
  0x6a   : > { %510 = vst [vmem:[%s5536_s26 + $0x2d0] sm:$0xff] %v509_v26  }
  0x6b   : > { %514 = vst [vmem:[%s5536_s26 + $0x2d8] sm:$0xff] %v513_v27  }
  0x6c   : > { %518 = vst [vmem:[%s5536_s26 + $0x2e0] sm:$0xff] %v517_v28  }
  0x6d   : > { %522 = vst [vmem:[%s5536_s26 + $0x2e8] sm:$0xff] %v521_v29  }
  0x6e   : > { %526 = vst [vmem:[%s5536_s26 + $0x2f0] sm:$0xff] %v525_v30  }
  0x6f   : > { %530 = vst [vmem:[%s5536_s26 + $0x2f8] sm:$0xff] %v529_v31  }
  0x70   : > { %534 = vst [vmem:[%s5536_s26 + $0x300] sm:$0xff] %v533_v32  }
  0x71   : > { %538 = vst [vmem:[%s5536_s26 + $0x308] sm:$0xff] %v537_v33  }
  0x72   : > { %542 = vst [vmem:[%s5536_s26 + $0x310] sm:$0xff] %v541_v34  }
  0x73   : > { %546 = vst [vmem:[%s5536_s26 + $0x318] sm:$0xff] %v545_v35  }
  0x74   : > { %550 = vst [vmem:[%s5536_s26 + $0x320] sm:$0xff] %v549_v36  }
  0x75   : > { %554 = vst [vmem:[%s5536_s26 + $0x328] sm:$0xff] %v553_v37  }
  0x76   : > { %558 = vst [vmem:[%s5536_s26 + $0x330] sm:$0xff] %v557_v38  }
  0x77   : > { %562 = vst [vmem:[%s5536_s26 + $0x338] sm:$0xff] %v561_v39  }
  0x78   : > { %566 = vst [vmem:[%s5536_s26 + $0x340] sm:$0xff] %v565_v40  }
  0x79   : > { %570 = vst [vmem:[%s5536_s26 + $0x348] sm:$0xff] %v569_v41  }
  0x7a   : > { %574 = vst [vmem:[%s5536_s26 + $0x350] sm:$0xff] %v573_v42  }
  0x7b   : > { %578 = vst [vmem:[%s5536_s26 + $0x358] sm:$0xff] %v577_v43  }
  0x7c   : > { %582 = vst [vmem:[%s5536_s26 + $0x360] sm:$0xff] %v581_v44  }
  0x7d   : > { %586 = vst [vmem:[%s5536_s26 + $0x368] sm:$0xff] %v585_v45  }
  0x7e   : > { %590 = vst [vmem:[%s5536_s26 + $0x370] sm:$0xff] %v589_v46  }
  0x7f   : > { %594 = vst [vmem:[%s5536_s26 + $0x378] sm:$0xff] %v593_v47  }
  0x80   : > { %598 = vst [vmem:[%s5536_s26 + $0x380] sm:$0xff] %v597_v48  }
  0x81   : > { %602 = vst [vmem:[%s5536_s26 + $0x388] sm:$0xff] %v601_v49  }
  0x82   : > { %606 = vst [vmem:[%s5536_s26 + $0x390] sm:$0xff] %v605_v50  }
  0x83   : > { %610 = vst [vmem:[%s5536_s26 + $0x398] sm:$0xff] %v609_v51  }
  0x84   : > { %614 = vst [vmem:[%s5536_s26 + $0x3a0] sm:$0xff] %v613_v52  }
  0x85   : > { %618 = vst [vmem:[%s5536_s26 + $0x3a8] sm:$0xff] %v617_v53  }
  0x86   : > { %622 = vst [vmem:[%s5536_s26 + $0x3b0] sm:$0xff] %v621_v54  }
  0x87   : > { %626 = vst [vmem:[%s5536_s26 + $0x3b8] sm:$0xff] %v625_v55  }
  0x88   : > { %630 = vst [vmem:[%s5536_s26 + $0x3c0] sm:$0xff] %v629_v56  }
  0x89   : > { %634 = vst [vmem:[%s5536_s26 + $0x3c8] sm:$0xff] %v633_v57  }
  0x8a   : > { %638 = vst [vmem:[%s5536_s26 + $0x3d0] sm:$0xff] %v637_v58  }
  0x8b   : > { %642 = vst [vmem:[%s5536_s26 + $0x3d8] sm:$0xff] %v641_v59  }
  0x8c   : > { %646 = vst [vmem:[%s5536_s26 + $0x3e0] sm:$0xff] %v645_v60  }
  0x8d   : > { %650 = vst [vmem:[%s5536_s26 + $0x3e8] sm:$0xff] %v649_v61  }
  0x8e   : > { %654 = vst [vmem:[%s5536_s26 + $0x3f0] sm:$0xff] %v653_v62  }
  0x8f   : > { %658 = vst [vmem:[%s5536_s26 + $0x3f8] sm:$0xff] %v657_v63  }
  0x90 PF: > { %p4713_p5 = scmp.ge.s32.totalorder %s5474_s14, 1  ;;  %p2245_p6 = scmp.lt.s32.totalorder %s5474_s14, 3 }
  0x92   : > { %p2246_p7 = pnand %p4713_p5, %p2245_p6 }
  0x93   : > { %s2252_s27 = sand.u32 (!%p2246_p7), 1, %s5466_s12   ;;  %p4715_p8 = scmp.ne.s32.totalorder (!%p2246_p7), %s4707_s15, 0 }
  0x94   : > { %2249 = sbr.rel (%p2246_p7) target bundleno = 866 (0x362), region = 80  ;;  %s4714_s28 = sshll.u32 (!%p2246_p7), %s2252_s27, 10 }
  0x95   : > { %s5794_s29 = scalar_lea.vmem (!%p2246_p7), [#allocation2], %s4714_s28 }
  0x99   : > { %2274 = sbr.rel (%p4715_p8) target bundleno = 161 (0xa1), region = 88 }
  0x9e   : > { %v5476_v0 = vmov 0.0  }
  0x9f   : > { %2275 = vst [vmem:[%s6396_s3] sm:$0xff] %v5476_v0 }
  0xa0   : > { %2276 = vst [vmem:[%s6396_s3 + $0x8] sm:$0xff] %v5476_v0 }
  0xa1 PF: > { %v5399_v1 = vld [vmem:[%s6394_s1 + $0x38] sm:$0xff]  ;;  %v5398_v2 = vld [vmem:[%s6394_s1 + $0x30] sm:$0xff]  ;;  %v5397_v3 = vld [vmem:[%s6394_s1 + $0x28] sm:$0xff]  ;;  %vm4628_vm0 = vcmask 1041409   ;;  %vm4630_vm1 = vcmask 1042434   ;;  %vm4632_vm2 = vcmask 1043459  }
  0xa2   : > { %3369 = vmatpush.bf16.msra.mxu0 %v5399_v1  ;;  %5400 = vmatpush.bf16.msra.mxu1 %v5399_v1  ;;  %v5396_v4 = vld [vmem:[%s6394_s1 + $0x20] sm:$0xff]  ;;  %v5395_v5 = vld [vmem:[%s6394_s1 + $0x18] sm:$0xff]  ;;  %v5394_v6 = vld [vmem:[%s6394_s1 + $0x10] sm:$0xff]  ;;  %vm4634_vm3 = vcmask 1044484   ;;  %vm4636_vm4 = vcmask 1045509   ;;  %vm4638_vm5 = vcmask 1046534  }
  0xa3   : > { %5401 = vmatpush.bf16.msra.mxu2 %v5399_v1  ;;  %5402 = vmatpush.bf16.msra.mxu3 %v5399_v1  ;;  %v5393_v7 = vld [vmem:[%s6394_s1 + $0x8] sm:$0xff]  ;;  %v5392_v8 = vld [vmem:[%s6394_s1] sm:$0xff]  ;;  %v5266_v17 = vld [vmem:[%s5794_s29 + $0x10] sm:$0xff]  ;;  %vm4640_vm6 = vcmask 1047559   ;;  %p5260_p9 = scmp.ne.s32.totalorder %s4707_s15, 1 }
  0xa4   : > { %v5264_v9 = vld [vmem:[%s5794_s29] sm:$0xff]  ;;  %v5265_v13 = vld [vmem:[%s5794_s29 + $0x8] sm:$0xff]  ;;  %v5298_v18 = vld [vmem:[%s5794_s29 + $0x110] sm:$0xff] }
  0xa5   : > { %v5296_v10 = vld [vmem:[%s5794_s29 + $0x100] sm:$0xff]  ;;  %v5297_v14 = vld [vmem:[%s5794_s29 + $0x108] sm:$0xff]  ;;  %v5330_v19 = vld [vmem:[%s5794_s29 + $0x210] sm:$0xff] }
  0xa6   : > { %3370 = vmatpush.bf16.msra.mxu0 %v5398_v2  ;;  %5403 = vmatpush.bf16.msra.mxu1 %v5398_v2  ;;  %v5328_v11 = vld [vmem:[%s5794_s29 + $0x200] sm:$0xff]  ;;  %v5329_v15 = vld [vmem:[%s5794_s29 + $0x208] sm:$0xff]  ;;  %v5362_v20 = vld [vmem:[%s5794_s29 + $0x310] sm:$0xff] }
  0xa7   : > { %5404 = vmatpush.bf16.msra.mxu2 %v5398_v2  ;;  %5405 = vmatpush.bf16.msra.mxu3 %v5398_v2  ;;  %v5360_v12 = vld [vmem:[%s5794_s29 + $0x300] sm:$0xff]  ;;  %v5361_v16 = vld [vmem:[%s5794_s29 + $0x308] sm:$0xff]  ;;  %v5267_v21 = vld [vmem:[%s5794_s29 + $0x18] sm:$0xff] }
  0xa8   : > { %v5299_v22 = vld [vmem:[%s5794_s29 + $0x118] sm:$0xff]  ;;  %v5268_v25 = vld [vmem:[%s5794_s29 + $0x20] sm:$0xff]  ;;  %v5269_v29 = vld [vmem:[%s5794_s29 + $0x28] sm:$0xff] }
  0xa9   : > { %v5331_v23 = vld [vmem:[%s5794_s29 + $0x218] sm:$0xff]  ;;  %v5300_v26 = vld [vmem:[%s5794_s29 + $0x120] sm:$0xff]  ;;  %v5301_v30 = vld [vmem:[%s5794_s29 + $0x128] sm:$0xff] }
  0xaa   : > { %3371 = vmatpush.bf16.msra.mxu0 %v5397_v3  ;;  %5406 = vmatpush.bf16.msra.mxu1 %v5397_v3  ;;  %v5363_v24 = vld [vmem:[%s5794_s29 + $0x318] sm:$0xff]  ;;  %v5332_v27 = vld [vmem:[%s5794_s29 + $0x220] sm:$0xff]  ;;  %v5333_v31 = vld [vmem:[%s5794_s29 + $0x228] sm:$0xff] }
  0xab   : > { %5407 = vmatpush.bf16.msra.mxu2 %v5397_v3  ;;  %5408 = vmatpush.bf16.msra.mxu3 %v5397_v3  ;;  %v5364_v28 = vld [vmem:[%s5794_s29 + $0x320] sm:$0xff]  ;;  %v5365_v32 = vld [vmem:[%s5794_s29 + $0x328] sm:$0xff]  ;;  %v5270_v33 = vld [vmem:[%s5794_s29 + $0x30] sm:$0xff] }
  0xac   : > { %v5302_v34 = vld [vmem:[%s5794_s29 + $0x130] sm:$0xff]  ;;  %v5271_v37 = vld [vmem:[%s5794_s29 + $0x38] sm:$0xff]  ;;  %v5272_v41 = vld [vmem:[%s5794_s29 + $0x40] sm:$0xff] }
  0xad   : > { %v5334_v35 = vld [vmem:[%s5794_s29 + $0x230] sm:$0xff]  ;;  %v5303_v38 = vld [vmem:[%s5794_s29 + $0x138] sm:$0xff]  ;;  %v5304_v42 = vld [vmem:[%s5794_s29 + $0x140] sm:$0xff] }
  0xae   : > { %3372 = vmatpush.bf16.msra.mxu0 %v5396_v4  ;;  %5409 = vmatpush.bf16.msra.mxu1 %v5396_v4  ;;  %v5366_v36 = vld [vmem:[%s5794_s29 + $0x330] sm:$0xff]  ;;  %v5335_v39 = vld [vmem:[%s5794_s29 + $0x238] sm:$0xff]  ;;  %v5336_v45 = vld [vmem:[%s5794_s29 + $0x240] sm:$0xff] }
  0xaf   : > { %5410 = vmatpush.bf16.msra.mxu2 %v5396_v4  ;;  %5411 = vmatpush.bf16.msra.mxu3 %v5396_v4  ;;  %v5367_v40 = vld [vmem:[%s5794_s29 + $0x338] sm:$0xff]  ;;  %v5368_v46 = vld [vmem:[%s5794_s29 + $0x340] sm:$0xff]  ;;  %v5273_v2 = vld [vmem:[%s5794_s29 + $0x48] sm:$0xff] }
  0xb0   : > { %v5867_v47 = vld [vmem:[%s6395_s2] ss:$0 sm:$0xff]  ;;  %v5305_v3 = vld [vmem:[%s5794_s29 + $0x148] sm:$0xff] }
  0xb2   : > { %3373 = vmatpush.bf16.msra.mxu0 %v5395_v5  ;;  %5412 = vmatpush.bf16.msra.mxu1 %v5395_v5 }
  0xb3   : > { %5413 = vmatpush.bf16.msra.mxu2 %v5395_v5  ;;  %5414 = vmatpush.bf16.msra.mxu3 %v5395_v5 }
  0xb6   : > { %3374 = vmatpush.bf16.msra.mxu0 %v5394_v6  ;;  %5415 = vmatpush.bf16.msra.mxu1 %v5394_v6 }
  0xb7   : > { %5416 = vmatpush.bf16.msra.mxu2 %v5394_v6  ;;  %5417 = vmatpush.bf16.msra.mxu3 %v5394_v6 }
  0xba   : > { %3375 = vmatpush.bf16.msra.mxu0 %v5393_v7  ;;  %5418 = vmatpush.bf16.msra.mxu1 %v5393_v7 }
  0xbb   : > { %5419 = vmatpush.bf16.msra.mxu2 %v5393_v7  ;;  %5420 = vmatpush.bf16.msra.mxu3 %v5393_v7 }
  0xbe   : > { %3376 = vmatpush.bf16.msra.mxu0 %v5392_v8  ;;  %5421 = vmatpush.bf16.msra.mxu1 %v5392_v8 }
  0xbf   : > { %5422 = vmatpush.bf16.msra.mxu2 %v5392_v8  ;;  %5423 = vmatpush.bf16.msra.mxu3 %v5392_v8  ;;  %v5337_v8 = vld [vmem:[%s5794_s29 + $0x248] sm:$0xff] }
  0xc1   : > { %3377 = vmatmul.bf16.vlgmr.msra.gmra.mxu0 %v5264_v9  ;;  %3537 = vmatmul.bf16.vlgmr.msra.gmra.mxu1 %v5296_v10  ;;  %v5369_v9 = vld [vmem:[%s5794_s29 + $0x348] sm:$0xff] }
  0xc2   : > { %3697 = vmatmul.bf16.vlgmr.msra.gmra.mxu2 %v5328_v11  ;;  %3857 = vmatmul.bf16.vlgmr.msra.gmra.mxu3 %v5360_v12 }
  0xd1   : > { %3382 = vmatmul.bf16.gmra.mxu0 %v5265_v13  ;;  %3542 = vmatmul.bf16.gmra.mxu1 %v5297_v14 }
  0xd2   : > { %3702 = vmatmul.bf16.gmra.mxu2 %v5329_v15  ;;  %3862 = vmatmul.bf16.gmra.mxu3 %v5361_v16 }
  0xe1   : > { %3387 = vmatmul.bf16.gmra.mxu0 %v5266_v17  ;;  %3547 = vmatmul.bf16.gmra.mxu1 %v5298_v18 }
  0xe2   : > { %3707 = vmatmul.bf16.gmra.mxu2 %v5330_v19  ;;  %3867 = vmatmul.bf16.gmra.mxu3 %v5362_v20 }
  0xf1   : > { %3392 = vmatmul.bf16.gmra.mxu0 %v5267_v21  ;;  %3552 = vmatmul.bf16.gmra.mxu1 %v5299_v22 }
  0xf2   : > { %3712 = vmatmul.bf16.gmra.mxu2 %v5331_v23  ;;  %3872 = vmatmul.bf16.gmra.mxu3 %v5363_v24 }
 0x101   : > { %3397 = vmatmul.bf16.gmra.mxu0 %v5268_v25  ;;  %3557 = vmatmul.bf16.gmra.mxu1 %v5300_v26 }
 0x102   : > { %3717 = vmatmul.bf16.gmra.mxu2 %v5332_v27  ;;  %3877 = vmatmul.bf16.gmra.mxu3 %v5364_v28 }
 0x111   : > { %3402 = vmatmul.bf16.gmra.mxu0 %v5269_v29  ;;  %3562 = vmatmul.bf16.gmra.mxu1 %v5301_v30 }
 0x112   : > { %3722 = vmatmul.bf16.gmra.mxu2 %v5333_v31  ;;  %3882 = vmatmul.bf16.gmra.mxu3 %v5365_v32 }
 0x121   : > { %3407 = vmatmul.bf16.gmra.mxu0 %v5270_v33  ;;  %3567 = vmatmul.bf16.gmra.mxu1 %v5302_v34 }
 0x122   : > { %3727 = vmatmul.bf16.gmra.mxu2 %v5334_v35  ;;  %3887 = vmatmul.bf16.gmra.mxu3 %v5366_v36 }
 0x131   : > { %3412 = vmatmul.bf16.gmra.mxu0 %v5271_v37  ;;  %3572 = vmatmul.bf16.gmra.mxu1 %v5303_v38 }
 0x132   : > { %3732 = vmatmul.bf16.gmra.mxu2 %v5335_v39  ;;  %3892 = vmatmul.bf16.gmra.mxu3 %v5367_v40  ;;  %v5274_v40 = vld [vmem:[%s5794_s29 + $0x50] sm:$0xff] }
 0x13e   : > { %v3378_v43 = vpop.f32.mrf.mxu0  ;;  %v3538_v44 = vpop.f32.mrf.mxu1 }
 0x13f   : > { %v3539_v48 = vadd.f32 %v5867_v47, %v3538_v44  ;;  %v3379_v49 = vadd.f32 %v5867_v47, %v3378_v43 }
 0x141   : > { %3417 = vmatmul.bf16.gmra.mxu0 %v5272_v41  ;;  %3577 = vmatmul.bf16.gmra.mxu1 %v5304_v42  ;;  %v4082_v54 = vmax.f32 %v3539_v48, 0.0  ;;  %v4018_v57 = vmax.f32 %v3379_v49, 0.0  ;;  %v5306_v41 = vld [vmem:[%s5794_s29 + $0x150] sm:$0xff] }
 0x142   : > { %3737 = vmatmul.bf16.gmra.mxu2 %v5336_v45  ;;  %3897 = vmatmul.bf16.gmra.mxu3 %v5368_v46  ;;  %v5338_v46 = vld [vmem:[%s5794_s29 + $0x250] sm:$0xff] }
 0x143   : > { %v5370_v48 = vld [vmem:[%s5794_s29 + $0x350] sm:$0xff] }
 0x145   : > { %v3698_v50 = vpop.f32.mrf.mxu2  ;;  %v3858_v51 = vpop.f32.mrf.mxu3 }
 0x146   : > { %v3380_v52 = vpop.f32.mrf.mxu0  ;;  %v3540_v53 = vpop.f32.mrf.mxu1  ;;  %v3699_v62 = vadd.f32 %v5867_v47, %v3698_v50  ;;  %v3859_v63 = vadd.f32 %v5867_v47, %v3858_v51 }
 0x147   : > { %v3381_v55 = vadd.f32 %v5867_v47, %v3380_v52  ;;  %v3541_v56 = vadd.f32 %v5867_v47, %v3540_v53 }
 0x148   : > { %v4146_v12 = vmax.f32 %v3699_v62, 0.0  ;;  %v4210_v13 = vmax.f32 %v3859_v63, 0.0 }
 0x149   : > { %v4019_v58 = vmax.f32 %v3381_v55, 0.0  ;;  %v4083_v59 = vmax.f32 %v3541_v56, 0.0 }
 0x14b   : > { %v4276_v60 = vadd.f32 %v4019_v58, %v4018_v57  ;;  %v4360_v61 = vadd.f32 %v4083_v59, %v4082_v54 }
 0x14d   : > { %v3700_v0 = vpop.f32.mrf.mxu2  ;;  %v3860_v1 = vpop.f32.mrf.mxu3 }
 0x14e   : > { %v3701_v4 = vadd.f32 %v5867_v47, %v3700_v0  ;;  %v3861_v5 = vadd.f32 %v5867_v47, %v3860_v1  ;;  %v3383_v6 = vpop.f32.mrf.mxu0  ;;  %v3543_v7 = vpop.f32.mrf.mxu1 }
 0x14f   : > { %v3384_v10 = vadd.f32 %v5867_v47, %v3383_v6  ;;  %v3544_v11 = vadd.f32 %v5867_v47, %v3543_v7 }
 0x150   : > { %v4147_v14 = vmax.f32 %v3701_v4, 0.0  ;;  %v4211_v15 = vmax.f32 %v3861_v5, 0.0 }
 0x151   : > { %v4020_v16 = vmax.f32 %v3384_v10, 0.0  ;;  %v4084_v17 = vmax.f32 %v3544_v11, 0.0  ;;  %3422 = vmatmul.bf16.gmra.mxu0 %v5273_v2  ;;  %3582 = vmatmul.bf16.gmra.mxu1 %v5305_v3 }
 0x152   : > { %v4444_v18 = vadd.f32 %v4147_v14, %v4146_v12  ;;  %v4528_v19 = vadd.f32 %v4211_v15, %v4210_v13  ;;  %3742 = vmatmul.bf16.gmra.mxu2 %v5337_v8  ;;  %3902 = vmatmul.bf16.gmra.mxu3 %v5369_v9  ;;  %v5275_v13 = vld [vmem:[%s5794_s29 + $0x58] sm:$0xff] }
 0x153   : > { %v4277_v20 = vadd.f32 %v4276_v60, %v4020_v16  ;;  %v4361_v21 = vadd.f32 %v4360_v61, %v4084_v17  ;;  %v5307_v14 = vld [vmem:[%s5794_s29 + $0x158] sm:$0xff] }
 0x155   : > { %v3703_v22 = vpop.f32.mrf.mxu2  ;;  %v3863_v23 = vpop.f32.mrf.mxu3 }
 0x156   : > { %v3704_v24 = vadd.f32 %v5867_v47, %v3703_v22  ;;  %v3864_v25 = vadd.f32 %v5867_v47, %v3863_v23  ;;  %v3385_v26 = vpop.f32.mrf.mxu0  ;;  %v3545_v27 = vpop.f32.mrf.mxu1 }
 0x157   : > { %v3386_v28 = vadd.f32 %v5867_v47, %v3385_v26  ;;  %v3546_v29 = vadd.f32 %v5867_v47, %v3545_v27 }
 0x158   : > { %v4148_v30 = vmax.f32 %v3704_v24, 0.0  ;;  %v4212_v31 = vmax.f32 %v3864_v25, 0.0 }
 0x159   : > { %v4021_v32 = vmax.f32 %v3386_v28, 0.0  ;;  %v4085_v33 = vmax.f32 %v3546_v29, 0.0 }
 0x15a   : > { %v4445_v34 = vadd.f32 %v4444_v18, %v4148_v30  ;;  %v4529_v35 = vadd.f32 %v4528_v19, %v4212_v31  ;;  %v5339_v19 = vld [vmem:[%s5794_s29 + $0x258] sm:$0xff] }
 0x15b   : > { %v4278_v36 = vadd.f32 %v4277_v20, %v4021_v32  ;;  %v4362_v37 = vadd.f32 %v4361_v21, %v4085_v33  ;;  %v5371_v20 = vld [vmem:[%s5794_s29 + $0x358] sm:$0xff] }
 0x15d   : > { %v3705_v38 = vpop.f32.mrf.mxu2  ;;  %v3865_v39 = vpop.f32.mrf.mxu3 }
 0x15e   : > { %v3706_v42 = vadd.f32 %v5867_v47, %v3705_v38  ;;  %v3866_v43 = vadd.f32 %v5867_v47, %v3865_v39  ;;  %v3388_v44 = vpop.f32.mrf.mxu0  ;;  %v3548_v45 = vpop.f32.mrf.mxu1 }
 0x15f   : > { %v3389_v49 = vadd.f32 %v5867_v47, %v3388_v44  ;;  %v3549_v50 = vadd.f32 %v5867_v47, %v3548_v45 }
 0x160   : > { %v4149_v51 = vmax.f32 %v3706_v42, 0.0  ;;  %v4213_v52 = vmax.f32 %v3866_v43, 0.0 }
 0x161   : > { %v4022_v53 = vmax.f32 %v3389_v49, 0.0  ;;  %v4086_v54 = vmax.f32 %v3549_v50, 0.0  ;;  %3427 = vmatmul.bf16.gmra.mxu0 %v5274_v40  ;;  %3587 = vmatmul.bf16.gmra.mxu1 %v5306_v41  ;;  %v5276_v50 = vld [vmem:[%s5794_s29 + $0x60] sm:$0xff] }
 0x162   : > { %v4446_v55 = vadd.f32 %v4445_v34, %v4149_v51  ;;  %v4530_v56 = vadd.f32 %v4529_v35, %v4213_v52  ;;  %3747 = vmatmul.bf16.gmra.mxu2 %v5338_v46  ;;  %3907 = vmatmul.bf16.gmra.mxu3 %v5370_v48  ;;  %v5308_v51 = vld [vmem:[%s5794_s29 + $0x160] sm:$0xff] }
 0x163   : > { %v4279_v57 = vadd.f32 %v4278_v36, %v4022_v53  ;;  %v4363_v58 = vadd.f32 %v4362_v37, %v4086_v54 }
 0x165   : > { %v3708_v59 = vpop.f32.mrf.mxu2  ;;  %v3868_v60 = vpop.f32.mrf.mxu3 }
 0x166   : > { %v3709_v61 = vadd.f32 %v5867_v47, %v3708_v59  ;;  %v3869_v62 = vadd.f32 %v5867_v47, %v3868_v60  ;;  %v3390_v63 = vpop.f32.mrf.mxu0  ;;  %v3550_v0 = vpop.f32.mrf.mxu1 }
 0x167   : > { %v3391_v1 = vadd.f32 %v5867_v47, %v3390_v63  ;;  %v3551_v2 = vadd.f32 %v5867_v47, %v3550_v0 }
 0x168   : > { %v4150_v3 = vmax.f32 %v3709_v61, 0.0  ;;  %v4214_v4 = vmax.f32 %v3869_v62, 0.0 }
 0x169   : > { %v4023_v5 = vmax.f32 %v3391_v1, 0.0  ;;  %v4087_v6 = vmax.f32 %v3551_v2, 0.0 }
 0x16a   : > { %v4447_v7 = vadd.f32 %v4446_v55, %v4150_v3  ;;  %v4531_v8 = vadd.f32 %v4530_v56, %v4214_v4  ;;  %v5340_v56 = vld [vmem:[%s5794_s29 + $0x260] sm:$0xff] }
 0x16b   : > { %v4280_v9 = vadd.f32 %v4279_v57, %v4023_v5  ;;  %v4364_v10 = vadd.f32 %v4363_v58, %v4087_v6  ;;  %v5372_v57 = vld [vmem:[%s5794_s29 + $0x360] sm:$0xff] }
 0x16d   : > { %v3710_v11 = vpop.f32.mrf.mxu2  ;;  %v3870_v12 = vpop.f32.mrf.mxu3 }
 0x16e   : > { %v3711_v15 = vadd.f32 %v5867_v47, %v3710_v11  ;;  %v3871_v16 = vadd.f32 %v5867_v47, %v3870_v12  ;;  %v3393_v17 = vpop.f32.mrf.mxu0  ;;  %v3553_v18 = vpop.f32.mrf.mxu1 }
 0x16f   : > { %v3394_v21 = vadd.f32 %v5867_v47, %v3393_v17  ;;  %v3554_v22 = vadd.f32 %v5867_v47, %v3553_v18 }
 0x170   : > { %v4151_v23 = vmax.f32 %v3711_v15, 0.0  ;;  %v4215_v24 = vmax.f32 %v3871_v16, 0.0 }
 0x171   : > { %v4024_v25 = vmax.f32 %v3394_v21, 0.0  ;;  %v4088_v26 = vmax.f32 %v3554_v22, 0.0  ;;  %3432 = vmatmul.bf16.gmra.mxu0 %v5275_v13  ;;  %3592 = vmatmul.bf16.gmra.mxu1 %v5307_v14  ;;  %v5277_v22 = vld [vmem:[%s5794_s29 + $0x68] sm:$0xff] }
 0x172   : > { %v4448_v27 = vadd.f32 %v4447_v7, %v4151_v23  ;;  %v4532_v28 = vadd.f32 %v4531_v8, %v4215_v24  ;;  %3752 = vmatmul.bf16.gmra.mxu2 %v5339_v19  ;;  %3912 = vmatmul.bf16.gmra.mxu3 %v5371_v20  ;;  %v5309_v23 = vld [vmem:[%s5794_s29 + $0x168] sm:$0xff] }
 0x173   : > { %v4281_v29 = vadd.f32 %v4280_v9, %v4024_v25  ;;  %v4365_v30 = vadd.f32 %v4364_v10, %v4088_v26 }
 0x175   : > { %v3713_v31 = vpop.f32.mrf.mxu2  ;;  %v3873_v32 = vpop.f32.mrf.mxu3 }
 0x176   : > { %v3714_v33 = vadd.f32 %v5867_v47, %v3713_v31  ;;  %v3874_v34 = vadd.f32 %v5867_v47, %v3873_v32  ;;  %v3395_v35 = vpop.f32.mrf.mxu0  ;;  %v3555_v36 = vpop.f32.mrf.mxu1 }
 0x177   : > { %v3396_v37 = vadd.f32 %v5867_v47, %v3395_v35  ;;  %v3556_v38 = vadd.f32 %v5867_v47, %v3555_v36 }
 0x178   : > { %v4152_v39 = vmax.f32 %v3714_v33, 0.0  ;;  %v4216_v40 = vmax.f32 %v3874_v34, 0.0 }
 0x179   : > { %v4025_v41 = vmax.f32 %v3396_v37, 0.0  ;;  %v4089_v42 = vmax.f32 %v3556_v38, 0.0 }
 0x17a   : > { %v4449_v43 = vadd.f32 %v4448_v27, %v4152_v39  ;;  %v4533_v44 = vadd.f32 %v4532_v28, %v4216_v40  ;;  %v5341_v28 = vld [vmem:[%s5794_s29 + $0x268] sm:$0xff] }
 0x17b   : > { %v4282_v45 = vadd.f32 %v4281_v29, %v4025_v41  ;;  %v4366_v46 = vadd.f32 %v4365_v30, %v4089_v42  ;;  %v5373_v29 = vld [vmem:[%s5794_s29 + $0x368] sm:$0xff] }
 0x17d   : > { %v3715_v48 = vpop.f32.mrf.mxu2  ;;  %v3875_v49 = vpop.f32.mrf.mxu3 }
 0x17e   : > { %v3716_v52 = vadd.f32 %v5867_v47, %v3715_v48  ;;  %v3876_v53 = vadd.f32 %v5867_v47, %v3875_v49  ;;  %v3398_v54 = vpop.f32.mrf.mxu0  ;;  %v3558_v55 = vpop.f32.mrf.mxu1 }
 0x17f   : > { %v3399_v58 = vadd.f32 %v5867_v47, %v3398_v54  ;;  %v3559_v59 = vadd.f32 %v5867_v47, %v3558_v55 }
 0x180   : > { %v4153_v60 = vmax.f32 %v3716_v52, 0.0  ;;  %v4217_v61 = vmax.f32 %v3876_v53, 0.0 }
 0x181   : > { %v4026_v62 = vmax.f32 %v3399_v58, 0.0  ;;  %v4090_v63 = vmax.f32 %v3559_v59, 0.0  ;;  %3437 = vmatmul.bf16.gmra.mxu0 %v5276_v50  ;;  %3597 = vmatmul.bf16.gmra.mxu1 %v5308_v51  ;;  %v5278_v59 = vld [vmem:[%s5794_s29 + $0x70] sm:$0xff] }
 0x182   : > { %v4450_v0 = vadd.f32 %v4449_v43, %v4153_v60  ;;  %v4534_v1 = vadd.f32 %v4533_v44, %v4217_v61  ;;  %3757 = vmatmul.bf16.gmra.mxu2 %v5340_v56  ;;  %3917 = vmatmul.bf16.gmra.mxu3 %v5372_v57  ;;  %v5310_v60 = vld [vmem:[%s5794_s29 + $0x170] sm:$0xff] }
 0x183   : > { %v4283_v2 = vadd.f32 %v4282_v45, %v4026_v62  ;;  %v4367_v3 = vadd.f32 %v4366_v46, %v4090_v63 }
 0x185   : > { %v3718_v4 = vpop.f32.mrf.mxu2  ;;  %v3878_v5 = vpop.f32.mrf.mxu3 }
 0x186   : > { %v3719_v6 = vadd.f32 %v5867_v47, %v3718_v4  ;;  %v3879_v7 = vadd.f32 %v5867_v47, %v3878_v5  ;;  %v3400_v8 = vpop.f32.mrf.mxu0  ;;  %v3560_v9 = vpop.f32.mrf.mxu1 }
 0x187   : > { %v3401_v10 = vadd.f32 %v5867_v47, %v3400_v8  ;;  %v3561_v11 = vadd.f32 %v5867_v47, %v3560_v9 }
 0x188   : > { %v4154_v12 = vmax.f32 %v3719_v6, 0.0  ;;  %v4218_v13 = vmax.f32 %v3879_v7, 0.0 }
 0x189   : > { %v4027_v14 = vmax.f32 %v3401_v10, 0.0  ;;  %v4091_v15 = vmax.f32 %v3561_v11, 0.0 }
 0x18a   : > { %v4451_v16 = vadd.f32 %v4450_v0, %v4154_v12  ;;  %v4535_v17 = vadd.f32 %v4534_v1, %v4218_v13  ;;  %v5342_v1 = vld [vmem:[%s5794_s29 + $0x270] sm:$0xff] }
 0x18b   : > { %v4284_v18 = vadd.f32 %v4283_v2, %v4027_v14  ;;  %v4368_v19 = vadd.f32 %v4367_v3, %v4091_v15  ;;  %v5374_v2 = vld [vmem:[%s5794_s29 + $0x370] sm:$0xff] }
 0x18d   : > { %v3720_v20 = vpop.f32.mrf.mxu2  ;;  %v3880_v21 = vpop.f32.mrf.mxu3 }
 0x18e   : > { %v3721_v24 = vadd.f32 %v5867_v47, %v3720_v20  ;;  %v3881_v25 = vadd.f32 %v5867_v47, %v3880_v21  ;;  %v3403_v26 = vpop.f32.mrf.mxu0  ;;  %v3563_v27 = vpop.f32.mrf.mxu1 }
 0x18f   : > { %v3404_v30 = vadd.f32 %v5867_v47, %v3403_v26  ;;  %v3564_v31 = vadd.f32 %v5867_v47, %v3563_v27 }
 0x190   : > { %v4155_v32 = vmax.f32 %v3721_v24, 0.0  ;;  %v4219_v33 = vmax.f32 %v3881_v25, 0.0 }
 0x191   : > { %v4028_v34 = vmax.f32 %v3404_v30, 0.0  ;;  %v4092_v35 = vmax.f32 %v3564_v31, 0.0  ;;  %3442 = vmatmul.bf16.gmra.mxu0 %v5277_v22  ;;  %3602 = vmatmul.bf16.gmra.mxu1 %v5309_v23  ;;  %v5279_v31 = vld [vmem:[%s5794_s29 + $0x78] sm:$0xff] }
 0x192   : > { %v4452_v36 = vadd.f32 %v4451_v16, %v4155_v32  ;;  %v4536_v37 = vadd.f32 %v4535_v17, %v4219_v33  ;;  %3762 = vmatmul.bf16.gmra.mxu2 %v5341_v28  ;;  %3922 = vmatmul.bf16.gmra.mxu3 %v5373_v29  ;;  %v5311_v32 = vld [vmem:[%s5794_s29 + $0x178] sm:$0xff] }
 0x193   : > { %v4285_v38 = vadd.f32 %v4284_v18, %v4028_v34  ;;  %v4369_v39 = vadd.f32 %v4368_v19, %v4092_v35 }
 0x195   : > { %v3723_v40 = vpop.f32.mrf.mxu2  ;;  %v3883_v41 = vpop.f32.mrf.mxu3 }
 0x196   : > { %v3724_v42 = vadd.f32 %v5867_v47, %v3723_v40  ;;  %v3884_v43 = vadd.f32 %v5867_v47, %v3883_v41  ;;  %v3405_v44 = vpop.f32.mrf.mxu0  ;;  %v3565_v45 = vpop.f32.mrf.mxu1 }
 0x197   : > { %v3406_v46 = vadd.f32 %v5867_v47, %v3405_v44  ;;  %v3566_v48 = vadd.f32 %v5867_v47, %v3565_v45 }
 0x198   : > { %v4156_v49 = vmax.f32 %v3724_v42, 0.0  ;;  %v4220_v50 = vmax.f32 %v3884_v43, 0.0 }
 0x199   : > { %v4029_v51 = vmax.f32 %v3406_v46, 0.0  ;;  %v4093_v52 = vmax.f32 %v3566_v48, 0.0 }
 0x19a   : > { %v4453_v53 = vadd.f32 %v4452_v36, %v4156_v49  ;;  %v4537_v54 = vadd.f32 %v4536_v37, %v4220_v50  ;;  %v5343_v37 = vld [vmem:[%s5794_s29 + $0x278] sm:$0xff] }
 0x19b   : > { %v4286_v55 = vadd.f32 %v4285_v38, %v4029_v51  ;;  %v4370_v56 = vadd.f32 %v4369_v39, %v4093_v52  ;;  %v5375_v38 = vld [vmem:[%s5794_s29 + $0x378] sm:$0xff] }
 0x19d   : > { %v3725_v57 = vpop.f32.mrf.mxu2  ;;  %v3885_v58 = vpop.f32.mrf.mxu3 }
 0x19e   : > { %v3726_v61 = vadd.f32 %v5867_v47, %v3725_v57  ;;  %v3886_v62 = vadd.f32 %v5867_v47, %v3885_v58  ;;  %v3408_v63 = vpop.f32.mrf.mxu0  ;;  %v3568_v0 = vpop.f32.mrf.mxu1 }
 0x19f   : > { %v3409_v3 = vadd.f32 %v5867_v47, %v3408_v63  ;;  %v3569_v4 = vadd.f32 %v5867_v47, %v3568_v0 }
 0x1a0   : > { %v4157_v5 = vmax.f32 %v3726_v61, 0.0  ;;  %v4221_v6 = vmax.f32 %v3886_v62, 0.0 }
 0x1a1   : > { %v4030_v7 = vmax.f32 %v3409_v3, 0.0  ;;  %v4094_v8 = vmax.f32 %v3569_v4, 0.0  ;;  %3447 = vmatmul.bf16.gmra.mxu0 %v5278_v59  ;;  %3607 = vmatmul.bf16.gmra.mxu1 %v5310_v60  ;;  %v5280_v4 = vld [vmem:[%s5794_s29 + $0x80] sm:$0xff] }
 0x1a2   : > { %v4454_v9 = vadd.f32 %v4453_v53, %v4157_v5  ;;  %v4538_v10 = vadd.f32 %v4537_v54, %v4221_v6  ;;  %3767 = vmatmul.bf16.gmra.mxu2 %v5342_v1  ;;  %3927 = vmatmul.bf16.gmra.mxu3 %v5374_v2  ;;  %v5312_v5 = vld [vmem:[%s5794_s29 + $0x180] sm:$0xff] }
 0x1a3   : > { %v4287_v11 = vadd.f32 %v4286_v55, %v4030_v7  ;;  %v4371_v12 = vadd.f32 %v4370_v56, %v4094_v8 }
 0x1a5   : > { %v3728_v13 = vpop.f32.mrf.mxu2  ;;  %v3888_v14 = vpop.f32.mrf.mxu3 }
 0x1a6   : > { %v3729_v15 = vadd.f32 %v5867_v47, %v3728_v13  ;;  %v3889_v16 = vadd.f32 %v5867_v47, %v3888_v14  ;;  %v3410_v17 = vpop.f32.mrf.mxu0  ;;  %v3570_v18 = vpop.f32.mrf.mxu1 }
 0x1a7   : > { %v3411_v19 = vadd.f32 %v5867_v47, %v3410_v17  ;;  %v3571_v20 = vadd.f32 %v5867_v47, %v3570_v18 }
 0x1a8   : > { %v4158_v21 = vmax.f32 %v3729_v15, 0.0  ;;  %v4222_v22 = vmax.f32 %v3889_v16, 0.0 }
 0x1a9   : > { %v4031_v23 = vmax.f32 %v3411_v19, 0.0  ;;  %v4095_v24 = vmax.f32 %v3571_v20, 0.0 }
 0x1aa   : > { %v4455_v25 = vadd.f32 %v4454_v9, %v4158_v21  ;;  %v4539_v26 = vadd.f32 %v4538_v10, %v4222_v22  ;;  %v5344_v10 = vld [vmem:[%s5794_s29 + $0x280] sm:$0xff] }
 0x1ab   : > { %v4288_v27 = vadd.f32 %v4287_v11, %v4031_v23  ;;  %v4372_v28 = vadd.f32 %v4371_v12, %v4095_v24  ;;  %v5376_v11 = vld [vmem:[%s5794_s29 + $0x380] sm:$0xff] }
 0x1ad   : > { %v3730_v29 = vpop.f32.mrf.mxu2  ;;  %v3890_v30 = vpop.f32.mrf.mxu3 }
 0x1ae   : > { %v3731_v33 = vadd.f32 %v5867_v47, %v3730_v29  ;;  %v3891_v34 = vadd.f32 %v5867_v47, %v3890_v30  ;;  %v3413_v35 = vpop.f32.mrf.mxu0  ;;  %v3573_v36 = vpop.f32.mrf.mxu1 }
 0x1af   : > { %v3414_v39 = vadd.f32 %v5867_v47, %v3413_v35  ;;  %v3574_v40 = vadd.f32 %v5867_v47, %v3573_v36  ;;  %v5313_v35 = vld [vmem:[%s5794_s29 + $0x188] sm:$0xff] }
 0x1b0   : > { %v4159_v41 = vmax.f32 %v3731_v33, 0.0  ;;  %v4223_v42 = vmax.f32 %v3891_v34, 0.0  ;;  %v5281_v34 = vld [vmem:[%s5794_s29 + $0x88] sm:$0xff] }
 0x1b1   : > { %v4032_v43 = vmax.f32 %v3414_v39, 0.0  ;;  %v4096_v44 = vmax.f32 %v3574_v40, 0.0  ;;  %3452 = vmatmul.bf16.gmra.mxu0 %v5279_v31  ;;  %3612 = vmatmul.bf16.gmra.mxu1 %v5311_v32  ;;  %v5345_v40 = vld [vmem:[%s5794_s29 + $0x288] sm:$0xff] }
 0x1b2   : > { %v4456_v45 = vadd.f32 %v4455_v25, %v4159_v41  ;;  %v4540_v46 = vadd.f32 %v4539_v26, %v4223_v42  ;;  %3772 = vmatmul.bf16.gmra.mxu2 %v5343_v37  ;;  %3932 = vmatmul.bf16.gmra.mxu3 %v5375_v38  ;;  %v5377_v41 = vld [vmem:[%s5794_s29 + $0x388] sm:$0xff] }
 0x1b3   : > { %v4289_v48 = vadd.f32 %v4288_v27, %v4032_v43  ;;  %v4373_v49 = vadd.f32 %v4372_v28, %v4096_v44 }
 0x1b5   : > { %v3733_v50 = vpop.f32.mrf.mxu2  ;;  %v3893_v51 = vpop.f32.mrf.mxu3 }
 0x1b6   : > { %v3734_v52 = vadd.f32 %v5867_v47, %v3733_v50  ;;  %v3894_v53 = vadd.f32 %v5867_v47, %v3893_v51  ;;  %v3415_v54 = vpop.f32.mrf.mxu0  ;;  %v3575_v55 = vpop.f32.mrf.mxu1 }
 0x1b7   : > { %v3416_v56 = vadd.f32 %v5867_v47, %v3415_v54  ;;  %v3576_v57 = vadd.f32 %v5867_v47, %v3575_v55 }
 0x1b8   : > { %v4160_v58 = vmax.f32 %v3734_v52, 0.0  ;;  %v4224_v59 = vmax.f32 %v3894_v53, 0.0 }
 0x1b9   : > { %v4033_v60 = vmax.f32 %v3416_v56, 0.0  ;;  %v4097_v61 = vmax.f32 %v3576_v57, 0.0 }
 0x1ba   : > { %v4457_v62 = vadd.f32 %v4456_v45, %v4160_v58  ;;  %v4541_v63 = vadd.f32 %v4540_v46, %v4224_v59 }
 0x1bb   : > { %v5959_v0 = vadd.f32 %v4289_v48, %v4033_v60  ;;  %v5961_v1 = vadd.f32 %v4373_v49, %v4097_v61 }
 0x1bd   : > { %v3735_v2 = vpop.f32.mrf.mxu2  ;;  %v3895_v3 = vpop.f32.mrf.mxu3 }
 0x1be   : > { %v3736_v6 = vadd.f32 %v5867_v47, %v3735_v2  ;;  %v3896_v7 = vadd.f32 %v5867_v47, %v3895_v3  ;;  %v3418_v8 = vpop.f32.mrf.mxu0  ;;  %v3578_v9 = vpop.f32.mrf.mxu1 }
 0x1bf   : > { %v3579_v16 = vadd.f32 %v5867_v47, %v3578_v9  ;;  %v3419_v17 = vadd.f32 %v5867_v47, %v3418_v8 }
 0x1c0   : > { %v4161_v12 = vmax.f32 %v3736_v6, 0.0  ;;  %v4225_v13 = vmax.f32 %v3896_v7, 0.0 }
 0x1c1   : > { %3457 = vmatmul.bf16.gmra.mxu0 %v5280_v4  ;;  %3617 = vmatmul.bf16.gmra.mxu1 %v5312_v5  ;;  %v4098_v22 = vmax.f32 %v3579_v16, 0.0  ;;  %v4034_v25 = vmax.f32 %v3419_v17, 0.0 }
 0x1c2   : > { %v5969_v14 = vadd.f32 %v4457_v62, %v4161_v12  ;;  %v5971_v15 = vadd.f32 %v4541_v63, %v4225_v13  ;;  %3777 = vmatmul.bf16.gmra.mxu2 %v5344_v10  ;;  %3937 = vmatmul.bf16.gmra.mxu3 %v5376_v11  ;;  %v5282_v11 = vld [vmem:[%s5794_s29 + $0x90] sm:$0xff] }
 0x1c3   : > { %v5314_v12 = vld [vmem:[%s5794_s29 + $0x190] sm:$0xff] }
 0x1c5   : > { %v3738_v18 = vpop.f32.mrf.mxu2  ;;  %v3898_v19 = vpop.f32.mrf.mxu3 }
 0x1c6   : > { %v3420_v20 = vpop.f32.mrf.mxu0  ;;  %v3580_v21 = vpop.f32.mrf.mxu1  ;;  %v3739_v30 = vadd.f32 %v5867_v47, %v3738_v18  ;;  %v3899_v31 = vadd.f32 %v5867_v47, %v3898_v19  ;;  %v5346_v19 = vld [vmem:[%s5794_s29 + $0x290] sm:$0xff] }
 0x1c7   : > { %v3421_v23 = vadd.f32 %v5867_v47, %v3420_v20  ;;  %v3581_v24 = vadd.f32 %v5867_v47, %v3580_v21  ;;  %v5378_v20 = vld [vmem:[%s5794_s29 + $0x390] sm:$0xff] }
 0x1c8   : > { %v4162_v44 = vmax.f32 %v3739_v30, 0.0  ;;  %v4226_v45 = vmax.f32 %v3899_v31, 0.0 }
 0x1c9   : > { %v4035_v26 = vmax.f32 %v3421_v23, 0.0  ;;  %v4099_v27 = vmax.f32 %v3581_v24, 0.0 }
 0x1cb   : > { %v4297_v28 = vadd.f32 %v4035_v26, %v4034_v25  ;;  %v4381_v29 = vadd.f32 %v4099_v27, %v4098_v22 }
 0x1cd   : > { %v3740_v32 = vpop.f32.mrf.mxu2  ;;  %v3900_v33 = vpop.f32.mrf.mxu3 }
 0x1ce   : > { %v3741_v36 = vadd.f32 %v5867_v47, %v3740_v32  ;;  %v3901_v37 = vadd.f32 %v5867_v47, %v3900_v33  ;;  %v3423_v38 = vpop.f32.mrf.mxu0  ;;  %v3583_v39 = vpop.f32.mrf.mxu1 }
 0x1cf   : > { %v3424_v42 = vadd.f32 %v5867_v47, %v3423_v38  ;;  %v3584_v43 = vadd.f32 %v5867_v47, %v3583_v39 }
 0x1d0   : > { %v4163_v46 = vmax.f32 %v3741_v36, 0.0  ;;  %v4227_v48 = vmax.f32 %v3901_v37, 0.0 }
 0x1d1   : > { %v4036_v49 = vmax.f32 %v3424_v42, 0.0  ;;  %v4100_v50 = vmax.f32 %v3584_v43, 0.0  ;;  %3462 = vmatmul.bf16.gmra.mxu0 %v5281_v34  ;;  %3622 = vmatmul.bf16.gmra.mxu1 %v5313_v35 }
 0x1d2   : > { %v4465_v51 = vadd.f32 %v4163_v46, %v4162_v44  ;;  %v4549_v52 = vadd.f32 %v4227_v48, %v4226_v45  ;;  %3782 = vmatmul.bf16.gmra.mxu2 %v5345_v40  ;;  %3942 = vmatmul.bf16.gmra.mxu3 %v5377_v41 }
 0x1d3   : > { %v4298_v53 = vadd.f32 %v4297_v28, %v4036_v49  ;;  %v4382_v54 = vadd.f32 %v4381_v29, %v4100_v50  ;;  %v5283_v50 = vld [vmem:[%s5794_s29 + $0x98] sm:$0xff] }
 0x1d5   : > { %v3743_v55 = vpop.f32.mrf.mxu2  ;;  %v3903_v56 = vpop.f32.mrf.mxu3 }
 0x1d6   : > { %v3744_v57 = vadd.f32 %v5867_v47, %v3743_v55  ;;  %v3904_v58 = vadd.f32 %v5867_v47, %v3903_v56  ;;  %v3425_v59 = vpop.f32.mrf.mxu0  ;;  %v3585_v60 = vpop.f32.mrf.mxu1  ;;  %v5347_v56 = vld [vmem:[%s5794_s29 + $0x298] sm:$0xff] }
 0x1d7   : > { %v3426_v61 = vadd.f32 %v5867_v47, %v3425_v59  ;;  %v3586_v62 = vadd.f32 %v5867_v47, %v3585_v60 }
 0x1d8   : > { %v4164_v63 = vmax.f32 %v3744_v57, 0.0  ;;  %v4228_v2 = vmax.f32 %v3904_v58, 0.0  ;;  %v5379_v57 = vld [vmem:[%s5794_s29 + $0x398] sm:$0xff] }
 0x1d9   : > { %v4037_v3 = vmax.f32 %v3426_v61, 0.0  ;;  %v4101_v4 = vmax.f32 %v3586_v62, 0.0 }
 0x1da   : > { %v4466_v5 = vadd.f32 %v4465_v51, %v4164_v63  ;;  %v4550_v6 = vadd.f32 %v4549_v52, %v4228_v2  ;;  %v5315_v51 = vld [vmem:[%s5794_s29 + $0x198] sm:$0xff] }
 0x1db   : > { %v4299_v7 = vadd.f32 %v4298_v53, %v4037_v3  ;;  %v4383_v8 = vadd.f32 %v4382_v54, %v4101_v4 }
 0x1dd   : > { %v3745_v9 = vpop.f32.mrf.mxu2  ;;  %v3905_v10 = vpop.f32.mrf.mxu3 }
 0x1de   : > { %v3746_v13 = vadd.f32 %v5867_v47, %v3745_v9  ;;  %v3906_v16 = vadd.f32 %v5867_v47, %v3905_v10  ;;  %v3428_v17 = vpop.f32.mrf.mxu0  ;;  %v3588_v18 = vpop.f32.mrf.mxu1 }
 0x1df   : > { %v3429_v21 = vadd.f32 %v5867_v47, %v3428_v17  ;;  %v3589_v22 = vadd.f32 %v5867_v47, %v3588_v18 }
 0x1e0   : > { %v4165_v23 = vmax.f32 %v3746_v13, 0.0  ;;  %v4229_v24 = vmax.f32 %v3906_v16, 0.0 }
 0x1e1   : > { %v4038_v25 = vmax.f32 %v3429_v21, 0.0  ;;  %v4102_v26 = vmax.f32 %v3589_v22, 0.0  ;;  %3467 = vmatmul.bf16.gmra.mxu0 %v5282_v11  ;;  %3627 = vmatmul.bf16.gmra.mxu1 %v5314_v12 }
 0x1e2   : > { %v4467_v27 = vadd.f32 %v4466_v5, %v4165_v23  ;;  %v4551_v28 = vadd.f32 %v4550_v6, %v4229_v24  ;;  %3787 = vmatmul.bf16.gmra.mxu2 %v5346_v19  ;;  %3947 = vmatmul.bf16.gmra.mxu3 %v5378_v20 }
 0x1e3   : > { %v4300_v29 = vadd.f32 %v4299_v7, %v4038_v25  ;;  %v4384_v30 = vadd.f32 %v4383_v8, %v4102_v26  ;;  %v5284_v26 = vld [vmem:[%s5794_s29 + $0xa0] sm:$0xff] }
 0x1e5   : > { %v3748_v31 = vpop.f32.mrf.mxu2  ;;  %v3908_v32 = vpop.f32.mrf.mxu3 }
 0x1e6   : > { %v3749_v33 = vadd.f32 %v5867_v47, %v3748_v31  ;;  %v3909_v34 = vadd.f32 %v5867_v47, %v3908_v32  ;;  %v3430_v35 = vpop.f32.mrf.mxu0  ;;  %v3590_v36 = vpop.f32.mrf.mxu1  ;;  %v5348_v32 = vld [vmem:[%s5794_s29 + $0x2a0] sm:$0xff] }
 0x1e7   : > { %v3431_v37 = vadd.f32 %v5867_v47, %v3430_v35  ;;  %v3591_v38 = vadd.f32 %v5867_v47, %v3590_v36 }
 0x1e8   : > { %v4166_v39 = vmax.f32 %v3749_v33, 0.0  ;;  %v4230_v40 = vmax.f32 %v3909_v34, 0.0  ;;  %v5380_v33 = vld [vmem:[%s5794_s29 + $0x3a0] sm:$0xff] }
 0x1e9   : > { %v4039_v41 = vmax.f32 %v3431_v37, 0.0  ;;  %v4103_v42 = vmax.f32 %v3591_v38, 0.0 }
 0x1ea   : > { %v4468_v43 = vadd.f32 %v4467_v27, %v4166_v39  ;;  %v4552_v44 = vadd.f32 %v4551_v28, %v4230_v40  ;;  %v5316_v27 = vld [vmem:[%s5794_s29 + $0x1a0] sm:$0xff] }
 0x1eb   : > { %v4301_v45 = vadd.f32 %v4300_v29, %v4039_v41  ;;  %v4385_v46 = vadd.f32 %v4384_v30, %v4103_v42 }
 0x1ed   : > { %v3750_v48 = vpop.f32.mrf.mxu2  ;;  %v3910_v49 = vpop.f32.mrf.mxu3 }
 0x1ee   : > { %v3751_v52 = vadd.f32 %v5867_v47, %v3750_v48  ;;  %v3911_v53 = vadd.f32 %v5867_v47, %v3910_v49  ;;  %v3433_v54 = vpop.f32.mrf.mxu0  ;;  %v3593_v55 = vpop.f32.mrf.mxu1 }
 0x1ef   : > { %v3434_v58 = vadd.f32 %v5867_v47, %v3433_v54  ;;  %v3594_v59 = vadd.f32 %v5867_v47, %v3593_v55 }
 0x1f0   : > { %v4167_v60 = vmax.f32 %v3751_v52, 0.0  ;;  %v4231_v61 = vmax.f32 %v3911_v53, 0.0 }
 0x1f1   : > { %v4040_v62 = vmax.f32 %v3434_v58, 0.0  ;;  %v4104_v63 = vmax.f32 %v3594_v59, 0.0  ;;  %3472 = vmatmul.bf16.gmra.mxu0 %v5283_v50  ;;  %3632 = vmatmul.bf16.gmra.mxu1 %v5315_v51 }
 0x1f2   : > { %v4469_v2 = vadd.f32 %v4468_v43, %v4167_v60  ;;  %v4553_v3 = vadd.f32 %v4552_v44, %v4231_v61  ;;  %3792 = vmatmul.bf16.gmra.mxu2 %v5347_v56  ;;  %3952 = vmatmul.bf16.gmra.mxu3 %v5379_v57 }
 0x1f3   : > { %v4302_v4 = vadd.f32 %v4301_v45, %v4040_v62  ;;  %v4386_v5 = vadd.f32 %v4385_v46, %v4104_v63  ;;  %v5285_v63 = vld [vmem:[%s5794_s29 + $0xa8] sm:$0xff] }
 0x1f5   : > { %v3753_v6 = vpop.f32.mrf.mxu2  ;;  %v3913_v7 = vpop.f32.mrf.mxu3 }
 0x1f6   : > { %v3754_v8 = vadd.f32 %v5867_v47, %v3753_v6  ;;  %v3914_v9 = vadd.f32 %v5867_v47, %v3913_v7  ;;  %v3435_v10 = vpop.f32.mrf.mxu0  ;;  %v3595_v11 = vpop.f32.mrf.mxu1  ;;  %v5349_v7 = vld [vmem:[%s5794_s29 + $0x2a8] sm:$0xff] }
 0x1f7   : > { %v3436_v12 = vadd.f32 %v5867_v47, %v3435_v10  ;;  %v3596_v13 = vadd.f32 %v5867_v47, %v3595_v11 }
 0x1f8   : > { %v4168_v16 = vmax.f32 %v3754_v8, 0.0  ;;  %v4232_v17 = vmax.f32 %v3914_v9, 0.0  ;;  %v5381_v8 = vld [vmem:[%s5794_s29 + $0x3a8] sm:$0xff] }
 0x1f9   : > { %v4041_v18 = vmax.f32 %v3436_v12, 0.0  ;;  %v4105_v19 = vmax.f32 %v3596_v13, 0.0 }
 0x1fa   : > { %v4470_v20 = vadd.f32 %v4469_v2, %v4168_v16  ;;  %v4554_v21 = vadd.f32 %v4553_v3, %v4232_v17  ;;  %v5317_v2 = vld [vmem:[%s5794_s29 + $0x1a8] sm:$0xff] }
 0x1fb   : > { %v4303_v22 = vadd.f32 %v4302_v4, %v4041_v18  ;;  %v4387_v23 = vadd.f32 %v4386_v5, %v4105_v19 }
 0x1fd   : > { %v3755_v24 = vpop.f32.mrf.mxu2  ;;  %v3915_v25 = vpop.f32.mrf.mxu3 }
 0x1fe   : > { %v3756_v28 = vadd.f32 %v5867_v47, %v3755_v24  ;;  %v3916_v29 = vadd.f32 %v5867_v47, %v3915_v25  ;;  %v3438_v30 = vpop.f32.mrf.mxu0  ;;  %v3598_v31 = vpop.f32.mrf.mxu1 }
 0x1ff   : > { %v3439_v34 = vadd.f32 %v5867_v47, %v3438_v30  ;;  %v3599_v35 = vadd.f32 %v5867_v47, %v3598_v31 }
 0x200   : > { %v4169_v36 = vmax.f32 %v3756_v28, 0.0  ;;  %v4233_v37 = vmax.f32 %v3916_v29, 0.0 }
 0x201   : > { %v4042_v38 = vmax.f32 %v3439_v34, 0.0  ;;  %v4106_v39 = vmax.f32 %v3599_v35, 0.0  ;;  %3477 = vmatmul.bf16.gmra.mxu0 %v5284_v26  ;;  %3637 = vmatmul.bf16.gmra.mxu1 %v5316_v27 }
 0x202   : > { %v4471_v40 = vadd.f32 %v4470_v20, %v4169_v36  ;;  %v4555_v41 = vadd.f32 %v4554_v21, %v4233_v37  ;;  %3797 = vmatmul.bf16.gmra.mxu2 %v5348_v32  ;;  %3957 = vmatmul.bf16.gmra.mxu3 %v5380_v33 }
 0x203   : > { %v4304_v42 = vadd.f32 %v4303_v22, %v4042_v38  ;;  %v4388_v43 = vadd.f32 %v4387_v23, %v4106_v39  ;;  %v6038_v23 = vld [vmem:[%s6395_s2] ss:$0 sm:$0xff]  ;;  %v5286_v39 = vld [vmem:[%s5794_s29 + $0xb0] sm:$0xff] }
 0x205   : > { %v3758_v44 = vpop.f32.mrf.mxu2  ;;  %v3918_v45 = vpop.f32.mrf.mxu3 }
 0x206   : > { %v3759_v46 = vadd.f32 %v5867_v47, %v3758_v44  ;;  %v3919_v48 = vadd.f32 %v5867_v47, %v3918_v45  ;;  %v3440_v49 = vpop.f32.mrf.mxu0  ;;  %v3600_v50 = vpop.f32.mrf.mxu1  ;;  %v5350_v45 = vld [vmem:[%s5794_s29 + $0x2b0] sm:$0xff] }
 0x207   : > { %v3441_v51 = vadd.f32 %v5867_v47, %v3440_v49  ;;  %v3601_v52 = vadd.f32 %v5867_v47, %v3600_v50 }
 0x208   : > { %v4170_v53 = vmax.f32 %v3759_v46, 0.0  ;;  %v4234_v54 = vmax.f32 %v3919_v48, 0.0  ;;  %v5382_v46 = vld [vmem:[%s5794_s29 + $0x3b0] sm:$0xff] }
 0x209   : > { %v4043_v55 = vmax.f32 %v3441_v51, 0.0  ;;  %v4107_v56 = vmax.f32 %v3601_v52, 0.0 }
 0x20a   : > { %v4472_v57 = vadd.f32 %v4471_v40, %v4170_v53  ;;  %v4556_v58 = vadd.f32 %v4555_v41, %v4234_v54  ;;  %v5318_v40 = vld [vmem:[%s5794_s29 + $0x1b0] sm:$0xff] }
 0x20b   : > { %v4305_v59 = vadd.f32 %v4304_v42, %v4043_v55  ;;  %v4389_v60 = vadd.f32 %v4388_v43, %v4107_v56 }
 0x20d   : > { %v3760_v61 = vpop.f32.mrf.mxu2  ;;  %v3920_v62 = vpop.f32.mrf.mxu3 }
 0x20e   : > { %v3761_v3 = vadd.f32 %v5867_v47, %v3760_v61  ;;  %v3921_v4 = vadd.f32 %v5867_v47, %v3920_v62  ;;  %v3443_v5 = vpop.f32.mrf.mxu0  ;;  %v3603_v6 = vpop.f32.mrf.mxu1 }
 0x20f   : > { %v3444_v9 = vadd.f32 %v5867_v47, %v3443_v5  ;;  %v3604_v10 = vadd.f32 %v5867_v47, %v3603_v6 }
 0x210   : > { %v4171_v11 = vmax.f32 %v3761_v3, 0.0  ;;  %v4235_v12 = vmax.f32 %v3921_v4, 0.0 }
 0x211   : > { %v4044_v13 = vmax.f32 %v3444_v9, 0.0  ;;  %v4108_v16 = vmax.f32 %v3604_v10, 0.0  ;;  %3482 = vmatmul.bf16.gmra.mxu0 %v5285_v63  ;;  %3642 = vmatmul.bf16.gmra.mxu1 %v5317_v2 }
 0x212   : > { %v4473_v17 = vadd.f32 %v4472_v57, %v4171_v11  ;;  %v4557_v18 = vadd.f32 %v4556_v58, %v4235_v12  ;;  %3802 = vmatmul.bf16.gmra.mxu2 %v5349_v7  ;;  %3962 = vmatmul.bf16.gmra.mxu3 %v5381_v8 }
 0x213   : > { %v4306_v19 = vadd.f32 %v4305_v59, %v4044_v13  ;;  %v4390_v20 = vadd.f32 %v4389_v60, %v4108_v16  ;;  %v5287_v16 = vld [vmem:[%s5794_s29 + $0xb8] sm:$0xff] }
 0x215   : > { %v3763_v21 = vpop.f32.mrf.mxu2  ;;  %v3923_v22 = vpop.f32.mrf.mxu3 }
 0x216   : > { %v3764_v47 = vadd.f32 %v6038_v23, %v3763_v21  ;;  %v3924_v24 = vadd.f32 %v6038_v23, %v3923_v22  ;;  %v3445_v25 = vpop.f32.mrf.mxu0  ;;  %v3605_v26 = vpop.f32.mrf.mxu1  ;;  %v5351_v22 = vld [vmem:[%s5794_s29 + $0x2b8] sm:$0xff] }
 0x217   : > { %v3446_v27 = vadd.f32 %v6038_v23, %v3445_v25  ;;  %v3606_v28 = vadd.f32 %v6038_v23, %v3605_v26 }
 0x218   : > { %v4172_v29 = vmax.f32 %v3764_v47, 0.0  ;;  %v4236_v30 = vmax.f32 %v3924_v24, 0.0  ;;  %v5383_v47 = vld [vmem:[%s5794_s29 + $0x3b8] sm:$0xff] }
 0x219   : > { %v4045_v31 = vmax.f32 %v3446_v27, 0.0  ;;  %v4109_v32 = vmax.f32 %v3606_v28, 0.0 }
 0x21a   : > { %v4474_v33 = vadd.f32 %v4473_v17, %v4172_v29  ;;  %v4558_v34 = vadd.f32 %v4557_v18, %v4236_v30  ;;  %v5319_v17 = vld [vmem:[%s5794_s29 + $0x1b8] sm:$0xff]  ;;  %v4291_v30 = vrot.slane %v5959_v0, 4 }
 0x21b   : > { %v4307_v35 = vadd.f32 %v4306_v19, %v4045_v31  ;;  %v4391_v36 = vadd.f32 %v4390_v20, %v4109_v32 }
 0x21d   : > { %v3765_v37 = vpop.f32.mrf.mxu2  ;;  %v3925_v38 = vpop.f32.mrf.mxu3 }
 0x21e   : > { %v3766_v41 = vadd.f32 %v6038_v23, %v3765_v37  ;;  %v3926_v42 = vadd.f32 %v6038_v23, %v3925_v38  ;;  %v3448_v43 = vpop.f32.mrf.mxu0  ;;  %v3608_v44 = vpop.f32.mrf.mxu1  ;;  %v4292_v37 = vadd.f32 %v4291_v30, %v5959_v0 }
 0x21f   : > { %v3449_v48 = vadd.f32 %v6038_v23, %v3448_v43  ;;  %v3609_v49 = vadd.f32 %v6038_v23, %v3608_v44 }
 0x220   : > { %v4173_v50 = vmax.f32 %v3766_v41, 0.0  ;;  %v4237_v51 = vmax.f32 %v3926_v42, 0.0 }
 0x221   : > { %v4046_v52 = vmax.f32 %v3449_v48, 0.0  ;;  %v4110_v53 = vmax.f32 %v3609_v49, 0.0  ;;  %3487 = vmatmul.bf16.gmra.mxu0 %v5286_v39  ;;  %3647 = vmatmul.bf16.gmra.mxu1 %v5318_v40  ;;  %v4293_v49 = vrot.slane %v4292_v37, 2 }
 0x222   : > { %v4475_v54 = vadd.f32 %v4474_v33, %v4173_v50  ;;  %v4559_v55 = vadd.f32 %v4558_v34, %v4237_v51  ;;  %3807 = vmatmul.bf16.gmra.mxu2 %v5350_v45  ;;  %3967 = vmatmul.bf16.gmra.mxu3 %v5382_v46  ;;  %v4459_v50 = vrot.slane %v5969_v14, 4 }
 0x223   : > { %v4308_v56 = vadd.f32 %v4307_v35, %v4046_v52  ;;  %v4392_v57 = vadd.f32 %v4391_v36, %v4110_v53 }
 0x225   : > { %v3768_v58 = vpop.f32.mrf.mxu2  ;;  %v3928_v59 = vpop.f32.mrf.mxu3 }
 0x226   : > { %v3769_v60 = vadd.f32 %v6038_v23, %v3768_v58  ;;  %v3929_v61 = vadd.f32 %v6038_v23, %v3928_v59  ;;  %v3450_v62 = vpop.f32.mrf.mxu0  ;;  %v3610_v63 = vpop.f32.mrf.mxu1  ;;  %v5320_v58 = vld [vmem:[%s5794_s29 + $0x1c0] sm:$0xff]  ;;  %v4294_v59 = vadd.f32 %v4293_v49, %v4292_v37 }
 0x227   : > { %v3451_v2 = vadd.f32 %v6038_v23, %v3450_v62  ;;  %v3611_v3 = vadd.f32 %v6038_v23, %v3610_v63 }
 0x228   : > { %v4174_v4 = vmax.f32 %v3769_v60, 0.0  ;;  %v4238_v5 = vmax.f32 %v3929_v61, 0.0  ;;  %v4460_v60 = vadd.f32 %v4459_v50, %v5969_v14 }
 0x229   : > { %v4047_v6 = vmax.f32 %v3451_v2, 0.0  ;;  %v4111_v7 = vmax.f32 %v3611_v3, 0.0  ;;  %v5352_v3 = vld [vmem:[%s5794_s29 + $0x2c0] sm:$0xff] }
 0x22a   : > { %v4476_v8 = vadd.f32 %v4475_v54, %v4174_v4  ;;  %v4560_v9 = vadd.f32 %v4559_v55, %v4238_v5  ;;  %v5384_v4 = vld [vmem:[%s5794_s29 + $0x3c0] sm:$0xff] }
 0x22b   : > { %v4309_v10 = vadd.f32 %v4308_v56, %v4047_v6  ;;  %v4393_v11 = vadd.f32 %v4392_v57, %v4111_v7  ;;  %v5288_v57 = vld [vmem:[%s5794_s29 + $0xc0] sm:$0xff] }
 0x22d   : > { %v3770_v12 = vpop.f32.mrf.mxu2  ;;  %v3930_v13 = vpop.f32.mrf.mxu3 }
 0x22e   : > { %v3771_v18 = vadd.f32 %v6038_v23, %v3770_v12  ;;  %v3931_v19 = vadd.f32 %v6038_v23, %v3930_v13  ;;  %v3453_v20 = vpop.f32.mrf.mxu0  ;;  %v3613_v21 = vpop.f32.mrf.mxu1 }
 0x22f   : > { %v3454_v24 = vadd.f32 %v6038_v23, %v3453_v20  ;;  %v3614_v25 = vadd.f32 %v6038_v23, %v3613_v21 }
 0x230   : > { %v4175_v26 = vmax.f32 %v3771_v18, 0.0  ;;  %v4239_v27 = vmax.f32 %v3931_v19, 0.0 }
 0x231   : > { %v4048_v28 = vmax.f32 %v3454_v24, 0.0  ;;  %v4112_v29 = vmax.f32 %v3614_v25, 0.0  ;;  %3492 = vmatmul.bf16.gmra.mxu0 %v5287_v16  ;;  %3652 = vmatmul.bf16.gmra.mxu1 %v5319_v17 }
 0x232   : > { %v4477_v31 = vadd.f32 %v4476_v8, %v4175_v26  ;;  %v4561_v32 = vadd.f32 %v4560_v9, %v4239_v27  ;;  %3812 = vmatmul.bf16.gmra.mxu2 %v5351_v22  ;;  %3972 = vmatmul.bf16.gmra.mxu3 %v5383_v47  ;;  %v4295_v9 = vrot.slane %v4294_v59, 1 }
 0x233   : > { %v4310_v33 = vadd.f32 %v4309_v10, %v4048_v28  ;;  %v4394_v34 = vadd.f32 %v4393_v11, %v4112_v29  ;;  %v4461_v10 = vrot.slane %v4460_v60, 2 }
 0x234   : > { %v4296_v21 = vadd.f32 %v4295_v9, %v4294_v59 }
 0x235   : > { %v3773_v35 = vpop.f32.mrf.mxu2  ;;  %v3933_v36 = vpop.f32.mrf.mxu3  ;;  %v4462_v22 = vadd.f32 %v4461_v10, %v4460_v60 }
 0x236   : > { %v3774_v38 = vadd.f32 %v6038_v23, %v3773_v35  ;;  %v3934_v39 = vadd.f32 %v6038_v23, %v3933_v36  ;;  %v3455_v40 = vpop.f32.mrf.mxu0  ;;  %v3615_v41 = vpop.f32.mrf.mxu1 }
 0x237   : > { %v3456_v42 = vadd.f32 %v6038_v23, %v3455_v40  ;;  %v3616_v43 = vadd.f32 %v6038_v23, %v3615_v41  ;;  %v4463_v35 = vrot.slane %v4462_v22, 1 }
 0x238   : > { %v4176_v44 = vmax.f32 %v3774_v38, 0.0  ;;  %v4240_v45 = vmax.f32 %v3934_v39, 0.0 }
 0x239   : > { %v4049_v46 = vmax.f32 %v3456_v42, 0.0  ;;  %v4113_v48 = vmax.f32 %v3616_v43, 0.0 }
 0x23a   : > { %v4478_v0 = vadd.f32 %v4477_v31, %v4176_v44  ;;  %v4562_v51 = vadd.f32 %v4561_v32, %v4240_v45  ;;  %v5289_v44 = vld [vmem:[%s5794_s29 + $0xc8] sm:$0xff] }
 0x23b   : > { %v4311_v52 = vadd.f32 %v4310_v33, %v4049_v46  ;;  %v6071_v53 = vadd.f32 %v4394_v34, %v4113_v48  ;;  %v5321_v45 = vld [vmem:[%s5794_s29 + $0x1c8] sm:$0xff]  ;;  %v4464_v46 = vadd.f32 %v4463_v35, %v4462_v22 }
 0x23d   : > { %v4312_v54 = vrot.slane %v4311_v52, 4  ;;  %v3775_v55 = vpop.f32.mrf.mxu2  ;;  %v3935_v56 = vpop.f32.mrf.mxu3 }
 0x23e   : > { %v3776_v61 = vadd.f32 %v6038_v23, %v3775_v55  ;;  %v3936_v62 = vadd.f32 %v6038_v23, %v3935_v56  ;;  %v3458_v63 = vpop.f32.mrf.mxu0  ;;  %v3618_v2 = vpop.f32.mrf.mxu1 }
 0x23f   : > { %v4313_v5 = vadd.f32 %v4312_v54, %v4311_v52  ;;  %v3619_v13 = vadd.f32 %v6038_v23, %v3618_v2  ;;  %v3459_v18 = vadd.f32 %v6038_v23, %v3458_v63  ;;  %v5353_v52 = vld [vmem:[%s5794_s29 + $0x2c8] sm:$0xff] }
 0x240   : > { %v4177_v6 = vmax.f32 %v3776_v61, 0.0  ;;  %v4241_v7 = vmax.f32 %v3936_v62, 0.0  ;;  %v5385_v54 = vld [vmem:[%s5794_s29 + $0x3c8] sm:$0xff] }
 0x241   : > { %v4314_v8 = vrot.slane %v4313_v5, 2  ;;  %3497 = vmatmul.bf16.gmra.mxu0 %v5288_v57  ;;  %3657 = vmatmul.bf16.gmra.mxu1 %v5320_v58  ;;  %v4114_v27 = vmax.f32 %v3619_v13, 0.0  ;;  %v4050_v32 = vmax.f32 %v3459_v18, 0.0 }
 0x242   : > { %v4479_v11 = vadd.f32 %v4478_v0, %v4177_v6  ;;  %v6080_v12 = vadd.f32 %v4562_v51, %v4241_v7  ;;  %3817 = vmatmul.bf16.gmra.mxu2 %v5352_v3  ;;  %3977 = vmatmul.bf16.gmra.mxu3 %v5384_v4 }
 0x243   : > { %v4315_v14 = vadd.f32 %v4314_v8, %v4313_v5 }
 0x244   : > { %v4480_v16 = vrot.slane %v4479_v11, 4 }
 0x245   : > { %v4316_v17 = vrot.slane %v4315_v14, 1  ;;  %v3778_v19 = vpop.f32.mrf.mxu2  ;;  %v3938_v20 = vpop.f32.mrf.mxu3 }
 0x246   : > { %v4481_v47 = vadd.f32 %v4480_v16, %v4479_v11  ;;  %v3460_v24 = vpop.f32.mrf.mxu0  ;;  %v3620_v25 = vpop.f32.mrf.mxu1  ;;  %v3779_v37 = vadd.f32 %v6038_v23, %v3778_v19  ;;  %v3939_v41 = vadd.f32 %v6038_v23, %v3938_v20 }
 0x247   : > { %v4317_v26 = vadd.f32 %v4316_v17, %v4315_v14  ;;  %v3461_v28 = vadd.f32 %v6038_v23, %v3460_v24  ;;  %v3621_v29 = vadd.f32 %v6038_v23, %v3620_v25 }
 0x248   : > { %v4482_v30 = vrot.slane %v4481_v47, 2  ;;  %v4178_v55 = vmax.f32 %v3779_v37, 0.0  ;;  %v4242_v59 = vmax.f32 %v3939_v41, 0.0 }
 0x249   : > { %v6087_v31 = vsel %vm4628_vm0, %v4317_v26, %v4296_v21  ;;  %v4051_v33 = vmax.f32 %v3461_v28, 0.0  ;;  %v4115_v34 = vmax.f32 %v3621_v29, 0.0  ;;  %v5290_v26 = vld [vmem:[%s5794_s29 + $0xd0] sm:$0xff] }
 0x24a   : > { %v4483_v36 = vadd.f32 %v4482_v30, %v4481_v47 }
 0x24b   : > { %v4318_v38 = vadd.f32 %v4051_v33, %v4050_v32  ;;  %v4402_v39 = vadd.f32 %v4115_v34, %v4114_v27  ;;  %v5322_v27 = vld [vmem:[%s5794_s29 + $0x1d0] sm:$0xff] }
 0x24c   : > { %v4484_v40 = vrot.slane %v4483_v36, 1  ;;  %v5354_v33 = vld [vmem:[%s5794_s29 + $0x2d0] sm:$0xff] }
 0x24d   : > { %v3780_v42 = vpop.f32.mrf.mxu2  ;;  %v3940_v43 = vpop.f32.mrf.mxu3  ;;  %v5386_v34 = vld [vmem:[%s5794_s29 + $0x3d0] sm:$0xff] }
 0x24e   : > { %v4485_v48 = vadd.f32 %v4484_v40, %v4483_v36  ;;  %v3781_v49 = vadd.f32 %v6038_v23, %v3780_v42  ;;  %v3941_v50 = vadd.f32 %v6038_v23, %v3940_v43  ;;  %v3463_v0 = vpop.f32.mrf.mxu0  ;;  %v3623_v51 = vpop.f32.mrf.mxu1 }
 0x24f   : > { %v3464_v56 = vadd.f32 %v6038_v23, %v3463_v0  ;;  %v3624_v57 = vadd.f32 %v6038_v23, %v3623_v51 }
 0x250   : > { %v6100_v58 = vsel %vm4628_vm0, %v4485_v48, %v4464_v46  ;;  %v4179_v60 = vmax.f32 %v3781_v49, 0.0  ;;  %v4243_v61 = vmax.f32 %v3941_v50, 0.0 }
 0x251   : > { %v4052_v62 = vmax.f32 %v3464_v56, 0.0  ;;  %v4116_v63 = vmax.f32 %v3624_v57, 0.0  ;;  %3502 = vmatmul.bf16.gmra.mxu0 %v5289_v44  ;;  %3662 = vmatmul.bf16.gmra.mxu1 %v5321_v45 }
 0x252   : > { %v4486_v2 = vadd.f32 %v4179_v60, %v4178_v55  ;;  %v4570_v3 = vadd.f32 %v4243_v61, %v4242_v59  ;;  %3822 = vmatmul.bf16.gmra.mxu2 %v5353_v52  ;;  %3982 = vmatmul.bf16.gmra.mxu3 %v5385_v54 }
 0x253   : > { %v4319_v4 = vadd.f32 %v4318_v38, %v4052_v62  ;;  %v4403_v5 = vadd.f32 %v4402_v39, %v4116_v63 }
 0x255   : > { %v3783_v6 = vpop.f32.mrf.mxu2  ;;  %v3943_v7 = vpop.f32.mrf.mxu3 }
 0x256   : > { %v3784_v8 = vadd.f32 %v6038_v23, %v3783_v6  ;;  %v3944_v9 = vadd.f32 %v6038_v23, %v3943_v7  ;;  %v3465_v10 = vpop.f32.mrf.mxu0  ;;  %v3625_v11 = vpop.f32.mrf.mxu1 }
 0x257   : > { %v3466_v14 = vadd.f32 %v6038_v23, %v3465_v10  ;;  %v3626_v13 = vadd.f32 %v6038_v23, %v3625_v11  ;;  %v5387_v10 = vld [vmem:[%s5794_s29 + $0x3d8] sm:$0xff] }
 0x258   : > { %v4180_v16 = vmax.f32 %v3784_v8, 0.0  ;;  %v4244_v17 = vmax.f32 %v3944_v9, 0.0  ;;  %v5355_v9 = vld [vmem:[%s5794_s29 + $0x2d8] sm:$0xff] }
 0x259   : > { %v4053_v18 = vmax.f32 %v3466_v14, 0.0  ;;  %v4117_v19 = vmax.f32 %v3626_v13, 0.0 }
 0x25a   : > { %v4487_v20 = vadd.f32 %v4486_v2, %v4180_v16  ;;  %v4571_v21 = vadd.f32 %v4570_v3, %v4244_v17  ;;  %v5291_v3 = vld [vmem:[%s5794_s29 + $0xd8] sm:$0xff] }
 0x25b   : > { %v4320_v22 = vadd.f32 %v4319_v4, %v4053_v18  ;;  %v4404_v47 = vadd.f32 %v4403_v5, %v4117_v19  ;;  %v5323_v4 = vld [vmem:[%s5794_s29 + $0x1d8] sm:$0xff] }
 0x25d   : > { %v3785_v24 = vpop.f32.mrf.mxu2  ;;  %v3945_v25 = vpop.f32.mrf.mxu3 }
 0x25e   : > { %v3786_v28 = vadd.f32 %v6038_v23, %v3785_v24  ;;  %v3946_v29 = vadd.f32 %v6038_v23, %v3945_v25  ;;  %v3468_v30 = vpop.f32.mrf.mxu0  ;;  %v3628_v32 = vpop.f32.mrf.mxu1 }
 0x25f   : > { %v3469_v35 = vadd.f32 %v6038_v23, %v3468_v30  ;;  %v3629_v36 = vadd.f32 %v6038_v23, %v3628_v32 }
 0x260   : > { %v4181_v37 = vmax.f32 %v3786_v28, 0.0  ;;  %v4245_v38 = vmax.f32 %v3946_v29, 0.0 }
 0x261   : > { %v4054_v39 = vmax.f32 %v3469_v35, 0.0  ;;  %v4118_v40 = vmax.f32 %v3629_v36, 0.0  ;;  %3507 = vmatmul.bf16.gmra.mxu0 %v5290_v26  ;;  %3667 = vmatmul.bf16.gmra.mxu1 %v5322_v27 }
 0x262   : > { %v4488_v41 = vadd.f32 %v4487_v20, %v4181_v37  ;;  %v4572_v42 = vadd.f32 %v4571_v21, %v4245_v38  ;;  %3827 = vmatmul.bf16.gmra.mxu2 %v5354_v33  ;;  %3987 = vmatmul.bf16.gmra.mxu3 %v5386_v34 }
 0x263   : > { %v4321_v43 = vadd.f32 %v4320_v22, %v4054_v39  ;;  %v4405_v44 = vadd.f32 %v4404_v47, %v4118_v40 }
 0x265   : > { %v3788_v45 = vpop.f32.mrf.mxu2  ;;  %v3948_v46 = vpop.f32.mrf.mxu3 }
 0x266   : > { %v3789_v48 = vadd.f32 %v6038_v23, %v3788_v45  ;;  %v3949_v49 = vadd.f32 %v6038_v23, %v3948_v46  ;;  %v3470_v50 = vpop.f32.mrf.mxu0  ;;  %v3630_v0 = vpop.f32.mrf.mxu1 }
 0x267   : > { %v3471_v51 = vadd.f32 %v6038_v23, %v3470_v50  ;;  %v3631_v52 = vadd.f32 %v6038_v23, %v3630_v0  ;;  %v5388_v50 = vld [vmem:[%s5794_s29 + $0x3e0] sm:$0xff] }
 0x268   : > { %v4182_v54 = vmax.f32 %v3789_v48, 0.0  ;;  %v4246_v55 = vmax.f32 %v3949_v49, 0.0  ;;  %v5356_v49 = vld [vmem:[%s5794_s29 + $0x2e0] sm:$0xff] }
 0x269   : > { %v4055_v56 = vmax.f32 %v3471_v51, 0.0  ;;  %v4119_v57 = vmax.f32 %v3631_v52, 0.0 }
 0x26a   : > { %v4489_v59 = vadd.f32 %v4488_v41, %v4182_v54  ;;  %v4573_v60 = vadd.f32 %v4572_v42, %v4246_v55  ;;  %v5292_v42 = vld [vmem:[%s5794_s29 + $0xe0] sm:$0xff] }
 0x26b   : > { %v4322_v61 = vadd.f32 %v4321_v43, %v4055_v56  ;;  %v4406_v62 = vadd.f32 %v4405_v44, %v4119_v57  ;;  %v5324_v43 = vld [vmem:[%s5794_s29 + $0x1e0] sm:$0xff] }
 0x26d   : > { %v3790_v63 = vpop.f32.mrf.mxu2  ;;  %v3950_v2 = vpop.f32.mrf.mxu3 }
 0x26e   : > { %v3791_v5 = vadd.f32 %v6038_v23, %v3790_v63  ;;  %v3951_v6 = vadd.f32 %v6038_v23, %v3950_v2  ;;  %v3473_v7 = vpop.f32.mrf.mxu0  ;;  %v3633_v8 = vpop.f32.mrf.mxu1 }
 0x26f   : > { %v3474_v11 = vadd.f32 %v6038_v23, %v3473_v7  ;;  %v3634_v14 = vadd.f32 %v6038_v23, %v3633_v8 }
 0x270   : > { %v4183_v13 = vmax.f32 %v3791_v5, 0.0  ;;  %v4247_v16 = vmax.f32 %v3951_v6, 0.0 }
 0x271   : > { %v4056_v17 = vmax.f32 %v3474_v11, 0.0  ;;  %v4120_v18 = vmax.f32 %v3634_v14, 0.0  ;;  %3512 = vmatmul.bf16.gmra.mxu0 %v5291_v3  ;;  %3672 = vmatmul.bf16.gmra.mxu1 %v5323_v4 }
 0x272   : > { %v4490_v19 = vadd.f32 %v4489_v59, %v4183_v13  ;;  %v4574_v20 = vadd.f32 %v4573_v60, %v4247_v16  ;;  %3832 = vmatmul.bf16.gmra.mxu2 %v5355_v9  ;;  %3992 = vmatmul.bf16.gmra.mxu3 %v5387_v10 }
 0x273   : > { %v4323_v21 = vadd.f32 %v4322_v61, %v4056_v17  ;;  %v4407_v22 = vadd.f32 %v4406_v62, %v4120_v18 }
 0x275   : > { %v3793_v47 = vpop.f32.mrf.mxu2  ;;  %v3953_v24 = vpop.f32.mrf.mxu3 }
 0x276   : > { %v3794_v25 = vadd.f32 %v6038_v23, %v3793_v47  ;;  %v3954_v26 = vadd.f32 %v6038_v23, %v3953_v24  ;;  %v3475_v27 = vpop.f32.mrf.mxu0  ;;  %v3635_v28 = vpop.f32.mrf.mxu1 }
 0x277   : > { %v3476_v29 = vadd.f32 %v6038_v23, %v3475_v27  ;;  %v3636_v30 = vadd.f32 %v6038_v23, %v3635_v28  ;;  %v5389_v27 = vld [vmem:[%s5794_s29 + $0x3e8] sm:$0xff] }
 0x278   : > { %v4184_v32 = vmax.f32 %v3794_v25, 0.0  ;;  %v4248_v33 = vmax.f32 %v3954_v26, 0.0  ;;  %v5357_v26 = vld [vmem:[%s5794_s29 + $0x2e8] sm:$0xff] }
 0x279   : > { %v4057_v34 = vmax.f32 %v3476_v29, 0.0  ;;  %v4121_v35 = vmax.f32 %v3636_v30, 0.0 }
 0x27a   : > { %v4491_v36 = vadd.f32 %v4490_v19, %v4184_v32  ;;  %v4575_v37 = vadd.f32 %v4574_v20, %v4248_v33  ;;  %v5293_v20 = vld [vmem:[%s5794_s29 + $0xe8] sm:$0xff] }
 0x27b   : > { %v4324_v38 = vadd.f32 %v4323_v21, %v4057_v34  ;;  %v4408_v39 = vadd.f32 %v4407_v22, %v4121_v35  ;;  %v5325_v21 = vld [vmem:[%s5794_s29 + $0x1e8] sm:$0xff] }
 0x27d   : > { %v3795_v40 = vpop.f32.mrf.mxu2  ;;  %v3955_v41 = vpop.f32.mrf.mxu3 }
 0x27e   : > { %v3796_v44 = vadd.f32 %v6038_v23, %v3795_v40  ;;  %v3956_v45 = vadd.f32 %v6038_v23, %v3955_v41  ;;  %v3478_v46 = vpop.f32.mrf.mxu0  ;;  %v3638_v48 = vpop.f32.mrf.mxu1 }
 0x27f   : > { %v3479_v0 = vadd.f32 %v6038_v23, %v3478_v46  ;;  %v3639_v51 = vadd.f32 %v6038_v23, %v3638_v48 }
 0x280   : > { %v4185_v52 = vmax.f32 %v3796_v44, 0.0  ;;  %v4249_v54 = vmax.f32 %v3956_v45, 0.0 }
 0x281   : > { %v4058_v55 = vmax.f32 %v3479_v0, 0.0  ;;  %v4122_v56 = vmax.f32 %v3639_v51, 0.0  ;;  %3517 = vmatmul.bf16.gmra.mxu0 %v5292_v42  ;;  %3677 = vmatmul.bf16.gmra.mxu1 %v5324_v43 }
 0x282   : > { %v4492_v57 = vadd.f32 %v4491_v36, %v4185_v52  ;;  %v4576_v59 = vadd.f32 %v4575_v37, %v4249_v54  ;;  %3837 = vmatmul.bf16.gmra.mxu2 %v5356_v49  ;;  %3997 = vmatmul.bf16.gmra.mxu3 %v5388_v50 }
 0x283   : > { %v4325_v60 = vadd.f32 %v4324_v38, %v4058_v55  ;;  %v4409_v61 = vadd.f32 %v4408_v39, %v4122_v56 }
 0x285   : > { %v3798_v62 = vpop.f32.mrf.mxu2  ;;  %v3958_v63 = vpop.f32.mrf.mxu3 }
 0x286   : > { %v3799_v2 = vadd.f32 %v6038_v23, %v3798_v62  ;;  %v3959_v3 = vadd.f32 %v6038_v23, %v3958_v63  ;;  %v3480_v4 = vpop.f32.mrf.mxu0  ;;  %v3640_v5 = vpop.f32.mrf.mxu1 }
 0x287   : > { %v3481_v6 = vadd.f32 %v6038_v23, %v3480_v4  ;;  %v3641_v7 = vadd.f32 %v6038_v23, %v3640_v5  ;;  %v5390_v4 = vld [vmem:[%s5794_s29 + $0x3f0] sm:$0xff] }
 0x288   : > { %v4186_v8 = vmax.f32 %v3799_v2, 0.0  ;;  %v4250_v9 = vmax.f32 %v3959_v3, 0.0  ;;  %v5358_v3 = vld [vmem:[%s5794_s29 + $0x2f0] sm:$0xff] }
 0x289   : > { %v4059_v10 = vmax.f32 %v3481_v6, 0.0  ;;  %v4123_v11 = vmax.f32 %v3641_v7, 0.0 }
 0x28a   : > { %v4493_v14 = vadd.f32 %v4492_v57, %v4186_v8  ;;  %v4577_v13 = vadd.f32 %v4576_v59, %v4250_v9  ;;  %v5294_v59 = vld [vmem:[%s5794_s29 + $0xf0] sm:$0xff] }
 0x28b   : > { %v4326_v16 = vadd.f32 %v4325_v60, %v4059_v10  ;;  %v4410_v17 = vadd.f32 %v4409_v61, %v4123_v11  ;;  %v5326_v60 = vld [vmem:[%s5794_s29 + $0x1f0] sm:$0xff] }
 0x28d   : > { %v3800_v18 = vpop.f32.mrf.mxu2  ;;  %v3960_v19 = vpop.f32.mrf.mxu3 }
 0x28e   : > { %v3801_v22 = vadd.f32 %v6038_v23, %v3800_v18  ;;  %v3961_v47 = vadd.f32 %v6038_v23, %v3960_v19  ;;  %v3483_v24 = vpop.f32.mrf.mxu0  ;;  %v3643_v25 = vpop.f32.mrf.mxu1 }
 0x28f   : > { %v3484_v28 = vadd.f32 %v6038_v23, %v3483_v24  ;;  %v3644_v29 = vadd.f32 %v6038_v23, %v3643_v25 }
 0x290   : > { %v4187_v30 = vmax.f32 %v3801_v22, 0.0  ;;  %v4251_v32 = vmax.f32 %v3961_v47, 0.0 }
 0x291   : > { %v4060_v33 = vmax.f32 %v3484_v28, 0.0  ;;  %v4124_v34 = vmax.f32 %v3644_v29, 0.0  ;;  %3522 = vmatmul.bf16.gmra.mxu0 %v5293_v20  ;;  %3682 = vmatmul.bf16.gmra.mxu1 %v5325_v21 }
 0x292   : > { %v4494_v35 = vadd.f32 %v4493_v14, %v4187_v30  ;;  %v4578_v36 = vadd.f32 %v4577_v13, %v4251_v32  ;;  %3842 = vmatmul.bf16.gmra.mxu2 %v5357_v26  ;;  %4002 = vmatmul.bf16.gmra.mxu3 %v5389_v27 }
 0x293   : > { %v4327_v37 = vadd.f32 %v4326_v16, %v4060_v33  ;;  %v4411_v38 = vadd.f32 %v4410_v17, %v4124_v34 }
 0x295   : > { %v3803_v39 = vpop.f32.mrf.mxu2  ;;  %v3963_v40 = vpop.f32.mrf.mxu3 }
 0x296   : > { %v3804_v41 = vadd.f32 %v6038_v23, %v3803_v39  ;;  %v3964_v42 = vadd.f32 %v6038_v23, %v3963_v40  ;;  %v3485_v43 = vpop.f32.mrf.mxu0  ;;  %v3645_v44 = vpop.f32.mrf.mxu1 }
 0x297   : > { %v3486_v45 = vadd.f32 %v6038_v23, %v3485_v43  ;;  %v3646_v46 = vadd.f32 %v6038_v23, %v3645_v44  ;;  %v5391_v43 = vld [vmem:[%s5794_s29 + $0x3f8] sm:$0xff] }
 0x298   : > { %v4188_v48 = vmax.f32 %v3804_v41, 0.0  ;;  %v4252_v49 = vmax.f32 %v3964_v42, 0.0  ;;  %v5359_v42 = vld [vmem:[%s5794_s29 + $0x2f8] sm:$0xff] }
 0x299   : > { %v4061_v50 = vmax.f32 %v3486_v45, 0.0  ;;  %v4125_v0 = vmax.f32 %v3646_v46, 0.0 }
 0x29a   : > { %v4495_v51 = vadd.f32 %v4494_v35, %v4188_v48  ;;  %v4579_v52 = vadd.f32 %v4578_v36, %v4252_v49  ;;  %v5295_v36 = vld [vmem:[%s5794_s29 + $0xf8] sm:$0xff] }
 0x29b   : > { %v4328_v54 = vadd.f32 %v4327_v37, %v4061_v50  ;;  %v4412_v55 = vadd.f32 %v4411_v38, %v4125_v0  ;;  %v5327_v37 = vld [vmem:[%s5794_s29 + $0x1f8] sm:$0xff] }
 0x29d   : > { %v3805_v56 = vpop.f32.mrf.mxu2  ;;  %v3965_v57 = vpop.f32.mrf.mxu3 }
 0x29e   : > { %v3806_v61 = vadd.f32 %v6038_v23, %v3805_v56  ;;  %v3966_v62 = vadd.f32 %v6038_v23, %v3965_v57  ;;  %v3488_v63 = vpop.f32.mrf.mxu0  ;;  %v3648_v2 = vpop.f32.mrf.mxu1 }
 0x29f   : > { %v3489_v5 = vadd.f32 %v6038_v23, %v3488_v63  ;;  %v3649_v6 = vadd.f32 %v6038_v23, %v3648_v2 }
 0x2a0   : > { %v4189_v7 = vmax.f32 %v3806_v61, 0.0  ;;  %v4253_v8 = vmax.f32 %v3966_v62, 0.0 }
 0x2a1   : > { %v4062_v9 = vmax.f32 %v3489_v5, 0.0  ;;  %v4126_v10 = vmax.f32 %v3649_v6, 0.0  ;;  %3527 = vmatmul.bf16.gmra.mxu0 %v5294_v59  ;;  %3687 = vmatmul.bf16.gmra.mxu1 %v5326_v60 }
 0x2a2   : > { %v4496_v11 = vadd.f32 %v4495_v51, %v4189_v7  ;;  %v4580_v14 = vadd.f32 %v4579_v52, %v4253_v8  ;;  %3847 = vmatmul.bf16.gmra.mxu2 %v5358_v3  ;;  %4007 = vmatmul.bf16.gmra.mxu3 %v5390_v4 }
 0x2a3   : > { %v4329_v13 = vadd.f32 %v4328_v54, %v4062_v9  ;;  %v4413_v16 = vadd.f32 %v4412_v55, %v4126_v10 }
 0x2a5   : > { %v3808_v17 = vpop.f32.mrf.mxu2  ;;  %v3968_v18 = vpop.f32.mrf.mxu3 }
 0x2a6   : > { %v3809_v19 = vadd.f32 %v6038_v23, %v3808_v17  ;;  %v3969_v20 = vadd.f32 %v6038_v23, %v3968_v18  ;;  %v3490_v21 = vpop.f32.mrf.mxu0  ;;  %v3650_v22 = vpop.f32.mrf.mxu1 }
 0x2a7   : > { %v3491_v47 = vadd.f32 %v6038_v23, %v3490_v21  ;;  %v3651_v24 = vadd.f32 %v6038_v23, %v3650_v22 }
 0x2a8   : > { %v4190_v25 = vmax.f32 %v3809_v19, 0.0  ;;  %v4254_v26 = vmax.f32 %v3969_v20, 0.0 }
 0x2a9   : > { %v4063_v27 = vmax.f32 %v3491_v47, 0.0  ;;  %v4127_v28 = vmax.f32 %v3651_v24, 0.0 }
 0x2aa   : > { %v4497_v29 = vadd.f32 %v4496_v11, %v4190_v25  ;;  %v4581_v30 = vadd.f32 %v4580_v14, %v4254_v26 }
 0x2ab   : > { %v4330_v32 = vadd.f32 %v4329_v13, %v4063_v27  ;;  %v4414_v33 = vadd.f32 %v4413_v16, %v4127_v28 }
 0x2ad   : > { %v3810_v34 = vpop.f32.mrf.mxu2  ;;  %v3970_v35 = vpop.f32.mrf.mxu3 }
 0x2ae   : > { %v3811_v38 = vadd.f32 %v6038_v23, %v3810_v34  ;;  %v3971_v39 = vadd.f32 %v6038_v23, %v3970_v35  ;;  %v3493_v40 = vpop.f32.mrf.mxu0  ;;  %v3653_v41 = vpop.f32.mrf.mxu1 }
 0x2af   : > { %v3494_v44 = vadd.f32 %v6038_v23, %v3493_v40  ;;  %v3654_v45 = vadd.f32 %v6038_v23, %v3653_v41 }
 0x2b0   : > { %v4191_v46 = vmax.f32 %v3811_v38, 0.0  ;;  %v4255_v48 = vmax.f32 %v3971_v39, 0.0 }
 0x2b1   : > { %v4064_v49 = vmax.f32 %v3494_v44, 0.0  ;;  %v4128_v50 = vmax.f32 %v3654_v45, 0.0  ;;  %3532 = vmatmul.bf16.gmra.mxu0 %v5295_v36  ;;  %3692 = vmatmul.bf16.gmra.mxu1 %v5327_v37 }
 0x2b2   : > { %v4498_v0 = vadd.f32 %v4497_v29, %v4191_v46  ;;  %v4582_v51 = vadd.f32 %v4581_v30, %v4255_v48  ;;  %3852 = vmatmul.bf16.gmra.mxu2 %v5359_v42  ;;  %4012 = vmatmul.bf16.gmra.mxu3 %v5391_v43 }
 0x2b3   : > { %v4331_v52 = vadd.f32 %v4330_v32, %v4064_v49  ;;  %v4415_v54 = vadd.f32 %v4414_v33, %v4128_v50 }
 0x2b5   : > { %v3813_v55 = vpop.f32.mrf.mxu2  ;;  %v3973_v56 = vpop.f32.mrf.mxu3 }
 0x2b6   : > { %v3814_v57 = vadd.f32 %v6038_v23, %v3813_v55  ;;  %v3974_v59 = vadd.f32 %v6038_v23, %v3973_v56  ;;  %v3495_v60 = vpop.f32.mrf.mxu0  ;;  %v3655_v61 = vpop.f32.mrf.mxu1 }
 0x2b7   : > { %v3496_v62 = vadd.f32 %v6038_v23, %v3495_v60  ;;  %v3656_v63 = vadd.f32 %v6038_v23, %v3655_v61 }
 0x2b8   : > { %v4192_v2 = vmax.f32 %v3814_v57, 0.0  ;;  %v4256_v3 = vmax.f32 %v3974_v59, 0.0 }
 0x2b9   : > { %v4065_v4 = vmax.f32 %v3496_v62, 0.0  ;;  %v4129_v5 = vmax.f32 %v3656_v63, 0.0 }
 0x2ba   : > { %v4499_v6 = vadd.f32 %v4498_v0, %v4192_v2  ;;  %v4583_v7 = vadd.f32 %v4582_v51, %v4256_v3 }
 0x2bb   : > { %v4332_v8 = vadd.f32 %v4331_v52, %v4065_v4  ;;  %v6178_v9 = vadd.f32 %v4415_v54, %v4129_v5 }
 0x2bd   : > { %v4333_v10 = vrot.slane %v4332_v8, 4  ;;  %v3815_v11 = vpop.f32.mrf.mxu2  ;;  %v3975_v14 = vpop.f32.mrf.mxu3 }
 0x2be   : > { %v3816_v13 = vadd.f32 %v6038_v23, %v3815_v11  ;;  %v3976_v16 = vadd.f32 %v6038_v23, %v3975_v14  ;;  %v3498_v17 = vpop.f32.mrf.mxu0  ;;  %v3658_v18 = vpop.f32.mrf.mxu1 }
 0x2bf   : > { %v4334_v19 = vadd.f32 %v4333_v10, %v4332_v8  ;;  %v3659_v26 = vadd.f32 %v6038_v23, %v3658_v18  ;;  %v3499_v29 = vadd.f32 %v6038_v23, %v3498_v17 }
 0x2c0   : > { %v4193_v20 = vmax.f32 %v3816_v13, 0.0  ;;  %v4257_v21 = vmax.f32 %v3976_v16, 0.0 }
 0x2c1   : > { %v4335_v22 = vrot.slane %v4334_v19, 2  ;;  %v4130_v37 = vmax.f32 %v3659_v26, 0.0  ;;  %v4066_v42 = vmax.f32 %v3499_v29, 0.0 }
 0x2c2   : > { %v4500_v47 = vadd.f32 %v4499_v6, %v4193_v20  ;;  %v6182_v24 = vadd.f32 %v4583_v7, %v4257_v21 }
 0x2c3   : > { %v4336_v25 = vadd.f32 %v4335_v22, %v4334_v19 }
 0x2c4   : > { %v4501_v27 = vrot.slane %v4500_v47, 4 }
 0x2c5   : > { %v4337_v28 = vrot.slane %v4336_v25, 1  ;;  %v3818_v30 = vpop.f32.mrf.mxu2  ;;  %v3978_v32 = vpop.f32.mrf.mxu3 }
 0x2c6   : > { %v4502_v33 = vadd.f32 %v4501_v27, %v4500_v47  ;;  %v3500_v34 = vpop.f32.mrf.mxu0  ;;  %v3660_v35 = vpop.f32.mrf.mxu1  ;;  %v3819_v46 = vadd.f32 %v6038_v23, %v3818_v30  ;;  %v3979_v0 = vadd.f32 %v6038_v23, %v3978_v32  ;;  %v6209_v32 = vld [vmem:[%s6395_s2] ss:$0 sm:$0xff] }
 0x2c7   : > { %v4338_v36 = vadd.f32 %v4337_v28, %v4336_v25  ;;  %v3501_v38 = vadd.f32 %v6038_v23, %v3500_v34  ;;  %v3661_v39 = vadd.f32 %v6038_v23, %v3660_v35 }
 0x2c8   : > { %v4503_v40 = vrot.slane %v4502_v33, 2  ;;  %v4194_v59 = vmax.f32 %v3819_v46, 0.0  ;;  %v4258_v63 = vmax.f32 %v3979_v0, 0.0 }
 0x2c9   : > { %v6190_v41 = vsel %vm4630_vm1, %v4338_v36, %v6087_v31  ;;  %v4067_v43 = vmax.f32 %v3501_v38, 0.0  ;;  %v4131_v44 = vmax.f32 %v3661_v39, 0.0 }
 0x2ca   : > { %v4504_v45 = vadd.f32 %v4503_v40, %v4502_v33 }
 0x2cb   : > { %v4339_v48 = vadd.f32 %v4067_v43, %v4066_v42  ;;  %v4423_v49 = vadd.f32 %v4131_v44, %v4130_v37 }
 0x2cc   : > { %v4505_v50 = vrot.slane %v4504_v45, 1 }
 0x2cd   : > { %v3820_v51 = vpop.f32.mrf.mxu2  ;;  %v3980_v52 = vpop.f32.mrf.mxu3 }
 0x2ce   : > { %v4506_v54 = vadd.f32 %v4505_v50, %v4504_v45  ;;  %v3821_v55 = vadd.f32 %v6038_v23, %v3820_v51  ;;  %v3981_v56 = vadd.f32 %v6038_v23, %v3980_v52  ;;  %v3503_v31 = vpop.f32.mrf.mxu0  ;;  %v3663_v57 = vpop.f32.mrf.mxu1 }
 0x2cf   : > { %v3504_v60 = vadd.f32 %v6038_v23, %v3503_v31  ;;  %v3664_v61 = vadd.f32 %v6038_v23, %v3663_v57 }
 0x2d0   : > { %v6200_v62 = vsel %vm4630_vm1, %v4506_v54, %v6100_v58  ;;  %v4195_v2 = vmax.f32 %v3821_v55, 0.0  ;;  %v4259_v3 = vmax.f32 %v3981_v56, 0.0 }
 0x2d1   : > { %v4068_v4 = vmax.f32 %v3504_v60, 0.0  ;;  %v4132_v5 = vmax.f32 %v3664_v61, 0.0 }
 0x2d2   : > { %v4507_v6 = vadd.f32 %v4195_v2, %v4194_v59  ;;  %v4591_v7 = vadd.f32 %v4259_v3, %v4258_v63 }
 0x2d3   : > { %v4340_v8 = vadd.f32 %v4339_v48, %v4068_v4  ;;  %v4424_v10 = vadd.f32 %v4423_v49, %v4132_v5 }
 0x2d5   : > { %v3823_v11 = vpop.f32.mrf.mxu2  ;;  %v3983_v14 = vpop.f32.mrf.mxu3 }
 0x2d6   : > { %v3824_v13 = vadd.f32 %v6038_v23, %v3823_v11  ;;  %v3984_v16 = vadd.f32 %v6038_v23, %v3983_v14  ;;  %v3505_v17 = vpop.f32.mrf.mxu0  ;;  %v3665_v18 = vpop.f32.mrf.mxu1 }
 0x2d7   : > { %v3506_v58 = vadd.f32 %v6038_v23, %v3505_v17  ;;  %v3666_v19 = vadd.f32 %v6038_v23, %v3665_v18 }
 0x2d8   : > { %v4196_v20 = vmax.f32 %v3824_v13, 0.0  ;;  %v4260_v21 = vmax.f32 %v3984_v16, 0.0 }
 0x2d9   : > { %v4069_v22 = vmax.f32 %v3506_v58, 0.0  ;;  %v4133_v47 = vmax.f32 %v3666_v19, 0.0  ;;  %v4375_v19 = vrot.slane %v5961_v1, 4 }
 0x2da   : > { %v4508_v25 = vadd.f32 %v4507_v6, %v4196_v20  ;;  %v4592_v26 = vadd.f32 %v4591_v7, %v4260_v21 }
 0x2db   : > { %v4341_v27 = vadd.f32 %v4340_v8, %v4069_v22  ;;  %v4425_v28 = vadd.f32 %v4424_v10, %v4133_v47  ;;  %v4376_v20 = vadd.f32 %v4375_v19, %v5961_v1 }
 0x2dd   : > { %v3825_v29 = vpop.f32.mrf.mxu2  ;;  %v3985_v30 = vpop.f32.mrf.mxu3 }
 0x2de   : > { %v3826_v33 = vadd.f32 %v6209_v32, %v3825_v29  ;;  %v3986_v34 = vadd.f32 %v6209_v32, %v3985_v30  ;;  %v3508_v23 = vpop.f32.mrf.mxu0  ;;  %v3668_v35 = vpop.f32.mrf.mxu1  ;;  %v4543_v30 = vrot.slane %v5971_v15, 4 }
 0x2df   : > { %v3509_v36 = vadd.f32 %v6209_v32, %v3508_v23  ;;  %v3669_v37 = vadd.f32 %v6209_v32, %v3668_v35  ;;  %v4417_v23 = vrot.slane %v6178_v9, 4 }
 0x2e0   : > { %v4197_v38 = vmax.f32 %v3826_v33, 0.0  ;;  %v4261_v39 = vmax.f32 %v3986_v34, 0.0  ;;  %v4396_v34 = vrot.slane %v6071_v53, 4 }
 0x2e1   : > { %v4070_v40 = vmax.f32 %v3509_v36, 0.0  ;;  %v4134_v42 = vmax.f32 %v3669_v37, 0.0 }
 0x2e2   : > { %v4509_v43 = vadd.f32 %v4508_v25, %v4197_v38  ;;  %v4593_v44 = vadd.f32 %v4592_v26, %v4261_v39  ;;  %v4377_v26 = vrot.slane %v4376_v20, 2 }
 0x2e3   : > { %v6215_v45 = vadd.f32 %v4341_v27, %v4070_v40  ;;  %v6217_v46 = vadd.f32 %v4425_v28, %v4134_v42 }
 0x2e4   : > { %v6245_v29 = vadd.f32 %v4377_v26, %v4376_v20 }
 0x2e5   : > { %v3828_v48 = vpop.f32.mrf.mxu2  ;;  %v3988_v49 = vpop.f32.mrf.mxu3 }
 0x2e6   : > { %v3829_v50 = vadd.f32 %v6209_v32, %v3828_v48  ;;  %v3989_v0 = vadd.f32 %v6209_v32, %v3988_v49  ;;  %v3510_v51 = vpop.f32.mrf.mxu0  ;;  %v3670_v52 = vpop.f32.mrf.mxu1  ;;  %v6264_v48 = vadd.f32 %v4543_v30, %v5971_v15 }
 0x2e7   : > { %v3511_v27 = vadd.f32 %v6209_v32, %v3510_v51  ;;  %v3671_v28 = vadd.f32 %v6209_v32, %v3670_v52 }
 0x2e8   : > { %v4198_v54 = vmax.f32 %v3829_v50, 0.0  ;;  %v4262_v55 = vmax.f32 %v3989_v0, 0.0 }
 0x2e9   : > { %v4071_v37 = vmax.f32 %v3511_v27, 0.0  ;;  %v4135_v38 = vmax.f32 %v3671_v28, 0.0 }
 0x2ea   : > { %v6221_v56 = vadd.f32 %v4509_v43, %v4198_v54  ;;  %v6223_v31 = vadd.f32 %v4593_v44, %v4262_v55  ;;  %v4379_v44 = vrot.slane %v6245_v29, 1  ;;  %v6271_v55 = vadd.f32 %v4396_v34, %v6071_v53 }
 0x2ed   : > { %v3830_v57 = vpop.f32.mrf.mxu2  ;;  %v3990_v59 = vpop.f32.mrf.mxu3 }
 0x2ee   : > { %v3513_v60 = vpop.f32.mrf.mxu0  ;;  %v3673_v61 = vpop.f32.mrf.mxu1  ;;  %v3831_v33 = vadd.f32 %v6209_v32, %v3830_v57  ;;  %v3991_v1 = vadd.f32 %v6209_v32, %v3990_v59  ;;  %v6274_v57 = vadd.f32 %v4417_v23, %v6178_v9 }
 0x2ef   : > { %v3514_v39 = vadd.f32 %v6209_v32, %v3513_v60  ;;  %v3674_v40 = vadd.f32 %v6209_v32, %v3673_v61  ;;  %v4343_v60 = vadd.f32 %v6215_v45, %v4071_v37  ;;  %v4427_v61 = vadd.f32 %v6217_v46, %v4135_v38 }
 0x2f0   : > { %v4199_v0 = vmax.f32 %v3831_v33, 0.0  ;;  %v4263_v51 = vmax.f32 %v3991_v1, 0.0 }
 0x2f2   : > { %v4511_v20 = vadd.f32 %v6221_v56, %v4199_v0  ;;  %v4595_v9 = vadd.f32 %v6223_v31, %v4263_v51 }
 0x2f5   : > { %v3833_v63 = vpop.f32.mrf.mxu2  ;;  %v3993_v2 = vpop.f32.mrf.mxu3 }
 0x2f6   : > { %v3515_v3 = vpop.f32.mrf.mxu0  ;;  %v3675_v4 = vpop.f32.mrf.mxu1  ;;  %v3834_v49 = vadd.f32 %v6209_v32, %v3833_v63  ;;  %v3994_v50 = vadd.f32 %v6209_v32, %v3993_v2  ;;  %v4072_v63 = vmax.f32 %v3514_v39, 0.0  ;;  %v4136_v2 = vmax.f32 %v3674_v40, 0.0 }
 0x2f7   : > { %v3516_v52 = vadd.f32 %v6209_v32, %v3515_v3  ;;  %v3676_v54 = vadd.f32 %v6209_v32, %v3675_v4 }
 0x2f8   : > { %v4200_v19 = vmax.f32 %v3834_v49, 0.0  ;;  %v4264_v3 = vmax.f32 %v3994_v50, 0.0  ;;  %v4344_v33 = vadd.f32 %v4343_v60, %v4072_v63 }
 0x2f9   : > { %v4073_v26 = vmax.f32 %v3516_v52, 0.0 }
 0x2fa   : > { %v4512_v34 = vadd.f32 %v4511_v20, %v4200_v19  ;;  %v4596_v23 = vadd.f32 %v4595_v9, %v4264_v3 }
 0x2fb   : > { %v4345_v39 = vadd.f32 %v4344_v33, %v4073_v26 }
 0x2fd   : > { %v3835_v5 = vpop.f32.mrf.mxu2  ;;  %v3995_v6 = vpop.f32.mrf.mxu3 }
 0x2fe   : > { %v3518_v7 = vpop.f32.mrf.mxu0  ;;  %v3678_v8 = vpop.f32.mrf.mxu1  ;;  %v3836_v59 = vadd.f32 %v6209_v32, %v3835_v5  ;;  %v3996_v15 = vadd.f32 %v6209_v32, %v3995_v6  ;;  %v4137_v5 = vmax.f32 %v3676_v54, 0.0 }
 0x2ff   : > { %v3519_v4 = vadd.f32 %v6209_v32, %v3518_v7  ;;  %v3679_v53 = vadd.f32 %v6209_v32, %v3678_v8  ;;  %v4428_v7 = vadd.f32 %v4427_v61, %v4136_v2 }
 0x300   : > { %v4201_v27 = vmax.f32 %v3836_v59, 0.0  ;;  %v4265_v6 = vmax.f32 %v3996_v15, 0.0 }
 0x301   : > { %v4074_v37 = vmax.f32 %v3519_v4, 0.0  ;;  %v4138_v38 = vmax.f32 %v3679_v53, 0.0 }
 0x302   : > { %v4513_v49 = vadd.f32 %v4512_v34, %v4201_v27  ;;  %v4597_v50 = vadd.f32 %v4596_v23, %v4265_v6 }
 0x303   : > { %v4346_v59 = vadd.f32 %v4345_v39, %v4074_v37 }
 0x305   : > { %v3838_v10 = vpop.f32.mrf.mxu2  ;;  %v3998_v11 = vpop.f32.mrf.mxu3 }
 0x306   : > { %v3520_v14 = vpop.f32.mrf.mxu0  ;;  %v3680_v13 = vpop.f32.mrf.mxu1  ;;  %v3839_v45 = vadd.f32 %v6209_v32, %v3838_v10  ;;  %v3999_v46 = vadd.f32 %v6209_v32, %v3998_v11  ;;  %v4429_v10 = vadd.f32 %v4428_v7, %v4137_v5 }
 0x307   : > { %v3521_v8 = vadd.f32 %v6209_v32, %v3520_v14  ;;  %v3681_v56 = vadd.f32 %v6209_v32, %v3680_v13 }
 0x308   : > { %v4202_v0 = vmax.f32 %v3839_v45, 0.0  ;;  %v4266_v14 = vmax.f32 %v3999_v46, 0.0  ;;  %v4430_v15 = vadd.f32 %v4429_v10, %v4138_v38 }
 0x309   : > { %v4075_v51 = vmax.f32 %v3521_v8, 0.0  ;;  %v4139_v13 = vmax.f32 %v3681_v56, 0.0 }
 0x30a   : > { %v4598_v19 = vadd.f32 %v4597_v50, %v4266_v14 }
 0x30b   : > { %v4347_v53 = vadd.f32 %v4346_v59, %v4075_v51 }
 0x30d   : > { %v6225_v16 = vpop.f32.mrf.mxu2  ;;  %v6227_v17 = vpop.f32.mrf.mxu3 }
 0x30e   : > { %v6229_v18 = vpop.f32.mrf.mxu0  ;;  %v6231_v58 = vpop.f32.mrf.mxu1  ;;  %v3841_v52 = vadd.f32 %v6209_v32, %v6225_v16  ;;  %v4001_v54 = vadd.f32 %v6209_v32, %v6227_v17  ;;  %v4514_v16 = vadd.f32 %v4513_v49, %v4202_v0 }
 0x30f   : > { %v3524_v11 = vadd.f32 %v6209_v32, %v6229_v18  ;;  %v3684_v40 = vadd.f32 %v6209_v32, %v6231_v58 }
 0x310   : > { %v4203_v20 = vmax.f32 %v3841_v52, 0.0  ;;  %v4267_v9 = vmax.f32 %v4001_v54, 0.0 }
 0x311   : > { %v4076_v60 = vmax.f32 %v3524_v11, 0.0  ;;  %v4140_v61 = vmax.f32 %v3684_v40, 0.0 }
 0x312   : > { %v4515_v34 = vadd.f32 %v4514_v16, %v4203_v20  ;;  %v4599_v23 = vadd.f32 %v4598_v19, %v4267_v9 }
 0x313   : > { %v4348_v45 = vadd.f32 %v4347_v53, %v4076_v60 }
 0x315   : > { %v6235_v21 = vpop.f32.mrf.mxu2  ;;  %v6237_v22 = vpop.f32.mrf.mxu3 }
 0x316   : > { %v6239_v47 = vpop.f32.mrf.mxu0  ;;  %v6241_v25 = vpop.f32.mrf.mxu1  ;;  %v3844_v63 = vadd.f32 %v6209_v32, %v6235_v21  ;;  %v4004_v2 = vadd.f32 %v6209_v32, %v6237_v22 }
 0x317   : > { %v3526_v18 = vadd.f32 %v6209_v32, %v6239_v47  ;;  %v3686_v58 = vadd.f32 %v6209_v32, %v6241_v25  ;;  %v4431_v25 = vadd.f32 %v4430_v15, %v4139_v13 }
 0x318   : > { %v4268_v33 = vmax.f32 %v4004_v2, 0.0 }
 0x319   : > { %v4077_v21 = vmax.f32 %v3526_v18, 0.0  ;;  %v4141_v27 = vmax.f32 %v3686_v58, 0.0  ;;  %v4432_v46 = vadd.f32 %v4431_v25, %v4140_v61 }
 0x31a   : > { %v4600_v40 = vadd.f32 %v4599_v23, %v4268_v33  ;;  %v4585_v33 = vrot.slane %v6182_v24, 4 }
 0x31b   : > { %v4349_v38 = vadd.f32 %v4348_v45, %v4077_v21 }
 0x31d   : > { %v6252_v35 = vpop.f32.mrf.mxu2  ;;  %v6254_v36 = vpop.f32.mrf.mxu3 }
 0x31e   : > { %v6258_v42 = vpop.f32.mrf.mxu0  ;;  %v6260_v43 = vpop.f32.mrf.mxu1  ;;  %v3846_v37 = vadd.f32 %v6209_v32, %v6252_v35 }
 0x31f   : > { %v3529_v17 = vadd.f32 %v6209_v32, %v6258_v42  ;;  %v3689_v3 = vadd.f32 %v6209_v32, %v6260_v43  ;;  %v4204_v42 = vmax.f32 %v3844_v63, 0.0 }
 0x320   : > { %v4205_v54 = vmax.f32 %v3846_v37, 0.0 }
 0x321   : > { %v4078_v7 = vmax.f32 %v3529_v17, 0.0  ;;  %v4142_v43 = vmax.f32 %v3689_v3, 0.0  ;;  %v4516_v11 = vadd.f32 %v4515_v34, %v4204_v42  ;;  %v4419_v42 = vrot.slane %v6274_v57, 2 }
 0x323   : > { %v4350_v0 = vadd.f32 %v4349_v38, %v4078_v7  ;;  %v4517_v25 = vadd.f32 %v4516_v11, %v4205_v54 }
 0x325   : > { %v6286_v28 = vpop.f32.mrf.mxu2  ;;  %v6288_v30 = vpop.f32.mrf.mxu3 }
 0x326   : > { %v3530_v1 = vpop.f32.mrf.mxu0  ;;  %v3690_v31 = vpop.f32.mrf.mxu1  ;;  %v3849_v49 = vadd.f32 %v6209_v32, %v6286_v28  ;;  %v4009_v50 = vadd.f32 %v6209_v32, %v6288_v30 }
 0x327   : > { %v3531_v22 = vadd.f32 %v6209_v32, %v3530_v1  ;;  %v3691_v6 = vadd.f32 %v6209_v32, %v3690_v31  ;;  %v4006_v1 = vadd.f32 %v6209_v32, %v6254_v36  ;;  %v4433_v31 = vadd.f32 %v4432_v46, %v4141_v27 }
 0x328   : > { %v4206_v63 = vmax.f32 %v3849_v49, 0.0  ;;  %v4270_v2 = vmax.f32 %v4009_v50, 0.0 }
 0x329   : > { %v4079_v39 = vmax.f32 %v3531_v22, 0.0  ;;  %v4143_v10 = vmax.f32 %v3691_v6, 0.0  ;;  %v4434_v14 = vadd.f32 %v4433_v31, %v4142_v43  ;;  %v4269_v36 = vmax.f32 %v4006_v1, 0.0 }
 0x32a   : > { %v4518_v22 = vadd.f32 %v4517_v25, %v4206_v63 }
 0x32b   : > { %v4351_v60 = vadd.f32 %v4350_v0, %v4079_v39  ;;  %v4435_v61 = vadd.f32 %v4434_v14, %v4143_v10  ;;  %v4420_v0 = vadd.f32 %v4419_v42, %v6274_v57  ;;  %v4586_v14 = vadd.f32 %v4585_v33, %v6182_v24 }
 0x32d   : > { %v3850_v47 = vpop.f32.mrf.mxu2  ;;  %v4010_v4 = vpop.f32.mrf.mxu3  ;;  %v4587_v57 = vrot.slane %v4586_v14, 2 }
 0x32e   : > { %v3533_v26 = vpop.f32.mrf.mxu0  ;;  %v3693_v5 = vpop.f32.mrf.mxu1  ;;  %v3851_v59 = vadd.f32 %v6209_v32, %v3850_v47  ;;  %v4011_v15 = vadd.f32 %v6209_v32, %v4010_v4  ;;  %v4601_v4 = vadd.f32 %v4600_v40, %v4269_v36 }
 0x32f   : > { %v3534_v8 = vadd.f32 %v6209_v32, %v3533_v26  ;;  %v3694_v56 = vadd.f32 %v6209_v32, %v3693_v5  ;;  %v4398_v26 = vrot.slane %v6271_v55, 2  ;;  %v4564_v5 = vrot.slane %v6080_v12, 4 }
 0x330   : > { %v4207_v20 = vmax.f32 %v3851_v59, 0.0  ;;  %v4271_v9 = vmax.f32 %v4011_v15, 0.0  ;;  %v4602_v6 = vadd.f32 %v4601_v4, %v4270_v2  ;;  %v4274_v4 = vld [vmem:[%s6396_s3] sm:$0xff] }
 0x331   : > { %v4080_v51 = vmax.f32 %v3534_v8, 0.0  ;;  %v4144_v13 = vmax.f32 %v3694_v56, 0.0  ;;  %v4399_v38 = vadd.f32 %v4398_v26, %v6271_v55  ;;  %v4565_v31 = vadd.f32 %v4564_v5, %v6080_v12 }
 0x332   : > { %v4519_v34 = vadd.f32 %v4518_v22, %v4207_v20  ;;  %v4603_v23 = vadd.f32 %v4602_v6, %v4271_v9 }
 0x333   : > { %v4352_v17 = vadd.f32 %v4351_v60, %v4080_v51  ;;  %v4436_v3 = vadd.f32 %v4435_v61, %v4144_v13  ;;  %v4400_v54 = vrot.slane %v4399_v38, 1  ;;  %v4566_v12 = vrot.slane %v4565_v31, 2 }
 0x335   : > { %v3853_v35 = vpop.f32.mrf.mxu2  ;;  %v4013_v52 = vpop.f32.mrf.mxu3 }
 0x336   : > { %v3535_v18 = vpop.f32.mrf.mxu0  ;;  %v3695_v58 = vpop.f32.mrf.mxu1  ;;  %v3854_v16 = vadd.f32 %v6209_v32, %v3853_v35  ;;  %v4014_v19 = vadd.f32 %v6209_v32, %v4013_v52  ;;  %v4545_v35 = vrot.slane %v6264_v48, 2 }
 0x337   : > { %v3536_v28 = vadd.f32 %v6209_v32, %v3535_v18  ;;  %v3696_v30 = vadd.f32 %v6209_v32, %v3695_v58  ;;  %v4380_v18 = vadd.f32 %v4379_v44, %v6245_v29  ;;  %v4421_v58 = vrot.slane %v4420_v0, 1 }
 0x338   : > { %v4208_v45 = vmax.f32 %v3854_v16, 0.0  ;;  %v4272_v46 = vmax.f32 %v4014_v19, 0.0  ;;  %v4546_v24 = vadd.f32 %v4545_v35, %v6264_v48  ;;  %v4567_v16 = vadd.f32 %v4566_v12, %v4565_v31 }
 0x339   : > { %v4081_v53 = vmax.f32 %v3536_v28, 0.0  ;;  %v4145_v47 = vmax.f32 %v3696_v30, 0.0  ;;  %v4401_v30 = vadd.f32 %v4400_v54, %v4399_v38 }
 0x33a   : > { %v4520_v11 = vadd.f32 %v4519_v34, %v4208_v45  ;;  %v4604_v40 = vadd.f32 %v4603_v23, %v4272_v46  ;;  %v4547_v25 = vrot.slane %v4546_v24, 1  ;;  %v4568_v26 = vrot.slane %v4567_v16, 1 }
 0x33b   : > { %v4353_v21 = vadd.f32 %v4352_v17, %v4081_v53  ;;  %v4437_v27 = vadd.f32 %v4436_v3, %v4145_v47  ;;  %v4422_v3 = vadd.f32 %v4421_v58, %v4420_v0  ;;  %v4588_v53 = vadd.f32 %v4587_v57, %v4586_v14 }
 0x33c   : > { %v4548_v46 = vadd.f32 %v4547_v25, %v4546_v24  ;;  %v4569_v42 = vadd.f32 %v4568_v26, %v4567_v16 }
 0x33d   : > { %v4354_v7 = vrot.slane %v4353_v21, 4  ;;  %v4438_v43 = vrot.slane %v4437_v27, 4  ;;  %v3855_v8 = vpop.f32.mrf.mxu2  ;;  %v4015_v56 = vpop.f32.mrf.mxu3 }
 0x33e   : > { %v3856_v37 = vadd.f32 %v6209_v32, %v3855_v8  ;;  %v4016_v1 = vadd.f32 %v6209_v32, %v4015_v56  ;;  %v4275_v8 = vld [vmem:[%s6396_s3 + $0x8] sm:$0xff] }
 0x33f   : > { %v4355_v39 = vadd.f32 %v4354_v7, %v4353_v21  ;;  %v4439_v10 = vadd.f32 %v4438_v43, %v4437_v27  ;;  %v4589_v27 = vrot.slane %v4588_v53, 1 }
 0x340   : > { %v4209_v49 = vmax.f32 %v3856_v37, 0.0  ;;  %v4273_v50 = vmax.f32 %v4016_v1, 0.0 }
 0x341   : > { %v4356_v51 = vrot.slane %v4355_v39, 2  ;;  %v4440_v13 = vrot.slane %v4439_v10, 2  ;;  %v4590_v7 = vadd.f32 %v4589_v27, %v4588_v53 }
 0x342   : > { %v4521_v52 = vadd.f32 %v4520_v11, %v4209_v49  ;;  %v4605_v32 = vadd.f32 %v4604_v40, %v4273_v50 }
 0x343   : > { %v4357_v55 = vadd.f32 %v4356_v51, %v4355_v39  ;;  %v4441_v36 = vadd.f32 %v4440_v13, %v4439_v10 }
 0x344   : > { %v4522_v59 = vrot.slane %v4521_v52, 4  ;;  %v4606_v15 = vrot.slane %v4605_v32, 4 }
 0x345   : > { %v4358_v60 = vrot.slane %v4357_v55, 1  ;;  %v4442_v2 = vrot.slane %v4441_v36, 1 }
 0x346   : > { %v4523_v61 = vadd.f32 %v4522_v59, %v4521_v52  ;;  %v4607_v28 = vadd.f32 %v4606_v15, %v4605_v32 }
 0x347   : > { %v4359_v63 = vadd.f32 %v4358_v60, %v4357_v55  ;;  %v4443_v20 = vadd.f32 %v4442_v2, %v4441_v36 }
 0x348   : > { %v4524_v19 = vrot.slane %v4523_v61, 2  ;;  %v4608_v17 = vrot.slane %v4607_v28, 2 }
 0x349   : > { %v4633_v29 = vsel %vm4632_vm2, %v4359_v63, %v6190_v41 }
 0x34a   : > { %v4635_v44 = vsel %vm4634_vm3, %v4380_v18, %v4633_v29  ;;  %v4525_v48 = vadd.f32 %v4524_v19, %v4523_v61  ;;  %v4609_v47 = vadd.f32 %v4608_v17, %v4607_v28 }
 0x34b   : > { %v4637_v9 = vsel %vm4636_vm4, %v4401_v30, %v4635_v44 }
 0x34c   : > { %v4639_v5 = vsel %vm4638_vm5, %v4422_v3, %v4637_v9  ;;  %v4526_v21 = vrot.slane %v4525_v48, 1  ;;  %v4610_v45 = vrot.slane %v4609_v47, 1 }
 0x34d   : > { %v4641_v41 = vsel %vm4640_vm6, %v4443_v20, %v4639_v5 }
 0x34e   : > { %v4651_v22 = vadd.f32 %v4641_v41, %v4274_v4  ;;  %v4527_v6 = vadd.f32 %v4526_v21, %v4525_v48  ;;  %v4611_v56 = vadd.f32 %v4610_v45, %v4609_v47 }
 0x350   : > { %4653 = vst [vmem:[%s6396_s3] sm:$0xff] %v4651_v22  ;;  %v4644_v33 = vsel %vm4632_vm2, %v4527_v6, %v6200_v62 }
 0x351   : > { %v4645_v43 = vsel %vm4634_vm3, %v4548_v46, %v4644_v33 }
 0x352   : > { %v4646_v34 = vsel %vm4636_vm4, %v4569_v42, %v4645_v43 }
 0x353   : > { %v4647_v23 = vsel %vm4638_vm5, %v4590_v7, %v4646_v34  ;;  %4658 = sbr.rel (%p5260_p9) target bundleno = 866 (0x362), region = 92 }
 0x354   : > { %v4648_v37 = vsel %vm4640_vm6, %v4611_v56, %v4647_v23 }
 0x355   : > { %v4652_v1 = vadd.f32 %v4648_v37, %v4275_v8 }
 0x357   : > { %4654 = vst [vmem:[%s6396_s3 + $0x8] sm:$0xff] %v4652_v1 }
 0x358   : > { %v4659_v62 = vld [vmem:[%s6396_s3] sm:$0xff] }
 0x359   : > { %v4661_v31 = vmul.f32 0.00390625, %v4659_v62 }
 0x35b   : > { %4663 = vst [vmem:[%s6396_s3] sm:$0xff] %v4661_v31 }
 0x35e   : > { %v4660_v38 = vld [vmem:[%s6396_s3 + $0x8] sm:$0xff] }
 0x35f   : > { %v4662_v39 = vmul.f32 0.00390625, %v4660_v38 }
 0x361   : > { %4664 = vst [vmem:[%s6396_s3 + $0x8] sm:$0xff] %v4662_v39 }
 0x362 PF: > { %p10_p10 = scmp.ge.s32.totalorder %s5514_s16, 4   ;;  %s6397_s12 = smov %s5470_s13 }
 0x363   : > { %s6398_s13 = smov %s5523_s19  ;;  %s6399_s14 = smov %s5514_s16 }
 0x364   :  { %12 = sbr.rel (!%p10_p10) target bundleno = 2 (0x2), region = 127 }

// kernel: image_captioning_forward.7
= control target key start
LH: loop header
LB: loop body
LE: loop exit
PB: predicated region body
PF: predicated region fallthrough
CT: control target
= control target key end

     0   :  { %s1344_s12 = smov 0   ;;  %s1346_s13 = smov 0   ;;  %s1655_s0 = inlined_call_operand.vmem [shape: bf16[144,128], index: 0, kind: input, shape index: {}]   ;;  %s1656_s1 = inlined_call_operand.vmem [shape: bf16[128,512], index: 1, kind: input, shape index: {}]   ;;  %s1657_s2 = inlined_call_operand.vmem [shape: f32[1,512], index: 2, kind: input, shape index: {}]   ;;  %s1658_s3 = inlined_call_operand.vmem [shape: f32[144,512], index: 3, kind: output, shape index: {}]  }
   0x1   :  { %s1348_s14 = smov 0   ;;  %s1350_s15 = smov 0  }
   0x2   :  { %s1352_s16 = smov 0  }
   0x3 LB: > { %s28_s17 = sadd.s32 1, %s1318_s15  ;;  %s1085_s18 = sadd.s32 4294967295, %s1322_s16   ;;  %s1322_s16 = sphi %s1352_s16, %s13_s16   ;;  %s1318_s15 = sphi %s1350_s15, %s1663_s15   ;;  %s1314_s14 = sphi %s1348_s14, %s1662_s14   ;;  %s1310_s13 = sphi %s1346_s13, %s1661_s13   ;;  %s1306_s12 = sphi %s1344_s12, %s1660_s12  }
   0x4   : > { %p30_p0 = scmp.ge.s32.totalorder %s28_s17, 2  ;;  %p76_p1 = scmp.ne.s32.totalorder %s1310_s13, %s1306_s12 }
   0x5   : > { %p77_p2 = scmp.eq.s32.totalorder %s1322_s16, 0  ;;  %p134_p4 = scmp.eq.s32.totalorder %s1085_s18, 1 }
   0x6   : > { %s1665_s17 = smov (%p30_p0, %s28_s17), 0  ;;  %s69_s20 = sadd.s32 1, %s1310_s13 }
   0x7   : > { %p78_p3 = por %p77_p2, %p76_p1  ;;  %s65_s19 = ssub.s32 %s1318_s15, %s1665_s17 }
   0x8   : > { %p67_p5 = scmp.eq.s32.totalorder %s65_s19, 0  ;;  %p1379_p6 = por %p134_p4, %p76_p1 }
   0x9   : > { %p1089_p7 = scmp.ge.s32.totalorder %s1322_s16, 2 }
   0xa   : > { %s1384_s22 = scalar_select %p67_p5, %s1310_s13, %s69_s20  }
   0xb   : > { %168 = sbr.rel (%p1089_p7) target bundleno = 36 (0x24), region = 20 }
  0x10   : > { %171 = sbr.rel (!%p78_p3) target bundleno = 36 (0x24), region = 24  ;;  %s173_s23 = sand.u32 (%p78_p3), 1, %s1310_s13  }
  0x11   : > { %s1200_s24 = sshll.u32 (%p78_p3), %s1318_s15, 3  ;;  %s1090_s25 = sshll.u32 (%p78_p3), %s173_s23, 7 }
  0x12   : > { %s1392_s28 = scalar_lea.vmem (%p78_p3), %s1656_s1, %s1200_s24  ;;  %s175_s29 = scalar_lea.vmem (%p78_p3), [#allocation3], %s1090_s25 }
  0x13   : > { %v240_v0 = vld [vmem:[%s1392_s28] sm:$0xff] (%p78_p3)  ;;  %v242_v1 = vld [vmem:[%s1392_s28 + $0x10] sm:$0xff] (%p78_p3) }
  0x14   : > { %v244_v2 = vld [vmem:[%s1392_s28 + $0x20] sm:$0xff] (%p78_p3)  ;;  %241 = vst [vmem:[%s175_s29] sm:$0xff] (%p78_p3), %v240_v0  ;;  %v246_v3 = vld [vmem:[%s1392_s28 + $0x30] sm:$0xff] (%p78_p3) }
  0x15   : > { %243 = vst [vmem:[%s175_s29 + $0x8] sm:$0xff] %v242_v1  ;;  %v248_v4 = vld [vmem:[%s1392_s28 + $0x40] sm:$0xff]  ;;  %v250_v5 = vld [vmem:[%s1392_s28 + $0x50] sm:$0xff] }
  0x16   : > { %245 = vst [vmem:[%s175_s29 + $0x10] sm:$0xff] %v244_v2  ;;  %v252_v6 = vld [vmem:[%s1392_s28 + $0x60] sm:$0xff]  ;;  %v254_v7 = vld [vmem:[%s1392_s28 + $0x70] sm:$0xff] }
  0x17   : > { %247 = vst [vmem:[%s175_s29 + $0x18] sm:$0xff] %v246_v3  ;;  %v256_v8 = vld [vmem:[%s1392_s28 + $0x80] sm:$0xff]  ;;  %v258_v9 = vld [vmem:[%s1392_s28 + $0x90] sm:$0xff] }
  0x18   : > { %249 = vst [vmem:[%s175_s29 + $0x20] sm:$0xff] %v248_v4  ;;  %v260_v10 = vld [vmem:[%s1392_s28 + $0xa0] sm:$0xff]  ;;  %v262_v11 = vld [vmem:[%s1392_s28 + $0xb0] sm:$0xff] }
  0x19   : > { %251 = vst [vmem:[%s175_s29 + $0x28] sm:$0xff] %v250_v5  ;;  %v264_v12 = vld [vmem:[%s1392_s28 + $0xc0] sm:$0xff]  ;;  %v266_v13 = vld [vmem:[%s1392_s28 + $0xd0] sm:$0xff] }
  0x1a   : > { %253 = vst [vmem:[%s175_s29 + $0x30] sm:$0xff] %v252_v6  ;;  %v268_v14 = vld [vmem:[%s1392_s28 + $0xe0] sm:$0xff]  ;;  %v270_v15 = vld [vmem:[%s1392_s28 + $0xf0] sm:$0xff] }
  0x1b   : > { %255 = vst [vmem:[%s175_s29 + $0x38] sm:$0xff] %v254_v7 }
  0x1c   : > { %257 = vst [vmem:[%s175_s29 + $0x40] sm:$0xff] %v256_v8 }
  0x1d   : > { %259 = vst [vmem:[%s175_s29 + $0x48] sm:$0xff] %v258_v9 }
  0x1e   : > { %261 = vst [vmem:[%s175_s29 + $0x50] sm:$0xff] %v260_v10 }
  0x1f   : > { %263 = vst [vmem:[%s175_s29 + $0x58] sm:$0xff] %v262_v11 }
  0x20   : > { %265 = vst [vmem:[%s175_s29 + $0x60] sm:$0xff] %v264_v12 }
  0x21   : > { %267 = vst [vmem:[%s175_s29 + $0x68] sm:$0xff] %v266_v13 }
  0x22   : > { %269 = vst [vmem:[%s175_s29 + $0x70] sm:$0xff] %v268_v14 }
  0x23   : > { %271 = vst [vmem:[%s175_s29 + $0x78] sm:$0xff] %v270_v15 }
  0x24 PF: > { %p1093_p8 = scmp.ge.s32.totalorder %s1322_s16, 1  ;;  %p284_p9 = scmp.lt.s32.totalorder %s1322_s16, 3 }
  0x26   : > { %p285_p10 = pnand %p1093_p8, %p284_p9 }
  0x27   : > { %s291_s30 = sand.u32 (!%p285_p10), 1, %s1306_s12   ;;  %s1095_s6 = sshll.u32 (!%p285_p10), %s1314_s14, 1 }
  0x28   : > { %288 = sbr.rel (%p285_p10) target bundleno = 294 (0x126), region = 66  ;;  %s1094_s4 = sshll.u32 (!%p285_p10), %s291_s30, 7 }
  0x29   : > { %s1415_s5 = scalar_lea.vmem (!%p285_p10), [#allocation3], %s1094_s4  ;;  %p337_p11 = scmp.lt.s32.totalorder (!%p285_p10), %s1095_s6, 3 }
  0x2a   : > { %s1243_s10 = smul.u32 (!%p285_p10), 288, %s291_s30 }
  0x2c   : > { %s1488_s11 = scalar_lea.vmem (!%p285_p10), [#allocation4], %s1243_s10 }
  0x2d   : > { %v1190_v16 = vld [vmem:[%s1415_s5 + $0x70] sm:$0xf]  ;;  %v1225_v17 = vld [vmem:[%s1415_s5 + $0x74] sm:$0xf0]  ;;  %v1224_v19 = vld [vmem:[%s1415_s5 + $0x74] sm:$0xf] }
  0x2e   : > { %v1191_v18 = vor.u32 %v1225_v17, %v1190_v16  ;;  %v1192_v20 = vld [vmem:[%s1415_s5 + $0x78] sm:$0xf0]  ;;  %v1182_v21 = vld [vmem:[%s1415_s5 + $0x60] sm:$0xf]  ;;  %v1223_v23 = vld [vmem:[%s1415_s5 + $0x64] sm:$0xf0] }
  0x2f   : > { %v1195_v22 = vor.u32 %v1224_v19, %v1192_v20  ;;  %v1222_v24 = vld [vmem:[%s1415_s5 + $0x64] sm:$0xf]  ;;  %v1184_v25 = vld [vmem:[%s1415_s5 + $0x68] sm:$0xf0]  ;;  %v1183_v26 = vor.u32 %v1223_v23, %v1182_v21  ;;  %v1174_v28 = vld [vmem:[%s1415_s5 + $0x50] sm:$0xf] }
  0x30   : > { %1227 = vmatpush.bf16.msra.mxu2 %v1191_v18  ;;  %587 = vmatpush.bf16.msra.mxu0 %v1191_v18  ;;  %v1187_v27 = vor.u32 %v1222_v24, %v1184_v25  ;;  %v1221_v29 = vld [vmem:[%s1415_s5 + $0x54] sm:$0xf0]  ;;  %v1220_v30 = vld [vmem:[%s1415_s5 + $0x54] sm:$0xf]  ;;  %v1176_v31 = vld [vmem:[%s1415_s5 + $0x58] sm:$0xf0] }
  0x31   : > { %641 = vmatpush.bf16.msra.mxu1 %v1195_v22  ;;  %1235 = vmatpush.bf16.msra.mxu3 %v1195_v22  ;;  %v1175_v32 = vor.u32 %v1221_v29, %v1174_v28  ;;  %v1179_v33 = vor.u32 %v1220_v30, %v1176_v31  ;;  %v1166_v34 = vld [vmem:[%s1415_s5 + $0x40] sm:$0xf]  ;;  %v1219_v35 = vld [vmem:[%s1415_s5 + $0x44] sm:$0xf0]  ;;  %v1218_v36 = vld [vmem:[%s1415_s5 + $0x44] sm:$0xf] }
  0x32   : > { %v1168_v37 = vld [vmem:[%s1415_s5 + $0x48] sm:$0xf0]  ;;  %v1167_v38 = vor.u32 %v1219_v35, %v1166_v34  ;;  %v1158_v40 = vld [vmem:[%s1415_s5 + $0x30] sm:$0xf]  ;;  %v1217_v41 = vld [vmem:[%s1415_s5 + $0x34] sm:$0xf0] }
  0x33   : > { %v1171_v39 = vor.u32 %v1218_v36, %v1168_v37  ;;  %v1216_v42 = vld [vmem:[%s1415_s5 + $0x34] sm:$0xf]  ;;  %v1160_v43 = vld [vmem:[%s1415_s5 + $0x38] sm:$0xf0]  ;;  %v1159_v44 = vor.u32 %v1217_v41, %v1158_v40  ;;  %v1150_v46 = vld [vmem:[%s1415_s5 + $0x20] sm:$0xf] }
  0x34   : > { %1228 = vmatpush.bf16.msra.mxu2 %v1183_v26  ;;  %588 = vmatpush.bf16.msra.mxu0 %v1183_v26  ;;  %v1163_v45 = vor.u32 %v1216_v42, %v1160_v43  ;;  %v1215_v47 = vld [vmem:[%s1415_s5 + $0x24] sm:$0xf0]  ;;  %v1214_v48 = vld [vmem:[%s1415_s5 + $0x24] sm:$0xf]  ;;  %v1152_v49 = vld [vmem:[%s1415_s5 + $0x28] sm:$0xf0] }
  0x35   : > { %642 = vmatpush.bf16.msra.mxu1 %v1187_v27  ;;  %1236 = vmatpush.bf16.msra.mxu3 %v1187_v27  ;;  %v1151_v50 = vor.u32 %v1215_v47, %v1150_v46  ;;  %v1155_v51 = vor.u32 %v1214_v48, %v1152_v49  ;;  %v1142_v52 = vld [vmem:[%s1415_s5 + $0x10] sm:$0xf]  ;;  %v1213_v53 = vld [vmem:[%s1415_s5 + $0x14] sm:$0xf0]  ;;  %v1212_v54 = vld [vmem:[%s1415_s5 + $0x14] sm:$0xf] }
  0x36   : > { %v1144_v55 = vld [vmem:[%s1415_s5 + $0x18] sm:$0xf0]  ;;  %v1143_v56 = vor.u32 %v1213_v53, %v1142_v52  ;;  %v1134_v58 = vld [vmem:[%s1415_s5] sm:$0xf]  ;;  %v1211_v59 = vld [vmem:[%s1415_s5 + $0x4] sm:$0xf0] }
  0x37   : > { %v1147_v57 = vor.u32 %v1212_v54, %v1144_v55  ;;  %v1210_v60 = vld [vmem:[%s1415_s5 + $0x4] sm:$0xf]  ;;  %v1136_v61 = vld [vmem:[%s1415_s5 + $0x8] sm:$0xf0]  ;;  %v1135_v62 = vor.u32 %v1211_v59, %v1134_v58  ;;  %v1207_v4 = vld [vmem:[%s1655_s0 + $0x30] sm:$0xff]  ;;  %s1667_s6 = smov (!%p337_p11, %s1095_s6), 3 }
  0x38   : > { %1229 = vmatpush.bf16.msra.mxu2 %v1175_v32  ;;  %589 = vmatpush.bf16.msra.mxu0 %v1175_v32  ;;  %v1139_v63 = vor.u32 %v1210_v60, %v1136_v61  ;;  %v1205_v0 = vld [vmem:[%s1655_s0 + $0x20] sm:$0xff]  ;;  %v1206_v2 = vld [vmem:[%s1655_s0 + $0x28] sm:$0xff]  ;;  %v1203_v5 = vld [vmem:[%s1655_s0 + $0x10] sm:$0xff]  ;;  %s339_s9 = scalar_lea.vmem %s1657_s2, %s1667_s6  ;;  %s1226_s12 = sshll.u32 (%p1379_p6), %s1314_s14, 4 }
  0x39   : > { %643 = vmatpush.bf16.msra.mxu1 %v1179_v33  ;;  %1237 = vmatpush.bf16.msra.mxu3 %v1179_v33  ;;  %v1201_v1 = vld [vmem:[%s1655_s0] sm:$0xff]  ;;  %v1202_v3 = vld [vmem:[%s1655_s0 + $0x8] sm:$0xff]  ;;  %v1208_v6 = vld [vmem:[%s1655_s0 + $0x38] sm:$0xff]  ;;  %s1568_s19 = scalar_lea.vmem (%p1379_p6), %s1658_s3, %s1226_s12 }
  0x3a   : > { %v1204_v7 = vld [vmem:[%s1655_s0 + $0x18] sm:$0xff]  ;;  %v1209_v8 = vld [vmem:[%s1655_s0 + $0x40] sm:$0xff] }
  0x3b   : > { %v806_v9 = vld [vmem:[%s339_s9] sm:$0x3] }
  0x3c   : > { %1230 = vmatpush.bf16.msra.mxu2 %v1167_v38  ;;  %590 = vmatpush.bf16.msra.mxu0 %v1167_v38  ;;  %v1482_v10 = vperm.slane %v806_v9, 1  ;;  %v1484_v11 = vperm.slane %v806_v9, 0 }
  0x3d   : > { %644 = vmatpush.bf16.msra.mxu1 %v1171_v39  ;;  %1238 = vmatpush.bf16.msra.mxu3 %v1171_v39 }
  0x40   : > { %1231 = vmatpush.bf16.msra.mxu2 %v1159_v44  ;;  %591 = vmatpush.bf16.msra.mxu0 %v1159_v44 }
  0x41   : > { %645 = vmatpush.bf16.msra.mxu1 %v1163_v45  ;;  %1239 = vmatpush.bf16.msra.mxu3 %v1163_v45 }
  0x44   : > { %1232 = vmatpush.bf16.msra.mxu2 %v1151_v50  ;;  %592 = vmatpush.bf16.msra.mxu0 %v1151_v50 }
  0x45   : > { %646 = vmatpush.bf16.msra.mxu1 %v1155_v51  ;;  %1240 = vmatpush.bf16.msra.mxu3 %v1155_v51 }
  0x48   : > { %1233 = vmatpush.bf16.msra.mxu2 %v1143_v56  ;;  %593 = vmatpush.bf16.msra.mxu0 %v1143_v56 }
  0x49   : > { %647 = vmatpush.bf16.msra.mxu1 %v1147_v57  ;;  %1241 = vmatpush.bf16.msra.mxu3 %v1147_v57 }
  0x4c   : > { %1234 = vmatpush.bf16.msra.mxu2 %v1135_v62  ;;  %594 = vmatpush.bf16.msra.mxu0 %v1135_v62 }
  0x4d   : > { %648 = vmatpush.bf16.msra.mxu1 %v1139_v63  ;;  %1242 = vmatpush.bf16.msra.mxu3 %v1139_v63 }
  0x4f   : > { %615 = vmatmul.bf16.vlgmr.msra.gmra.mxu2 %v1205_v0  ;;  %595 = vmatmul.bf16.vlgmr.msra.gmra.mxu0 %v1201_v1 }
  0x50   : > { %649 = vmatmul.bf16.vlgmr.msra.gmra.mxu1 %v1201_v1  ;;  %674 = vmatmul.bf16.vlgmr.msra.gmra.mxu3 %v1206_v2 }
  0x5f   : > { %620 = vmatmul.bf16.gmra.mxu2 %v1206_v2  ;;  %600 = vmatmul.bf16.gmra.mxu0 %v1202_v3 }
  0x60   : > { %654 = vmatmul.bf16.gmra.mxu1 %v1202_v3  ;;  %679 = vmatmul.bf16.gmra.mxu3 %v1207_v4 }
  0x6f   : > { %625 = vmatmul.bf16.gmra.mxu2 %v1207_v4  ;;  %605 = vmatmul.bf16.gmra.mxu0 %v1203_v5 }
  0x70   : > { %659 = vmatmul.bf16.gmra.mxu1 %v1203_v5  ;;  %684 = vmatmul.bf16.gmra.mxu3 %v1208_v6 }
  0x7f   : > { %630 = vmatmul.bf16.gmra.mxu2 %v1208_v6  ;;  %610 = vmatmul.bf16.gmra.mxu0 %v1204_v7 }
  0x80   : > { %664 = vmatmul.bf16.gmra.mxu1 %v1204_v7  ;;  %689 = vmatmul.bf16.gmra.mxu3 %v1209_v8 }
  0x8f   : > { %635 = vmatmul.bf16.gmra.mxu2 %v1209_v8 }
  0x90   : > { %669 = vmatmul.bf16.gmra.mxu1 %v1205_v0 }
  0xcc   : > { %v596_v12 = vpop.f32.mrf.mxu0 }
  0xcd   : > { %v650_v13 = vpop.f32.mrf.mxu1  ;;  %v812_v14 = vadd.f32 %v1484_v11, %v596_v12 }
  0xce   : > { %v813_v15 = vadd.f32 %v1482_v10, %v650_v13 }
  0xcf   : > { %848 = vst [vmem:[%s1488_s11] sm:$0xff] %v812_v14 }
  0xd0   : > { %849 = vst [vmem:[%s1488_s11 + $0x8] sm:$0xff] %v813_v15 }
  0xd2   : > { %v616_v16 = vpop.f32.mrf.mxu2 }
  0xd3   : > { %v828_v17 = vadd.f32 %v1484_v11, %v616_v16  ;;  %v675_v18 = vpop.f32.mrf.mxu3 }
  0xd4   : > { %v833_v19 = vadd.f32 %v1482_v10, %v675_v18  ;;  %v598_v20 = vpop.f32.mrf.mxu0 }
  0xd5   : > { %864 = vst [vmem:[%s1488_s11 + $0x80] sm:$0xff] %v828_v17  ;;  %v652_v21 = vpop.f32.mrf.mxu1  ;;  %v814_v22 = vadd.f32 %v1484_v11, %v598_v20 }
  0xd6   : > { %v815_v23 = vadd.f32 %v1482_v10, %v652_v21  ;;  %869 = vst [vmem:[%s1488_s11 + $0xa8] sm:$0xff] %v833_v19 }
  0xd7   : > { %850 = vst [vmem:[%s1488_s11 + $0x10] sm:$0xff] %v814_v22  ;;  %v911_v22 = vld [vmem:[%s1488_s11 + $0x8] sm:$0xff] (%p1379_p6) }
  0xd8   : > { %851 = vst [vmem:[%s1488_s11 + $0x18] sm:$0xff] %v815_v23 }
  0xd9   : > { %912 = vst [vmem:[%s1568_s19 + $0x8] sm:$0xff] (%p1379_p6), %v911_v22 }
  0xda   : > { %v618_v24 = vpop.f32.mrf.mxu2 }
  0xdb   : > { %v830_v25 = vadd.f32 %v1484_v11, %v618_v24  ;;  %v677_v26 = vpop.f32.mrf.mxu3 }
  0xdc   : > { %v835_v27 = vadd.f32 %v1482_v10, %v677_v26  ;;  %v601_v28 = vpop.f32.mrf.mxu0 }
  0xdd   : > { %866 = vst [vmem:[%s1488_s11 + $0x90] sm:$0xff] %v830_v25  ;;  %v655_v29 = vpop.f32.mrf.mxu1  ;;  %v816_v30 = vadd.f32 %v1484_v11, %v601_v28 }
  0xde   : > { %v817_v31 = vadd.f32 %v1482_v10, %v655_v29  ;;  %871 = vst [vmem:[%s1488_s11 + $0xb8] sm:$0xff] %v835_v27 }
  0xdf   : > { %852 = vst [vmem:[%s1488_s11 + $0x20] sm:$0xff] %v816_v30  ;;  %v915_v23 = vld [vmem:[%s1488_s11 + $0x18] sm:$0xff] (%p1379_p6) }
  0xe0   : > { %853 = vst [vmem:[%s1488_s11 + $0x28] sm:$0xff] %v817_v31 }
  0xe1   : > { %916 = vst [vmem:[%s1568_s19 + $0x28] sm:$0xff] (%p1379_p6), %v915_v23 }
  0xe2   : > { %v621_v32 = vpop.f32.mrf.mxu2 }
  0xe3   : > { %v832_v33 = vadd.f32 %v1484_v11, %v621_v32  ;;  %v680_v34 = vpop.f32.mrf.mxu3 }
  0xe4   : > { %v837_v35 = vadd.f32 %v1482_v10, %v680_v34  ;;  %v603_v36 = vpop.f32.mrf.mxu0 }
  0xe5   : > { %868 = vst [vmem:[%s1488_s11 + $0xa0] sm:$0xff] %v832_v33  ;;  %v657_v37 = vpop.f32.mrf.mxu1  ;;  %v818_v38 = vadd.f32 %v1484_v11, %v603_v36  ;;  %v941_v36 = vld [vmem:[%s1488_s11 + $0x80] sm:$0xff] (%p1379_p6) }
  0xe6   : > { %v819_v39 = vadd.f32 %v1482_v10, %v657_v37  ;;  %873 = vst [vmem:[%s1488_s11 + $0xc8] sm:$0xff] %v837_v35  ;;  %v917_v24 = vld [vmem:[%s1488_s11 + $0x20] sm:$0xff] (%p1379_p6) }
  0xe7   : > { %854 = vst [vmem:[%s1488_s11 + $0x30] sm:$0xff] %v818_v38  ;;  %v919_v25 = vld [vmem:[%s1488_s11 + $0x28] sm:$0xff] (%p1379_p6)  ;;  %v945_v38 = vld [vmem:[%s1488_s11 + $0x90] sm:$0xff] (%p1379_p6) }
  0xe8   : > { %855 = vst [vmem:[%s1488_s11 + $0x38] sm:$0xff] %v819_v39 }
  0xe9   : > { %918 = vst [vmem:[%s1568_s19 + $0x40] sm:$0xff] (%p1379_p6), %v917_v24 }
  0xea   : > { %v623_v40 = vpop.f32.mrf.mxu2  ;;  %920 = vst [vmem:[%s1568_s19 + $0x48] sm:$0xff] (%p1379_p6), %v919_v25 }
  0xeb   : > { %v834_v41 = vadd.f32 %v1484_v11, %v623_v40  ;;  %v682_v42 = vpop.f32.mrf.mxu3  ;;  %942 = vst [vmem:[%s1568_s19 + $0x100] sm:$0xff] (%p1379_p6), %v941_v36 }
  0xec   : > { %v839_v43 = vadd.f32 %v1482_v10, %v682_v42  ;;  %v606_v44 = vpop.f32.mrf.mxu0  ;;  %v949_v40 = vld [vmem:[%s1488_s11 + $0xa0] sm:$0xff] (%p1379_p6)  ;;  %946 = vst [vmem:[%s1568_s19 + $0x120] sm:$0xff] (%p1379_p6), %v945_v38 }
  0xed   : > { %870 = vst [vmem:[%s1488_s11 + $0xb0] sm:$0xff] %v834_v41  ;;  %v660_v45 = vpop.f32.mrf.mxu1  ;;  %v820_v46 = vadd.f32 %v1484_v11, %v606_v44  ;;  %v951_v41 = vld [vmem:[%s1488_s11 + $0xa8] sm:$0xff] (%p1379_p6) }
  0xee   : > { %v821_v47 = vadd.f32 %v1482_v10, %v660_v45  ;;  %875 = vst [vmem:[%s1488_s11 + $0xd8] sm:$0xff] %v839_v43  ;;  %v921_v26 = vld [vmem:[%s1488_s11 + $0x30] sm:$0xff] (%p1379_p6)  ;;  %v955_v43 = vld [vmem:[%s1488_s11 + $0xb8] sm:$0xff] (%p1379_p6)  ;;  %v959_v45 = vld [vmem:[%s1488_s11 + $0xc8] sm:$0xff] (%p1379_p6) }
  0xef   : > { %856 = vst [vmem:[%s1488_s11 + $0x40] sm:$0xff] %v820_v46  ;;  %v923_v27 = vld [vmem:[%s1488_s11 + $0x38] sm:$0xff] (%p1379_p6) }
  0xf0   : > { %857 = vst [vmem:[%s1488_s11 + $0x48] sm:$0xff] %v821_v47 }
  0xf1   : > { %922 = vst [vmem:[%s1568_s19 + $0x60] sm:$0xff] (%p1379_p6), %v921_v26 }
  0xf2   : > { %v626_v48 = vpop.f32.mrf.mxu2  ;;  %924 = vst [vmem:[%s1568_s19 + $0x68] sm:$0xff] (%p1379_p6), %v923_v27 }
  0xf3   : > { %v836_v49 = vadd.f32 %v1484_v11, %v626_v48  ;;  %v685_v50 = vpop.f32.mrf.mxu3  ;;  %950 = vst [vmem:[%s1568_s19 + $0x140] sm:$0xff] (%p1379_p6), %v949_v40 }
  0xf4   : > { %v841_v51 = vadd.f32 %v1482_v10, %v685_v50  ;;  %v608_v52 = vpop.f32.mrf.mxu0  ;;  %v953_v42 = vld [vmem:[%s1488_s11 + $0xb0] sm:$0xff] (%p1379_p6)  ;;  %952 = vst [vmem:[%s1568_s19 + $0x148] sm:$0xff] (%p1379_p6), %v951_v41 }
  0xf5   : > { %872 = vst [vmem:[%s1488_s11 + $0xc0] sm:$0xff] %v836_v49  ;;  %v662_v53 = vpop.f32.mrf.mxu1  ;;  %v822_v54 = vadd.f32 %v1484_v11, %v608_v52  ;;  %v963_v47 = vld [vmem:[%s1488_s11 + $0xd8] sm:$0xff] (%p1379_p6) }
  0xf6   : > { %v823_v55 = vadd.f32 %v1482_v10, %v662_v53  ;;  %877 = vst [vmem:[%s1488_s11 + $0xe8] sm:$0xff] %v841_v51  ;;  %v925_v28 = vld [vmem:[%s1488_s11 + $0x40] sm:$0xff] (%p1379_p6) }
  0xf7   : > { %858 = vst [vmem:[%s1488_s11 + $0x50] sm:$0xff] %v822_v54  ;;  %v927_v29 = vld [vmem:[%s1488_s11 + $0x48] sm:$0xff] (%p1379_p6) }
  0xf8   : > { %859 = vst [vmem:[%s1488_s11 + $0x58] sm:$0xff] %v823_v55 }
  0xf9   : > { %926 = vst [vmem:[%s1568_s19 + $0x80] sm:$0xff] (%p1379_p6), %v925_v28 }
  0xfa   : > { %v628_v56 = vpop.f32.mrf.mxu2  ;;  %928 = vst [vmem:[%s1568_s19 + $0x88] sm:$0xff] (%p1379_p6), %v927_v29 }
  0xfb   : > { %v838_v57 = vadd.f32 %v1484_v11, %v628_v56  ;;  %v687_v58 = vpop.f32.mrf.mxu3  ;;  %954 = vst [vmem:[%s1568_s19 + $0x160] sm:$0xff] (%p1379_p6), %v953_v42 }
  0xfc   : > { %v843_v59 = vadd.f32 %v1482_v10, %v687_v58  ;;  %v611_v60 = vpop.f32.mrf.mxu0  ;;  %v957_v44 = vld [vmem:[%s1488_s11 + $0xc0] sm:$0xff] (%p1379_p6)  ;;  %956 = vst [vmem:[%s1568_s19 + $0x168] sm:$0xff] (%p1379_p6), %v955_v43 }
  0xfd   : > { %874 = vst [vmem:[%s1488_s11 + $0xd0] sm:$0xff] %v838_v57  ;;  %v665_v61 = vpop.f32.mrf.mxu1  ;;  %v824_v62 = vadd.f32 %v1484_v11, %v611_v60  ;;  %v967_v49 = vld [vmem:[%s1488_s11 + $0xe8] sm:$0xff] (%p1379_p6) }
  0xfe   : > { %v825_v63 = vadd.f32 %v1482_v10, %v665_v61  ;;  %879 = vst [vmem:[%s1488_s11 + $0xf8] sm:$0xff] %v843_v59  ;;  %v929_v30 = vld [vmem:[%s1488_s11 + $0x50] sm:$0xff] (%p1379_p6) }
  0xff   : > { %860 = vst [vmem:[%s1488_s11 + $0x60] sm:$0xff] %v824_v62  ;;  %v931_v31 = vld [vmem:[%s1488_s11 + $0x58] sm:$0xff] (%p1379_p6) }
 0x100   : > { %861 = vst [vmem:[%s1488_s11 + $0x68] sm:$0xff] %v825_v63 }
 0x101   : > { %930 = vst [vmem:[%s1568_s19 + $0xa0] sm:$0xff] (%p1379_p6), %v929_v30 }
 0x102   : > { %v631_v0 = vpop.f32.mrf.mxu2  ;;  %932 = vst [vmem:[%s1568_s19 + $0xa8] sm:$0xff] (%p1379_p6), %v931_v31 }
 0x103   : > { %v840_v1 = vadd.f32 %v1484_v11, %v631_v0  ;;  %v690_v2 = vpop.f32.mrf.mxu3  ;;  %958 = vst [vmem:[%s1568_s19 + $0x180] sm:$0xff] (%p1379_p6), %v957_v44 }
 0x104   : > { %v845_v3 = vadd.f32 %v1482_v10, %v690_v2  ;;  %v613_v4 = vpop.f32.mrf.mxu0  ;;  %v961_v46 = vld [vmem:[%s1488_s11 + $0xd0] sm:$0xff] (%p1379_p6)  ;;  %960 = vst [vmem:[%s1568_s19 + $0x188] sm:$0xff] (%p1379_p6), %v959_v45 }
 0x105   : > { %876 = vst [vmem:[%s1488_s11 + $0xe0] sm:$0xff] %v840_v1  ;;  %v667_v5 = vpop.f32.mrf.mxu1  ;;  %v826_v6 = vadd.f32 %v1484_v11, %v613_v4  ;;  %v971_v51 = vld [vmem:[%s1488_s11 + $0xf8] sm:$0xff] (%p1379_p6) }
 0x106   : > { %v827_v7 = vadd.f32 %v1482_v10, %v667_v5  ;;  %881 = vst [vmem:[%s1488_s11 + $0x108] sm:$0xff] %v845_v3  ;;  %v933_v32 = vld [vmem:[%s1488_s11 + $0x60] sm:$0xff] (%p1379_p6) }
 0x107   : > { %862 = vst [vmem:[%s1488_s11 + $0x70] sm:$0xff] %v826_v6  ;;  %v935_v33 = vld [vmem:[%s1488_s11 + $0x68] sm:$0xff] (%p1379_p6) }
 0x108   : > { %863 = vst [vmem:[%s1488_s11 + $0x78] sm:$0xff] %v827_v7 }
 0x109   : > { %934 = vst [vmem:[%s1568_s19 + $0xc0] sm:$0xff] (%p1379_p6), %v933_v32 }
 0x10a   : > { %v633_v8 = vpop.f32.mrf.mxu2  ;;  %936 = vst [vmem:[%s1568_s19 + $0xc8] sm:$0xff] (%p1379_p6), %v935_v33 }
 0x10b   : > { %v842_v9 = vadd.f32 %v1484_v11, %v633_v8  ;;  %v692_v12 = vpop.f32.mrf.mxu3  ;;  %962 = vst [vmem:[%s1568_s19 + $0x1a0] sm:$0xff] (%p1379_p6), %v961_v46 }
 0x10c   : > { %v847_v13 = vadd.f32 %v1482_v10, %v692_v12  ;;  %v965_v48 = vld [vmem:[%s1488_s11 + $0xe0] sm:$0xff] (%p1379_p6)  ;;  %964 = vst [vmem:[%s1568_s19 + $0x1a8] sm:$0xff] (%p1379_p6), %v963_v47 }
 0x10d   : > { %878 = vst [vmem:[%s1488_s11 + $0xf0] sm:$0xff] %v842_v9  ;;  %v670_v14 = vpop.f32.mrf.mxu1  ;;  %v975_v53 = vld [vmem:[%s1488_s11 + $0x108] sm:$0xff] (%p1379_p6) }
 0x10e   : > { %v829_v15 = vadd.f32 %v1482_v10, %v670_v14  ;;  %883 = vst [vmem:[%s1488_s11 + $0x118] sm:$0xff] %v847_v13  ;;  %v937_v34 = vld [vmem:[%s1488_s11 + $0x70] sm:$0xff] (%p1379_p6) }
 0x10f   : > { %v939_v35 = vld [vmem:[%s1488_s11 + $0x78] sm:$0xff] (%p1379_p6)  ;;  %938 = vst [vmem:[%s1568_s19 + $0xe0] sm:$0xff] (%p1379_p6), %v937_v34 }
 0x110   : > { %865 = vst [vmem:[%s1488_s11 + $0x88] sm:$0xff] %v829_v15 }
 0x111   : > { %940 = vst [vmem:[%s1568_s19 + $0xe8] sm:$0xff] (%p1379_p6), %v939_v35 }
 0x112   : > { %v636_v16 = vpop.f32.mrf.mxu2  ;;  %966 = vst [vmem:[%s1568_s19 + $0x1c0] sm:$0xff] (%p1379_p6), %v965_v48 }
 0x113   : > { %v844_v17 = vadd.f32 %v1484_v11, %v636_v16  ;;  %968 = vst [vmem:[%s1568_s19 + $0x1c8] sm:$0xff] (%p1379_p6), %v967_v49 }
 0x114   : > { %v969_v50 = vld [vmem:[%s1488_s11 + $0xf0] sm:$0xff] (%p1379_p6)  ;;  %972 = vst [vmem:[%s1568_s19 + $0x1e8] sm:$0xff] (%p1379_p6), %v971_v51 }
 0x115   : > { %880 = vst [vmem:[%s1488_s11 + $0x100] sm:$0xff] %v844_v17  ;;  %v672_v18 = vpop.f32.mrf.mxu1  ;;  %v979_v55 = vld [vmem:[%s1488_s11 + $0x118] sm:$0xff] (%p1379_p6) }
 0x116   : > { %v831_v19 = vadd.f32 %v1482_v10, %v672_v18  ;;  %v909_v10 = vld [vmem:[%s1488_s11] sm:$0xff] (%p1379_p6)  ;;  %970 = vst [vmem:[%s1568_s19 + $0x1e0] sm:$0xff] (%p1379_p6), %v969_v50 }
 0x117   : > { %910 = vst [vmem:[%s1568_s19] sm:$0xff] (%p1379_p6), %v909_v10  ;;  %v943_v37 = vld [vmem:[%s1488_s11 + $0x88] sm:$0xff] (%p1379_p6) }
 0x118   : > { %867 = vst [vmem:[%s1488_s11 + $0x98] sm:$0xff] %v831_v19 }
 0x119   : > { %890 = sbr.rel (!%p1379_p6) target bundleno = 294 (0x126), region = 82  ;;  %944 = vst [vmem:[%s1568_s19 + $0x108] sm:$0xff] (%p1379_p6), %v943_v37 }
 0x11a   : > { %v638_v20 = vpop.f32.mrf.mxu2  ;;  %976 = vst [vmem:[%s1568_s19 + $0x208] sm:$0xff] (%p1379_p6), %v975_v53 }
 0x11b   : > { %v846_v21 = vadd.f32 %v1484_v11, %v638_v20  ;;  %v913_v11 = vld [vmem:[%s1488_s11 + $0x10] sm:$0xff] (%p1379_p6)  ;;  %980 = vst [vmem:[%s1568_s19 + $0x228] sm:$0xff] (%p1379_p6), %v979_v55 }
 0x11c   : > { %914 = vst [vmem:[%s1568_s19 + $0x20] sm:$0xff] (%p1379_p6), %v913_v11  ;;  %v973_v52 = vld [vmem:[%s1488_s11 + $0x100] sm:$0xff] (%p1379_p6) }
 0x11d   : > { %882 = vst [vmem:[%s1488_s11 + $0x110] sm:$0xff] %v846_v21 }
 0x11e   : > { %974 = vst [vmem:[%s1568_s19 + $0x200] sm:$0xff] %v973_v52 }
 0x11f   : > { %v947_v39 = vld [vmem:[%s1488_s11 + $0x98] sm:$0xff] }
 0x120   : > { %948 = vst [vmem:[%s1568_s19 + $0x128] sm:$0xff] %v947_v39 }
 0x124   : > { %v977_v54 = vld [vmem:[%s1488_s11 + $0x110] sm:$0xff] }
 0x125   : > { %978 = vst [vmem:[%s1568_s19 + $0x220] sm:$0xff] %v977_v54 }
 0x126 PF: > { %s13_s16 = sadd.s32 1, %s1322_s16   ;;  %s1660_s12 = smov %s1310_s13 }
 0x127   : > { %p10_p12 = scmp.ge.s32.totalorder %s13_s16, 4   ;;  %s1661_s13 = smov %s1384_s22 }
 0x128   : > { %s1662_s14 = smov %s1318_s15  ;;  %s1663_s15 = smov %s1665_s17 }
 0x129   :  { %12 = sbr.rel (!%p10_p12) target bundleno = 3 (0x3), region = 142 }

// kernel: image_captioning_forward.9
= control target key start
LH: loop header
LB: loop body
LE: loop exit
PB: predicated region body
PF: predicated region fallthrough
CT: control target
= control target key end

     0   :  { %s583_s1 = inlined_call_operand.vmem [shape: bf16[128,128], index: 1, kind: input, shape index: {}]   ;;  %s584_s2 = inlined_call_operand.vmem [shape: f32[1,128], index: 2, kind: input, shape index: {}]   ;;  %s585_s0 = inlined_call_operand.vmem [shape: bf16[144,128], index: 0, kind: input, shape index: {}]   ;;  %s586_s3 = inlined_call_operand.vmem [shape: f32[144,128], index: 3, kind: output, shape index: {}]  }
   0x1   :  { %v429_v0 = vld [vmem:[%s583_s1 + $0x38] sm:$0xff]  ;;  %v428_v1 = vld [vmem:[%s583_s1 + $0x30] sm:$0xff]  ;;  %v427_v2 = vld [vmem:[%s583_s1 + $0x28] sm:$0xff] }
   0x2   :  { %431 = vmatpush.bf16.msra.mxu2 %v429_v0  ;;  %432 = vmatpush.bf16.msra.mxu3 %v429_v0  ;;  %v426_v3 = vld [vmem:[%s583_s1 + $0x20] sm:$0xff]  ;;  %v425_v4 = vld [vmem:[%s583_s1 + $0x18] sm:$0xff]  ;;  %v424_v5 = vld [vmem:[%s583_s1 + $0x10] sm:$0xff] }
   0x3   :  { %190 = vmatpush.bf16.msra.mxu0 %v429_v0  ;;  %430 = vmatpush.bf16.msra.mxu1 %v429_v0  ;;  %v423_v6 = vld [vmem:[%s583_s1 + $0x8] sm:$0xff]  ;;  %v422_v7 = vld [vmem:[%s583_s1] sm:$0xff]  ;;  %v420_v9 = vld [vmem:[%s585_s0 + $0x38] sm:$0xff] }
   0x4   :  { %v417_v8 = vld [vmem:[%s585_s0 + $0x20] sm:$0xff]  ;;  %v415_v11 = vld [vmem:[%s585_s0 + $0x10] sm:$0xff]  ;;  %v418_v12 = vld [vmem:[%s585_s0 + $0x28] sm:$0xff] }
   0x5   :  { %v413_v10 = vld [vmem:[%s585_s0] sm:$0xff]  ;;  %v414_v14 = vld [vmem:[%s585_s0 + $0x8] sm:$0xff]  ;;  %v416_v15 = vld [vmem:[%s585_s0 + $0x18] sm:$0xff] }
   0x6   :  { %434 = vmatpush.bf16.msra.mxu2 %v428_v1  ;;  %435 = vmatpush.bf16.msra.mxu3 %v428_v1  ;;  %v421_v13 = vld [vmem:[%s585_s0 + $0x40] sm:$0xff]  ;;  %v419_v16 = vld [vmem:[%s585_s0 + $0x30] sm:$0xff] }
   0x7   :  { %191 = vmatpush.bf16.msra.mxu0 %v428_v1  ;;  %433 = vmatpush.bf16.msra.mxu1 %v428_v1  ;;  %v454_v17 = vld [vmem:[%s584_s2] ss:$0 sm:$0xff] }
   0xa   :  { %437 = vmatpush.bf16.msra.mxu2 %v427_v2  ;;  %438 = vmatpush.bf16.msra.mxu3 %v427_v2 }
   0xb   :  { %192 = vmatpush.bf16.msra.mxu0 %v427_v2  ;;  %436 = vmatpush.bf16.msra.mxu1 %v427_v2 }
   0xe   :  { %440 = vmatpush.bf16.msra.mxu2 %v426_v3  ;;  %441 = vmatpush.bf16.msra.mxu3 %v426_v3 }
   0xf   :  { %193 = vmatpush.bf16.msra.mxu0 %v426_v3  ;;  %439 = vmatpush.bf16.msra.mxu1 %v426_v3 }
  0x12   :  { %443 = vmatpush.bf16.msra.mxu2 %v425_v4  ;;  %444 = vmatpush.bf16.msra.mxu3 %v425_v4 }
  0x13   :  { %194 = vmatpush.bf16.msra.mxu0 %v425_v4  ;;  %442 = vmatpush.bf16.msra.mxu1 %v425_v4 }
  0x16   :  { %446 = vmatpush.bf16.msra.mxu2 %v424_v5  ;;  %447 = vmatpush.bf16.msra.mxu3 %v424_v5 }
  0x17   :  { %195 = vmatpush.bf16.msra.mxu0 %v424_v5  ;;  %445 = vmatpush.bf16.msra.mxu1 %v424_v5 }
  0x1a   :  { %449 = vmatpush.bf16.msra.mxu2 %v423_v6  ;;  %450 = vmatpush.bf16.msra.mxu3 %v423_v6 }
  0x1b   :  { %196 = vmatpush.bf16.msra.mxu0 %v423_v6  ;;  %448 = vmatpush.bf16.msra.mxu1 %v423_v6 }
  0x1e   :  { %452 = vmatpush.bf16.msra.mxu2 %v422_v7  ;;  %453 = vmatpush.bf16.msra.mxu3 %v422_v7 }
  0x1f   :  { %197 = vmatpush.bf16.msra.mxu0 %v422_v7  ;;  %451 = vmatpush.bf16.msra.mxu1 %v422_v7 }
  0x21   :  { %218 = vmatmul.bf16.vlgmr.msra.gmra.mxu2 %v417_v8  ;;  %233 = vmatmul.bf16.vlgmr.msra.gmra.mxu3 %v420_v9 }
  0x22   :  { %198 = vmatmul.bf16.vlgmr.msra.gmra.mxu0 %v413_v10  ;;  %208 = vmatmul.bf16.vlgmr.msra.gmra.mxu1 %v415_v11 }
  0x31   :  { %223 = vmatmul.bf16.gmra.mxu2 %v418_v12  ;;  %238 = vmatmul.bf16.gmra.mxu3 %v421_v13 }
  0x32   :  { %203 = vmatmul.bf16.gmra.mxu0 %v414_v14  ;;  %213 = vmatmul.bf16.gmra.mxu1 %v416_v15 }
  0x41   :  { %228 = vmatmul.bf16.gmra.mxu2 %v419_v16 }
  0x9f   :  { %v199_v18 = vpop.f32.mrf.mxu0  ;;  %v209_v19 = vpop.f32.mrf.mxu1 }
  0xa0   :  { %v305_v20 = vadd.f32 %v454_v17, %v199_v18  ;;  %v309_v21 = vadd.f32 %v454_v17, %v209_v19 }
  0xa2   :  { %323 = vst [vmem:[%s586_s3] sm:$0xff] %v305_v20 }
  0xa3   :  { %327 = vst [vmem:[%s586_s3 + $0x20] sm:$0xff] %v309_v21 }
  0xa4   :  { %v219_v22 = vpop.f32.mrf.mxu2  ;;  %v234_v23 = vpop.f32.mrf.mxu3 }
  0xa5   :  { %v313_v24 = vadd.f32 %v454_v17, %v219_v22  ;;  %v319_v25 = vadd.f32 %v454_v17, %v234_v23 }
  0xa7   :  { %331 = vst [vmem:[%s586_s3 + $0x40] sm:$0xff] %v313_v24  ;;  %v201_v26 = vpop.f32.mrf.mxu0  ;;  %v211_v27 = vpop.f32.mrf.mxu1 }
  0xa8   :  { %337 = vst [vmem:[%s586_s3 + $0x70] sm:$0xff] %v319_v25  ;;  %v306_v28 = vadd.f32 %v454_v17, %v201_v26  ;;  %v310_v29 = vadd.f32 %v454_v17, %v211_v27 }
  0xaa   :  { %324 = vst [vmem:[%s586_s3 + $0x8] sm:$0xff] %v306_v28 }
  0xab   :  { %328 = vst [vmem:[%s586_s3 + $0x28] sm:$0xff] %v310_v29 }
  0xac   :  { %v221_v30 = vpop.f32.mrf.mxu2  ;;  %v236_v31 = vpop.f32.mrf.mxu3 }
  0xad   :  { %v314_v32 = vadd.f32 %v454_v17, %v221_v30  ;;  %v320_v33 = vadd.f32 %v454_v17, %v236_v31 }
  0xaf   :  { %332 = vst [vmem:[%s586_s3 + $0x48] sm:$0xff] %v314_v32  ;;  %v204_v34 = vpop.f32.mrf.mxu0  ;;  %v214_v35 = vpop.f32.mrf.mxu1 }
  0xb0   :  { %338 = vst [vmem:[%s586_s3 + $0x78] sm:$0xff] %v320_v33  ;;  %v307_v36 = vadd.f32 %v454_v17, %v204_v34  ;;  %v311_v37 = vadd.f32 %v454_v17, %v214_v35 }
  0xb2   :  { %325 = vst [vmem:[%s586_s3 + $0x10] sm:$0xff] %v307_v36 }
  0xb3   :  { %329 = vst [vmem:[%s586_s3 + $0x30] sm:$0xff] %v311_v37 }
  0xb4   :  { %v224_v38 = vpop.f32.mrf.mxu2  ;;  %v239_v39 = vpop.f32.mrf.mxu3 }
  0xb5   :  { %v315_v40 = vadd.f32 %v454_v17, %v224_v38  ;;  %v321_v41 = vadd.f32 %v454_v17, %v239_v39 }
  0xb7   :  { %333 = vst [vmem:[%s586_s3 + $0x50] sm:$0xff] %v315_v40  ;;  %v206_v42 = vpop.f32.mrf.mxu0  ;;  %v216_v43 = vpop.f32.mrf.mxu1 }
  0xb8   :  { %339 = vst [vmem:[%s586_s3 + $0x80] sm:$0xff] %v321_v41  ;;  %v308_v44 = vadd.f32 %v454_v17, %v206_v42  ;;  %v312_v45 = vadd.f32 %v454_v17, %v216_v43 }
  0xba   :  { %326 = vst [vmem:[%s586_s3 + $0x18] sm:$0xff] %v308_v44 }
  0xbb   :  { %330 = vst [vmem:[%s586_s3 + $0x38] sm:$0xff] %v312_v45 }
  0xbc   :  { %v226_v46 = vpop.f32.mrf.mxu2  ;;  %v241_v47 = vpop.f32.mrf.mxu3 }
  0xbd   :  { %v316_v48 = vadd.f32 %v454_v17, %v226_v46  ;;  %v322_v49 = vadd.f32 %v454_v17, %v241_v47 }
  0xbf   :  { %334 = vst [vmem:[%s586_s3 + $0x58] sm:$0xff] %v316_v48 }
  0xc0   :  { %340 = vst [vmem:[%s586_s3 + $0x88] sm:$0xff] %v322_v49 }
  0xc4   :  { %v229_v50 = vpop.f32.mrf.mxu2 }
  0xc5   :  { %v317_v51 = vadd.f32 %v454_v17, %v229_v50 }
  0xc7   :  { %335 = vst [vmem:[%s586_s3 + $0x60] sm:$0xff] %v317_v51 }
  0xcc   :  { %v231_v52 = vpop.f32.mrf.mxu2 }
  0xcd   :  { %v318_v53 = vadd.f32 %v454_v17, %v231_v52 }
  0xcf   :  { %336 = vst [vmem:[%s586_s3 + $0x68] sm:$0xff] %v318_v53 }

// kernel: image_captioning_forward.8
= control target key start
LH: loop header
LB: loop body
LE: loop exit
PB: predicated region body
PF: predicated region fallthrough
CT: control target
= control target key end

     0   :  { %s8294_s1 = inlined_call_operand.vmem [shape: bf16[128,512], index: 1, kind: input, shape index: {}]   ;;  %s8295_s0 = inlined_call_operand.vmem [shape: f32[9,16,512], index: 0, kind: input, shape index: {}]   ;;  %s8296_s2 = inlined_call_operand.vmem [shape: bf16[9,16,128], index: 2, kind: output, shape index: {}]  }
   0x1   :  { %v3569_v0 = vld [vmem:[%s8294_s1 + $0xe0] sm:$0xf]  ;;  %v5019_v1 = vld [vmem:[%s8294_s1 + $0xec] sm:$0xf0]  ;;  %v5001_v2 = vld [vmem:[%s8294_s1 + $0xe4] sm:$0xf] }
   0x2   :  { %v3570_v3 = vor.u32 %v5019_v1, %v3569_v0  ;;  %v3571_v4 = vld [vmem:[%s8294_s1 + $0xf0] sm:$0xf0]  ;;  %v5010_v5 = vld [vmem:[%s8294_s1 + $0xec] sm:$0xf]  ;;  %v3579_v6 = vld [vmem:[%s8294_s1 + $0xf8] sm:$0xf0] }
   0x3   :  { %v3574_v7 = vor.u32 %v5001_v2, %v3571_v4  ;;  %v3582_v8 = vor.u32 %v5010_v5, %v3579_v6  ;;  %v3553_v9 = vld [vmem:[%s8294_s1 + $0xc0] sm:$0xf]  ;;  %v4983_v10 = vld [vmem:[%s8294_s1 + $0xcc] sm:$0xf0]  ;;  %v4965_v11 = vld [vmem:[%s8294_s1 + $0xc4] sm:$0xf] }
   0x4   :  { %227 = vmatpush.bf16.msra.mxu0 %v3570_v3  ;;  %v3554_v12 = vor.u32 %v4983_v10, %v3553_v9  ;;  %v3555_v13 = vld [vmem:[%s8294_s1 + $0xd0] sm:$0xf0]  ;;  %v4974_v14 = vld [vmem:[%s8294_s1 + $0xcc] sm:$0xf]  ;;  %v3563_v15 = vld [vmem:[%s8294_s1 + $0xd8] sm:$0xf0] }
   0x5   :  { %241 = vmatpush.bf16.msra.mxu1 %v3574_v7  ;;  %269 = vmatpush.bf16.msra.mxu3 %v3582_v8  ;;  %v3558_v16 = vor.u32 %v4965_v11, %v3555_v13  ;;  %v3566_v17 = vor.u32 %v4974_v14, %v3563_v15  ;;  %v3577_v18 = vld [vmem:[%s8294_s1 + $0xe8] sm:$0xf]  ;;  %v5028_v19 = vld [vmem:[%s8294_s1 + $0xf4] sm:$0xf0]  ;;  %v3537_v20 = vld [vmem:[%s8294_s1 + $0xa0] sm:$0xf] }
   0x6   :  { %v3578_v21 = vor.u32 %v5028_v19, %v3577_v18  ;;  %v4947_v22 = vld [vmem:[%s8294_s1 + $0xac] sm:$0xf0]  ;;  %v4929_v23 = vld [vmem:[%s8294_s1 + $0xa4] sm:$0xf]  ;;  %v3539_v24 = vld [vmem:[%s8294_s1 + $0xb0] sm:$0xf0] }
   0x7   :  { %v4938_v25 = vld [vmem:[%s8294_s1 + $0xac] sm:$0xf]  ;;  %v3547_v26 = vld [vmem:[%s8294_s1 + $0xb8] sm:$0xf0]  ;;  %v3561_v27 = vld [vmem:[%s8294_s1 + $0xc8] sm:$0xf]  ;;  %v3538_v28 = vor.u32 %v4947_v22, %v3537_v20  ;;  %v3542_v32 = vor.u32 %v4929_v23, %v3539_v24 }
   0x8   :  { %228 = vmatpush.bf16.msra.mxu0 %v3554_v12  ;;  %255 = vmatpush.bf16.msra.mxu2 %v3578_v21  ;;  %v4992_v29 = vld [vmem:[%s8294_s1 + $0xd4] sm:$0xf0]  ;;  %v3521_v30 = vld [vmem:[%s8294_s1 + $0x80] sm:$0xf]  ;;  %v4911_v31 = vld [vmem:[%s8294_s1 + $0x8c] sm:$0xf0]  ;;  %v3550_v33 = vor.u32 %v4938_v25, %v3547_v26 }
   0x9   :  { %242 = vmatpush.bf16.msra.mxu1 %v3558_v16  ;;  %270 = vmatpush.bf16.msra.mxu3 %v3566_v17  ;;  %v3562_v34 = vor.u32 %v4992_v29, %v3561_v27  ;;  %v4893_v35 = vld [vmem:[%s8294_s1 + $0x84] sm:$0xf]  ;;  %v3523_v36 = vld [vmem:[%s8294_s1 + $0x90] sm:$0xf0]  ;;  %v4902_v37 = vld [vmem:[%s8294_s1 + $0x8c] sm:$0xf]  ;;  %v3522_v41 = vor.u32 %v4911_v31, %v3521_v30 }
   0xa   :  { %v3531_v38 = vld [vmem:[%s8294_s1 + $0x98] sm:$0xf0]  ;;  %v3545_v39 = vld [vmem:[%s8294_s1 + $0xa8] sm:$0xf]  ;;  %v4956_v40 = vld [vmem:[%s8294_s1 + $0xb4] sm:$0xf0]  ;;  %v3526_v45 = vor.u32 %v4893_v35, %v3523_v36 }
   0xb   :  { %v3546_v42 = vor.u32 %v4956_v40, %v3545_v39  ;;  %v3505_v43 = vld [vmem:[%s8294_s1 + $0x60] sm:$0xf]  ;;  %v4875_v44 = vld [vmem:[%s8294_s1 + $0x6c] sm:$0xf0]  ;;  %v3534_v46 = vor.u32 %v4902_v37, %v3531_v38  ;;  %v4857_v47 = vld [vmem:[%s8294_s1 + $0x64] sm:$0xf] }
   0xc   :  { %229 = vmatpush.bf16.msra.mxu0 %v3538_v28  ;;  %256 = vmatpush.bf16.msra.mxu2 %v3562_v34  ;;  %v3529_v48 = vld [vmem:[%s8294_s1 + $0x88] sm:$0xf]  ;;  %v4920_v49 = vld [vmem:[%s8294_s1 + $0x94] sm:$0xf0]  ;;  %v3507_v50 = vld [vmem:[%s8294_s1 + $0x70] sm:$0xf0]  ;;  %v3506_v53 = vor.u32 %v4875_v44, %v3505_v43 }
   0xd   :  { %243 = vmatpush.bf16.msra.mxu1 %v3542_v32  ;;  %271 = vmatpush.bf16.msra.mxu3 %v3550_v33  ;;  %v4866_v51 = vld [vmem:[%s8294_s1 + $0x6c] sm:$0xf]  ;;  %v3515_v52 = vld [vmem:[%s8294_s1 + $0x78] sm:$0xf0]  ;;  %v3530_v54 = vor.u32 %v4920_v49, %v3529_v48  ;;  %v3489_v55 = vld [vmem:[%s8294_s1 + $0x40] sm:$0xf]  ;;  %v3510_v57 = vor.u32 %v4857_v47, %v3507_v50 }
   0xe   :  { %v4839_v56 = vld [vmem:[%s8294_s1 + $0x4c] sm:$0xf0]  ;;  %v3518_v58 = vor.u32 %v4866_v51, %v3515_v52  ;;  %v4821_v59 = vld [vmem:[%s8294_s1 + $0x44] sm:$0xf]  ;;  %v3513_v60 = vld [vmem:[%s8294_s1 + $0x68] sm:$0xf] }
   0xf   :  { %v4884_v61 = vld [vmem:[%s8294_s1 + $0x74] sm:$0xf0]  ;;  %v3491_v62 = vld [vmem:[%s8294_s1 + $0x50] sm:$0xf0]  ;;  %v4830_v63 = vld [vmem:[%s8294_s1 + $0x4c] sm:$0xf]  ;;  %v3490_v1 = vor.u32 %v4839_v56, %v3489_v55 }
  0x10   :  { %230 = vmatpush.bf16.msra.mxu0 %v3522_v41  ;;  %257 = vmatpush.bf16.msra.mxu2 %v3546_v42  ;;  %v3499_v0 = vld [vmem:[%s8294_s1 + $0x58] sm:$0xf0]  ;;  %v3514_v2 = vor.u32 %v4884_v61, %v3513_v60  ;;  %v3473_v3 = vld [vmem:[%s8294_s1 + $0x20] sm:$0xf]  ;;  %v4803_v4 = vld [vmem:[%s8294_s1 + $0x2c] sm:$0xf0]  ;;  %v3494_v5 = vor.u32 %v4821_v59, %v3491_v62 }
  0x11   :  { %244 = vmatpush.bf16.msra.mxu1 %v3526_v45  ;;  %272 = vmatpush.bf16.msra.mxu3 %v3534_v46  ;;  %v3502_v6 = vor.u32 %v4830_v63, %v3499_v0  ;;  %v4785_v7 = vld [vmem:[%s8294_s1 + $0x24] sm:$0xf]  ;;  %v3497_v8 = vld [vmem:[%s8294_s1 + $0x48] sm:$0xf]  ;;  %v4848_v9 = vld [vmem:[%s8294_s1 + $0x54] sm:$0xf0]  ;;  %v3474_v13 = vor.u32 %v4803_v4, %v3473_v3 }
  0x12   :  { %v3475_v10 = vld [vmem:[%s8294_s1 + $0x30] sm:$0xf0]  ;;  %v4794_v11 = vld [vmem:[%s8294_s1 + $0x2c] sm:$0xf]  ;;  %v3483_v12 = vld [vmem:[%s8294_s1 + $0x38] sm:$0xf0]  ;;  %v3498_v14 = vor.u32 %v4848_v9, %v3497_v8 }
  0x13   :  { %v3457_v15 = vld [vmem:[%s8294_s1] sm:$0xf]  ;;  %v4767_v16 = vld [vmem:[%s8294_s1 + $0xc] sm:$0xf0]  ;;  %v3478_v17 = vor.u32 %v4785_v7, %v3475_v10  ;;  %v3486_v18 = vor.u32 %v4794_v11, %v3483_v12  ;;  %v4749_v19 = vld [vmem:[%s8294_s1 + $0x4] sm:$0xf] }
  0x14   :  { %231 = vmatpush.bf16.msra.mxu0 %v3506_v53  ;;  %258 = vmatpush.bf16.msra.mxu2 %v3530_v54  ;;  %v3481_v20 = vld [vmem:[%s8294_s1 + $0x28] sm:$0xf]  ;;  %v4812_v21 = vld [vmem:[%s8294_s1 + $0x34] sm:$0xf0]  ;;  %v3459_v22 = vld [vmem:[%s8294_s1 + $0x10] sm:$0xf0]  ;;  %v3458_v25 = vor.u32 %v4767_v16, %v3457_v15 }
  0x15   :  { %245 = vmatpush.bf16.msra.mxu1 %v3510_v57  ;;  %273 = vmatpush.bf16.msra.mxu3 %v3518_v58  ;;  %v4758_v23 = vld [vmem:[%s8294_s1 + $0xc] sm:$0xf]  ;;  %v3467_v24 = vld [vmem:[%s8294_s1 + $0x18] sm:$0xf0]  ;;  %v3482_v26 = vor.u32 %v4812_v21, %v3481_v20  ;;  %v3462_v27 = vor.u32 %v4749_v19, %v3459_v22  ;;  %v3465_v29 = vld [vmem:[%s8294_s1 + $0x8] sm:$0xf] }
  0x16   :  { %v3470_v28 = vor.u32 %v4758_v23, %v3467_v24  ;;  %v4776_v30 = vld [vmem:[%s8294_s1 + $0x14] sm:$0xf0]  ;;  %v5371_v32 = vmov 0.0|0.0   ;;  %v56_v33 = vld [vmem:[%s8295_s0] sm:$0xff]  ;;  %v57_v34 = vld [vmem:[%s8295_s0 + $0x8] sm:$0xff] }
  0x17   :  { %v3466_v31 = vor.u32 %v4776_v30, %v3465_v29  ;;  %v3711_v35 = vld [vmem:[%s8294_s1 + $0xe0] sm:$0xf]  ;;  %v5018_v36 = vld [vmem:[%s8294_s1 + $0xec] sm:$0xf0]  ;;  %v5000_v37 = vld [vmem:[%s8294_s1 + $0xe4] sm:$0xf] }
  0x18   :  { %232 = vmatpush.bf16.msra.mxu0 %v3490_v1  ;;  %259 = vmatpush.bf16.msra.mxu2 %v3514_v2  ;;  %v3712_v38 = vor.u32 %v5018_v36, %v3711_v35  ;;  %v3713_v39 = vld [vmem:[%s8294_s1 + $0xf0] sm:$0xf0]  ;;  %v3719_v40 = vld [vmem:[%s8294_s1 + $0xe8] sm:$0xf]  ;;  %v5027_v41 = vld [vmem:[%s8294_s1 + $0xf4] sm:$0xf0] }
  0x19   :  { %246 = vmatpush.bf16.msra.mxu1 %v3494_v5  ;;  %274 = vmatpush.bf16.msra.mxu3 %v3502_v6  ;;  %v3716_v43 = vor.u32 %v5000_v37, %v3713_v39  ;;  %v3720_v44 = vor.u32 %v5027_v41, %v3719_v40  ;;  %v5009_v45 = vld [vmem:[%s8294_s1 + $0xec] sm:$0xf]  ;;  %v3721_v46 = vld [vmem:[%s8294_s1 + $0xf8] sm:$0xf0]  ;;  %v3695_v51 = vld [vmem:[%s8294_s1 + $0xc0] sm:$0xf] }
  0x1a   :  { %v3724_v49 = vor.u32 %v5009_v45, %v3721_v46  ;;  %v4982_v52 = vld [vmem:[%s8294_s1 + $0xcc] sm:$0xf0]  ;;  %v4964_v53 = vld [vmem:[%s8294_s1 + $0xc4] sm:$0xf]  ;;  %v59_v55 = vld [vmem:[%s8295_s0 + $0x18] sm:$0xff] }
  0x1b   :  { %v3696_v56 = vor.u32 %v4982_v52, %v3695_v51  ;;  %v3697_v57 = vld [vmem:[%s8294_s1 + $0xd0] sm:$0xf0]  ;;  %v3703_v58 = vld [vmem:[%s8294_s1 + $0xc8] sm:$0xf]  ;;  %v4991_v61 = vld [vmem:[%s8294_s1 + $0xd4] sm:$0xf0] }
  0x1c   :  { %233 = vmatpush.bf16.msra.mxu0 %v3474_v13  ;;  %260 = vmatpush.bf16.msra.mxu2 %v3498_v14  ;;  %v3700_v60 = vor.u32 %v4964_v53, %v3697_v57  ;;  %v4973_v62 = vld [vmem:[%s8294_s1 + $0xcc] sm:$0xf]  ;;  %v60_v63 = vld [vmem:[%s8295_s0 + $0x20] sm:$0xff]  ;;  %v3704_v1 = vor.u32 %v4991_v61, %v3703_v58  ;;  %v3705_v2 = vld [vmem:[%s8294_s1 + $0xd8] sm:$0xf0] }
  0x1d   :  { %247 = vmatpush.bf16.msra.mxu1 %v3478_v17  ;;  %275 = vmatpush.bf16.msra.mxu3 %v3486_v18  ;;  %v61_v0 = vld [vmem:[%s8295_s0 + $0x28] sm:$0xff]  ;;  %v3708_v3 = vor.u32 %v4973_v62, %v3705_v2  ;;  %v3679_v4 = vld [vmem:[%s8294_s1 + $0xa0] sm:$0xf]  ;;  %v4946_v5 = vld [vmem:[%s8294_s1 + $0xac] sm:$0xf0] }
  0x1e   :  { %v4928_v6 = vld [vmem:[%s8294_s1 + $0xa4] sm:$0xf]  ;;  %v3680_v8 = vor.u32 %v4946_v5, %v3679_v4  ;;  %v3681_v9 = vld [vmem:[%s8294_s1 + $0xb0] sm:$0xf0]  ;;  %v3687_v10 = vld [vmem:[%s8294_s1 + $0xa8] sm:$0xf] }
  0x1f   :  { %v4955_v11 = vld [vmem:[%s8294_s1 + $0xb4] sm:$0xf0]  ;;  %v3684_v14 = vor.u32 %v4928_v6, %v3681_v9  ;;  %v4937_v16 = vld [vmem:[%s8294_s1 + $0xac] sm:$0xf]  ;;  %v3689_v17 = vld [vmem:[%s8294_s1 + $0xb8] sm:$0xf0] }
  0x20   :  { %234 = vmatpush.bf16.msra.mxu0 %v3458_v25  ;;  %261 = vmatpush.bf16.msra.mxu2 %v3482_v26  ;;  %v3688_v15 = vor.u32 %v4955_v11, %v3687_v10  ;;  %v3692_v20 = vor.u32 %v4937_v16, %v3689_v17  ;;  %v3663_v23 = vld [vmem:[%s8294_s1 + $0x80] sm:$0xf]  ;;  %v4910_v24 = vld [vmem:[%s8294_s1 + $0x8c] sm:$0xf0]  ;;  %v3665_v29 = vld [vmem:[%s8294_s1 + $0x90] sm:$0xf0] }
  0x21   :  { %248 = vmatpush.bf16.msra.mxu1 %v3462_v27  ;;  %276 = vmatpush.bf16.msra.mxu3 %v3470_v28  ;;  %v3664_v27 = vor.u32 %v4910_v24, %v3663_v23  ;;  %v4892_v28 = vld [vmem:[%s8294_s1 + $0x84] sm:$0xf]  ;;  %v3671_v36 = vld [vmem:[%s8294_s1 + $0x88] sm:$0xf]  ;;  %v4919_v37 = vld [vmem:[%s8294_s1 + $0x94] sm:$0xf0] }
  0x22   :  { %v3668_v35 = vor.u32 %v4892_v28, %v3665_v29  ;;  %v4901_v39 = vld [vmem:[%s8294_s1 + $0x8c] sm:$0xf]  ;;  %v3673_v40 = vld [vmem:[%s8294_s1 + $0x98] sm:$0xf0]  ;;  %v3647_v41 = vld [vmem:[%s8294_s1 + $0x60] sm:$0xf] }
  0x23   :  { %235 = vmatmul.bf16.vlgmr.msra.gmra.mxu0 %v5371_v32  ;;  %v4856_v45 = vld [vmem:[%s8294_s1 + $0x64] sm:$0xf]  ;;  %v58_v46 = vld [vmem:[%s8295_s0 + $0x10] sm:$0xff]  ;;  %v3676_v52 = vor.u32 %v4901_v39, %v3673_v40 }
  0x24   :  { %249 = vmatmul.bf16.vlgmr.msra.gmra.mxu1 %v5371_v32  ;;  %277 = vmatmul.bf16.vlgmr.msra.gmra.mxu3 %v5371_v32  ;;  %v3601_v24 = vld [vmem:[%s8294_s1 + $0x10] sm:$0xf0] }
  0x25   :  { %262 = vmatpush.bf16.msra.mxu2 %v3466_v31  ;;  %604 = vmatpush.bf16.msrb.mxu0 %v3712_v38 }
  0x26   :  { %618 = vmatpush.bf16.msrb.mxu1 %v3716_v43  ;;  %646 = vmatpush.bf16.msrb.mxu3 %v3724_v49  ;;  %v3655_v49 = vld [vmem:[%s8294_s1 + $0x68] sm:$0xf] }
  0x28   :  { %263 = vmatmul.bf16.vlgmr.msra.gmra.mxu2 %v5371_v32 }
  0x29   :  { %632 = vmatpush.bf16.msrb.mxu2 %v3720_v44  ;;  %605 = vmatpush.bf16.msrb.mxu0 %v3696_v56  ;;  %v4874_v44 = vld [vmem:[%s8294_s1 + $0x6c] sm:$0xf0]  ;;  %v4865_v56 = vld [vmem:[%s8294_s1 + $0x6c] sm:$0xf] }
  0x2a   :  { %619 = vmatpush.bf16.msrb.mxu1 %v3700_v60  ;;  %647 = vmatpush.bf16.msrb.mxu3 %v3708_v3  ;;  %v3648_v53 = vor.u32 %v4874_v44, %v3647_v41  ;;  %v3657_v60 = vld [vmem:[%s8294_s1 + $0x78] sm:$0xf0]  ;;  %v4847_v44 = vld [vmem:[%s8294_s1 + $0x54] sm:$0xf0] }
  0x2d   :  { %633 = vmatpush.bf16.msrb.mxu2 %v3704_v1  ;;  %606 = vmatpush.bf16.msrb.mxu0 %v3680_v8 }
  0x2e   :  { %620 = vmatpush.bf16.msrb.mxu1 %v3684_v14  ;;  %648 = vmatpush.bf16.msrb.mxu3 %v3692_v20 }
  0x31   :  { %634 = vmatpush.bf16.msrb.mxu2 %v3688_v15  ;;  %607 = vmatpush.bf16.msrb.mxu0 %v3664_v27  ;;  %v62_v15 = vld [vmem:[%s8295_s0 + $0x30] sm:$0xff] }
  0x32   :  { %621 = vmatpush.bf16.msrb.mxu1 %v3668_v35  ;;  %649 = vmatpush.bf16.msrb.mxu3 %v3676_v52 }
  0x35   :  { %608 = vmatpush.bf16.msrb.mxu0 %v3648_v53  ;;  %v3615_v53 = vld [vmem:[%s8294_s1 + $0x20] sm:$0xf] }
  0xa0   :  { %v236_v42 = vpop.f32.mrf.mxu0 }
  0xa1   :  { %v283_v47 = vadd.f32 %v236_v42, %v56_v33  ;;  %v250_v48 = vpop.f32.mrf.mxu1 }
  0xa2   :  { %v284_v50 = vadd.f32 %v250_v48, %v57_v34  ;;  %v63_v34 = vld [vmem:[%s8295_s0 + $0x38] sm:$0xff]  ;;  %v3649_v48 = vld [vmem:[%s8294_s1 + $0x70] sm:$0xf0] }
  0xa3   :  { %v3583_v54 = vmul.f32 -1.442695, %v283_v47  ;;  %v3672_v47 = vor.u32 %v4919_v37, %v3671_v36  ;;  %v4838_v36 = vld [vmem:[%s8294_s1 + $0x4c] sm:$0xf0]  ;;  %v4820_v37 = vld [vmem:[%s8294_s1 + $0x44] sm:$0xf] }
  0xa4   :  { %v3585_v59 = vmul.f32 -1.442695, %v284_v50 }
  0xa5   :  { %5083 = vpow2.f32 %v3583_v54  ;;  %v3652_v54 = vor.u32 %v4856_v45, %v3649_v48  ;;  %635 = vmatpush.bf16.msrb.mxu2 %v3672_v47 }
  0xa6   :  { %5085 = vpow2.f32 %v3585_v59 }
  0xa7   :  { %v278_v7 = vpop.f32.mrf.mxu3  ;;  %622 = vmatpush.bf16.msrb.mxu1 %v3652_v54  ;;  %v4802_v54 = vld [vmem:[%s8294_s1 + $0x2c] sm:$0xf0] }
  0xa8   :  { %v286_v12 = vadd.f32 %v278_v7, %v59_v55  ;;  %v238_v13 = vpop.f32.mrf.mxu0  ;;  %v4883_v55 = vld [vmem:[%s8294_s1 + $0x74] sm:$0xf0] }
  0xa9   :  { %v287_v18 = vadd.f32 %v238_v13, %v60_v63  ;;  %v252_v19 = vpop.f32.mrf.mxu1  ;;  %v3656_v59 = vor.u32 %v4883_v55, %v3655_v49  ;;  %v4829_v49 = vld [vmem:[%s8294_s1 + $0x4c] sm:$0xf] }
  0xaa   :  { %v3587_v21 = vmul.f32 -1.442695, %v286_v12  ;;  %v288_v22 = vadd.f32 %v252_v19, %v61_v0  ;;  %v3660_v0 = vor.u32 %v4865_v56, %v3657_v60  ;;  %v4784_v60 = vld [vmem:[%s8294_s1 + $0x24] sm:$0xf] }
  0xab   :  { %v5084_v25 = vpop.eup %5083  ;;  %v3584_v26 = vmul.f32 -1.442695, %v287_v18  ;;  %v264_v42 = vpop.f32.mrf.mxu2  ;;  %636 = vmatpush.bf16.msrb.mxu2 %v3656_v59 }
  0xac   :  { %v5086_v30 = vpop.eup %5085  ;;  %v5678_v31 = vadd.f32 1.0, %v5084_v25  ;;  %5087 = vpow2.f32 %v3587_v21  ;;  %v3586_v32 = vmul.f32 -1.442695, %v288_v22  ;;  %v285_v63 = vadd.f32 %v264_v42, %v58_v46  ;;  %650 = vmatpush.bf16.msrb.mxu3 %v3660_v0 }
  0xad   :  { %v5680_v33 = vadd.f32 1.0, %v5086_v30  ;;  %5089 = vpow2.f32 %v3584_v26  ;;  %v3607_v30 = vld [vmem:[%s8294_s1 + $0x8] sm:$0xf] }
  0xae   :  { %5091 = vrcp.f32 %v5678_v31  ;;  %v308_v7 = vand.u32 2147483647, %v5678_v31  ;;  %v310_v8 = vand.u32 2147483648, %v5678_v31  ;;  %vm304_vm2 = vweird.f32 %v5678_v31 }
  0xaf   :  { %5093 = vrcp.f32 %v5680_v33  ;;  %v280_v38 = vpop.f32.mrf.mxu3  ;;  %v348_v10 = vand.u32 2147483648, %v5680_v33  ;;  %v346_v11 = vand.u32 2147483647, %v5680_v33  ;;  %vm342_vm1 = vweird.f32 %v5680_v33 }
  0xb0   :  { %5095 = vpow2.f32 %v3586_v32  ;;  %v290_v43 = vadd.f32 %v280_v38, %v63_v34  ;;  %vm5754_vm4 = vcmp.eq.f32.partialorder %v308_v7, 8.507059e+37  ;;  %v311_v20 = vor.u32 1.1754944e-38, %v310_v8  ;;  %v3633_v38 = vld [vmem:[%s8294_s1 + $0x50] sm:$0xf0] }
  0xb1   :  { %v349_v23 = vor.u32 1.1754944e-38, %v348_v10  ;;  %vm5768_vm6 = vcmp.eq.f32.partialorder %v346_v11, 8.507059e+37  ;;  %v4793_v10 = vld [vmem:[%s8294_s1 + $0x2c] sm:$0xf]  ;;  %v3625_v11 = vld [vmem:[%s8294_s1 + $0x38] sm:$0xf0] }
  0xb2   :  { %v5088_v50 = vpop.eup %5087  ;;  %v3588_v51 = vmul.f32 -1.442695, %v290_v43  ;;  %v3639_v43 = vld [vmem:[%s8294_s1 + $0x48] sm:$0xf] }
  0xb3   :  { %v5090_v57 = vpop.eup %5089  ;;  %v5723_v58 = vadd.f32 1.0, %v5088_v50  ;;  %v266_v16 = vpop.f32.mrf.mxu2  ;;  %v3641_v50 = vld [vmem:[%s8294_s1 + $0x58] sm:$0xf0] }
  0xb4   :  { %v5728_v61 = vpop.eup %5091  ;;  %v5730_v62 = vadd.f32 1.0, %v5090_v57  ;;  %5097 = vpow2.f32 %v3588_v51 }
  0xb5   :  { %v5094_v1 = vpop.eup %5093  ;;  %v300_v2 = vmul.f32 %v5728_v61, %v5678_v31  ;;  %5099 = vrcp.f32 %v5723_v58  ;;  %vm305_vm0 = vweird.f32 %v5728_v61  ;;  %v289_v31 = vadd.f32 %v266_v16, %v62_v15  ;;  %v4766_v16 = vld [vmem:[%s8294_s1 + $0xc] sm:$0xf0] }
  0xb6   :  { %v5096_v3 = vpop.eup %5095  ;;  %v338_v4 = vmul.f32 %v5094_v1, %v5680_v33  ;;  %5101 = vrcp.f32 %v5730_v62  ;;  %vm343_vm3 = vweird.f32 %v5094_v1  ;;  %vm5764_vm5 = vmor %vm304_vm2, %vm305_vm0  ;;  %v323_v27 = vand.u32 2147483647, %v5730_v62  ;;  %v3631_v33 = vld [vmem:[%s8294_s1 + $0x40] sm:$0xf] }
  0xb7   :  { %v301_v5 = vsub.f32 1.0, %v300_v2  ;;  %v5737_v6 = vadd.f32 1.0, %v5096_v3  ;;  %5103 = vtanh.f32 %v285_v63  ;;  %vm5781_vm7 = vmor %vm342_vm1, %vm343_vm3  ;;  %vm319_vm8 = vweird.f32 %v5730_v62  ;;  %v3617_v3 = vld [vmem:[%s8294_s1 + $0x30] sm:$0xf0] }
  0xb8   :  { %v339_v9 = vsub.f32 1.0, %v338_v4  ;;  %vm5821_vm10 = vcmp.eq.f32.partialorder %v323_v27, 8.507059e+37  ;;  %v325_v48 = vand.u32 2147483648, %v5730_v62  ;;  %v3632_v0 = vor.u32 %v4838_v36, %v3631_v33  ;;  %v3623_v4 = vld [vmem:[%s8294_s1 + $0x28] sm:$0xf] }
  0xb9   :  { %5105 = vrcp.f32 %v5737_v6  ;;  %v302_v12 = vmul.f32 %v5728_v61, %v301_v5  ;;  %vm357_vm9 = vweird.f32 %v5737_v6  ;;  %v363_v46 = vand.u32 2147483648, %v5737_v6  ;;  %v4811_v5 = vld [vmem:[%s8294_s1 + $0x34] sm:$0xf0]  ;;  %v3609_v33 = vld [vmem:[%s8294_s1 + $0x18] sm:$0xf0] }
  0xba   :  { %v5098_v13 = vpop.eup %5097  ;;  %v340_v14 = vmul.f32 %v5094_v1, %v339_v9  ;;  %v361_v52 = vand.u32 2147483647, %v5737_v6  ;;  %v3640_v2 = vor.u32 %v4847_v44, %v3639_v43  ;;  %v326_v9 = vor.u32 1.1754944e-38, %v325_v48  ;;  %609 = vmatpush.bf16.msrb.mxu0 %v3632_v0 }
  0xbb   :  { %v5751_v17 = vpop.eup %5099  ;;  %v303_v18 = vadd.f32 %v5728_v61, %v302_v12  ;;  %v5758_v21 = vadd.f32 1.0, %v5098_v13  ;;  %v364_v12 = vor.u32 1.1754944e-38, %v363_v46  ;;  %v3616_v15 = vor.u32 %v4802_v54, %v3615_v53 }
  0xbc   :  { %v5760_v22 = vpop.eup %5101  ;;  %v341_v25 = vadd.f32 %v5094_v1, %v340_v14  ;;  %v5788_v34 = vmul.f32 %v5751_v17, %v5723_v58  ;;  %v3644_v14 = vor.u32 %v4829_v49, %v3641_v50  ;;  %637 = vmatpush.bf16.msrb.mxu2 %v3640_v2  ;;  %vm362_vm15 = vcmp.eq.f32.partialorder %v361_v52, 8.507059e+37  ;;  %v3863_v2 = vld [vmem:[%s8294_s1 + $0xe8] sm:$0xf] }
  0xbd   :  { %v315_v28 = vmul.f32 %v5760_v22, %v5730_v62  ;;  %v307_v29 = vsel %vm5764_vm5, %v5728_v61, %v303_v18  ;;  %5107 = vrcp.f32 %v5758_v21  ;;  %v5104_v32 = vpop.eup %5103  ;;  %vm320_vm11 = vweird.f32 %v5760_v22  ;;  %v3599_v62 = vld [vmem:[%s8294_s1] sm:$0xf] }
  0xbe   :  { %v345_v35 = vsel %vm5781_vm7, %v5094_v1, %v341_v25  ;;  %v312_v41 = vsel %vm5754_vm4, %v311_v20, %v307_v29  ;;  %5109 = vtanh.f32 %v289_v31  ;;  %v379_v55 = vsub.f32 1.0, %v5788_v34  ;;  %vm321_vm12 = vmor %vm319_vm8, %vm320_vm11  ;;  %651 = vmatpush.bf16.msrb.mxu3 %v3644_v14  ;;  %v4775_v31 = vld [vmem:[%s8294_s1 + $0x14] sm:$0xf0]  ;;  %610 = vmatpush.bf16.msrb.mxu0 %v3616_v15  ;;  %v3839_v14 = vld [vmem:[%s8294_s1 + $0xc0] sm:$0xf] }
  0xbf   :  { %v5805_v39 = vpop.eup %5105  ;;  %v316_v40 = vsub.f32 1.0, %v315_v28  ;;  %v350_v42 = vsel %vm5768_vm6, %v349_v23, %v345_v35  ;;  %v411_v59 = vmul.f32 %v5104_v32, %v312_v41  ;;  %v3636_v1 = vor.u32 %v4820_v37, %v3633_v38  ;;  %v4748_v23 = vld [vmem:[%s8294_s1 + $0x4] sm:$0xf]  ;;  %v4981_v15 = vld [vmem:[%s8294_s1 + $0xcc] sm:$0xf0] }
  0xc0   :  { %v353_v45 = vmul.f32 %v5805_v39, %v5737_v6  ;;  %v409_v57 = vmul.f32 0.0, %v350_v42  ;;  %vm358_vm13 = vweird.f32 %v5805_v39  ;;  %v380_v26 = vmul.f32 %v5751_v17, %v379_v55  ;;  %v4757_v6 = vld [vmem:[%s8294_s1 + $0xc] sm:$0xf] }
  0xc1   :  { %v317_v51 = vmul.f32 %v5760_v22, %v316_v40  ;;  %623 = vmatpush.bf16.msrb.mxu1 %v3636_v1  ;;  %vm359_vm14 = vmor %vm357_vm9, %vm358_vm13  ;;  %v3624_v28 = vor.u32 %v4811_v5, %v3623_v4  ;;  %v3628_v29 = vor.u32 %v4793_v10, %v3625_v11  ;;  %v3600_v35 = vor.u32 %v4766_v16, %v3599_v62  ;;  %v3857_v1 = vld [vmem:[%s8294_s1 + $0xf0] sm:$0xf0]  ;;  %v4963_v62 = vld [vmem:[%s8294_s1 + $0xc4] sm:$0xf] }
  0xc2   :  { %v354_v56 = vsub.f32 1.0, %v353_v45  ;;  %v5888_v27 = vadd.f32 %v411_v59, %v409_v57  ;;  %v3604_v38 = vor.u32 %v4748_v23, %v3601_v24  ;;  %v3612_v41 = vor.u32 %v4757_v6, %v3609_v33  ;;  %v3592_v24 = vld [vmem:[%s8295_s0 + $0x58] sm:$0xff]  ;;  %v4927_v6 = vld [vmem:[%s8294_s1 + $0xa4] sm:$0xf] }
  0xc3   :  { %v5845_v61 = vpop.eup %5107  ;;  %v318_v63 = vadd.f32 %v5760_v22, %v317_v51  ;;  %638 = vmatpush.bf16.msrb.mxu2 %v3624_v28  ;;  %652 = vmatpush.bf16.msrb.mxu3 %v3628_v29  ;;  %vm383_vm0 = vweird.f32 %v5751_v17  ;;  %v381_v43 = vadd.f32 %v5751_v17, %v380_v26  ;;  %vm382_vm2 = vweird.f32 %v5723_v58  ;;  %v4972_v28 = vld [vmem:[%s8294_s1 + $0xcc] sm:$0xf]  ;;  %v3593_v29 = vld [vmem:[%s8295_s0 + $0x60] sm:$0xff] }
  0xc4   :  { %v355_v7 = vmul.f32 %v5805_v39, %v354_v56  ;;  %v393_v8 = vmul.f32 %v5845_v61, %v5758_v21  ;;  %v5110_v25 = vpop.eup %5109  ;;  %5111 = vtanh.f32 %v5888_v27  ;;  %vm398_vm1 = vweird.f32 %v5845_v61  ;;  %611 = vmatpush.bf16.msrb.mxu0 %v3600_v35  ;;  %vm384_vm3 = vmor %vm382_vm2, %vm383_vm0  ;;  %v4945_v35 = vld [vmem:[%s8294_s1 + $0xac] sm:$0xf0] }
  0xc5   :  { %v322_v13 = vsel %vm321_vm12, %v5760_v22, %v318_v63  ;;  %v3620_v22 = vor.u32 %v4784_v60, %v3617_v3  ;;  %v388_v45 = vand.u32 2147483648, %v5723_v58  ;;  %v403_v46 = vand.u32 2147483648, %v5758_v21  ;;  %v3855_v60 = vld [vmem:[%s8294_s1 + $0xe0] sm:$0xf]  ;;  %v4999_v63 = vld [vmem:[%s8294_s1 + $0xe4] sm:$0xf] }
  0xc6   :  { %v394_v18 = vsub.f32 1.0, %v393_v8  ;;  %v327_v19 = vsel %vm5821_vm10, %v326_v9, %v322_v13  ;;  %v356_v20 = vadd.f32 %v5805_v39, %v355_v7  ;;  %v386_v47 = vand.u32 2147483647, %v5723_v58  ;;  %v5026_v3 = vld [vmem:[%s8294_s1 + $0xf4] sm:$0xf0] }
  0xc7   :  { %v412_v34 = vmul.f32 %v5110_v25, %v327_v19  ;;  %624 = vmatpush.bf16.msrb.mxu1 %v3620_v22  ;;  %vm397_vm4 = vweird.f32 %v5758_v21  ;;  %v401_v48 = vand.u32 2147483647, %v5758_v21  ;;  %653 = vmatpush.bf16.msrb.mxu3 %v3612_v41  ;;  %v385_v49 = vsel %vm384_vm3, %v5751_v17, %v381_v43  ;;  %v3589_v17 = vld [vmem:[%s8295_s0 + $0x40] sm:$0xff]  ;;  %v3590_v21 = vld [vmem:[%s8295_s0 + $0x48] sm:$0xff]  ;;  %v3865_v8 = vld [vmem:[%s8294_s1 + $0xf8] sm:$0xf0] }
  0xc8   :  { %v360_v32 = vsel %vm359_vm14, %v5805_v39, %v356_v20  ;;  %v395_v36 = vmul.f32 %v5845_v61, %v394_v18  ;;  %v3608_v39 = vor.u32 %v4775_v31, %v3607_v30  ;;  %vm399_vm5 = vmor %vm397_vm4, %vm398_vm1  ;;  %v389_v52 = vor.u32 1.1754944e-38, %v388_v45  ;;  %v5008_v7 = vld [vmem:[%s8294_s1 + $0xec] sm:$0xf]  ;;  %v3841_v18 = vld [vmem:[%s8294_s1 + $0xd0] sm:$0xf0] }
  0xc9   :  { %v365_v37 = vsel %vm362_vm15, %v364_v12, %v360_v32  ;;  %v404_v53 = vor.u32 1.1754944e-38, %v403_v46  ;;  %vm387_vm6 = vcmp.eq.f32.partialorder %v386_v47, 8.507059e+37  ;;  %vm402_vm7 = vcmp.eq.f32.partialorder %v401_v48, 8.507059e+37  ;;  %v3847_v19 = vld [vmem:[%s8294_s1 + $0xc8] sm:$0xf] }
  0xca   :  { %v410_v40 = vmul.f32 0.0, %v365_v37  ;;  %v396_v44 = vadd.f32 %v5845_v61, %v395_v36  ;;  %639 = vmatpush.bf16.msrb.mxu2 %v3608_v39  ;;  %v5112_v51 = vpop.eup %5111  ;;  %v390_v55 = vsel %vm387_vm6, %v389_v52, %v385_v49  ;;  %v3860_v4 = vor.u32 %v4999_v63, %v3857_v1  ;;  %v4990_v20 = vld [vmem:[%s8294_s1 + $0xd4] sm:$0xf0]  ;;  %v3594_v30 = vld [vmem:[%s8295_s0 + $0x68] sm:$0xff]  ;;  %v3849_v31 = vld [vmem:[%s8294_s1 + $0xd8] sm:$0xf0] }
  0xcb   :  { %625 = vmatpush.bf16.msrb.mxu1 %v3604_v38  ;;  %v417_v57 = vmul.f32 %v5112_v51, %v390_v55  ;;  %v3864_v5 = vor.u32 %v5026_v3, %v3863_v2  ;;  %v3868_v11 = vor.u32 %v5008_v7, %v3865_v8  ;;  %v3840_v16 = vor.u32 %v4981_v15, %v3839_v14  ;;  %v3825_v36 = vld [vmem:[%s8294_s1 + $0xb0] sm:$0xf0]  ;;  %v3831_v37 = vld [vmem:[%s8294_s1 + $0xa8] sm:$0xf]  ;;  %v4954_v38 = vld [vmem:[%s8294_s1 + $0xb4] sm:$0xf0] }
  0xcc   :  { %v5910_v42 = vadd.f32 %v412_v34, %v410_v40  ;;  %v400_v50 = vsel %vm399_vm5, %v5845_v61, %v396_v44  ;;  %v5017_v61 = vld [vmem:[%s8294_s1 + $0xec] sm:$0xf0]  ;;  %v3844_v25 = vor.u32 %v4963_v62, %v3841_v18  ;;  %v3848_v26 = vor.u32 %v4990_v20, %v3847_v19  ;;  %v3823_v34 = vld [vmem:[%s8294_s1 + $0xa0] sm:$0xf]  ;;  %v4936_v43 = vld [vmem:[%s8294_s1 + $0xac] sm:$0xf] }
  0xcd   :  { %v405_v56 = vsel %vm402_vm7, %v404_v53, %v400_v50  ;;  %v3856_v0 = vor.u32 %v5017_v61, %v3855_v60  ;;  %1024 = vmatpush.bf16.msra.mxu3 %v3868_v11  ;;  %v3852_v32 = vor.u32 %v4972_v28, %v3849_v31  ;;  %v3824_v33 = vor.u32 %v4945_v35, %v3823_v34  ;;  %v3833_v44 = vld [vmem:[%s8294_s1 + $0xb8] sm:$0xf0]  ;;  %v3807_v51 = vld [vmem:[%s8294_s1 + $0x80] sm:$0xf]  ;;  %v4909_v52 = vld [vmem:[%s8294_s1 + $0x8c] sm:$0xf0] }
  0xce   :  { %5113 = vtanh.f32 %v5910_v42  ;;  %1010 = vmatpush.bf16.msra.mxu2 %v3864_v5  ;;  %v3828_v39 = vor.u32 %v4927_v6, %v3825_v36  ;;  %v3832_v41 = vor.u32 %v4954_v38, %v3831_v37  ;;  %v3836_v48 = vor.u32 %v4936_v43, %v3833_v44  ;;  %v4891_v53 = vld [vmem:[%s8294_s1 + $0x84] sm:$0xf]  ;;  %v4918_v60 = vld [vmem:[%s8294_s1 + $0x94] sm:$0xf0]  ;;  %v4900_v1 = vld [vmem:[%s8294_s1 + $0x8c] sm:$0xf] }
  0xcf   :  { %982 = vmatpush.bf16.msra.mxu0 %v3856_v0  ;;  %996 = vmatpush.bf16.msra.mxu1 %v3860_v4  ;;  %v3808_v55 = vor.u32 %v4909_v52, %v3807_v51  ;;  %v3817_v2 = vld [vmem:[%s8294_s1 + $0x98] sm:$0xf0]  ;;  %v3791_v7 = vld [vmem:[%s8294_s1 + $0x60] sm:$0xf]  ;;  %v4873_v8 = vld [vmem:[%s8294_s1 + $0x6c] sm:$0xf0] }
  0xd0   :  { %v3820_v5 = vor.u32 %v4900_v1, %v3817_v2  ;;  %v3596_v11 = vld [vmem:[%s8295_s0 + $0x78] sm:$0xff]  ;;  %v3792_v15 = vor.u32 %v4873_v8, %v3791_v7  ;;  %v4864_v62 = vld [vmem:[%s8294_s1 + $0x6c] sm:$0xf]  ;;  %v3777_v31 = vld [vmem:[%s8294_s1 + $0x50] sm:$0xf0] }
  0xd1   :  { %1025 = vmatpush.bf16.msra.mxu3 %v3852_v32  ;;  %v4882_v14 = vld [vmem:[%s8294_s1 + $0x74] sm:$0xf0]  ;;  %v3591_v37 = vld [vmem:[%s8295_s0 + $0x50] sm:$0xff]  ;;  %v3783_v52 = vld [vmem:[%s8294_s1 + $0x48] sm:$0xf] }
  0xd2   :  { %1011 = vmatpush.bf16.msra.mxu2 %v3848_v26  ;;  %v4783_v1 = vld [vmem:[%s8294_s1 + $0x24] sm:$0xf]  ;;  %v3761_v2 = vld [vmem:[%s8294_s1 + $0x30] sm:$0xf0] }
  0xd3   :  { %983 = vmatpush.bf16.msra.mxu0 %v3840_v16  ;;  %997 = vmatpush.bf16.msra.mxu1 %v3844_v25  ;;  %v3801_v16 = vld [vmem:[%s8294_s1 + $0x78] sm:$0xf0]  ;;  %v4819_v25 = vld [vmem:[%s8294_s1 + $0x44] sm:$0xf] }
  0xd4   :  { %v5114_v54 = vpop.eup %5113  ;;  %v3780_v6 = vor.u32 %v4819_v25, %v3777_v31  ;;  %v3764_v25 = vor.u32 %v4783_v1, %v3761_v2 }
  0xd5   :  { %v418_v58 = vmul.f32 %v5114_v54, %v405_v56  ;;  %v3809_v56 = vld [vmem:[%s8294_s1 + $0x90] sm:$0xf0]  ;;  %1026 = vmatpush.bf16.msra.mxu3 %v3836_v48 }
  0xd6   :  { %1012 = vmatpush.bf16.msra.mxu2 %v3832_v41 }
  0xd7   :  { %v5032_v59 = vpack.c.bf16 %v418_v58, %v417_v57  ;;  %984 = vmatpush.bf16.msra.mxu0 %v3824_v33  ;;  %998 = vmatpush.bf16.msra.mxu1 %v3828_v39  ;;  %v3815_v57 = vld [vmem:[%s8294_s1 + $0x88] sm:$0xf] }
  0xd8   :  { %v3816_v0 = vor.u32 %v4918_v60, %v3815_v57 }
  0xd9   :  { %5033 = vst [vmem:[%s8296_s2] sm:$0xff] %v5032_v59   ;;  %612 = vmatmul.bf16.vlgmr.msrb.gmra.mxu0 %v5032_v59  ;;  %626 = vmatmul.bf16.vlgmr.msrb.gmra.mxu1 %v5032_v59 }
  0xda   :  { %640 = vmatmul.bf16.vlgmr.msrb.gmra.mxu2 %v5032_v59  ;;  %654 = vmatmul.bf16.vlgmr.msrb.gmra.mxu3 %v5032_v59 }
  0xdb   :  { %985 = vmatpush.bf16.msra.mxu0 %v3808_v55  ;;  %1013 = vmatpush.bf16.msra.mxu2 %v3816_v0 }
  0xdc   :  { %1027 = vmatpush.bf16.msra.mxu3 %v3820_v5 }
  0xdf   :  { %986 = vmatpush.bf16.msra.mxu0 %v3792_v15  ;;  %v4792_v15 = vld [vmem:[%s8294_s1 + $0x2c] sm:$0xf] }
 0x156   :  { %v613_v9 = vpop.f32.mrf.mxu0  ;;  %v627_v10 = vpop.f32.mrf.mxu1 }
 0x157   :  { %v660_v12 = vadd.f32 %v3589_v17, %v613_v9  ;;  %v661_v13 = vadd.f32 %v3590_v21, %v627_v10  ;;  %v3812_v21 = vor.u32 %v4891_v53, %v3809_v56  ;;  %v4855_v9 = vld [vmem:[%s8294_s1 + $0x64] sm:$0xf]  ;;  %v3793_v10 = vld [vmem:[%s8294_s1 + $0x70] sm:$0xf0]  ;;  %v4846_v53 = vld [vmem:[%s8294_s1 + $0x54] sm:$0xf0] }
 0x158   :  { %v3796_v19 = vor.u32 %v4855_v9, %v3793_v10  ;;  %v4828_v56 = vld [vmem:[%s8294_s1 + $0x4c] sm:$0xf]  ;;  %v3784_v0 = vor.u32 %v4846_v53, %v3783_v52  ;;  %v3767_v10 = vld [vmem:[%s8294_s1 + $0x28] sm:$0xf] }
 0x159   :  { %v3725_v22 = vmul.f32 -1.442695, %v660_v12  ;;  %v3727_v23 = vmul.f32 -1.442695, %v661_v13  ;;  %999 = vmatpush.bf16.msra.mxu1 %v3812_v21  ;;  %v3799_v13 = vld [vmem:[%s8294_s1 + $0x68] sm:$0xf] }
 0x15a   :  { %v3800_v20 = vor.u32 %v4882_v14, %v3799_v13  ;;  %v4801_v21 = vld [vmem:[%s8294_s1 + $0x2c] sm:$0xf0]  ;;  %v4810_v14 = vld [vmem:[%s8294_s1 + $0x34] sm:$0xf0] }
 0x15b   :  { %5115 = vpow2.f32 %v3725_v22  ;;  %v3804_v22 = vor.u32 %v4864_v62, %v3801_v16  ;;  %v3769_v62 = vld [vmem:[%s8294_s1 + $0x38] sm:$0xf0] }
 0x15c   :  { %5117 = vpow2.f32 %v3727_v23  ;;  %v3775_v23 = vld [vmem:[%s8294_s1 + $0x40] sm:$0xf]  ;;  %1014 = vmatpush.bf16.msra.mxu2 %v3800_v20  ;;  %v4765_v20 = vld [vmem:[%s8294_s1 + $0xc] sm:$0xf0] }
 0x15d   :  { %v655_v40 = vpop.f32.mrf.mxu3  ;;  %v641_v4 = vpop.f32.mrf.mxu2  ;;  %1000 = vmatpush.bf16.msra.mxu1 %v3796_v19  ;;  %1028 = vmatpush.bf16.msra.mxu3 %v3804_v22  ;;  %v3743_v19 = vld [vmem:[%s8294_s1] sm:$0xf]  ;;  %v4747_v22 = vld [vmem:[%s8294_s1 + $0x4] sm:$0xf] }
 0x15e   :  { %v663_v45 = vadd.f32 %v3592_v24, %v655_v40  ;;  %v615_v46 = vpop.f32.mrf.mxu0  ;;  %v629_v47 = vpop.f32.mrf.mxu1  ;;  %v4837_v24 = vld [vmem:[%s8294_s1 + $0x4c] sm:$0xf0] }
 0x15f   :  { %v664_v49 = vadd.f32 %v3593_v29, %v615_v46  ;;  %v665_v50 = vadd.f32 %v3594_v30, %v629_v47  ;;  %v3776_v30 = vor.u32 %v4837_v24, %v3775_v23  ;;  %v3595_v46 = vld [vmem:[%s8295_s0 + $0x70] sm:$0xff] }
 0x160   :  { %v3729_v54 = vmul.f32 -1.442695, %v663_v45  ;;  %1015 = vmatpush.bf16.msra.mxu2 %v3784_v0 }
 0x161   :  { %v5116_v58 = vpop.eup %5115  ;;  %v3726_v59 = vmul.f32 -1.442695, %v664_v49  ;;  %v3728_v17 = vmul.f32 -1.442695, %v665_v50  ;;  %987 = vmatpush.bf16.msra.mxu0 %v3776_v30  ;;  %v662_v50 = vadd.f32 %v3591_v37, %v641_v4  ;;  %1001 = vmatpush.bf16.msra.mxu1 %v3780_v6  ;;  %v4774_v30 = vld [vmem:[%s8294_s1 + $0x14] sm:$0xf0] }
 0x162   :  { %v5118_v61 = vpop.eup %5117  ;;  %v6032_v63 = vadd.f32 1.0, %v5116_v58  ;;  %5119 = vpow2.f32 %v3729_v54 }
 0x163   :  { %v6040_v3 = vadd.f32 1.0, %v5118_v61  ;;  %5121 = vpow2.f32 %v3726_v59  ;;  %v3785_v59 = vld [vmem:[%s8294_s1 + $0x58] sm:$0xf0] }
 0x164   :  { %5123 = vrcp.f32 %v6032_v63  ;;  %v685_v34 = vand.u32 2147483647, %v6032_v63  ;;  %v687_v38 = vand.u32 2147483648, %v6032_v63  ;;  %vm681_vm12 = vweird.f32 %v6032_v63 }
 0x165   :  { %5125 = vrcp.f32 %v6040_v3  ;;  %v657_v12 = vpop.f32.mrf.mxu3  ;;  %v725_v41 = vand.u32 2147483648, %v6040_v3  ;;  %v723_v43 = vand.u32 2147483647, %v6040_v3  ;;  %v643_v47 = vpop.f32.mrf.mxu2  ;;  %vm719_vm11 = vweird.f32 %v6040_v3  ;;  %1002 = vmatpush.bf16.msra.mxu1 %v3764_v25  ;;  %v3734_v25 = vld [vmem:[%s8295_s0 + $0x88] sm:$0xff] }
 0x166   :  { %5127 = vpow2.f32 %v3728_v17  ;;  %v667_v29 = vadd.f32 %v3596_v11, %v657_v12  ;;  %vm6110_vm9 = vcmp.eq.f32.partialorder %v685_v34, 8.507059e+37  ;;  %v688_v55 = vor.u32 1.1754944e-38, %v687_v38  ;;  %v3759_v17 = vld [vmem:[%s8294_s1 + $0x20] sm:$0xf] }
 0x167   :  { %v666_v58 = vadd.f32 %v3595_v46, %v643_v47  ;;  %v726_v60 = vor.u32 1.1754944e-38, %v725_v41  ;;  %vm6160_vm15 = vcmp.eq.f32.partialorder %v723_v43, 8.507059e+37  ;;  %v3788_v12 = vor.u32 %v4828_v56, %v3785_v59 }
 0x168   :  { %v5120_v18 = vpop.eup %5119  ;;  %v3730_v48 = vmul.f32 -1.442695, %v667_v29  ;;  %v3760_v13 = vor.u32 %v4801_v21, %v3759_v17  ;;  %v3751_v29 = vld [vmem:[%s8294_s1 + $0x8] sm:$0xf]  ;;  %v3744_v41 = vor.u32 %v4765_v20, %v3743_v19 }
 0x169   :  { %v5122_v26 = vpop.eup %5121  ;;  %v6080_v28 = vadd.f32 1.0, %v5120_v18  ;;  %1029 = vmatpush.bf16.msra.mxu3 %v3788_v12 }
 0x16a   :  { %v6085_v32 = vpop.eup %5123  ;;  %v6088_v35 = vadd.f32 1.0, %v5122_v26  ;;  %988 = vmatpush.bf16.msra.mxu0 %v3760_v13  ;;  %v3745_v26 = vld [vmem:[%s8294_s1 + $0x10] sm:$0xf0] }
 0x16b   :  { %v6090_v33 = vpop.eup %5125  ;;  %v677_v36 = vmul.f32 %v6085_v32, %v6032_v63  ;;  %5129 = vrcp.f32 %v6080_v28  ;;  %vm682_vm8 = vweird.f32 %v6085_v32 }
 0x16c   :  { %v5128_v40 = vpop.eup %5127  ;;  %v715_v39 = vmul.f32 %v6090_v33, %v6040_v3  ;;  %5131 = vrcp.f32 %v6088_v35  ;;  %vm720_vm10 = vweird.f32 %v6090_v33  ;;  %vm6141_vm13 = vmor %vm681_vm12, %vm682_vm8  ;;  %v700_v9 = vand.u32 2147483647, %v6088_v35 }
 0x16d   :  { %v678_v44 = vsub.f32 1.0, %v677_v36  ;;  %v6104_v45 = vadd.f32 1.0, %v5128_v40  ;;  %vm6155_vm14 = vmor %vm719_vm11, %vm720_vm10  ;;  %vm696_vm1 = vweird.f32 %v6088_v35  ;;  %v702_v6 = vand.u32 2147483648, %v6088_v35  ;;  %v3753_v36 = vld [vmem:[%s8294_s1 + $0x18] sm:$0xf0] }
 0x16e   :  { %v716_v49 = vsub.f32 1.0, %v715_v39  ;;  %v3768_v40 = vor.u32 %v4810_v14, %v3767_v10  ;;  %v3772_v39 = vor.u32 %v4792_v15, %v3769_v62  ;;  %989 = vmatpush.bf16.msra.mxu0 %v3744_v41  ;;  %vm701_vm5 = vcmp.eq.f32.partialorder %v700_v9, 8.507059e+37 }
 0x16f   :  { %v679_v54 = vmul.f32 %v6085_v32, %v678_v44  ;;  %5133 = vrcp.f32 %v6104_v45  ;;  %v740_v8 = vand.u32 2147483648, %v6104_v45  ;;  %vm734_vm0 = vweird.f32 %v6104_v45 }
 0x170   :  { %v717_v57 = vmul.f32 %v6090_v33, %v716_v49  ;;  %5135 = vpow2.f32 %v3730_v48  ;;  %1016 = vmatpush.bf16.msra.mxu2 %v3768_v40  ;;  %1030 = vmatpush.bf16.msra.mxu3 %v3772_v39  ;;  %v3748_v49 = vor.u32 %v4747_v22, %v3745_v26  ;;  %v765_v9 = vand.u32 2147483648, %v6080_v28  ;;  %v3999_v26 = vld [vmem:[%s8294_s1 + $0xe0] sm:$0xf] }
 0x171   :  { %v680_v61 = vadd.f32 %v6085_v32, %v679_v54  ;;  %v6151_v3 = vpop.eup %5129  ;;  %5137 = vtanh.f32 %v662_v50  ;;  %v3752_v50 = vor.u32 %v4774_v30, %v3751_v29  ;;  %v5016_v29 = vld [vmem:[%s8294_s1 + $0xec] sm:$0xf0]  ;;  %v4998_v30 = vld [vmem:[%s8294_s1 + $0xe4] sm:$0xf] }
 0x172   :  { %v718_v5 = vadd.f32 %v6090_v33, %v717_v57  ;;  %v6169_v11 = vpop.eup %5131  ;;  %5139 = vtanh.f32 %v666_v58  ;;  %v755_v31 = vmul.f32 %v6151_v3, %v6080_v28  ;;  %v703_v58 = vor.u32 1.1754944e-38, %v702_v6  ;;  %1003 = vmatpush.bf16.msra.mxu1 %v3748_v49  ;;  %v5025_v6 = vld [vmem:[%s8294_s1 + $0xf4] sm:$0xf0] }
 0x173   :  { %v684_v16 = vsel %vm6141_vm13, %v6085_v32, %v680_v61  ;;  %v692_v18 = vmul.f32 %v6169_v11, %v6088_v35  ;;  %vm697_vm2 = vweird.f32 %v6169_v11  ;;  %vm760_vm8 = vweird.f32 %v6151_v3 }
 0x174   :  { %v722_v24 = vsel %vm6155_vm14, %v6090_v33, %v718_v5  ;;  %v4756_v33 = vld [vmem:[%s8294_s1 + $0xc] sm:$0xf]  ;;  %v689_v38 = vsel %vm6110_vm9, %v688_v55, %v684_v16  ;;  %v738_v55 = vand.u32 2147483647, %v6104_v45  ;;  %vm698_vm4 = vmor %vm696_vm1, %vm697_vm2  ;;  %v756_v59 = vsub.f32 1.0, %v755_v31  ;;  %1017 = vmatpush.bf16.msra.mxu2 %v3752_v50 }
 0x175   :  { %v5134_v23 = vpop.eup %5133  ;;  %v693_v32 = vsub.f32 1.0, %v692_v18  ;;  %v727_v43 = vsel %vm6160_vm15, %v726_v60, %v722_v24  ;;  %v3756_v51 = vor.u32 %v4756_v33, %v3753_v36  ;;  %vm759_vm9 = vweird.f32 %v6080_v28  ;;  %v3985_v50 = vld [vmem:[%s8294_s1 + $0xd0] sm:$0xf0] }
 0x176   :  { %v730_v34 = vmul.f32 %v5134_v23, %v6104_v45  ;;  %v5136_v37 = vpop.eup %5135  ;;  %vm735_vm3 = vweird.f32 %v5134_v23  ;;  %v786_v56 = vmul.f32 %v727_v43, %v5888_v27  ;;  %v741_v27 = vor.u32 1.1754944e-38, %v740_v8  ;;  %vm761_vm11 = vmor %vm759_vm9, %vm760_vm8 }
 0x177   :  { %v694_v46 = vmul.f32 %v6169_v11, %v693_v32  ;;  %v5138_v47 = vpop.eup %5137  ;;  %v753_v48 = vadd.f32 1.0, %v5136_v37  ;;  %vm736_vm6 = vmor %vm734_vm0, %vm735_vm3  ;;  %1031 = vmatpush.bf16.msra.mxu3 %v3756_v51  ;;  %vm739_vm7 = vcmp.eq.f32.partialorder %v738_v55, 8.507059e+37  ;;  %v757_v2 = vmul.f32 %v6151_v3, %v756_v59  ;;  %v4001_v32 = vld [vmem:[%s8294_s1 + $0xf0] sm:$0xf0]  ;;  %v5007_v37 = vld [vmem:[%s8294_s1 + $0xec] sm:$0xf] }
 0x178   :  { %v731_v44 = vsub.f32 1.0, %v730_v34  ;;  %v5140_v52 = vpop.eup %5139  ;;  %v788_v57 = vmul.f32 %v5138_v47, %v689_v38  ;;  %v766_v62 = vor.u32 1.1754944e-38, %v765_v9  ;;  %v4000_v31 = vor.u32 %v5016_v29, %v3999_v26  ;;  %v4007_v34 = vld [vmem:[%s8294_s1 + $0xe8] sm:$0xf]  ;;  %v4009_v38 = vld [vmem:[%s8294_s1 + $0xf8] sm:$0xf0] }
 0x179   :  { %v695_v54 = vadd.f32 %v6169_v11, %v694_v46  ;;  %5141 = vrcp.f32 %v753_v48  ;;  %v758_v45 = vadd.f32 %v6151_v3, %v757_v2  ;;  %v780_v10 = vand.u32 2147483648, %v753_v48  ;;  %v3983_v46 = vld [vmem:[%s8294_s1 + $0xc0] sm:$0xf]  ;;  %v4980_v47 = vld [vmem:[%s8294_s1 + $0xcc] sm:$0xf0]  ;;  %v3736_v55 = vld [vmem:[%s8295_s0 + $0x98] sm:$0xff] }
 0x17a   :  { %v732_v53 = vmul.f32 %v5134_v23, %v731_v44  ;;  %v6238_v0 = vadd.f32 %v788_v57, %v786_v56  ;;  %v778_v12 = vand.u32 2147483647, %v753_v48  ;;  %vm774_vm12 = vweird.f32 %v753_v48  ;;  %1360 = vmatpush.bf16.msrb.mxu0 %v4000_v31  ;;  %v3991_v51 = vld [vmem:[%s8294_s1 + $0xc8] sm:$0xf]  ;;  %v3737_v59 = vld [vmem:[%s8295_s0 + $0xa0] sm:$0xff] }
 0x17b   :  { %v699_v17 = vsel %vm698_vm4, %v6169_v11, %v695_v54  ;;  %v762_v14 = vsel %vm761_vm11, %v6151_v3, %v758_v45  ;;  %v781_v16 = vor.u32 1.1754944e-38, %v780_v10  ;;  %v3733_v3 = vld [vmem:[%s8295_s0 + $0x80] sm:$0xff]  ;;  %v4004_v33 = vor.u32 %v4998_v30, %v4001_v32  ;;  %v3969_v2 = vld [vmem:[%s8294_s1 + $0xb0] sm:$0xf0]  ;;  %v4935_v9 = vld [vmem:[%s8294_s1 + $0xac] sm:$0xf] }
 0x17c   :  { %v733_v21 = vadd.f32 %v5134_v23, %v732_v53  ;;  %v704_v60 = vsel %vm701_vm5, %v703_v58, %v699_v17  ;;  %5143 = vtanh.f32 %v6238_v0  ;;  %vm779_vm15 = vcmp.eq.f32.partialorder %v778_v12, 8.507059e+37  ;;  %v4971_v58 = vld [vmem:[%s8294_s1 + $0xcc] sm:$0xf]  ;;  %v3977_v10 = vld [vmem:[%s8294_s1 + $0xb8] sm:$0xf0] }
 0x17d   :  { %v789_v63 = vmul.f32 %v5140_v52, %v704_v60  ;;  %v4008_v36 = vor.u32 %v5025_v6, %v4007_v34  ;;  %v4012_v41 = vor.u32 %v5007_v37, %v4009_v38  ;;  %1374 = vmatpush.bf16.msrb.mxu1 %v4004_v33  ;;  %v3984_v49 = vor.u32 %v4980_v47, %v3983_v46  ;;  %v4989_v52 = vld [vmem:[%s8294_s1 + $0xd4] sm:$0xf0]  ;;  %v3738_v17 = vld [vmem:[%s8295_s0 + $0xa8] sm:$0xff]  ;;  %v3967_v60 = vld [vmem:[%s8294_s1 + $0xa0] sm:$0xf] }
 0x17e   :  { %v737_v61 = vsel %vm736_vm6, %v5134_v23, %v733_v21  ;;  %v3992_v57 = vor.u32 %v4989_v52, %v3991_v51  ;;  %v3993_v21 = vld [vmem:[%s8294_s1 + $0xd8] sm:$0xf0]  ;;  %v4917_v26 = vld [vmem:[%s8294_s1 + $0x94] sm:$0xf0]  ;;  %v4899_v32 = vld [vmem:[%s8294_s1 + $0x8c] sm:$0xf] }
 0x17f   :  { %v742_v1 = vsel %vm739_vm7, %v741_v27, %v737_v61  ;;  %v5142_v4 = vpop.eup %5141  ;;  %1388 = vmatpush.bf16.msrb.mxu2 %v4008_v36  ;;  %1402 = vmatpush.bf16.msrb.mxu3 %v4012_v41  ;;  %v3996_v27 = vor.u32 %v4971_v58, %v3993_v21  ;;  %v4944_v61 = vld [vmem:[%s8294_s1 + $0xac] sm:$0xf0]  ;;  %v3961_v34 = vld [vmem:[%s8294_s1 + $0x98] sm:$0xf0]  ;;  %v3935_v37 = vld [vmem:[%s8294_s1 + $0x60] sm:$0xf] }
 0x180   :  { %v787_v35 = vmul.f32 %v742_v1, %v5910_v42  ;;  %v770_v7 = vmul.f32 %v5142_v4, %v753_v48  ;;  %v763_v42 = vand.u32 2147483647, %v6080_v28  ;;  %vm775_vm10 = vweird.f32 %v5142_v4  ;;  %v4962_v48 = vld [vmem:[%s8294_s1 + $0xc4] sm:$0xf]  ;;  %1361 = vmatpush.bf16.msrb.mxu0 %v3984_v49  ;;  %v4872_v38 = vld [vmem:[%s8294_s1 + $0x6c] sm:$0xf0] }
 0x181   :  { %vm776_vm13 = vmor %vm774_vm12, %vm775_vm10  ;;  %v3988_v56 = vor.u32 %v4962_v48, %v3985_v50  ;;  %v3968_v1 = vor.u32 %v4944_v61, %v3967_v60  ;;  %v3964_v36 = vor.u32 %v4899_v32, %v3961_v34  ;;  %v3740_v41 = vld [vmem:[%s8295_s0 + $0xb8] sm:$0xff]  ;;  %v3936_v47 = vor.u32 %v4872_v38, %v3935_v37  ;;  %v4863_v48 = vld [vmem:[%s8294_s1 + $0x6c] sm:$0xf] }
 0x182   :  { %v6242_v5 = vadd.f32 %v789_v63, %v787_v35  ;;  %v771_v8 = vsub.f32 1.0, %v770_v7  ;;  %v5144_v15 = vpop.eup %5143  ;;  %vm764_vm14 = vcmp.eq.f32.partialorder %v763_v42, 8.507059e+37  ;;  %v4926_v63 = vld [vmem:[%s8294_s1 + $0xa4] sm:$0xf]  ;;  %v3975_v35 = vld [vmem:[%s8294_s1 + $0xa8] sm:$0xf] }
 0x183   :  { %v767_v20 = vsel %vm764_vm14, %v766_v62, %v762_v14  ;;  %1375 = vmatpush.bf16.msrb.mxu1 %v3988_v56  ;;  %1389 = vmatpush.bf16.msrb.mxu2 %v3992_v57  ;;  %v3972_v45 = vor.u32 %v4926_v63, %v3969_v2  ;;  %v3951_v62 = vld [vmem:[%s8294_s1 + $0x80] sm:$0xf]  ;;  %v4881_v46 = vld [vmem:[%s8294_s1 + $0x74] sm:$0xf0]  ;;  %v3945_v49 = vld [vmem:[%s8294_s1 + $0x78] sm:$0xf0] }
 0x184   :  { %5145 = vtanh.f32 %v6242_v5  ;;  %v772_v11 = vmul.f32 %v5142_v4, %v771_v8  ;;  %v794_v23 = vmul.f32 %v5144_v15, %v767_v20  ;;  %1403 = vmatpush.bf16.msrb.mxu3 %v3996_v27  ;;  %1362 = vmatpush.bf16.msrb.mxu0 %v3968_v1  ;;  %v4818_v56 = vld [vmem:[%s8294_s1 + $0x44] sm:$0xf]  ;;  %v3921_v21 = vld [vmem:[%s8294_s1 + $0x50] sm:$0xf0] }
 0x185   :  { %v3924_v63 = vor.u32 %v4818_v56, %v3921_v21  ;;  %v4782_v32 = vld [vmem:[%s8294_s1 + $0x24] sm:$0xf]  ;;  %v3905_v34 = vld [vmem:[%s8294_s1 + $0x30] sm:$0xf0] }
 0x186   :  { %v773_v13 = vadd.f32 %v5142_v4, %v772_v11  ;;  %v3908_v56 = vor.u32 %v4782_v32, %v3905_v34 }
 0x187   :  { %1376 = vmatpush.bf16.msrb.mxu1 %v3972_v45 }
 0x188   :  { %v777_v19 = vsel %vm776_vm13, %v5142_v4, %v773_v13  ;;  %v4953_v4 = vld [vmem:[%s8294_s1 + $0xb4] sm:$0xf0]  ;;  %v3980_v13 = vor.u32 %v4935_v9, %v3977_v10 }
 0x189   :  { %v782_v22 = vsel %vm779_vm15, %v781_v16, %v777_v19  ;;  %v3976_v8 = vor.u32 %v4953_v4, %v3975_v35  ;;  %v4908_v16 = vld [vmem:[%s8294_s1 + $0x8c] sm:$0xf0] }
 0x18a   :  { %v5146_v18 = vpop.eup %5145  ;;  %v3952_v20 = vor.u32 %v4908_v16, %v3951_v62  ;;  %1404 = vmatpush.bf16.msrb.mxu3 %v3980_v13  ;;  %v3735_v35 = vld [vmem:[%s8295_s0 + $0x90] sm:$0xff]  ;;  %v3927_v16 = vld [vmem:[%s8294_s1 + $0x48] sm:$0xf] }
 0x18b   :  { %v795_v28 = vmul.f32 %v5146_v18, %v782_v22  ;;  %1390 = vmatpush.bf16.msrb.mxu2 %v3976_v8  ;;  %v4890_v18 = vld [vmem:[%s8294_s1 + $0x84] sm:$0xf]  ;;  %v3953_v22 = vld [vmem:[%s8294_s1 + $0x90] sm:$0xf0] }
 0x18c   :  { %1363 = vmatpush.bf16.msrb.mxu0 %v3952_v20 }
 0x18d   :  { %v5037_v24 = vpack.c.bf16 %v795_v28, %v794_v23  ;;  %v3959_v23 = vld [vmem:[%s8294_s1 + $0x88] sm:$0xf] }
 0x18e   :  { %v3960_v31 = vor.u32 %v4917_v26, %v3959_v23  ;;  %1405 = vmatpush.bf16.msrb.mxu3 %v3964_v36 }
 0x18f   :  { %5074 = vst [vmem:[%s8296_s2 + $0x8] sm:$0xff] %v5037_v24   ;;  %990 = vmatmul.bf16.vlgmr.msra.gmra.mxu0 %v5037_v24  ;;  %1004 = vmatmul.bf16.vlgmr.msra.gmra.mxu1 %v5037_v24 }
 0x190   :  { %1018 = vmatmul.bf16.vlgmr.msra.gmra.mxu2 %v5037_v24  ;;  %1032 = vmatmul.bf16.vlgmr.msra.gmra.mxu3 %v5037_v24 }
 0x191   :  { %1391 = vmatpush.bf16.msrb.mxu2 %v3960_v31  ;;  %1364 = vmatpush.bf16.msrb.mxu0 %v3936_v47  ;;  %v4791_v47 = vld [vmem:[%s8294_s1 + $0x2c] sm:$0xf] }
 0x20c   :  { %v991_v40 = vpop.f32.mrf.mxu0  ;;  %v1005_v39 = vpop.f32.mrf.mxu1 }
 0x20d   :  { %v1038_v43 = vadd.f32 %v3733_v3, %v991_v40  ;;  %v1039_v44 = vadd.f32 %v3734_v25, %v1005_v39  ;;  %v3956_v25 = vor.u32 %v4890_v18, %v3953_v22  ;;  %v4854_v40 = vld [vmem:[%s8294_s1 + $0x64] sm:$0xf]  ;;  %v3937_v39 = vld [vmem:[%s8294_s1 + $0x70] sm:$0xf0]  ;;  %v4845_v18 = vld [vmem:[%s8294_s1 + $0x54] sm:$0xf0] }
 0x20e   :  { %v3940_v51 = vor.u32 %v4854_v40, %v3937_v39  ;;  %v4827_v22 = vld [vmem:[%s8294_s1 + $0x4c] sm:$0xf]  ;;  %v3928_v31 = vor.u32 %v4845_v18, %v3927_v16  ;;  %v3911_v39 = vld [vmem:[%s8294_s1 + $0x28] sm:$0xf] }
 0x20f   :  { %v3869_v53 = vmul.f32 -1.442695, %v1038_v43  ;;  %v3871_v54 = vmul.f32 -1.442695, %v1039_v44  ;;  %1377 = vmatpush.bf16.msrb.mxu1 %v3956_v25  ;;  %v3943_v44 = vld [vmem:[%s8294_s1 + $0x68] sm:$0xf] }
 0x210   :  { %v3944_v52 = vor.u32 %v4881_v46, %v3943_v44  ;;  %v4800_v25 = vld [vmem:[%s8294_s1 + $0x2c] sm:$0xf0]  ;;  %v4809_v46 = vld [vmem:[%s8294_s1 + $0x34] sm:$0xf0] }
 0x211   :  { %5147 = vpow2.f32 %v3869_v53  ;;  %v3948_v53 = vor.u32 %v4863_v48, %v3945_v49  ;;  %v3913_v48 = vld [vmem:[%s8294_s1 + $0x38] sm:$0xf0] }
 0x212   :  { %5149 = vpow2.f32 %v3871_v54  ;;  %v3919_v54 = vld [vmem:[%s8294_s1 + $0x40] sm:$0xf]  ;;  %1392 = vmatpush.bf16.msrb.mxu2 %v3944_v52  ;;  %v4764_v52 = vld [vmem:[%s8294_s1 + $0xc] sm:$0xf0] }
 0x213   :  { %v1033_v7 = vpop.f32.mrf.mxu3  ;;  %v1019_v33 = vpop.f32.mrf.mxu2  ;;  %1378 = vmatpush.bf16.msrb.mxu1 %v3940_v51  ;;  %1406 = vmatpush.bf16.msrb.mxu3 %v3948_v53  ;;  %v3887_v51 = vld [vmem:[%s8294_s1] sm:$0xf]  ;;  %v4746_v53 = vld [vmem:[%s8294_s1 + $0x4] sm:$0xf] }
 0x214   :  { %v1041_v42 = vadd.f32 %v3736_v55, %v1033_v7  ;;  %v993_v11 = vpop.f32.mrf.mxu0  ;;  %v1007_v12 = vpop.f32.mrf.mxu1  ;;  %v4836_v55 = vld [vmem:[%s8294_s1 + $0x4c] sm:$0xf0] }
 0x215   :  { %v1042_v14 = vadd.f32 %v3737_v59, %v993_v11  ;;  %v1043_v15 = vadd.f32 %v3738_v17, %v1007_v12  ;;  %v3920_v17 = vor.u32 %v4836_v55, %v3919_v54  ;;  %v3739_v11 = vld [vmem:[%s8295_s0 + $0xb0] sm:$0xff] }
 0x216   :  { %v3873_v19 = vmul.f32 -1.442695, %v1041_v42  ;;  %1393 = vmatpush.bf16.msrb.mxu2 %v3928_v31 }
 0x217   :  { %v5148_v28 = vpop.eup %5147  ;;  %v3870_v24 = vmul.f32 -1.442695, %v1042_v14  ;;  %v3872_v3 = vmul.f32 -1.442695, %v1043_v15  ;;  %1365 = vmatpush.bf16.msrb.mxu0 %v3920_v17  ;;  %v1040_v15 = vadd.f32 %v3735_v35, %v1019_v33  ;;  %1379 = vmatpush.bf16.msrb.mxu1 %v3924_v63  ;;  %v4773_v17 = vld [vmem:[%s8294_s1 + $0x14] sm:$0xf0] }
 0x218   :  { %v5150_v29 = vpop.eup %5149  ;;  %v6360_v30 = vadd.f32 1.0, %v5148_v28  ;;  %5151 = vpow2.f32 %v3873_v19 }
 0x219   :  { %v6368_v6 = vadd.f32 1.0, %v5150_v29  ;;  %5153 = vpow2.f32 %v3870_v24  ;;  %v3929_v24 = vld [vmem:[%s8294_s1 + $0x58] sm:$0xf0] }
 0x21a   :  { %5155 = vrcp.f32 %v6360_v30  ;;  %v1063_v60 = vand.u32 2147483647, %v6360_v30  ;;  %v1065_v4 = vand.u32 2147483648, %v6360_v30  ;;  %vm1059_vm4 = vweird.f32 %v6360_v30 }
 0x21b   :  { %5157 = vrcp.f32 %v6368_v6  ;;  %v1035_v43 = vpop.f32.mrf.mxu3  ;;  %v1103_v8 = vand.u32 2147483648, %v6368_v6  ;;  %v1101_v9 = vand.u32 2147483647, %v6368_v6  ;;  %v1021_v12 = vpop.f32.mrf.mxu2  ;;  %vm1097_vm3 = vweird.f32 %v6368_v6  ;;  %1380 = vmatpush.bf16.msrb.mxu1 %v3908_v56  ;;  %v3878_v56 = vld [vmem:[%s8295_s0 + $0xc8] sm:$0xff] }
 0x21c   :  { %5159 = vpow2.f32 %v3872_v3  ;;  %v1045_v59 = vadd.f32 %v3740_v41, %v1035_v43  ;;  %vm6438_vm1 = vcmp.eq.f32.partialorder %v1063_v60, 8.507059e+37  ;;  %v1066_v20 = vor.u32 1.1754944e-38, %v1065_v4  ;;  %v3903_v3 = vld [vmem:[%s8294_s1 + $0x20] sm:$0xf] }
 0x21d   :  { %v1044_v28 = vadd.f32 %v3739_v11, %v1021_v12  ;;  %v1104_v26 = vor.u32 1.1754944e-38, %v1103_v8  ;;  %vm6488_vm7 = vcmp.eq.f32.partialorder %v1101_v9, 8.507059e+37  ;;  %v3932_v43 = vor.u32 %v4827_v22, %v3929_v24 }
 0x21e   :  { %v5152_v50 = vpop.eup %5151  ;;  %v3874_v13 = vmul.f32 -1.442695, %v1045_v59  ;;  %v3904_v44 = vor.u32 %v4800_v25, %v3903_v3  ;;  %v3895_v59 = vld [vmem:[%s8294_s1 + $0x8] sm:$0xf]  ;;  %v3888_v8 = vor.u32 %v4764_v52, %v3887_v51 }
 0x21f   :  { %v5154_v57 = vpop.eup %5153  ;;  %v6408_v58 = vadd.f32 1.0, %v5152_v50  ;;  %1407 = vmatpush.bf16.msrb.mxu3 %v3932_v43 }
 0x220   :  { %v6413_v27 = vpop.eup %5155  ;;  %v6416_v61 = vadd.f32 1.0, %v5154_v57  ;;  %1366 = vmatpush.bf16.msrb.mxu0 %v3904_v44  ;;  %v3889_v57 = vld [vmem:[%s8294_s1 + $0x10] sm:$0xf0] }
 0x221   :  { %v6418_v1 = vpop.eup %5157  ;;  %v1055_v2 = vmul.f32 %v6413_v27, %v6360_v30  ;;  %5161 = vrcp.f32 %v6408_v58  ;;  %vm1060_vm0 = vweird.f32 %v6413_v27 }
 0x222   :  { %v5160_v7 = vpop.eup %5159  ;;  %v1093_v45 = vmul.f32 %v6418_v1, %v6368_v6  ;;  %5163 = vrcp.f32 %v6416_v61  ;;  %vm1098_vm2 = vweird.f32 %v6418_v1  ;;  %vm6469_vm5 = vmor %vm1059_vm4, %vm1060_vm0  ;;  %v1078_v40 = vand.u32 2147483647, %v6416_v61 }
 0x223   :  { %v1056_v10 = vsub.f32 1.0, %v1055_v2  ;;  %v6432_v42 = vadd.f32 1.0, %v5160_v7  ;;  %vm6483_vm6 = vmor %vm1097_vm3, %vm1098_vm2  ;;  %vm1074_vm9 = vweird.f32 %v6416_v61  ;;  %v1080_v63 = vand.u32 2147483648, %v6416_v61  ;;  %v3897_v2 = vld [vmem:[%s8294_s1 + $0x18] sm:$0xf0] }
 0x224   :  { %v1094_v14 = vsub.f32 1.0, %v1093_v45  ;;  %v3912_v7 = vor.u32 %v4809_v46, %v3911_v39  ;;  %v3916_v45 = vor.u32 %v4791_v47, %v3913_v48  ;;  %1367 = vmatpush.bf16.msrb.mxu0 %v3888_v8  ;;  %vm1079_vm13 = vcmp.eq.f32.partialorder %v1078_v40, 8.507059e+37 }
 0x225   :  { %v1057_v19 = vmul.f32 %v6413_v27, %v1056_v10  ;;  %5165 = vrcp.f32 %v6432_v42  ;;  %v1118_v38 = vand.u32 2147483648, %v6432_v42  ;;  %vm1112_vm8 = vweird.f32 %v6432_v42 }
 0x226   :  { %v1095_v23 = vmul.f32 %v6418_v1, %v1094_v14  ;;  %5167 = vpow2.f32 %v3874_v13  ;;  %1394 = vmatpush.bf16.msrb.mxu2 %v3912_v7  ;;  %1408 = vmatpush.bf16.msrb.mxu3 %v3916_v45  ;;  %v3892_v14 = vor.u32 %v4746_v53, %v3889_v57  ;;  %v1143_v40 = vand.u32 2147483648, %v6408_v58  ;;  %v4143_v57 = vld [vmem:[%s8294_s1 + $0xe0] sm:$0xf] }
 0x227   :  { %v1058_v29 = vadd.f32 %v6413_v27, %v1057_v19  ;;  %v6479_v6 = vpop.eup %5161  ;;  %5169 = vtanh.f32 %v1040_v15  ;;  %v3896_v15 = vor.u32 %v4773_v17, %v3895_v59  ;;  %v5015_v59 = vld [vmem:[%s8294_s1 + $0xec] sm:$0xf0]  ;;  %v4997_v17 = vld [vmem:[%s8294_s1 + $0xe4] sm:$0xf] }
 0x228   :  { %v1096_v36 = vadd.f32 %v6418_v1, %v1095_v23  ;;  %v6497_v41 = vpop.eup %5163  ;;  %5171 = vtanh.f32 %v1044_v28  ;;  %v1133_v21 = vmul.f32 %v6479_v6, %v6408_v58  ;;  %v1081_v28 = vor.u32 1.1754944e-38, %v1080_v63  ;;  %1381 = vmatpush.bf16.msrb.mxu1 %v3892_v14  ;;  %v5024_v63 = vld [vmem:[%s8294_s1 + $0xf4] sm:$0xf0] }
 0x229   :  { %v1062_v49 = vsel %vm6469_vm5, %v6413_v27, %v1058_v29  ;;  %v1070_v50 = vmul.f32 %v6497_v41, %v6416_v61  ;;  %vm1075_vm10 = vweird.f32 %v6497_v41  ;;  %vm1138_vm0 = vweird.f32 %v6479_v6 }
 0x22a   :  { %v1100_v55 = vsel %vm6483_vm6, %v6418_v1, %v1096_v36  ;;  %v4755_v1 = vld [vmem:[%s8294_s1 + $0xc] sm:$0xf]  ;;  %v1067_v4 = vsel %vm6438_vm1, %v1066_v20, %v1062_v49  ;;  %v1116_v20 = vand.u32 2147483647, %v6432_v42  ;;  %vm1076_vm12 = vmor %vm1074_vm9, %vm1075_vm10  ;;  %v1134_v24 = vsub.f32 1.0, %v1133_v21  ;;  %1395 = vmatpush.bf16.msrb.mxu2 %v3896_v15 }
 0x22b   :  { %v5166_v54 = vpop.eup %5165  ;;  %v1071_v27 = vsub.f32 1.0, %v1070_v50  ;;  %v1105_v9 = vsel %vm6488_vm7, %v1104_v26, %v1100_v55  ;;  %v3900_v62 = vor.u32 %v4755_v1, %v3897_v2  ;;  %vm1137_vm1 = vweird.f32 %v6408_v58  ;;  %v4129_v15 = vld [vmem:[%s8294_s1 + $0xd0] sm:$0xf0] }
 0x22c   :  { %v1108_v60 = vmul.f32 %v5166_v54, %v6432_v42  ;;  %v5168_v35 = vpop.eup %5167  ;;  %vm1113_vm11 = vweird.f32 %v5166_v54  ;;  %v1164_v22 = vmul.f32 %v1105_v9, %v6238_v0  ;;  %v1119_v0 = vor.u32 1.1754944e-38, %v1118_v38  ;;  %vm1139_vm3 = vmor %vm1137_vm1, %vm1138_vm0 }
 0x22d   :  { %v1072_v11 = vmul.f32 %v6497_v41, %v1071_v27  ;;  %v5170_v12 = vpop.eup %5169  ;;  %v1131_v13 = vadd.f32 1.0, %v5168_v35  ;;  %vm1114_vm14 = vmor %vm1112_vm8, %vm1113_vm11  ;;  %1409 = vmatpush.bf16.msrb.mxu3 %v3900_v62  ;;  %vm1117_vm15 = vcmp.eq.f32.partialorder %v1116_v20, 8.507059e+37  ;;  %v1135_v34 = vmul.f32 %v6479_v6, %v1134_v24  ;;  %v4145_v27 = vld [vmem:[%s8294_s1 + $0xf0] sm:$0xf0]  ;;  %v5006_v35 = vld [vmem:[%s8294_s1 + $0xec] sm:$0xf] }
 0x22e   :  { %v1109_v10 = vsub.f32 1.0, %v1108_v60  ;;  %v5172_v16 = vpop.eup %5171  ;;  %v1166_v23 = vmul.f32 %v5170_v12, %v1067_v4  ;;  %v1144_v48 = vor.u32 1.1754944e-38, %v1143_v40  ;;  %v4144_v21 = vor.u32 %v5015_v59, %v4143_v57  ;;  %v4151_v60 = vld [vmem:[%s8294_s1 + $0xe8] sm:$0xf]  ;;  %v4153_v4 = vld [vmem:[%s8294_s1 + $0xf8] sm:$0xf0] }
 0x22f   :  { %v1073_v19 = vadd.f32 %v6497_v41, %v1072_v11  ;;  %5173 = vrcp.f32 %v1131_v13  ;;  %v1136_v42 = vadd.f32 %v6479_v6, %v1135_v34  ;;  %v1158_v39 = vand.u32 2147483648, %v1131_v13  ;;  %v4127_v11 = vld [vmem:[%s8294_s1 + $0xc0] sm:$0xf]  ;;  %v4979_v12 = vld [vmem:[%s8294_s1 + $0xcc] sm:$0xf0]  ;;  %v3880_v20 = vld [vmem:[%s8295_s0 + $0xd8] sm:$0xff] }
 0x230   :  { %v1110_v18 = vmul.f32 %v5166_v54, %v1109_v10  ;;  %v6566_v31 = vadd.f32 %v1166_v23, %v1164_v22  ;;  %v1156_v43 = vand.u32 2147483647, %v1131_v13  ;;  %vm1152_vm4 = vweird.f32 %v1131_v13  ;;  %1738 = vmatpush.bf16.msra.mxu0 %v4144_v21  ;;  %v4135_v62 = vld [vmem:[%s8294_s1 + $0xc8] sm:$0xf]  ;;  %v3881_v24 = vld [vmem:[%s8295_s0 + $0xe0] sm:$0xff] }
 0x231   :  { %v1077_v3 = vsel %vm1076_vm12, %v6497_v41, %v1073_v19  ;;  %v1140_v46 = vsel %vm1139_vm3, %v6479_v6, %v1136_v42  ;;  %v1159_v49 = vor.u32 1.1754944e-38, %v1158_v39  ;;  %v3877_v6 = vld [vmem:[%s8295_s0 + $0xc0] sm:$0xff]  ;;  %v4148_v1 = vor.u32 %v4997_v17, %v4145_v27  ;;  %v4113_v34 = vld [vmem:[%s8294_s1 + $0xb0] sm:$0xf0]  ;;  %v4934_v40 = vld [vmem:[%s8294_s1 + $0xac] sm:$0xf] }
 0x232   :  { %v1111_v25 = vadd.f32 %v5166_v54, %v1110_v18  ;;  %v1082_v26 = vsel %vm1079_vm13, %v1081_v28, %v1077_v3  ;;  %5175 = vtanh.f32 %v6566_v31  ;;  %vm1157_vm7 = vcmp.eq.f32.partialorder %v1156_v43, 8.507059e+37  ;;  %v4970_v28 = vld [vmem:[%s8294_s1 + $0xcc] sm:$0xf]  ;;  %v4121_v39 = vld [vmem:[%s8294_s1 + $0xb8] sm:$0xf0] }
 0x233   :  { %v1167_v30 = vmul.f32 %v5172_v16, %v1082_v26  ;;  %v4152_v2 = vor.u32 %v5024_v63, %v4151_v60  ;;  %v4156_v8 = vor.u32 %v5006_v35, %v4153_v4  ;;  %1752 = vmatpush.bf16.msra.mxu1 %v4148_v1  ;;  %v4128_v14 = vor.u32 %v4979_v12, %v4127_v11  ;;  %v4988_v16 = vld [vmem:[%s8294_s1 + $0xd4] sm:$0xf0]  ;;  %v3882_v3 = vld [vmem:[%s8295_s0 + $0xe8] sm:$0xff]  ;;  %v4111_v26 = vld [vmem:[%s8294_s1 + $0xa0] sm:$0xf] }
 0x234   :  { %v1115_v29 = vsel %vm1114_vm14, %v5166_v54, %v1111_v25  ;;  %v4136_v23 = vor.u32 %v4988_v16, %v4135_v62  ;;  %v4137_v25 = vld [vmem:[%s8294_s1 + $0xd8] sm:$0xf0]  ;;  %v4916_v57 = vld [vmem:[%s8294_s1 + $0x94] sm:$0xf0]  ;;  %v4898_v27 = vld [vmem:[%s8294_s1 + $0x8c] sm:$0xf] }
 0x235   :  { %v1120_v32 = vsel %vm1117_vm15, %v1119_v0, %v1115_v29  ;;  %v5174_v33 = vpop.eup %5173  ;;  %1766 = vmatpush.bf16.msra.mxu2 %v4152_v2  ;;  %1780 = vmatpush.bf16.msra.mxu3 %v4156_v8  ;;  %v4140_v0 = vor.u32 %v4970_v28, %v4137_v25  ;;  %v4943_v29 = vld [vmem:[%s8294_s1 + $0xac] sm:$0xf0]  ;;  %v4105_v60 = vld [vmem:[%s8294_s1 + $0x98] sm:$0xf0]  ;;  %v4079_v35 = vld [vmem:[%s8294_s1 + $0x60] sm:$0xf] }
 0x236   :  { %v1165_v61 = vmul.f32 %v1120_v32, %v6242_v5  ;;  %v1148_v37 = vmul.f32 %v5174_v33, %v1131_v13  ;;  %v1141_v5 = vand.u32 2147483647, %v6408_v58  ;;  %vm1153_vm2 = vweird.f32 %v5174_v33  ;;  %v4961_v13 = vld [vmem:[%s8294_s1 + $0xc4] sm:$0xf]  ;;  %1739 = vmatpush.bf16.msra.mxu0 %v4128_v14  ;;  %v4871_v4 = vld [vmem:[%s8294_s1 + $0x6c] sm:$0xf0] }
 0x237   :  { %vm1154_vm5 = vmor %vm1152_vm4, %vm1153_vm2  ;;  %v4132_v22 = vor.u32 %v4961_v13, %v4129_v15  ;;  %v4112_v32 = vor.u32 %v4943_v29, %v4111_v26  ;;  %v4108_v2 = vor.u32 %v4898_v27, %v4105_v60  ;;  %v3884_v8 = vld [vmem:[%s8295_s0 + $0xf8] sm:$0xff]  ;;  %v4080_v12 = vor.u32 %v4871_v4, %v4079_v35  ;;  %v4862_v13 = vld [vmem:[%s8294_s1 + $0x6c] sm:$0xf] }
 0x238   :  { %v6570_v36 = vadd.f32 %v1167_v30, %v1165_v61  ;;  %v1149_v38 = vsub.f32 1.0, %v1148_v37  ;;  %v5176_v47 = vpop.eup %5175  ;;  %vm1142_vm6 = vcmp.eq.f32.partialorder %v1141_v5, 8.507059e+37  ;;  %v4925_v30 = vld [vmem:[%s8294_s1 + $0xa4] sm:$0xf]  ;;  %v4119_v61 = vld [vmem:[%s8294_s1 + $0xa8] sm:$0xf] }
 0x239   :  { %v1145_v52 = vsel %vm1142_vm6, %v1144_v48, %v1140_v46  ;;  %1753 = vmatpush.bf16.msra.mxu1 %v4132_v22  ;;  %1767 = vmatpush.bf16.msra.mxu2 %v4136_v23  ;;  %v4116_v42 = vor.u32 %v4925_v30, %v4113_v34  ;;  %v4095_v48 = vld [vmem:[%s8294_s1 + $0x80] sm:$0xf]  ;;  %v4880_v11 = vld [vmem:[%s8294_s1 + $0x74] sm:$0xf0]  ;;  %v4089_v14 = vld [vmem:[%s8294_s1 + $0x78] sm:$0xf0] }
 0x23a   :  { %5177 = vtanh.f32 %v6570_v36  ;;  %v1150_v41 = vmul.f32 %v5174_v33, %v1149_v38  ;;  %v1172_v54 = vmul.f32 %v5176_v47, %v1145_v52  ;;  %1781 = vmatpush.bf16.msra.mxu3 %v4140_v0  ;;  %1740 = vmatpush.bf16.msra.mxu0 %v4112_v32  ;;  %v4817_v22 = vld [vmem:[%s8294_s1 + $0x44] sm:$0xf]  ;;  %v4065_v25 = vld [vmem:[%s8294_s1 + $0x50] sm:$0xf0] }
 0x23b   :  { %v4068_v30 = vor.u32 %v4817_v22, %v4065_v25  ;;  %v4781_v27 = vld [vmem:[%s8294_s1 + $0x24] sm:$0xf]  ;;  %v4049_v60 = vld [vmem:[%s8294_s1 + $0x30] sm:$0xf0] }
 0x23c   :  { %v1151_v44 = vadd.f32 %v5174_v33, %v1150_v41  ;;  %v4052_v22 = vor.u32 %v4781_v27, %v4049_v60 }
 0x23d   :  { %1754 = vmatpush.bf16.msra.mxu1 %v4116_v42 }
 0x23e   :  { %v1155_v51 = vsel %vm1154_vm5, %v5174_v33, %v1151_v44  ;;  %v4952_v33 = vld [vmem:[%s8294_s1 + $0xb4] sm:$0xf0]  ;;  %v4124_v44 = vor.u32 %v4934_v40, %v4121_v39 }
 0x23f   :  { %v1160_v53 = vsel %vm1157_vm7, %v1159_v49, %v1155_v51  ;;  %v4120_v38 = vor.u32 %v4952_v33, %v4119_v61  ;;  %v4907_v49 = vld [vmem:[%s8294_s1 + $0x8c] sm:$0xf0] }
 0x240   :  { %v5178_v50 = vpop.eup %5177  ;;  %v4096_v52 = vor.u32 %v4907_v49, %v4095_v48  ;;  %1782 = vmatpush.bf16.msra.mxu3 %v4124_v44  ;;  %v3879_v61 = vld [vmem:[%s8295_s0 + $0xd0] sm:$0xff]  ;;  %v4071_v49 = vld [vmem:[%s8294_s1 + $0x48] sm:$0xf] }
 0x241   :  { %v1173_v58 = vmul.f32 %v5178_v50, %v1160_v53  ;;  %1768 = vmatpush.bf16.msra.mxu2 %v4120_v38  ;;  %v4889_v50 = vld [vmem:[%s8294_s1 + $0x84] sm:$0xf]  ;;  %v4097_v53 = vld [vmem:[%s8294_s1 + $0x90] sm:$0xf0] }
 0x242   :  { %1741 = vmatpush.bf16.msra.mxu0 %v4096_v52 }
 0x243   :  { %v5042_v55 = vpack.c.bf16 %v1173_v58, %v1172_v54  ;;  %v4103_v54 = vld [vmem:[%s8294_s1 + $0x88] sm:$0xf] }
 0x244   :  { %v4104_v21 = vor.u32 %v4916_v57, %v4103_v54  ;;  %1783 = vmatpush.bf16.msra.mxu3 %v4108_v2 }
 0x245   :  { %5075 = vst [vmem:[%s8296_s2 + $0x10] sm:$0xff] %v5042_v55   ;;  %1368 = vmatmul.bf16.vlgmr.msrb.gmra.mxu0 %v5042_v55  ;;  %1382 = vmatmul.bf16.vlgmr.msrb.gmra.mxu1 %v5042_v55 }
 0x246   :  { %1396 = vmatmul.bf16.vlgmr.msrb.gmra.mxu2 %v5042_v55  ;;  %1410 = vmatmul.bf16.vlgmr.msrb.gmra.mxu3 %v5042_v55 }
 0x247   :  { %1769 = vmatpush.bf16.msra.mxu2 %v4104_v21  ;;  %1742 = vmatpush.bf16.msra.mxu0 %v4080_v12  ;;  %v4790_v12 = vld [vmem:[%s8294_s1 + $0x2c] sm:$0xf] }
 0x2c2   :  { %v1369_v7 = vpop.f32.mrf.mxu0  ;;  %v1383_v45 = vpop.f32.mrf.mxu1 }
 0x2c3   :  { %v1416_v9 = vadd.f32 %v3877_v6, %v1369_v7  ;;  %v1417_v10 = vadd.f32 %v3878_v56, %v1383_v45  ;;  %v4100_v56 = vor.u32 %v4889_v50, %v4097_v53  ;;  %v4853_v7 = vld [vmem:[%s8294_s1 + $0x64] sm:$0xf]  ;;  %v4081_v45 = vld [vmem:[%s8294_s1 + $0x70] sm:$0xf0]  ;;  %v4844_v50 = vld [vmem:[%s8294_s1 + $0x54] sm:$0xf0] }
 0x2c4   :  { %v4084_v62 = vor.u32 %v4853_v7, %v4081_v45  ;;  %v4826_v53 = vld [vmem:[%s8294_s1 + $0x4c] sm:$0xf]  ;;  %v4072_v21 = vor.u32 %v4844_v50, %v4071_v49  ;;  %v4055_v45 = vld [vmem:[%s8294_s1 + $0x28] sm:$0xf] }
 0x2c5   :  { %v4013_v18 = vmul.f32 -1.442695, %v1416_v9  ;;  %v4015_v19 = vmul.f32 -1.442695, %v1417_v10  ;;  %1755 = vmatpush.bf16.msra.mxu1 %v4100_v56  ;;  %v4087_v10 = vld [vmem:[%s8294_s1 + $0x68] sm:$0xf] }
 0x2c6   :  { %v4088_v16 = vor.u32 %v4880_v11, %v4087_v10  ;;  %v4799_v56 = vld [vmem:[%s8294_s1 + $0x2c] sm:$0xf0]  ;;  %v4808_v11 = vld [vmem:[%s8294_s1 + $0x34] sm:$0xf0] }
 0x2c7   :  { %5179 = vpow2.f32 %v4013_v18  ;;  %v4092_v18 = vor.u32 %v4862_v13, %v4089_v14  ;;  %v4057_v13 = vld [vmem:[%s8294_s1 + $0x38] sm:$0xf0] }
 0x2c8   :  { %5181 = vpow2.f32 %v4015_v19  ;;  %v4063_v19 = vld [vmem:[%s8294_s1 + $0x40] sm:$0xf]  ;;  %1770 = vmatpush.bf16.msra.mxu2 %v4088_v16  ;;  %v4763_v16 = vld [vmem:[%s8294_s1 + $0xc] sm:$0xf0] }
 0x2c9   :  { %v1411_v37 = vpop.f32.mrf.mxu3  ;;  %v1397_v1 = vpop.f32.mrf.mxu2  ;;  %1756 = vmatpush.bf16.msra.mxu1 %v4084_v62  ;;  %1784 = vmatpush.bf16.msra.mxu3 %v4092_v18  ;;  %v4031_v62 = vld [vmem:[%s8294_s1] sm:$0xf]  ;;  %v4745_v18 = vld [vmem:[%s8294_s1 + $0x4] sm:$0xf] }
 0x2ca   :  { %v1419_v5 = vadd.f32 %v3880_v20, %v1411_v37  ;;  %v1371_v41 = vpop.f32.mrf.mxu0  ;;  %v1385_v43 = vpop.f32.mrf.mxu1  ;;  %v4835_v20 = vld [vmem:[%s8294_s1 + $0x4c] sm:$0xf0] }
 0x2cb   :  { %v1420_v46 = vadd.f32 %v3881_v24, %v1371_v41  ;;  %v1421_v47 = vadd.f32 %v3882_v3, %v1385_v43  ;;  %v4064_v3 = vor.u32 %v4835_v20, %v4063_v19  ;;  %v3883_v41 = vld [vmem:[%s8295_s0 + $0xf0] sm:$0xff] }
 0x2cc   :  { %v4017_v51 = vmul.f32 -1.442695, %v1419_v5  ;;  %1771 = vmatpush.bf16.msra.mxu2 %v4072_v21 }
 0x2cd   :  { %v5180_v58 = vpop.eup %5179  ;;  %v4014_v55 = vmul.f32 -1.442695, %v1420_v46  ;;  %v4016_v6 = vmul.f32 -1.442695, %v1421_v47  ;;  %1743 = vmatpush.bf16.msra.mxu0 %v4064_v3  ;;  %v1418_v47 = vadd.f32 %v3879_v61, %v1397_v1  ;;  %1757 = vmatpush.bf16.msra.mxu1 %v4068_v30  ;;  %v4772_v3 = vld [vmem:[%s8294_s1 + $0x14] sm:$0xf0] }
 0x2ce   :  { %v5182_v59 = vpop.eup %5181  ;;  %v6688_v17 = vadd.f32 1.0, %v5180_v58  ;;  %5183 = vpow2.f32 %v4017_v51 }
 0x2cf   :  { %v6696_v63 = vadd.f32 1.0, %v5182_v59  ;;  %5185 = vpow2.f32 %v4014_v55  ;;  %v4073_v55 = vld [vmem:[%s8294_s1 + $0x58] sm:$0xf0] }
 0x2d0   :  { %5187 = vrcp.f32 %v6688_v17  ;;  %v1441_v26 = vand.u32 2147483647, %v6688_v17  ;;  %v1443_v33 = vand.u32 2147483648, %v6688_v17  ;;  %vm1437_vm12 = vweird.f32 %v6688_v17 }
 0x2d1   :  { %5189 = vrcp.f32 %v6696_v63  ;;  %v1413_v9 = vpop.f32.mrf.mxu3  ;;  %v1481_v38 = vand.u32 2147483648, %v6696_v63  ;;  %v1479_v40 = vand.u32 2147483647, %v6696_v63  ;;  %v1399_v43 = vpop.f32.mrf.mxu2  ;;  %vm1475_vm11 = vweird.f32 %v6696_v63  ;;  %1758 = vmatpush.bf16.msra.mxu1 %v4052_v22  ;;  %v4022_v22 = vld [vmem:[%s8295_s0 + $0x108] sm:$0xff] }
 0x2d2   :  { %5191 = vpow2.f32 %v4016_v6  ;;  %v1423_v24 = vadd.f32 %v3884_v8, %v1413_v9  ;;  %vm6766_vm9 = vcmp.eq.f32.partialorder %v1441_v26, 8.507059e+37  ;;  %v1444_v52 = vor.u32 1.1754944e-38, %v1443_v33  ;;  %v4047_v6 = vld [vmem:[%s8294_s1 + $0x20] sm:$0xf] }
 0x2d3   :  { %v1422_v58 = vadd.f32 %v3883_v41, %v1399_v43  ;;  %v1482_v57 = vor.u32 1.1754944e-38, %v1481_v38  ;;  %vm6816_vm15 = vcmp.eq.f32.partialorder %v1479_v40, 8.507059e+37  ;;  %v4076_v9 = vor.u32 %v4826_v53, %v4073_v55 }
 0x2d4   :  { %v5184_v15 = vpop.eup %5183  ;;  %v4018_v44 = vmul.f32 -1.442695, %v1423_v24  ;;  %v4048_v10 = vor.u32 %v4799_v56, %v4047_v6  ;;  %v4039_v24 = vld [vmem:[%s8294_s1 + $0x8] sm:$0xf]  ;;  %v4032_v38 = vor.u32 %v4763_v16, %v4031_v62 }
 0x2d5   :  { %v5186_v23 = vpop.eup %5185  ;;  %v6736_v28 = vadd.f32 1.0, %v5184_v15  ;;  %1785 = vmatpush.bf16.msra.mxu3 %v4076_v9 }
 0x2d6   :  { %v6741_v0 = vpop.eup %5187  ;;  %v6744_v29 = vadd.f32 1.0, %v5186_v23  ;;  %1744 = vmatpush.bf16.msra.mxu0 %v4048_v10  ;;  %v4033_v23 = vld [vmem:[%s8294_s1 + $0x10] sm:$0xf0] }
 0x2d7   :  { %v6746_v32 = vpop.eup %5189  ;;  %v1433_v34 = vmul.f32 %v6741_v0, %v6688_v17  ;;  %5193 = vrcp.f32 %v6736_v28  ;;  %vm1438_vm8 = vweird.f32 %v6741_v0 }
 0x2d8   :  { %v5192_v37 = vpop.eup %5191  ;;  %v1471_v42 = vmul.f32 %v6746_v32, %v6696_v63  ;;  %5195 = vrcp.f32 %v6744_v29  ;;  %vm1476_vm10 = vweird.f32 %v6746_v32  ;;  %vm6797_vm13 = vmor %vm1437_vm12, %vm1438_vm8  ;;  %v1456_v7 = vand.u32 2147483647, %v6744_v29 }
 0x2d9   :  { %v1434_v39 = vsub.f32 1.0, %v1433_v34  ;;  %v6760_v5 = vadd.f32 1.0, %v5192_v37  ;;  %vm6811_vm14 = vmor %vm1475_vm11, %vm1476_vm10  ;;  %vm1452_vm1 = vweird.f32 %v6744_v29  ;;  %v1458_v30 = vand.u32 2147483648, %v6744_v29  ;;  %v4041_v34 = vld [vmem:[%s8294_s1 + $0x18] sm:$0xf0] }
 0x2da   :  { %v1472_v46 = vsub.f32 1.0, %v1471_v42  ;;  %v4056_v37 = vor.u32 %v4808_v11, %v4055_v45  ;;  %v4060_v42 = vor.u32 %v4790_v12, %v4057_v13  ;;  %1745 = vmatpush.bf16.msra.mxu0 %v4032_v38  ;;  %vm1457_vm5 = vcmp.eq.f32.partialorder %v1456_v7, 8.507059e+37 }
 0x2db   :  { %v1435_v51 = vmul.f32 %v6741_v0, %v1434_v39  ;;  %5197 = vrcp.f32 %v6760_v5  ;;  %v1496_v4 = vand.u32 2147483648, %v6760_v5  ;;  %vm1490_vm0 = vweird.f32 %v6760_v5 }
 0x2dc   :  { %v1473_v54 = vmul.f32 %v6746_v32, %v1472_v46  ;;  %5199 = vpow2.f32 %v4018_v44  ;;  %1772 = vmatpush.bf16.msra.mxu2 %v4056_v37  ;;  %1786 = vmatpush.bf16.msra.mxu3 %v4060_v42  ;;  %v4036_v46 = vor.u32 %v4745_v18, %v4033_v23  ;;  %v1521_v7 = vand.u32 2147483648, %v6736_v28  ;;  %v4287_v23 = vld [vmem:[%s8294_s1 + $0xe0] sm:$0xf] }
 0x2dd   :  { %v1436_v59 = vadd.f32 %v6741_v0, %v1435_v51  ;;  %v6807_v63 = vpop.eup %5193  ;;  %5201 = vtanh.f32 %v1418_v47  ;;  %v4040_v47 = vor.u32 %v4772_v3, %v4039_v24  ;;  %v5014_v24 = vld [vmem:[%s8294_s1 + $0xec] sm:$0xf0]  ;;  %v4996_v3 = vld [vmem:[%s8294_s1 + $0xe4] sm:$0xf] }
 0x2de   :  { %v1474_v2 = vadd.f32 %v6746_v32, %v1473_v54  ;;  %v6825_v8 = vpop.eup %5195  ;;  %5203 = vtanh.f32 %v1422_v58  ;;  %v1511_v25 = vmul.f32 %v6807_v63, %v6736_v28  ;;  %v1459_v58 = vor.u32 1.1754944e-38, %v1458_v30  ;;  %1759 = vmatpush.bf16.msra.mxu1 %v4036_v46  ;;  %v5023_v30 = vld [vmem:[%s8294_s1 + $0xf4] sm:$0xf0] }
 0x2df   :  { %v1440_v14 = vsel %vm6797_vm13, %v6741_v0, %v1436_v59  ;;  %v1448_v15 = vmul.f32 %v6825_v8, %v6744_v29  ;;  %vm1453_vm2 = vweird.f32 %v6825_v8  ;;  %vm1516_vm8 = vweird.f32 %v6807_v63 }
 0x2e0   :  { %v1478_v20 = vsel %vm6811_vm14, %v6746_v32, %v1474_v2  ;;  %v4754_v32 = vld [vmem:[%s8294_s1 + $0xc] sm:$0xf]  ;;  %v1445_v33 = vsel %vm6766_vm9, %v1444_v52, %v1440_v14  ;;  %v1494_v52 = vand.u32 2147483647, %v6760_v5  ;;  %vm1454_vm4 = vmor %vm1452_vm1, %vm1453_vm2  ;;  %v1512_v55 = vsub.f32 1.0, %v1511_v25  ;;  %1773 = vmatpush.bf16.msra.mxu2 %v4040_v47 }
 0x2e1   :  { %v5198_v19 = vpop.eup %5197  ;;  %v1449_v0 = vsub.f32 1.0, %v1448_v15  ;;  %v1483_v40 = vsel %vm6816_vm15, %v1482_v57, %v1478_v20  ;;  %v4044_v48 = vor.u32 %v4754_v32, %v4041_v34  ;;  %vm1515_vm9 = vweird.f32 %v6736_v28  ;;  %v4273_v47 = vld [vmem:[%s8294_s1 + $0xd0] sm:$0xf0] }
 0x2e2   :  { %v1486_v26 = vmul.f32 %v5198_v19, %v6760_v5  ;;  %v5200_v61 = vpop.eup %5199  ;;  %vm1491_vm3 = vweird.f32 %v5198_v19  ;;  %v1542_v53 = vmul.f32 %v1483_v40, %v6566_v31  ;;  %v1497_v31 = vor.u32 1.1754944e-38, %v1496_v4  ;;  %vm1517_vm11 = vmor %vm1515_vm9, %vm1516_vm8 }
 0x2e3   :  { %v1450_v41 = vmul.f32 %v6825_v8, %v1449_v0  ;;  %v5202_v43 = vpop.eup %5201  ;;  %v1509_v44 = vadd.f32 1.0, %v5200_v61  ;;  %vm1492_vm6 = vmor %vm1490_vm0, %vm1491_vm3  ;;  %1787 = vmatpush.bf16.msra.mxu3 %v4044_v48  ;;  %vm1495_vm7 = vcmp.eq.f32.partialorder %v1494_v52, 8.507059e+37  ;;  %v1513_v60 = vmul.f32 %v6807_v63, %v1512_v55  ;;  %v4289_v0 = vld [vmem:[%s8294_s1 + $0xf0] sm:$0xf0]  ;;  %v5005_v61 = vld [vmem:[%s8294_s1 + $0xec] sm:$0xf] }
 0x2e4   :  { %v1487_v39 = vsub.f32 1.0, %v1486_v26  ;;  %v5204_v49 = vpop.eup %5203  ;;  %v1544_v54 = vmul.f32 %v5202_v43, %v1445_v33  ;;  %v1522_v13 = vor.u32 1.1754944e-38, %v1521_v7  ;;  %v4288_v25 = vor.u32 %v5014_v24, %v4287_v23  ;;  %v4295_v26 = vld [vmem:[%s8294_s1 + $0xe8] sm:$0xf]  ;;  %v4297_v33 = vld [vmem:[%s8294_s1 + $0xf8] sm:$0xf0] }
 0x2e5   :  { %v1451_v51 = vadd.f32 %v6825_v8, %v1450_v41  ;;  %5205 = vrcp.f32 %v1509_v44  ;;  %v1514_v5 = vadd.f32 %v6807_v63, %v1513_v60  ;;  %v1536_v45 = vand.u32 2147483648, %v1509_v44  ;;  %v4271_v41 = vld [vmem:[%s8294_s1 + $0xc0] sm:$0xf]  ;;  %v4978_v43 = vld [vmem:[%s8294_s1 + $0xcc] sm:$0xf0]  ;;  %v4024_v52 = vld [vmem:[%s8295_s0 + $0x118] sm:$0xff] }
 0x2e6   :  { %v1488_v50 = vmul.f32 %v5198_v19, %v1487_v39  ;;  %v6894_v21 = vadd.f32 %v1544_v54, %v1542_v53  ;;  %v1534_v9 = vand.u32 2147483647, %v1509_v44  ;;  %vm1530_vm12 = vweird.f32 %v1509_v44  ;;  %2116 = vmatpush.bf16.msrb.mxu0 %v4288_v25  ;;  %v4279_v48 = vld [vmem:[%s8294_s1 + $0xc8] sm:$0xf]  ;;  %v4025_v55 = vld [vmem:[%s8295_s0 + $0x120] sm:$0xff] }
 0x2e7   :  { %v1455_v6 = vsel %vm1454_vm4, %v6825_v8, %v1451_v51  ;;  %v1518_v11 = vsel %vm1517_vm11, %v6807_v63, %v1514_v5  ;;  %v1537_v14 = vor.u32 1.1754944e-38, %v1536_v45  ;;  %v4021_v63 = vld [vmem:[%s8295_s0 + $0x100] sm:$0xff]  ;;  %v4292_v32 = vor.u32 %v4996_v3, %v4289_v0  ;;  %v4257_v60 = vld [vmem:[%s8294_s1 + $0xb0] sm:$0xf0]  ;;  %v4933_v7 = vld [vmem:[%s8294_s1 + $0xac] sm:$0xf] }
 0x2e8   :  { %v1489_v56 = vadd.f32 %v5198_v19, %v1488_v50  ;;  %v1460_v57 = vsel %vm1457_vm5, %v1459_v58, %v1455_v6  ;;  %5207 = vtanh.f32 %v6894_v21  ;;  %vm1535_vm15 = vcmp.eq.f32.partialorder %v1534_v9, 8.507059e+37  ;;  %v4969_v58 = vld [vmem:[%s8294_s1 + $0xcc] sm:$0xf]  ;;  %v4265_v45 = vld [vmem:[%s8294_s1 + $0xb8] sm:$0xf0] }
 0x2e9   :  { %v1545_v17 = vmul.f32 %v5204_v49, %v1460_v57  ;;  %v4296_v34 = vor.u32 %v5023_v30, %v4295_v26  ;;  %v4300_v38 = vor.u32 %v5005_v61, %v4297_v33  ;;  %2130 = vmatpush.bf16.msrb.mxu1 %v4292_v32  ;;  %v4272_v46 = vor.u32 %v4978_v43, %v4271_v41  ;;  %v4987_v49 = vld [vmem:[%s8294_s1 + $0xd4] sm:$0xf0]  ;;  %v4026_v6 = vld [vmem:[%s8295_s0 + $0x128] sm:$0xff]  ;;  %v4255_v57 = vld [vmem:[%s8294_s1 + $0xa0] sm:$0xf] }
 0x2ea   :  { %v1493_v59 = vsel %vm1492_vm6, %v5198_v19, %v1489_v56  ;;  %v4280_v54 = vor.u32 %v4987_v49, %v4279_v48  ;;  %v4281_v56 = vld [vmem:[%s8294_s1 + $0xd8] sm:$0xf0]  ;;  %v4915_v23 = vld [vmem:[%s8294_s1 + $0x94] sm:$0xf0]  ;;  %v4897_v0 = vld [vmem:[%s8294_s1 + $0x8c] sm:$0xf] }
 0x2eb   :  { %v1498_v27 = vsel %vm1495_vm7, %v1497_v31, %v1493_v59  ;;  %v5206_v1 = vpop.eup %5205  ;;  %2144 = vmatpush.bf16.msrb.mxu2 %v4296_v34  ;;  %2158 = vmatpush.bf16.msrb.mxu3 %v4300_v38  ;;  %v4284_v31 = vor.u32 %v4969_v58, %v4281_v56  ;;  %v4942_v59 = vld [vmem:[%s8294_s1 + $0xac] sm:$0xf0]  ;;  %v4249_v26 = vld [vmem:[%s8294_s1 + $0x98] sm:$0xf0]  ;;  %v4223_v61 = vld [vmem:[%s8294_s1 + $0x60] sm:$0xf] }
 0x2ec   :  { %v1543_v29 = vmul.f32 %v1498_v27, %v6570_v36  ;;  %v1526_v35 = vmul.f32 %v5206_v1, %v1509_v44  ;;  %v1519_v36 = vand.u32 2147483647, %v6736_v28  ;;  %vm1531_vm10 = vweird.f32 %v5206_v1  ;;  %v4960_v44 = vld [vmem:[%s8294_s1 + $0xc4] sm:$0xf]  ;;  %2117 = vmatpush.bf16.msrb.mxu0 %v4272_v46  ;;  %v4870_v33 = vld [vmem:[%s8294_s1 + $0x6c] sm:$0xf0] }
 0x2ed   :  { %vm1532_vm13 = vmor %vm1530_vm12, %vm1531_vm10  ;;  %v4276_v53 = vor.u32 %v4960_v44, %v4273_v47  ;;  %v4256_v27 = vor.u32 %v4942_v59, %v4255_v57  ;;  %v4252_v34 = vor.u32 %v4897_v0, %v4249_v26  ;;  %v4028_v38 = vld [vmem:[%s8295_s0 + $0x138] sm:$0xff]  ;;  %v4224_v43 = vor.u32 %v4870_v33, %v4223_v61  ;;  %v4861_v44 = vld [vmem:[%s8294_s1 + $0x6c] sm:$0xf] }
 0x2ee   :  { %v6898_v2 = vadd.f32 %v1545_v17, %v1543_v29  ;;  %v1527_v4 = vsub.f32 1.0, %v1526_v35  ;;  %v5208_v12 = vpop.eup %5207  ;;  %vm1520_vm14 = vcmp.eq.f32.partialorder %v1519_v36, 8.507059e+37  ;;  %v4924_v17 = vld [vmem:[%s8294_s1 + $0xa4] sm:$0xf]  ;;  %v4263_v29 = vld [vmem:[%s8294_s1 + $0xa8] sm:$0xf] }
 0x2ef   :  { %v1523_v16 = vsel %vm1520_vm14, %v1522_v13, %v1518_v11  ;;  %2131 = vmatpush.bf16.msrb.mxu1 %v4276_v53  ;;  %2145 = vmatpush.bf16.msrb.mxu2 %v4280_v54  ;;  %v4260_v5 = vor.u32 %v4924_v17, %v4257_v60  ;;  %v4239_v13 = vld [vmem:[%s8294_s1 + $0x80] sm:$0xf]  ;;  %v4879_v41 = vld [vmem:[%s8294_s1 + $0x74] sm:$0xf0]  ;;  %v4233_v46 = vld [vmem:[%s8294_s1 + $0x78] sm:$0xf0] }
 0x2f0   :  { %5209 = vtanh.f32 %v6898_v2  ;;  %v1528_v8 = vmul.f32 %v5206_v1, %v1527_v4  ;;  %v1550_v19 = vmul.f32 %v5208_v12, %v1523_v16  ;;  %2159 = vmatpush.bf16.msrb.mxu3 %v4284_v31  ;;  %2118 = vmatpush.bf16.msrb.mxu0 %v4256_v27  ;;  %v4816_v53 = vld [vmem:[%s8294_s1 + $0x44] sm:$0xf]  ;;  %v4209_v56 = vld [vmem:[%s8294_s1 + $0x50] sm:$0xf0] }
 0x2f1   :  { %v4212_v17 = vor.u32 %v4816_v53, %v4209_v56  ;;  %v4780_v0 = vld [vmem:[%s8294_s1 + $0x24] sm:$0xf]  ;;  %v4193_v26 = vld [vmem:[%s8294_s1 + $0x30] sm:$0xf0] }
 0x2f2   :  { %v1529_v10 = vadd.f32 %v5206_v1, %v1528_v8  ;;  %v4196_v53 = vor.u32 %v4780_v0, %v4193_v26 }
 0x2f3   :  { %2132 = vmatpush.bf16.msrb.mxu1 %v4260_v5 }
 0x2f4   :  { %v1533_v62 = vsel %vm1532_vm13, %v5206_v1, %v1529_v10  ;;  %v4951_v1 = vld [vmem:[%s8294_s1 + $0xb4] sm:$0xf0]  ;;  %v4268_v10 = vor.u32 %v4933_v7, %v4265_v45 }
 0x2f5   :  { %v1538_v18 = vsel %vm1535_vm15, %v1537_v14, %v1533_v62  ;;  %v4264_v4 = vor.u32 %v4951_v1, %v4263_v29  ;;  %v4906_v14 = vld [vmem:[%s8294_s1 + $0x8c] sm:$0xf0] }
 0x2f6   :  { %v5210_v15 = vpop.eup %5209  ;;  %v4240_v16 = vor.u32 %v4906_v14, %v4239_v13  ;;  %2160 = vmatpush.bf16.msrb.mxu3 %v4268_v10  ;;  %v4023_v29 = vld [vmem:[%s8295_s0 + $0x110] sm:$0xff]  ;;  %v4215_v14 = vld [vmem:[%s8294_s1 + $0x48] sm:$0xf] }
 0x2f7   :  { %v1551_v28 = vmul.f32 %v5210_v15, %v1538_v18  ;;  %2146 = vmatpush.bf16.msrb.mxu2 %v4264_v4  ;;  %v4888_v15 = vld [vmem:[%s8294_s1 + $0x84] sm:$0xf]  ;;  %v4241_v18 = vld [vmem:[%s8294_s1 + $0x90] sm:$0xf0] }
 0x2f8   :  { %2119 = vmatpush.bf16.msrb.mxu0 %v4240_v16 }
 0x2f9   :  { %v5047_v20 = vpack.c.bf16 %v1551_v28, %v1550_v19  ;;  %v4247_v19 = vld [vmem:[%s8294_s1 + $0x88] sm:$0xf] }
 0x2fa   :  { %v4248_v25 = vor.u32 %v4915_v23, %v4247_v19  ;;  %2161 = vmatpush.bf16.msrb.mxu3 %v4252_v34 }
 0x2fb   :  { %5076 = vst [vmem:[%s8296_s2 + $0x18] sm:$0xff] %v5047_v20   ;;  %1746 = vmatmul.bf16.vlgmr.msra.gmra.mxu0 %v5047_v20  ;;  %1760 = vmatmul.bf16.vlgmr.msra.gmra.mxu1 %v5047_v20 }
 0x2fc   :  { %1774 = vmatmul.bf16.vlgmr.msra.gmra.mxu2 %v5047_v20  ;;  %1788 = vmatmul.bf16.vlgmr.msra.gmra.mxu3 %v5047_v20 }
 0x2fd   :  { %2147 = vmatpush.bf16.msrb.mxu2 %v4248_v25  ;;  %2120 = vmatpush.bf16.msrb.mxu0 %v4224_v43  ;;  %v4789_v43 = vld [vmem:[%s8294_s1 + $0x2c] sm:$0xf] }
 0x378   :  { %v1747_v37 = vpop.f32.mrf.mxu0  ;;  %v1761_v42 = vpop.f32.mrf.mxu1 }
 0x379   :  { %v1794_v40 = vadd.f32 %v4021_v63, %v1747_v37  ;;  %v1795_v39 = vadd.f32 %v4022_v22, %v1761_v42  ;;  %v4244_v22 = vor.u32 %v4888_v15, %v4241_v18  ;;  %v4852_v37 = vld [vmem:[%s8294_s1 + $0x64] sm:$0xf]  ;;  %v4225_v42 = vld [vmem:[%s8294_s1 + $0x70] sm:$0xf0]  ;;  %v4843_v15 = vld [vmem:[%s8294_s1 + $0x54] sm:$0xf0] }
 0x37a   :  { %v4228_v48 = vor.u32 %v4852_v37, %v4225_v42  ;;  %v4825_v18 = vld [vmem:[%s8294_s1 + $0x4c] sm:$0xf]  ;;  %v4216_v25 = vor.u32 %v4843_v15, %v4215_v14  ;;  %v4199_v42 = vld [vmem:[%s8294_s1 + $0x28] sm:$0xf] }
 0x37b   :  { %v4157_v50 = vmul.f32 -1.442695, %v1794_v40  ;;  %v4159_v51 = vmul.f32 -1.442695, %v1795_v39  ;;  %2133 = vmatpush.bf16.msrb.mxu1 %v4244_v22  ;;  %v4231_v39 = vld [vmem:[%s8294_s1 + $0x68] sm:$0xf] }
 0x37c   :  { %v4232_v49 = vor.u32 %v4879_v41, %v4231_v39  ;;  %v4798_v22 = vld [vmem:[%s8294_s1 + $0x2c] sm:$0xf0]  ;;  %v4807_v41 = vld [vmem:[%s8294_s1 + $0x34] sm:$0xf0] }
 0x37d   :  { %5211 = vpow2.f32 %v4157_v50  ;;  %v4236_v50 = vor.u32 %v4861_v44, %v4233_v46  ;;  %v4201_v44 = vld [vmem:[%s8294_s1 + $0x38] sm:$0xf0] }
 0x37e   :  { %5213 = vpow2.f32 %v4159_v51  ;;  %v4207_v51 = vld [vmem:[%s8294_s1 + $0x40] sm:$0xf]  ;;  %2148 = vmatpush.bf16.msrb.mxu2 %v4232_v49  ;;  %v4762_v49 = vld [vmem:[%s8294_s1 + $0xc] sm:$0xf0] }
 0x37f   :  { %v1789_v35 = vpop.f32.mrf.mxu3  ;;  %v1775_v32 = vpop.f32.mrf.mxu2  ;;  %2134 = vmatpush.bf16.msrb.mxu1 %v4228_v48  ;;  %2162 = vmatpush.bf16.msrb.mxu3 %v4236_v50  ;;  %v4175_v48 = vld [vmem:[%s8294_s1] sm:$0xf]  ;;  %v4744_v50 = vld [vmem:[%s8294_s1 + $0x4] sm:$0xf] }
 0x380   :  { %v1797_v36 = vadd.f32 %v4024_v52, %v1789_v35  ;;  %v1749_v8 = vpop.f32.mrf.mxu0  ;;  %v1763_v9 = vpop.f32.mrf.mxu1  ;;  %v4834_v52 = vld [vmem:[%s8294_s1 + $0x4c] sm:$0xf0] }
 0x381   :  { %v1798_v11 = vadd.f32 %v4025_v55, %v1749_v8  ;;  %v1799_v12 = vadd.f32 %v4026_v6, %v1763_v9  ;;  %v4208_v6 = vor.u32 %v4834_v52, %v4207_v51  ;;  %v4027_v8 = vld [vmem:[%s8295_s0 + $0x130] sm:$0xff] }
 0x382   :  { %v4161_v62 = vmul.f32 -1.442695, %v1797_v36  ;;  %2149 = vmatpush.bf16.msrb.mxu2 %v4216_v25 }
 0x383   :  { %v5212_v28 = vpop.eup %5211  ;;  %v4158_v20 = vmul.f32 -1.442695, %v1798_v11  ;;  %v4160_v63 = vmul.f32 -1.442695, %v1799_v12  ;;  %2121 = vmatpush.bf16.msrb.mxu0 %v4208_v6  ;;  %v1796_v12 = vadd.f32 %v4023_v29, %v1775_v32  ;;  %2135 = vmatpush.bf16.msrb.mxu1 %v4212_v17  ;;  %v4771_v6 = vld [vmem:[%s8294_s1 + $0x14] sm:$0xf0] }
 0x384   :  { %v5214_v24 = vpop.eup %5213  ;;  %v7016_v3 = vadd.f32 1.0, %v5212_v28  ;;  %5215 = vpow2.f32 %v4161_v62 }
 0x385   :  { %v7024_v30 = vadd.f32 1.0, %v5214_v24  ;;  %5217 = vpow2.f32 %v4158_v20  ;;  %v4217_v20 = vld [vmem:[%s8294_s1 + $0x58] sm:$0xf0] }
 0x386   :  { %5219 = vrcp.f32 %v7016_v3  ;;  %v1819_v57 = vand.u32 2147483647, %v7016_v3  ;;  %v1821_v1 = vand.u32 2147483648, %v7016_v3  ;;  %vm1815_vm4 = vweird.f32 %v7016_v3 }
 0x387   :  { %5221 = vrcp.f32 %v7024_v30  ;;  %v1791_v40 = vpop.f32.mrf.mxu3  ;;  %v1859_v4 = vand.u32 2147483648, %v7024_v30  ;;  %v1857_v7 = vand.u32 2147483647, %v7024_v30  ;;  %v1777_v9 = vpop.f32.mrf.mxu2  ;;  %vm1853_vm3 = vweird.f32 %v7024_v30  ;;  %2136 = vmatpush.bf16.msrb.mxu1 %v4196_v53  ;;  %v4166_v53 = vld [vmem:[%s8295_s0 + $0x148] sm:$0xff] }
 0x388   :  { %5223 = vpow2.f32 %v4160_v63  ;;  %v1801_v55 = vadd.f32 %v4028_v38, %v1791_v40  ;;  %vm7094_vm1 = vcmp.eq.f32.partialorder %v1819_v57, 8.507059e+37  ;;  %v1822_v16 = vor.u32 1.1754944e-38, %v1821_v1  ;;  %v4191_v63 = vld [vmem:[%s8294_s1 + $0x20] sm:$0xf] }
 0x389   :  { %v1800_v28 = vadd.f32 %v4027_v8, %v1777_v9  ;;  %v1860_v23 = vor.u32 1.1754944e-38, %v1859_v4  ;;  %vm7144_vm7 = vcmp.eq.f32.partialorder %v1857_v7, 8.507059e+37  ;;  %v4220_v40 = vor.u32 %v4825_v18, %v4217_v20 }
 0x38a   :  { %v5216_v47 = vpop.eup %5215  ;;  %v4162_v10 = vmul.f32 -1.442695, %v1801_v55  ;;  %v4192_v39 = vor.u32 %v4798_v22, %v4191_v63  ;;  %v4183_v55 = vld [vmem:[%s8294_s1 + $0x8] sm:$0xf]  ;;  %v4176_v4 = vor.u32 %v4762_v49, %v4175_v48 }
 0x38b   :  { %v5218_v54 = vpop.eup %5217  ;;  %v7064_v58 = vadd.f32 1.0, %v5216_v47  ;;  %2163 = vmatpush.bf16.msrb.mxu3 %v4220_v40 }
 0x38c   :  { %v7069_v31 = vpop.eup %5219  ;;  %v7072_v59 = vadd.f32 1.0, %v5218_v54  ;;  %2122 = vmatpush.bf16.msrb.mxu0 %v4192_v39  ;;  %v4177_v54 = vld [vmem:[%s8294_s1 + $0x10] sm:$0xf0] }
 0x38d   :  { %v7074_v27 = vpop.eup %5221  ;;  %v1811_v60 = vmul.f32 %v7069_v31, %v7016_v3  ;;  %5225 = vrcp.f32 %v7064_v58  ;;  %vm1816_vm0 = vweird.f32 %v7069_v31 }
 0x38e   :  { %v5224_v35 = vpop.eup %5223  ;;  %v1849_v5 = vmul.f32 %v7074_v27, %v7024_v30  ;;  %5227 = vrcp.f32 %v7072_v59  ;;  %vm1854_vm2 = vweird.f32 %v7074_v27  ;;  %vm7125_vm5 = vmor %vm1815_vm4, %vm1816_vm0  ;;  %v1834_v37 = vand.u32 2147483647, %v7072_v59 }
 0x38f   :  { %v1812_v45 = vsub.f32 1.0, %v1811_v60  ;;  %v7088_v36 = vadd.f32 1.0, %v5224_v35  ;;  %vm7139_vm6 = vmor %vm1853_vm3, %vm1854_vm2  ;;  %vm1830_vm9 = vweird.f32 %v7072_v59  ;;  %v1836_v17 = vand.u32 2147483648, %v7072_v59  ;;  %v4185_v60 = vld [vmem:[%s8294_s1 + $0x18] sm:$0xf0] }
 0x390   :  { %v1850_v11 = vsub.f32 1.0, %v1849_v5  ;;  %v4200_v35 = vor.u32 %v4807_v41, %v4199_v42  ;;  %v4204_v5 = vor.u32 %v4789_v43, %v4201_v44  ;;  %2123 = vmatpush.bf16.msrb.mxu0 %v4176_v4  ;;  %vm1835_vm13 = vcmp.eq.f32.partialorder %v1834_v37, 8.507059e+37 }
 0x391   :  { %v1813_v62 = vmul.f32 %v7069_v31, %v1812_v45  ;;  %5229 = vrcp.f32 %v7088_v36  ;;  %v1874_v33 = vand.u32 2147483648, %v7088_v36  ;;  %vm1868_vm8 = vweird.f32 %v7088_v36 }
 0x392   :  { %v1851_v19 = vmul.f32 %v7074_v27, %v1850_v11  ;;  %5231 = vpow2.f32 %v4162_v10  ;;  %2150 = vmatpush.bf16.msrb.mxu2 %v4200_v35  ;;  %2164 = vmatpush.bf16.msrb.mxu3 %v4204_v5  ;;  %v4180_v11 = vor.u32 %v4744_v50, %v4177_v54  ;;  %v1899_v37 = vand.u32 2147483648, %v7064_v58  ;;  %v4431_v54 = vld [vmem:[%s8294_s1 + $0xe0] sm:$0xf] }
 0x393   :  { %v1814_v24 = vadd.f32 %v7069_v31, %v1813_v62  ;;  %v7135_v30 = vpop.eup %5225  ;;  %5233 = vtanh.f32 %v1796_v12  ;;  %v4184_v12 = vor.u32 %v4771_v6, %v4183_v55  ;;  %v5013_v55 = vld [vmem:[%s8294_s1 + $0xec] sm:$0xf0]  ;;  %v4995_v6 = vld [vmem:[%s8294_s1 + $0xe4] sm:$0xf] }
 0x394   :  { %v1852_v34 = vadd.f32 %v7074_v27, %v1851_v19  ;;  %v7153_v38 = vpop.eup %5227  ;;  %5235 = vtanh.f32 %v1800_v28  ;;  %v1889_v56 = vmul.f32 %v7135_v30, %v7064_v58  ;;  %v1837_v28 = vor.u32 1.1754944e-38, %v1836_v17  ;;  %2137 = vmatpush.bf16.msrb.mxu1 %v4180_v11  ;;  %v5022_v17 = vld [vmem:[%s8294_s1 + $0xf4] sm:$0xf0] }
 0x395   :  { %v1818_v46 = vsel %vm7125_vm5, %v7069_v31, %v1814_v24  ;;  %v1826_v47 = vmul.f32 %v7153_v38, %v7072_v59  ;;  %vm1831_vm10 = vweird.f32 %v7153_v38  ;;  %vm1894_vm0 = vweird.f32 %v7135_v30 }
 0x396   :  { %v1856_v52 = vsel %vm7139_vm6, %v7074_v27, %v1852_v34  ;;  %v4753_v27 = vld [vmem:[%s8294_s1 + $0xc] sm:$0xf]  ;;  %v1823_v1 = vsel %vm7094_vm1, %v1822_v16, %v1818_v46  ;;  %v1872_v16 = vand.u32 2147483647, %v7088_v36  ;;  %vm1832_vm12 = vmor %vm1830_vm9, %vm1831_vm10  ;;  %v1890_v20 = vsub.f32 1.0, %v1889_v56  ;;  %2151 = vmatpush.bf16.msrb.mxu2 %v4184_v12 }
 0x397   :  { %v5230_v51 = vpop.eup %5229  ;;  %v1827_v31 = vsub.f32 1.0, %v1826_v47  ;;  %v1861_v7 = vsel %vm7144_vm7, %v1860_v23, %v1856_v52  ;;  %v4188_v13 = vor.u32 %v4753_v27, %v4185_v60  ;;  %vm1893_vm1 = vweird.f32 %v7064_v58  ;;  %v4417_v12 = vld [vmem:[%s8294_s1 + $0xd0] sm:$0xf0] }
 0x398   :  { %v1864_v57 = vmul.f32 %v5230_v51, %v7088_v36  ;;  %v5232_v29 = vpop.eup %5231  ;;  %vm1869_vm11 = vweird.f32 %v5230_v51  ;;  %v1920_v18 = vmul.f32 %v1861_v7, %v6894_v21  ;;  %v1875_v21 = vor.u32 1.1754944e-38, %v1874_v33  ;;  %vm1895_vm3 = vmor %vm1893_vm1, %vm1894_vm0 }
 0x399   :  { %v1828_v8 = vmul.f32 %v7153_v38, %v1827_v31  ;;  %v5234_v9 = vpop.eup %5233  ;;  %v1887_v10 = vadd.f32 1.0, %v5232_v29  ;;  %vm1870_vm14 = vmor %vm1868_vm8, %vm1869_vm11  ;;  %2165 = vmatpush.bf16.msrb.mxu3 %v4188_v13  ;;  %vm1873_vm15 = vcmp.eq.f32.partialorder %v1872_v16, 8.507059e+37  ;;  %v1891_v26 = vmul.f32 %v7135_v30, %v1890_v20  ;;  %v4433_v31 = vld [vmem:[%s8294_s1 + $0xf0] sm:$0xf0]  ;;  %v5004_v29 = vld [vmem:[%s8294_s1 + $0xec] sm:$0xf] }
 0x39a   :  { %v1865_v45 = vsub.f32 1.0, %v1864_v57  ;;  %v5236_v14 = vpop.eup %5235  ;;  %v1922_v19 = vmul.f32 %v5234_v9, %v1823_v1  ;;  %v1900_v44 = vor.u32 1.1754944e-38, %v1899_v37  ;;  %v4432_v56 = vor.u32 %v5013_v55, %v4431_v54  ;;  %v4439_v57 = vld [vmem:[%s8294_s1 + $0xe8] sm:$0xf]  ;;  %v4441_v1 = vld [vmem:[%s8294_s1 + $0xf8] sm:$0xf0] }
 0x39b   :  { %v1829_v62 = vadd.f32 %v7153_v38, %v1828_v8  ;;  %5237 = vrcp.f32 %v1887_v10  ;;  %v1892_v36 = vadd.f32 %v7135_v30, %v1891_v26  ;;  %v1914_v42 = vand.u32 2147483648, %v1887_v10  ;;  %v4415_v8 = vld [vmem:[%s8294_s1 + $0xc0] sm:$0xf]  ;;  %v4977_v9 = vld [vmem:[%s8294_s1 + $0xcc] sm:$0xf0]  ;;  %v4168_v16 = vld [vmem:[%s8295_s0 + $0x158] sm:$0xff] }
 0x39c   :  { %v1866_v15 = vmul.f32 %v5230_v51, %v1865_v45  ;;  %v7222_v25 = vadd.f32 %v1922_v19, %v1920_v18  ;;  %v1912_v40 = vand.u32 2147483647, %v1887_v10  ;;  %vm1908_vm4 = vweird.f32 %v1887_v10  ;;  %2494 = vmatpush.bf16.msra.mxu0 %v4432_v56  ;;  %v4423_v13 = vld [vmem:[%s8294_s1 + $0xc8] sm:$0xf]  ;;  %v4169_v20 = vld [vmem:[%s8295_s0 + $0x160] sm:$0xff] }
 0x39d   :  { %v1833_v63 = vsel %vm1832_vm12, %v7153_v38, %v1829_v62  ;;  %v1896_v41 = vsel %vm1895_vm3, %v7135_v30, %v1892_v36  ;;  %v1915_v46 = vor.u32 1.1754944e-38, %v1914_v42  ;;  %v4165_v30 = vld [vmem:[%s8295_s0 + $0x140] sm:$0xff]  ;;  %v4436_v27 = vor.u32 %v4995_v6, %v4433_v31  ;;  %v4401_v26 = vld [vmem:[%s8294_s1 + $0xb0] sm:$0xf0]  ;;  %v4932_v37 = vld [vmem:[%s8294_s1 + $0xac] sm:$0xf] }
 0x39e   :  { %v1867_v22 = vadd.f32 %v5230_v51, %v1866_v15  ;;  %v1838_v23 = vsel %vm1835_vm13, %v1837_v28, %v1833_v63  ;;  %5239 = vtanh.f32 %v7222_v25  ;;  %vm1913_vm7 = vcmp.eq.f32.partialorder %v1912_v40, 8.507059e+37  ;;  %v4968_v28 = vld [vmem:[%s8294_s1 + $0xcc] sm:$0xf]  ;;  %v4409_v42 = vld [vmem:[%s8294_s1 + $0xb8] sm:$0xf0] }
 0x39f   :  { %v1923_v3 = vmul.f32 %v5236_v14, %v1838_v23  ;;  %v4440_v60 = vor.u32 %v5022_v17, %v4439_v57  ;;  %v4444_v4 = vor.u32 %v5004_v29, %v4441_v1  ;;  %2508 = vmatpush.bf16.msra.mxu1 %v4436_v27  ;;  %v4416_v11 = vor.u32 %v4977_v9, %v4415_v8  ;;  %v4986_v14 = vld [vmem:[%s8294_s1 + $0xd4] sm:$0xf0]  ;;  %v4170_v63 = vld [vmem:[%s8295_s0 + $0x168] sm:$0xff]  ;;  %v4399_v23 = vld [vmem:[%s8294_s1 + $0xa0] sm:$0xf] }
 0x3a0   :  { %v1871_v24 = vsel %vm1870_vm14, %v5230_v51, %v1867_v22  ;;  %v4424_v19 = vor.u32 %v4986_v14, %v4423_v13  ;;  %v4425_v22 = vld [vmem:[%s8294_s1 + $0xd8] sm:$0xf0]  ;;  %v4914_v54 = vld [vmem:[%s8294_s1 + $0x94] sm:$0xf0]  ;;  %v4896_v31 = vld [vmem:[%s8294_s1 + $0x8c] sm:$0xf] }
 0x3a1   :  { %v1876_v0 = vsel %vm1873_vm15, %v1875_v21, %v1871_v24  ;;  %v5238_v32 = vpop.eup %5237  ;;  %2522 = vmatpush.bf16.msra.mxu2 %v4440_v60  ;;  %2536 = vmatpush.bf16.msra.mxu3 %v4444_v4  ;;  %v4428_v21 = vor.u32 %v4968_v28, %v4425_v22  ;;  %v4941_v24 = vld [vmem:[%s8294_s1 + $0xac] sm:$0xf0]  ;;  %v4393_v57 = vld [vmem:[%s8294_s1 + $0x98] sm:$0xf0]  ;;  %v4367_v29 = vld [vmem:[%s8294_s1 + $0x60] sm:$0xf] }
 0x3a2   :  { %v1921_v59 = vmul.f32 %v1876_v0, %v6898_v2  ;;  %v1904_v61 = vmul.f32 %v5238_v32, %v1887_v10  ;;  %v1897_v2 = vand.u32 2147483647, %v7064_v58  ;;  %vm1909_vm2 = vweird.f32 %v5238_v32  ;;  %v4959_v10 = vld [vmem:[%s8294_s1 + $0xc4] sm:$0xf]  ;;  %2495 = vmatpush.bf16.msra.mxu0 %v4416_v11  ;;  %v4869_v1 = vld [vmem:[%s8294_s1 + $0x6c] sm:$0xf0] }
 0x3a3   :  { %vm1910_vm5 = vmor %vm1908_vm4, %vm1909_vm2  ;;  %v4420_v18 = vor.u32 %v4959_v10, %v4417_v12  ;;  %v4400_v0 = vor.u32 %v4941_v24, %v4399_v23  ;;  %v4396_v60 = vor.u32 %v4896_v31, %v4393_v57  ;;  %v4172_v4 = vld [vmem:[%s8295_s0 + $0x178] sm:$0xff]  ;;  %v4368_v9 = vor.u32 %v4869_v1, %v4367_v29  ;;  %v4860_v10 = vld [vmem:[%s8294_s1 + $0x6c] sm:$0xf] }
 0x3a4   :  { %v7226_v34 = vadd.f32 %v1923_v3, %v1921_v59  ;;  %v1905_v33 = vsub.f32 1.0, %v1904_v61  ;;  %v5240_v43 = vpop.eup %5239  ;;  %vm1898_vm6 = vcmp.eq.f32.partialorder %v1897_v2, 8.507059e+37  ;;  %v4923_v3 = vld [vmem:[%s8294_s1 + $0xa4] sm:$0xf]  ;;  %v4407_v59 = vld [vmem:[%s8294_s1 + $0xa8] sm:$0xf] }
 0x3a5   :  { %v1901_v49 = vsel %vm1898_vm6, %v1900_v44, %v1896_v41  ;;  %2509 = vmatpush.bf16.msra.mxu1 %v4420_v18  ;;  %2523 = vmatpush.bf16.msra.mxu2 %v4424_v19  ;;  %v4404_v36 = vor.u32 %v4923_v3, %v4401_v26  ;;  %v4383_v44 = vld [vmem:[%s8294_s1 + $0x80] sm:$0xf]  ;;  %v4878_v8 = vld [vmem:[%s8294_s1 + $0x74] sm:$0xf0]  ;;  %v4377_v11 = vld [vmem:[%s8294_s1 + $0x78] sm:$0xf0] }
 0x3a6   :  { %5241 = vtanh.f32 %v7226_v34  ;;  %v1906_v38 = vmul.f32 %v5238_v32, %v1905_v33  ;;  %v1928_v51 = vmul.f32 %v5240_v43, %v1901_v49  ;;  %2537 = vmatpush.bf16.msra.mxu3 %v4428_v21  ;;  %2496 = vmatpush.bf16.msra.mxu0 %v4400_v0  ;;  %v4815_v18 = vld [vmem:[%s8294_s1 + $0x44] sm:$0xf]  ;;  %v4353_v22 = vld [vmem:[%s8294_s1 + $0x50] sm:$0xf0] }
 0x3a7   :  { %v4356_v3 = vor.u32 %v4815_v18, %v4353_v22  ;;  %v4779_v31 = vld [vmem:[%s8294_s1 + $0x24] sm:$0xf]  ;;  %v4337_v57 = vld [vmem:[%s8294_s1 + $0x30] sm:$0xf0] }
 0x3a8   :  { %v1907_v39 = vadd.f32 %v5238_v32, %v1906_v38  ;;  %v4340_v18 = vor.u32 %v4779_v31, %v4337_v57 }
 0x3a9   :  { %2510 = vmatpush.bf16.msra.mxu1 %v4404_v36 }
 0x3aa   :  { %v1911_v48 = vsel %vm1910_vm5, %v5238_v32, %v1907_v39  ;;  %v4950_v32 = vld [vmem:[%s8294_s1 + $0xb4] sm:$0xf0]  ;;  %v4412_v39 = vor.u32 %v4932_v37, %v4409_v42 }
 0x3ab   :  { %v1916_v50 = vsel %vm1913_vm7, %v1915_v46, %v1911_v48  ;;  %v4408_v33 = vor.u32 %v4950_v32, %v4407_v59  ;;  %v4905_v46 = vld [vmem:[%s8294_s1 + $0x8c] sm:$0xf0] }
 0x3ac   :  { %v5242_v47 = vpop.eup %5241  ;;  %v4384_v49 = vor.u32 %v4905_v46, %v4383_v44  ;;  %2538 = vmatpush.bf16.msra.mxu3 %v4412_v39  ;;  %v4167_v59 = vld [vmem:[%s8295_s0 + $0x150] sm:$0xff]  ;;  %v4359_v46 = vld [vmem:[%s8294_s1 + $0x48] sm:$0xf] }
 0x3ad   :  { %v1929_v58 = vmul.f32 %v5242_v47, %v1916_v50  ;;  %2524 = vmatpush.bf16.msra.mxu2 %v4408_v33  ;;  %v4887_v47 = vld [vmem:[%s8294_s1 + $0x84] sm:$0xf]  ;;  %v4385_v50 = vld [vmem:[%s8294_s1 + $0x90] sm:$0xf0] }
 0x3ae   :  { %2497 = vmatpush.bf16.msra.mxu0 %v4384_v49 }
 0x3af   :  { %v5052_v52 = vpack.c.bf16 %v1929_v58, %v1928_v51  ;;  %v4391_v51 = vld [vmem:[%s8294_s1 + $0x88] sm:$0xf] }
 0x3b0   :  { %v4392_v56 = vor.u32 %v4914_v54, %v4391_v51  ;;  %2539 = vmatpush.bf16.msra.mxu3 %v4396_v60 }
 0x3b1   :  { %5077 = vst [vmem:[%s8296_s2 + $0x20] sm:$0xff] %v5052_v52   ;;  %2124 = vmatmul.bf16.vlgmr.msrb.gmra.mxu0 %v5052_v52  ;;  %2138 = vmatmul.bf16.vlgmr.msrb.gmra.mxu1 %v5052_v52 }
 0x3b2   :  { %2152 = vmatmul.bf16.vlgmr.msrb.gmra.mxu2 %v5052_v52  ;;  %2166 = vmatmul.bf16.vlgmr.msrb.gmra.mxu3 %v5052_v52 }
 0x3b3   :  { %2525 = vmatpush.bf16.msra.mxu2 %v4392_v56  ;;  %2498 = vmatpush.bf16.msra.mxu0 %v4368_v9  ;;  %v4788_v9 = vld [vmem:[%s8294_s1 + $0x2c] sm:$0xf] }
 0x42e   :  { %v2125_v35 = vpop.f32.mrf.mxu0  ;;  %v2139_v5 = vpop.f32.mrf.mxu1 }
 0x42f   :  { %v2172_v7 = vadd.f32 %v4165_v30, %v2125_v35  ;;  %v2173_v45 = vadd.f32 %v4166_v53, %v2139_v5  ;;  %v4388_v53 = vor.u32 %v4887_v47, %v4385_v50  ;;  %v4851_v35 = vld [vmem:[%s8294_s1 + $0x64] sm:$0xf]  ;;  %v4369_v5 = vld [vmem:[%s8294_s1 + $0x70] sm:$0xf0]  ;;  %v4842_v47 = vld [vmem:[%s8294_s1 + $0x54] sm:$0xf0] }
 0x430   :  { %v4372_v13 = vor.u32 %v4851_v35, %v4369_v5  ;;  %v4824_v50 = vld [vmem:[%s8294_s1 + $0x4c] sm:$0xf]  ;;  %v4360_v56 = vor.u32 %v4842_v47, %v4359_v46  ;;  %v4343_v5 = vld [vmem:[%s8294_s1 + $0x28] sm:$0xf] }
 0x431   :  { %v4301_v15 = vmul.f32 -1.442695, %v2172_v7  ;;  %v4303_v62 = vmul.f32 -1.442695, %v2173_v45  ;;  %2511 = vmatpush.bf16.msra.mxu1 %v4388_v53  ;;  %v4375_v45 = vld [vmem:[%s8294_s1 + $0x68] sm:$0xf] }
 0x432   :  { %v4376_v14 = vor.u32 %v4878_v8, %v4375_v45  ;;  %v4797_v53 = vld [vmem:[%s8294_s1 + $0x2c] sm:$0xf0]  ;;  %v4806_v8 = vld [vmem:[%s8294_s1 + $0x34] sm:$0xf0] }
 0x433   :  { %5243 = vpow2.f32 %v4301_v15  ;;  %v4380_v15 = vor.u32 %v4860_v10, %v4377_v11  ;;  %v4345_v10 = vld [vmem:[%s8294_s1 + $0x38] sm:$0xf0] }
 0x434   :  { %5245 = vpow2.f32 %v4303_v62  ;;  %v4351_v62 = vld [vmem:[%s8294_s1 + $0x40] sm:$0xf]  ;;  %2526 = vmatpush.bf16.msra.mxu2 %v4376_v14  ;;  %v4761_v14 = vld [vmem:[%s8294_s1 + $0xc] sm:$0xf0] }
 0x435   :  { %v2167_v61 = vpop.f32.mrf.mxu3  ;;  %v2153_v27 = vpop.f32.mrf.mxu2  ;;  %2512 = vmatpush.bf16.msra.mxu1 %v4372_v13  ;;  %2540 = vmatpush.bf16.msra.mxu3 %v4380_v15  ;;  %v4319_v13 = vld [vmem:[%s8294_s1] sm:$0xf]  ;;  %v4743_v15 = vld [vmem:[%s8294_s1 + $0x4] sm:$0xf] }
 0x436   :  { %v2175_v2 = vadd.f32 %v4168_v16, %v2167_v61  ;;  %v2127_v38 = vpop.f32.mrf.mxu0  ;;  %v2141_v40 = vpop.f32.mrf.mxu1  ;;  %v4833_v16 = vld [vmem:[%s8294_s1 + $0x4c] sm:$0xf0] }
 0x437   :  { %v2176_v41 = vadd.f32 %v4169_v20, %v2127_v38  ;;  %v2177_v43 = vadd.f32 %v4170_v63, %v2141_v40  ;;  %v4352_v63 = vor.u32 %v4833_v16, %v4351_v62  ;;  %v4171_v38 = vld [vmem:[%s8295_s0 + $0x170] sm:$0xff] }
 0x438   :  { %v4305_v48 = vmul.f32 -1.442695, %v2175_v2  ;;  %2527 = vmatpush.bf16.msra.mxu2 %v4360_v56 }
 0x439   :  { %v5244_v58 = vpop.eup %5243  ;;  %v4302_v52 = vmul.f32 -1.442695, %v2176_v41  ;;  %v4304_v30 = vmul.f32 -1.442695, %v2177_v43  ;;  %2499 = vmatpush.bf16.msra.mxu0 %v4352_v63  ;;  %v2174_v43 = vadd.f32 %v4167_v59, %v2153_v27  ;;  %2513 = vmatpush.bf16.msra.mxu1 %v4356_v3  ;;  %v4770_v63 = vld [vmem:[%s8294_s1 + $0x14] sm:$0xf0] }
 0x43a   :  { %v5246_v55 = vpop.eup %5245  ;;  %v7344_v6 = vadd.f32 1.0, %v5244_v58  ;;  %5247 = vpow2.f32 %v4305_v48 }
 0x43b   :  { %v7352_v17 = vadd.f32 1.0, %v5246_v55  ;;  %5249 = vpow2.f32 %v4302_v52  ;;  %v4361_v52 = vld [vmem:[%s8294_s1 + $0x58] sm:$0xf0] }
 0x43c   :  { %5251 = vrcp.f32 %v7344_v6  ;;  %v2197_v23 = vand.u32 2147483647, %v7344_v6  ;;  %v2199_v32 = vand.u32 2147483648, %v7344_v6  ;;  %vm2193_vm12 = vweird.f32 %v7344_v6 }
 0x43d   :  { %5253 = vrcp.f32 %v7352_v17  ;;  %v2169_v7 = vpop.f32.mrf.mxu3  ;;  %v2237_v33 = vand.u32 2147483648, %v7352_v17  ;;  %v2235_v37 = vand.u32 2147483647, %v7352_v17  ;;  %v2155_v40 = vpop.f32.mrf.mxu2  ;;  %vm2231_vm11 = vweird.f32 %v7352_v17  ;;  %2514 = vmatpush.bf16.msra.mxu1 %v4340_v18  ;;  %v4310_v18 = vld [vmem:[%s8295_s0 + $0x188] sm:$0xff] }
 0x43e   :  { %5255 = vpow2.f32 %v4304_v30  ;;  %v2179_v20 = vadd.f32 %v4172_v4, %v2169_v7  ;;  %vm7422_vm9 = vcmp.eq.f32.partialorder %v2197_v23, 8.507059e+37  ;;  %v2200_v49 = vor.u32 1.1754944e-38, %v2199_v32  ;;  %v4335_v30 = vld [vmem:[%s8294_s1 + $0x20] sm:$0xf] }
 0x43f   :  { %v2178_v58 = vadd.f32 %v4171_v38, %v2155_v40  ;;  %v2238_v54 = vor.u32 1.1754944e-38, %v2237_v33  ;;  %vm7472_vm15 = vcmp.eq.f32.partialorder %v2235_v37, 8.507059e+37  ;;  %v4364_v7 = vor.u32 %v4824_v50, %v4361_v52 }
 0x440   :  { %v5248_v12 = vpop.eup %5247  ;;  %v4306_v39 = vmul.f32 -1.442695, %v2179_v20  ;;  %v4336_v45 = vor.u32 %v4797_v53, %v4335_v30  ;;  %v4327_v20 = vld [vmem:[%s8294_s1 + $0x8] sm:$0xf]  ;;  %v4320_v33 = vor.u32 %v4761_v14, %v4319_v13 }
 0x441   :  { %v5250_v19 = vpop.eup %5249  ;;  %v7392_v28 = vadd.f32 1.0, %v5248_v12  ;;  %2541 = vmatpush.bf16.msra.mxu3 %v4364_v7 }
 0x442   :  { %v7397_v21 = vpop.eup %5251  ;;  %v7400_v24 = vadd.f32 1.0, %v5250_v19  ;;  %2500 = vmatpush.bf16.msra.mxu0 %v4336_v45  ;;  %v4321_v19 = vld [vmem:[%s8294_s1 + $0x10] sm:$0xf0] }
 0x443   :  { %v7402_v0 = vpop.eup %5253  ;;  %v2189_v26 = vmul.f32 %v7397_v21, %v7344_v6  ;;  %5257 = vrcp.f32 %v7392_v28  ;;  %vm2194_vm8 = vweird.f32 %v7397_v21 }
 0x444   :  { %v5256_v61 = vpop.eup %5255  ;;  %v2227_v36 = vmul.f32 %v7402_v0, %v7352_v17  ;;  %5259 = vrcp.f32 %v7400_v24  ;;  %vm2232_vm10 = vweird.f32 %v7402_v0  ;;  %vm7453_vm13 = vmor %vm2193_vm12, %vm2194_vm8  ;;  %v2212_v35 = vand.u32 2147483647, %v7400_v24 }
 0x445   :  { %v2190_v42 = vsub.f32 1.0, %v2189_v26  ;;  %v7416_v2 = vadd.f32 1.0, %v5256_v61  ;;  %vm7467_vm14 = vmor %vm2231_vm11, %vm2232_vm10  ;;  %vm2208_vm1 = vweird.f32 %v7400_v24  ;;  %v2214_v3 = vand.u32 2147483648, %v7400_v24  ;;  %v4329_v26 = vld [vmem:[%s8294_s1 + $0x18] sm:$0xf0] }
 0x446   :  { %v2228_v41 = vsub.f32 1.0, %v2227_v36  ;;  %v4344_v61 = vor.u32 %v4806_v8, %v4343_v5  ;;  %v4348_v36 = vor.u32 %v4788_v9, %v4345_v10  ;;  %2501 = vmatpush.bf16.msra.mxu0 %v4320_v33  ;;  %vm2213_vm5 = vcmp.eq.f32.partialorder %v2212_v35, 8.507059e+37 }
 0x447   :  { %v2191_v48 = vmul.f32 %v7397_v21, %v2190_v42  ;;  %5261 = vrcp.f32 %v7416_v2  ;;  %v2252_v1 = vand.u32 2147483648, %v7416_v2  ;;  %vm2246_vm0 = vweird.f32 %v7416_v2 }
 0x448   :  { %v2229_v51 = vmul.f32 %v7402_v0, %v2228_v41  ;;  %5263 = vpow2.f32 %v4306_v39  ;;  %2528 = vmatpush.bf16.msra.mxu2 %v4344_v61  ;;  %2542 = vmatpush.bf16.msra.mxu3 %v4348_v36  ;;  %v4324_v41 = vor.u32 %v4743_v15, %v4321_v19  ;;  %v2277_v35 = vand.u32 2147483648, %v7392_v28  ;;  %v4575_v19 = vld [vmem:[%s8294_s1 + $0xe0] sm:$0xf] }
 0x449   :  { %v2192_v55 = vadd.f32 %v7397_v21, %v2191_v48  ;;  %v7463_v17 = vpop.eup %5257  ;;  %5265 = vtanh.f32 %v2174_v43  ;;  %v4328_v43 = vor.u32 %v4770_v63, %v4327_v20  ;;  %v5012_v20 = vld [vmem:[%s8294_s1 + $0xec] sm:$0xf0]  ;;  %v4994_v63 = vld [vmem:[%s8294_s1 + $0xe4] sm:$0xf] }
 0x44a   :  { %v2230_v60 = vadd.f32 %v7402_v0, %v2229_v51  ;;  %v7481_v4 = vpop.eup %5259  ;;  %5267 = vtanh.f32 %v2178_v58  ;;  %v2267_v22 = vmul.f32 %v7463_v17, %v7392_v28  ;;  %v2215_v58 = vor.u32 1.1754944e-38, %v2214_v3  ;;  %2515 = vmatpush.bf16.msra.mxu1 %v4324_v41  ;;  %v5021_v3 = vld [vmem:[%s8294_s1 + $0xf4] sm:$0xf0] }
 0x44b   :  { %v2196_v11 = vsel %vm7453_vm13, %v7397_v21, %v2192_v55  ;;  %v2204_v12 = vmul.f32 %v7481_v4, %v7400_v24  ;;  %vm2209_vm2 = vweird.f32 %v7481_v4  ;;  %vm2272_vm8 = vweird.f32 %v7463_v17 }
 0x44c   :  { %v2234_v16 = vsel %vm7467_vm14, %v7402_v0, %v2230_v60  ;;  %v4752_v0 = vld [vmem:[%s8294_s1 + $0xc] sm:$0xf]  ;;  %v2201_v32 = vsel %vm7422_vm9, %v2200_v49, %v2196_v11  ;;  %v2250_v49 = vand.u32 2147483647, %v7416_v2  ;;  %vm2210_vm4 = vmor %vm2208_vm1, %vm2209_vm2  ;;  %v2268_v52 = vsub.f32 1.0, %v2267_v22  ;;  %2529 = vmatpush.bf16.msra.mxu2 %v4328_v43 }
 0x44d   :  { %v5262_v62 = vpop.eup %5261  ;;  %v2205_v21 = vsub.f32 1.0, %v2204_v12  ;;  %v2239_v37 = vsel %vm7472_vm15, %v2238_v54, %v2234_v16  ;;  %v4332_v44 = vor.u32 %v4752_v0, %v4329_v26  ;;  %vm2271_vm9 = vweird.f32 %v7392_v28  ;;  %v4561_v43 = vld [vmem:[%s8294_s1 + $0xd0] sm:$0xf0] }
 0x44e   :  { %v2242_v23 = vmul.f32 %v5262_v62, %v7416_v2  ;;  %v5264_v59 = vpop.eup %5263  ;;  %vm2247_vm3 = vweird.f32 %v5262_v62  ;;  %v2298_v50 = vmul.f32 %v2239_v37, %v7222_v25  ;;  %v2253_v25 = vor.u32 1.1754944e-38, %v2252_v1  ;;  %vm2273_vm11 = vmor %vm2271_vm9, %vm2272_vm8 }
 0x44f   :  { %v2206_v38 = vmul.f32 %v7481_v4, %v2205_v21  ;;  %v5266_v40 = vpop.eup %5265  ;;  %v2265_v39 = vadd.f32 1.0, %v5264_v59  ;;  %vm2248_vm6 = vmor %vm2246_vm0, %vm2247_vm3  ;;  %2543 = vmatpush.bf16.msra.mxu3 %v4332_v44  ;;  %vm2251_vm7 = vcmp.eq.f32.partialorder %v2250_v49, 8.507059e+37  ;;  %v2269_v57 = vmul.f32 %v7463_v17, %v2268_v52  ;;  %v4577_v21 = vld [vmem:[%s8294_s1 + $0xf0] sm:$0xf0]  ;;  %v5003_v59 = vld [vmem:[%s8294_s1 + $0xec] sm:$0xf] }
 0x450   :  { %v2243_v42 = vsub.f32 1.0, %v2242_v23  ;;  %v5268_v46 = vpop.eup %5267  ;;  %v2300_v51 = vmul.f32 %v5266_v40, %v2201_v32  ;;  %v2278_v10 = vor.u32 1.1754944e-38, %v2277_v35  ;;  %v4576_v22 = vor.u32 %v5012_v20, %v4575_v19  ;;  %v4583_v23 = vld [vmem:[%s8294_s1 + $0xe8] sm:$0xf]  ;;  %v4585_v32 = vld [vmem:[%s8294_s1 + $0xf8] sm:$0xf0] }
 0x451   :  { %v2207_v48 = vadd.f32 %v7481_v4, %v2206_v38  ;;  %5269 = vrcp.f32 %v2265_v39  ;;  %v2270_v2 = vadd.f32 %v7463_v17, %v2269_v57  ;;  %v2292_v5 = vand.u32 2147483648, %v2265_v39  ;;  %v4559_v38 = vld [vmem:[%s8294_s1 + $0xc0] sm:$0xf]  ;;  %v4976_v40 = vld [vmem:[%s8294_s1 + $0xcc] sm:$0xf0]  ;;  %v4312_v49 = vld [vmem:[%s8295_s0 + $0x198] sm:$0xff] }
 0x452   :  { %v2244_v47 = vmul.f32 %v5262_v62, %v2243_v42  ;;  %v7550_v56 = vadd.f32 %v2300_v51, %v2298_v50  ;;  %v2290_v7 = vand.u32 2147483647, %v2265_v39  ;;  %vm2286_vm12 = vweird.f32 %v2265_v39  ;;  %2872 = vmatpush.bf16.msrb.mxu0 %v4576_v22  ;;  %v4567_v44 = vld [vmem:[%s8294_s1 + $0xc8] sm:$0xf]  ;;  %v4313_v52 = vld [vmem:[%s8295_s0 + $0x1a0] sm:$0xff] }
 0x453   :  { %v2211_v30 = vsel %vm2210_vm4, %v7481_v4, %v2207_v48  ;;  %v2274_v8 = vsel %vm2273_vm11, %v7463_v17, %v2270_v2  ;;  %v2293_v11 = vor.u32 1.1754944e-38, %v2292_v5  ;;  %v4309_v17 = vld [vmem:[%s8295_s0 + $0x180] sm:$0xff]  ;;  %v4580_v0 = vor.u32 %v4994_v63, %v4577_v21  ;;  %v4545_v57 = vld [vmem:[%s8294_s1 + $0xb0] sm:$0xf0]  ;;  %v4931_v35 = vld [vmem:[%s8294_s1 + $0xac] sm:$0xf] }
 0x454   :  { %v2245_v53 = vadd.f32 %v5262_v62, %v2244_v47  ;;  %v2216_v54 = vsel %vm2213_vm5, %v2215_v58, %v2211_v30  ;;  %5271 = vtanh.f32 %v7550_v56  ;;  %vm2291_vm15 = vcmp.eq.f32.partialorder %v2290_v7, 8.507059e+37  ;;  %v4967_v58 = vld [vmem:[%s8294_s1 + $0xcc] sm:$0xf]  ;;  %v4553_v5 = vld [vmem:[%s8294_s1 + $0xb8] sm:$0xf0] }
 0x455   :  { %v2301_v6 = vmul.f32 %v5268_v46, %v2216_v54  ;;  %v4584_v26 = vor.u32 %v5021_v3, %v4583_v23  ;;  %v4588_v33 = vor.u32 %v5003_v59, %v4585_v32  ;;  %2886 = vmatpush.bf16.msrb.mxu1 %v4580_v0  ;;  %v4560_v41 = vor.u32 %v4976_v40, %v4559_v38  ;;  %v4985_v46 = vld [vmem:[%s8294_s1 + $0xd4] sm:$0xf0]  ;;  %v4314_v30 = vld [vmem:[%s8295_s0 + $0x1a8] sm:$0xff]  ;;  %v4543_v54 = vld [vmem:[%s8294_s1 + $0xa0] sm:$0xf] }
 0x456   :  { %v2249_v55 = vsel %vm2248_vm6, %v5262_v62, %v2245_v53  ;;  %v4568_v51 = vor.u32 %v4985_v46, %v4567_v44  ;;  %v4569_v53 = vld [vmem:[%s8294_s1 + $0xd8] sm:$0xf0]  ;;  %v4913_v19 = vld [vmem:[%s8294_s1 + $0x94] sm:$0xf0]  ;;  %v4895_v21 = vld [vmem:[%s8294_s1 + $0x8c] sm:$0xf] }
 0x457   :  { %v2254_v31 = vsel %vm2251_vm7, %v2253_v25, %v2249_v55  ;;  %v5270_v27 = vpop.eup %5269  ;;  %2900 = vmatpush.bf16.msrb.mxu2 %v4584_v26  ;;  %2914 = vmatpush.bf16.msrb.mxu3 %v4588_v33  ;;  %v4572_v25 = vor.u32 %v4967_v58, %v4569_v53  ;;  %v4940_v55 = vld [vmem:[%s8294_s1 + $0xac] sm:$0xf0]  ;;  %v4537_v23 = vld [vmem:[%s8294_s1 + $0x98] sm:$0xf0]  ;;  %v4511_v59 = vld [vmem:[%s8294_s1 + $0x60] sm:$0xf] }
 0x458   :  { %v2299_v24 = vmul.f32 %v2254_v31, %v7226_v34  ;;  %v2282_v29 = vmul.f32 %v5270_v27, %v2265_v39  ;;  %v2275_v34 = vand.u32 2147483647, %v7392_v28  ;;  %vm2287_vm10 = vweird.f32 %v5270_v27  ;;  %v4958_v39 = vld [vmem:[%s8294_s1 + $0xc4] sm:$0xf]  ;;  %2873 = vmatpush.bf16.msrb.mxu0 %v4560_v41  ;;  %v4868_v32 = vld [vmem:[%s8294_s1 + $0x6c] sm:$0xf0] }
 0x459   :  { %vm2288_vm13 = vmor %vm2286_vm12, %vm2287_vm10  ;;  %v4564_v50 = vor.u32 %v4958_v39, %v4561_v43  ;;  %v4544_v31 = vor.u32 %v4940_v55, %v4543_v54  ;;  %v4540_v26 = vor.u32 %v4895_v21, %v4537_v23  ;;  %v4316_v33 = vld [vmem:[%s8295_s0 + $0x1b8] sm:$0xff]  ;;  %v4512_v40 = vor.u32 %v4868_v32, %v4511_v59  ;;  %v4859_v39 = vld [vmem:[%s8294_s1 + $0x6c] sm:$0xf] }
 0x45a   :  { %v7554_v60 = vadd.f32 %v2301_v6, %v2299_v24  ;;  %v2283_v1 = vsub.f32 1.0, %v2282_v29  ;;  %v5272_v9 = vpop.eup %5271  ;;  %vm2276_vm14 = vcmp.eq.f32.partialorder %v2275_v34, 8.507059e+37  ;;  %v4922_v6 = vld [vmem:[%s8294_s1 + $0xa4] sm:$0xf]  ;;  %v4551_v24 = vld [vmem:[%s8294_s1 + $0xa8] sm:$0xf] }
 0x45b   :  { %v2279_v14 = vsel %vm2276_vm14, %v2278_v10, %v2274_v8  ;;  %2887 = vmatpush.bf16.msrb.mxu1 %v4564_v50  ;;  %2901 = vmatpush.bf16.msrb.mxu2 %v4568_v51  ;;  %v4548_v2 = vor.u32 %v4922_v6, %v4545_v57  ;;  %v4527_v10 = vld [vmem:[%s8294_s1 + $0x80] sm:$0xf]  ;;  %v4877_v38 = vld [vmem:[%s8294_s1 + $0x74] sm:$0xf0]  ;;  %v4521_v41 = vld [vmem:[%s8294_s1 + $0x78] sm:$0xf0] }
 0x45c   :  { %5273 = vtanh.f32 %v7554_v60  ;;  %v2284_v4 = vmul.f32 %v5270_v27, %v2283_v1  ;;  %v2306_v62 = vmul.f32 %v5272_v9, %v2279_v14  ;;  %2915 = vmatpush.bf16.msrb.mxu3 %v4572_v25  ;;  %2874 = vmatpush.bf16.msrb.mxu0 %v4544_v31  ;;  %v4814_v50 = vld [vmem:[%s8294_s1 + $0x44] sm:$0xf]  ;;  %v4497_v53 = vld [vmem:[%s8294_s1 + $0x50] sm:$0xf0] }
 0x45d   :  { %v4500_v6 = vor.u32 %v4814_v50, %v4497_v53  ;;  %v4778_v21 = vld [vmem:[%s8294_s1 + $0x24] sm:$0xf]  ;;  %v4481_v23 = vld [vmem:[%s8294_s1 + $0x30] sm:$0xf0] }
 0x45e   :  { %v2285_v45 = vadd.f32 %v5270_v27, %v2284_v4  ;;  %v4484_v50 = vor.u32 %v4778_v21, %v4481_v23 }
 0x45f   :  { %2888 = vmatpush.bf16.msrb.mxu1 %v4548_v2 }
 0x460   :  { %v2289_v13 = vsel %vm2288_vm13, %v5270_v27, %v2285_v45  ;;  %v4949_v27 = vld [vmem:[%s8294_s1 + $0xb4] sm:$0xf0]  ;;  %v4556_v45 = vor.u32 %v4931_v35, %v4553_v5 }
 0x461   :  { %v2294_v15 = vsel %vm2291_vm15, %v2293_v11, %v2289_v13  ;;  %v4552_v1 = vor.u32 %v4949_v27, %v4551_v24  ;;  %v4904_v11 = vld [vmem:[%s8294_s1 + $0x8c] sm:$0xf0] }
 0x462   :  { %v5274_v12 = vpop.eup %5273  ;;  %v4528_v14 = vor.u32 %v4904_v11, %v4527_v10  ;;  %2916 = vmatpush.bf16.msrb.mxu3 %v4556_v45  ;;  %v4311_v24 = vld [vmem:[%s8295_s0 + $0x190] sm:$0xff]  ;;  %v4503_v11 = vld [vmem:[%s8294_s1 + $0x48] sm:$0xf] }
 0x463   :  { %v2307_v28 = vmul.f32 %v5274_v12, %v2294_v15  ;;  %2902 = vmatpush.bf16.msrb.mxu2 %v4552_v1  ;;  %v4886_v12 = vld [vmem:[%s8294_s1 + $0x84] sm:$0xf]  ;;  %v4529_v15 = vld [vmem:[%s8294_s1 + $0x90] sm:$0xf0] }
 0x464   :  { %2875 = vmatpush.bf16.msrb.mxu0 %v4528_v14 }
 0x465   :  { %v5057_v16 = vpack.c.bf16 %v2307_v28, %v2306_v62  ;;  %v4535_v62 = vld [vmem:[%s8294_s1 + $0x88] sm:$0xf] }
 0x466   :  { %v4536_v22 = vor.u32 %v4913_v19, %v4535_v62  ;;  %2917 = vmatpush.bf16.msrb.mxu3 %v4540_v26 }
 0x467   :  { %5078 = vst [vmem:[%s8296_s2 + $0x28] sm:$0xff] %v5057_v16   ;;  %2502 = vmatmul.bf16.vlgmr.msra.gmra.mxu0 %v5057_v16  ;;  %2516 = vmatmul.bf16.vlgmr.msra.gmra.mxu1 %v5057_v16 }
 0x468   :  { %2530 = vmatmul.bf16.vlgmr.msra.gmra.mxu2 %v5057_v16  ;;  %2544 = vmatmul.bf16.vlgmr.msra.gmra.mxu3 %v5057_v16 }
 0x469   :  { %2903 = vmatpush.bf16.msrb.mxu2 %v4536_v22  ;;  %2876 = vmatpush.bf16.msrb.mxu0 %v4512_v40  ;;  %v4787_v40 = vld [vmem:[%s8294_s1 + $0x2c] sm:$0xf] }
 0x4e4   :  { %v2503_v61 = vpop.f32.mrf.mxu0  ;;  %v2517_v36 = vpop.f32.mrf.mxu1 }
 0x4e5   :  { %v2550_v37 = vadd.f32 %v4309_v17, %v2503_v61  ;;  %v2551_v42 = vadd.f32 %v4310_v18, %v2517_v36  ;;  %v4532_v18 = vor.u32 %v4886_v12, %v4529_v15  ;;  %v4850_v61 = vld [vmem:[%s8294_s1 + $0x64] sm:$0xf]  ;;  %v4513_v36 = vld [vmem:[%s8294_s1 + $0x70] sm:$0xf0]  ;;  %v4841_v12 = vld [vmem:[%s8294_s1 + $0x54] sm:$0xf0] }
 0x4e6   :  { %v4516_v44 = vor.u32 %v4850_v61, %v4513_v36  ;;  %v4823_v15 = vld [vmem:[%s8294_s1 + $0x4c] sm:$0xf]  ;;  %v4504_v22 = vor.u32 %v4841_v12, %v4503_v11  ;;  %v4487_v36 = vld [vmem:[%s8294_s1 + $0x28] sm:$0xf] }
 0x4e7   :  { %v4445_v47 = vmul.f32 -1.442695, %v2550_v37  ;;  %v4447_v48 = vmul.f32 -1.442695, %v2551_v42  ;;  %2889 = vmatpush.bf16.msrb.mxu1 %v4532_v18  ;;  %v4519_v42 = vld [vmem:[%s8294_s1 + $0x68] sm:$0xf] }
 0x4e8   :  { %v4520_v46 = vor.u32 %v4877_v38, %v4519_v42  ;;  %v4796_v18 = vld [vmem:[%s8294_s1 + $0x2c] sm:$0xf0]  ;;  %v4805_v38 = vld [vmem:[%s8294_s1 + $0x34] sm:$0xf0] }
 0x4e9   :  { %5275 = vpow2.f32 %v4445_v47  ;;  %v4524_v47 = vor.u32 %v4859_v39, %v4521_v41  ;;  %v4489_v39 = vld [vmem:[%s8294_s1 + $0x38] sm:$0xf0] }
 0x4ea   :  { %5277 = vpow2.f32 %v4447_v48  ;;  %v4495_v48 = vld [vmem:[%s8294_s1 + $0x40] sm:$0xf]  ;;  %2904 = vmatpush.bf16.msrb.mxu2 %v4520_v46  ;;  %v4760_v46 = vld [vmem:[%s8294_s1 + $0xc] sm:$0xf0] }
 0x4eb   :  { %v2545_v29 = vpop.f32.mrf.mxu3  ;;  %v2531_v0 = vpop.f32.mrf.mxu2  ;;  %2890 = vmatpush.bf16.msrb.mxu1 %v4516_v44  ;;  %2918 = vmatpush.bf16.msrb.mxu3 %v4524_v47  ;;  %v4463_v44 = vld [vmem:[%s8294_s1] sm:$0xf]  ;;  %v4742_v47 = vld [vmem:[%s8294_s1 + $0x4] sm:$0xf] }
 0x4ec   :  { %v2553_v34 = vadd.f32 %v4312_v49, %v2545_v29  ;;  %v2505_v4 = vpop.f32.mrf.mxu0  ;;  %v2519_v7 = vpop.f32.mrf.mxu1  ;;  %v4832_v49 = vld [vmem:[%s8294_s1 + $0x4c] sm:$0xf0] }
 0x4ed   :  { %v2554_v8 = vadd.f32 %v4313_v52, %v2505_v4  ;;  %v2555_v9 = vadd.f32 %v4314_v30, %v2519_v7  ;;  %v4496_v30 = vor.u32 %v4832_v49, %v4495_v48  ;;  %v4315_v4 = vld [vmem:[%s8295_s0 + $0x1b0] sm:$0xff] }
 0x4ee   :  { %v4449_v13 = vmul.f32 -1.442695, %v2553_v34  ;;  %2905 = vmatpush.bf16.msrb.mxu2 %v4504_v22 }
 0x4ef   :  { %v5276_v28 = vpop.eup %5275  ;;  %v4446_v16 = vmul.f32 -1.442695, %v2554_v8  ;;  %v4448_v17 = vmul.f32 -1.442695, %v2555_v9  ;;  %2877 = vmatpush.bf16.msrb.mxu0 %v4496_v30  ;;  %v2552_v9 = vadd.f32 %v4311_v24, %v2531_v0  ;;  %2891 = vmatpush.bf16.msrb.mxu1 %v4500_v6  ;;  %v4769_v30 = vld [vmem:[%s8294_s1 + $0x14] sm:$0xf0] }
 0x4f0   :  { %v5278_v20 = vpop.eup %5277  ;;  %v7672_v63 = vadd.f32 1.0, %v5276_v28  ;;  %5279 = vpow2.f32 %v4449_v13 }
 0x4f1   :  { %v7680_v3 = vadd.f32 1.0, %v5278_v20  ;;  %5281 = vpow2.f32 %v4446_v16  ;;  %v4505_v16 = vld [vmem:[%s8294_s1 + $0x58] sm:$0xf0] }
 0x4f2   :  { %5283 = vrcp.f32 %v7672_v63  ;;  %v2575_v54 = vand.u32 2147483647, %v7672_v63  ;;  %v2577_v27 = vand.u32 2147483648, %v7672_v63  ;;  %vm2571_vm4 = vweird.f32 %v7672_v63 }
 0x4f3   :  { %5285 = vrcp.f32 %v7680_v3  ;;  %v2547_v37 = vpop.f32.mrf.mxu3  ;;  %v2615_v1 = vand.u32 2147483648, %v7680_v3  ;;  %v2613_v35 = vand.u32 2147483647, %v7680_v3  ;;  %v2533_v7 = vpop.f32.mrf.mxu2  ;;  %vm2609_vm3 = vweird.f32 %v7680_v3  ;;  %2892 = vmatpush.bf16.msrb.mxu1 %v4484_v50  ;;  %v4454_v50 = vld [vmem:[%s8295_s0 + $0x1c8] sm:$0xff] }
 0x4f4   :  { %5287 = vpow2.f32 %v4448_v17  ;;  %v2557_v52 = vadd.f32 %v4316_v33, %v2547_v37  ;;  %vm7750_vm1 = vcmp.eq.f32.partialorder %v2575_v54, 8.507059e+37  ;;  %v2578_v14 = vor.u32 1.1754944e-38, %v2577_v27  ;;  %v4479_v17 = vld [vmem:[%s8294_s1 + $0x20] sm:$0xf] }
 0x4f5   :  { %v2556_v28 = vadd.f32 %v4315_v4, %v2533_v7  ;;  %v2616_v19 = vor.u32 1.1754944e-38, %v2615_v1  ;;  %vm7800_vm7 = vcmp.eq.f32.partialorder %v2613_v35, 8.507059e+37  ;;  %v4508_v37 = vor.u32 %v4823_v15, %v4505_v16 }
 0x4f6   :  { %v5280_v43 = vpop.eup %5279  ;;  %v4450_v45 = vmul.f32 -1.442695, %v2557_v52  ;;  %v4480_v42 = vor.u32 %v4796_v18, %v4479_v17  ;;  %v4471_v52 = vld [vmem:[%s8294_s1 + $0x8] sm:$0xf]  ;;  %v4464_v1 = vor.u32 %v4760_v46, %v4463_v44 }
 0x4f7   :  { %v5282_v51 = vpop.eup %5281  ;;  %v7720_v58 = vadd.f32 1.0, %v5280_v43  ;;  %2919 = vmatpush.bf16.msrb.mxu3 %v4508_v37 }
 0x4f8   :  { %v7725_v25 = vpop.eup %5283  ;;  %v7728_v55 = vadd.f32 1.0, %v5282_v51  ;;  %2878 = vmatpush.bf16.msrb.mxu0 %v4480_v42  ;;  %v4465_v51 = vld [vmem:[%s8294_s1 + $0x10] sm:$0xf0] }
 0x4f9   :  { %v7730_v31 = vpop.eup %5285  ;;  %v2567_v57 = vmul.f32 %v7725_v25, %v7672_v63  ;;  %5289 = vrcp.f32 %v7720_v58  ;;  %vm2572_vm0 = vweird.f32 %v7725_v25 }
 0x4fa   :  { %v5288_v29 = vpop.eup %5287  ;;  %v2605_v2 = vmul.f32 %v7730_v31, %v7680_v3  ;;  %5291 = vrcp.f32 %v7728_v55  ;;  %vm2610_vm2 = vweird.f32 %v7730_v31  ;;  %vm7781_vm5 = vmor %vm2571_vm4, %vm2572_vm0  ;;  %v2590_v61 = vand.u32 2147483647, %v7728_v55 }
 0x4fb   :  { %v2568_v5 = vsub.f32 1.0, %v2567_v57  ;;  %v7744_v34 = vadd.f32 1.0, %v5288_v29  ;;  %vm7795_vm6 = vmor %vm2609_vm3, %vm2610_vm2  ;;  %vm2586_vm9 = vweird.f32 %v7728_v55  ;;  %v2592_v6 = vand.u32 2147483648, %v7728_v55  ;;  %v4473_v57 = vld [vmem:[%s8294_s1 + $0x18] sm:$0xf0] }
 0x4fc   :  { %v2606_v8 = vsub.f32 1.0, %v2605_v2  ;;  %v4488_v29 = vor.u32 %v4805_v38, %v4487_v36  ;;  %v4492_v2 = vor.u32 %v4787_v40, %v4489_v39  ;;  %2879 = vmatpush.bf16.msrb.mxu0 %v4464_v1  ;;  %vm2591_vm13 = vcmp.eq.f32.partialorder %v2590_v61, 8.507059e+37 }
 0x4fd   :  { %v2569_v13 = vmul.f32 %v7725_v25, %v2568_v5  ;;  %5293 = vrcp.f32 %v7744_v34  ;;  %v2630_v32 = vand.u32 2147483648, %v7744_v34  ;;  %vm2624_vm8 = vweird.f32 %v7744_v34 }
 0x4fe   :  { %v2607_v62 = vmul.f32 %v7730_v31, %v2606_v8  ;;  %5295 = vpow2.f32 %v4450_v45  ;;  %2906 = vmatpush.bf16.msrb.mxu2 %v4488_v29  ;;  %2920 = vmatpush.bf16.msrb.mxu3 %v4492_v2  ;;  %v4468_v8 = vor.u32 %v4742_v47, %v4465_v51  ;;  %v2655_v61 = vand.u32 2147483648, %v7720_v58  ;;  %v4719_v51 = vld [vmem:[%s8294_s1 + $0xe0] sm:$0xf] }
 0x4ff   :  { %v2570_v20 = vadd.f32 %v7725_v25, %v2569_v13  ;;  %v7791_v3 = vpop.eup %5289  ;;  %5297 = vtanh.f32 %v2552_v9  ;;  %v4472_v9 = vor.u32 %v4769_v30, %v4471_v52  ;;  %v5011_v52 = vld [vmem:[%s8294_s1 + $0xec] sm:$0xf0]  ;;  %v4993_v30 = vld [vmem:[%s8294_s1 + $0xe4] sm:$0xf] }
 0x500   :  { %v2608_v26 = vadd.f32 %v7730_v31, %v2607_v62  ;;  %v7809_v33 = vpop.eup %5291  ;;  %5299 = vtanh.f32 %v2556_v28  ;;  %v2645_v53 = vmul.f32 %v7791_v3, %v7720_v58  ;;  %v2593_v28 = vor.u32 1.1754944e-38, %v2592_v6  ;;  %2893 = vmatpush.bf16.msrb.mxu1 %v4468_v8  ;;  %v5020_v6 = vld [vmem:[%s8294_s1 + $0xf4] sm:$0xf0] }
 0x501   :  { %v2574_v41 = vsel %vm7781_vm5, %v7725_v25, %v2570_v20  ;;  %v2582_v43 = vmul.f32 %v7809_v33, %v7728_v55  ;;  %vm2587_vm10 = vweird.f32 %v7809_v33  ;;  %vm2650_vm0 = vweird.f32 %v7791_v3 }
 0x502   :  { %v2612_v49 = vsel %vm7795_vm6, %v7730_v31, %v2608_v26  ;;  %v4751_v31 = vld [vmem:[%s8294_s1 + $0xc] sm:$0xf]  ;;  %v2579_v27 = vsel %vm7750_vm1, %v2578_v14, %v2574_v41  ;;  %v2628_v14 = vand.u32 2147483647, %v7744_v34  ;;  %vm2588_vm12 = vmor %vm2586_vm9, %vm2587_vm10  ;;  %v2646_v16 = vsub.f32 1.0, %v2645_v53  ;;  %2907 = vmatpush.bf16.msrb.mxu2 %v4472_v9 }
 0x503   :  { %v5294_v48 = vpop.eup %5293  ;;  %v2583_v25 = vsub.f32 1.0, %v2582_v43  ;;  %v2617_v35 = vsel %vm7800_vm7, %v2616_v19, %v2612_v49  ;;  %v4476_v10 = vor.u32 %v4751_v31, %v4473_v57  ;;  %vm2649_vm1 = vweird.f32 %v7720_v58  ;;  %v4705_v9 = vld [vmem:[%s8294_s1 + $0xd0] sm:$0xf0] }
 0x504   :  { %v2620_v54 = vmul.f32 %v5294_v48, %v7744_v34  ;;  %v5296_v24 = vpop.eup %5295  ;;  %vm2625_vm11 = vweird.f32 %v5294_v48  ;;  %v2676_v15 = vmul.f32 %v2617_v35, %v7550_v56  ;;  %v2631_v56 = vor.u32 1.1754944e-38, %v2630_v32  ;;  %vm2651_vm3 = vmor %vm2649_vm1, %vm2650_vm0 }
 0x505   :  { %v2584_v4 = vmul.f32 %v7809_v33, %v2583_v25  ;;  %v5298_v7 = vpop.eup %5297  ;;  %v2643_v45 = vadd.f32 1.0, %v5296_v24  ;;  %vm2626_vm14 = vmor %vm2624_vm8, %vm2625_vm11  ;;  %2921 = vmatpush.bf16.msrb.mxu3 %v4476_v10  ;;  %vm2629_vm15 = vcmp.eq.f32.partialorder %v2628_v14, 8.507059e+37  ;;  %v2647_v23 = vmul.f32 %v7791_v3, %v2646_v16  ;;  %v4721_v25 = vld [vmem:[%s8294_s1 + $0xf0] sm:$0xf0]  ;;  %v5002_v24 = vld [vmem:[%s8294_s1 + $0xec] sm:$0xf] }
 0x506   :  { %v2621_v5 = vsub.f32 1.0, %v2620_v54  ;;  %v5300_v11 = vpop.eup %5299  ;;  %v2678_v62 = vmul.f32 %v5298_v7, %v2579_v27  ;;  %v2656_v39 = vor.u32 1.1754944e-38, %v2655_v61  ;;  %v4720_v53 = vor.u32 %v5011_v52, %v4719_v51  ;;  %v4727_v54 = vld [vmem:[%s8294_s1 + $0xe8] sm:$0xf]  ;;  %v4729_v27 = vld [vmem:[%s8294_s1 + $0xf8] sm:$0xf0] }
 0x507   :  { %v2585_v13 = vadd.f32 %v7809_v33, %v2584_v4  ;;  %5301 = vrcp.f32 %v2643_v45  ;;  %v2648_v34 = vadd.f32 %v7791_v3, %v2647_v23  ;;  %v2670_v36 = vand.u32 2147483648, %v2643_v45  ;;  %v4703_v4 = vld [vmem:[%s8294_s1 + $0xc0] sm:$0xf]  ;;  %v4975_v7 = vld [vmem:[%s8294_s1 + $0xcc] sm:$0xf0]  ;;  %v4456_v14 = vld [vmem:[%s8295_s0 + $0x1d8] sm:$0xff] }
 0x508   :  { %v2622_v12 = vmul.f32 %v5294_v48, %v2621_v5  ;;  %v7878_v22 = vadd.f32 %v2678_v62, %v2676_v15  ;;  %v2668_v37 = vand.u32 2147483647, %v2643_v45  ;;  %vm2664_vm4 = vweird.f32 %v2643_v45  ;;  %3250 = vmatpush.bf16.msra.mxu0 %v4720_v53  ;;  %v4711_v10 = vld [vmem:[%s8294_s1 + $0xc8] sm:$0xf]  ;;  %v4457_v16 = vld [vmem:[%s8295_s0 + $0x1e0] sm:$0xff] }
 0x509   :  { %v2589_v17 = vsel %vm2588_vm12, %v7809_v33, %v2585_v13  ;;  %v2652_v38 = vsel %vm2651_vm3, %v7791_v3, %v2648_v34  ;;  %v2671_v41 = vor.u32 1.1754944e-38, %v2670_v36  ;;  %v4453_v3 = vld [vmem:[%s8295_s0 + $0x1c0] sm:$0xff]  ;;  %v4724_v31 = vor.u32 %v4993_v30, %v4721_v25  ;;  %v4689_v23 = vld [vmem:[%s8294_s1 + $0xb0] sm:$0xf0]  ;;  %v4930_v61 = vld [vmem:[%s8294_s1 + $0xac] sm:$0xf] }
 0x50a   :  { %v2623_v18 = vadd.f32 %v5294_v48, %v2622_v12  ;;  %v2594_v19 = vsel %vm2591_vm13, %v2593_v28, %v2589_v17  ;;  %5303 = vtanh.f32 %v7878_v22  ;;  %vm2669_vm7 = vcmp.eq.f32.partialorder %v2668_v37, 8.507059e+37  ;;  %v4966_v28 = vld [vmem:[%s8294_s1 + $0xcc] sm:$0xf]  ;;  %v4697_v36 = vld [vmem:[%s8294_s1 + $0xb8] sm:$0xf0] }
 0x50b   :  { %v2679_v63 = vmul.f32 %v5300_v11, %v2594_v19  ;;  %v4728_v57 = vor.u32 %v5020_v6, %v4727_v54  ;;  %v4732_v1 = vor.u32 %v5002_v24, %v4729_v27  ;;  %3264 = vmatpush.bf16.msra.mxu1 %v4724_v31  ;;  %v4704_v8 = vor.u32 %v4975_v7, %v4703_v4  ;;  %v4984_v11 = vld [vmem:[%s8294_s1 + $0xd4] sm:$0xf0]  ;;  %v4458_v17 = vld [vmem:[%s8295_s0 + $0x1e8] sm:$0xff]  ;;  %v4687_v19 = vld [vmem:[%s8294_s1 + $0xa0] sm:$0xf] }
 0x50c   :  { %v2627_v20 = vsel %vm2626_vm14, %v5294_v48, %v2623_v18  ;;  %v4712_v62 = vor.u32 %v4984_v11, %v4711_v10  ;;  %v4713_v18 = vld [vmem:[%s8294_s1 + $0xd8] sm:$0xf0]  ;;  %v4912_v51 = vld [vmem:[%s8294_s1 + $0x94] sm:$0xf0]  ;;  %v4894_v25 = vld [vmem:[%s8294_s1 + $0x8c] sm:$0xf] }
 0x50d   :  { %v2632_v21 = vsel %vm2629_vm15, %v2631_v56, %v2627_v20  ;;  %v5302_v0 = vpop.eup %5301  ;;  %3278 = vmatpush.bf16.msra.mxu2 %v4728_v57  ;;  %3292 = vmatpush.bf16.msra.mxu3 %v4732_v1  ;;  %v4716_v56 = vor.u32 %v4966_v28, %v4713_v18  ;;  %v4939_v20 = vld [vmem:[%s8294_s1 + $0xac] sm:$0xf0]  ;;  %v4681_v54 = vld [vmem:[%s8294_s1 + $0x98] sm:$0xf0]  ;;  %v4655_v24 = vld [vmem:[%s8294_s1 + $0x60] sm:$0xf] }
 0x50e   :  { %v2677_v55 = vmul.f32 %v2632_v21, %v7554_v60  ;;  %v2660_v59 = vmul.f32 %v5302_v0, %v2643_v45  ;;  %v2653_v60 = vand.u32 2147483647, %v7720_v58  ;;  %vm2665_vm2 = vweird.f32 %v5302_v0  ;;  %v4957_v45 = vld [vmem:[%s8294_s1 + $0xc4] sm:$0xf]  ;;  %3251 = vmatpush.bf16.msra.mxu0 %v4704_v8  ;;  %v4867_v27 = vld [vmem:[%s8294_s1 + $0x6c] sm:$0xf0] }
 0x50f   :  { %vm2666_vm5 = vmor %vm2664_vm4, %vm2665_vm2  ;;  %v4708_v15 = vor.u32 %v4957_v45, %v4705_v9  ;;  %v4688_v21 = vor.u32 %v4939_v20, %v4687_v19  ;;  %v4684_v57 = vor.u32 %v4894_v25, %v4681_v54  ;;  %v4460_v1 = vld [vmem:[%s8295_s0 + $0x1f8] sm:$0xff]  ;;  %v4656_v7 = vor.u32 %v4867_v27, %v4655_v24  ;;  %v4858_v45 = vld [vmem:[%s8294_s1 + $0x6c] sm:$0xf] }
 0x510   :  { %v7882_v26 = vadd.f32 %v2679_v63, %v2677_v55  ;;  %v2661_v32 = vsub.f32 1.0, %v2660_v59  ;;  %v5304_v40 = vpop.eup %5303  ;;  %vm2654_vm6 = vcmp.eq.f32.partialorder %v2653_v60, 8.507059e+37  ;;  %v4921_v63 = vld [vmem:[%s8294_s1 + $0xa4] sm:$0xf]  ;;  %v4695_v55 = vld [vmem:[%s8294_s1 + $0xa8] sm:$0xf] }
 0x511   :  { %v2657_v46 = vsel %vm2654_vm6, %v2656_v39, %v2652_v38  ;;  %3265 = vmatpush.bf16.msra.mxu1 %v4708_v15  ;;  %3279 = vmatpush.bf16.msra.mxu2 %v4712_v62  ;;  %v4692_v34 = vor.u32 %v4921_v63, %v4689_v23  ;;  %v4671_v39 = vld [vmem:[%s8294_s1 + $0x80] sm:$0xf]  ;;  %v4876_v4 = vld [vmem:[%s8294_s1 + $0x74] sm:$0xf0]  ;;  %v4665_v8 = vld [vmem:[%s8294_s1 + $0x78] sm:$0xf0] }
 0x512   :  { %5305 = vtanh.f32 %v7882_v26  ;;  %v2662_v33 = vmul.f32 %v5302_v0, %v2661_v32  ;;  %v2684_v48 = vmul.f32 %v5304_v40, %v2657_v46  ;;  %3293 = vmatpush.bf16.msra.mxu3 %v4716_v56  ;;  %3252 = vmatpush.bf16.msra.mxu0 %v4688_v21  ;;  %v4813_v15 = vld [vmem:[%s8294_s1 + $0x44] sm:$0xf]  ;;  %v4641_v18 = vld [vmem:[%s8294_s1 + $0x50] sm:$0xf0] }
 0x513   :  { %v4644_v63 = vor.u32 %v4813_v15, %v4641_v18  ;;  %v4777_v25 = vld [vmem:[%s8294_s1 + $0x24] sm:$0xf]  ;;  %v4625_v54 = vld [vmem:[%s8294_s1 + $0x30] sm:$0xf0] }
 0x514   :  { %v2663_v42 = vadd.f32 %v5302_v0, %v2662_v33  ;;  %v4628_v15 = vor.u32 %v4777_v25, %v4625_v54 }
 0x515   :  { %3266 = vmatpush.bf16.msra.mxu1 %v4692_v34 }
 0x516   :  { %v2667_v44 = vsel %vm2666_vm5, %v5302_v0, %v2663_v42  ;;  %v4948_v0 = vld [vmem:[%s8294_s1 + $0xb4] sm:$0xf0]  ;;  %v4700_v42 = vor.u32 %v4930_v61, %v4697_v36 }
 0x517   :  { %v2672_v47 = vsel %vm2669_vm7, %v2671_v41, %v2667_v44  ;;  %v4696_v32 = vor.u32 %v4948_v0, %v4695_v55  ;;  %v4903_v41 = vld [vmem:[%s8294_s1 + $0x8c] sm:$0xf0] }
 0x518   :  { %v5306_v43 = vpop.eup %5305  ;;  %v4672_v46 = vor.u32 %v4903_v41, %v4671_v39  ;;  %3294 = vmatpush.bf16.msra.mxu3 %v4700_v42  ;;  %v4455_v55 = vld [vmem:[%s8295_s0 + $0x1d0] sm:$0xff]  ;;  %v4647_v41 = vld [vmem:[%s8294_s1 + $0x48] sm:$0xf] }
 0x519   :  { %v2685_v58 = vmul.f32 %v5306_v43, %v2672_v47  ;;  %3280 = vmatpush.bf16.msra.mxu2 %v4696_v32  ;;  %v4885_v43 = vld [vmem:[%s8294_s1 + $0x84] sm:$0xf]  ;;  %v4673_v47 = vld [vmem:[%s8294_s1 + $0x90] sm:$0xf0] }
 0x51a   :  { %3253 = vmatpush.bf16.msra.mxu0 %v4672_v46 }
 0x51b   :  { %v5062_v49 = vpack.c.bf16 %v2685_v58, %v2684_v48  ;;  %v4679_v48 = vld [vmem:[%s8294_s1 + $0x88] sm:$0xf] }
 0x51c   :  { %v4680_v53 = vor.u32 %v4912_v51, %v4679_v48  ;;  %3295 = vmatpush.bf16.msra.mxu3 %v4684_v57 }
 0x51d   :  { %5079 = vst [vmem:[%s8296_s2 + $0x30] sm:$0xff] %v5062_v49   ;;  %2880 = vmatmul.bf16.vlgmr.msrb.gmra.mxu0 %v5062_v49  ;;  %2894 = vmatmul.bf16.vlgmr.msrb.gmra.mxu1 %v5062_v49 }
 0x51e   :  { %2908 = vmatmul.bf16.vlgmr.msrb.gmra.mxu2 %v5062_v49  ;;  %2922 = vmatmul.bf16.vlgmr.msrb.gmra.mxu3 %v5062_v49 }
 0x51f   :  { %3281 = vmatpush.bf16.msra.mxu2 %v4680_v53  ;;  %3254 = vmatpush.bf16.msra.mxu0 %v4656_v7  ;;  %v4786_v7 = vld [vmem:[%s8294_s1 + $0x2c] sm:$0xf] }
 0x59a   :  { %v2881_v29 = vpop.f32.mrf.mxu0  ;;  %v2895_v2 = vpop.f32.mrf.mxu1 }
 0x59b   :  { %v2928_v35 = vadd.f32 %v4453_v3, %v2881_v29  ;;  %v2929_v5 = vadd.f32 %v4454_v50, %v2895_v2  ;;  %v4676_v50 = vor.u32 %v4885_v43, %v4673_v47  ;;  %v4849_v29 = vld [vmem:[%s8294_s1 + $0x64] sm:$0xf]  ;;  %v4657_v2 = vld [vmem:[%s8294_s1 + $0x70] sm:$0xf0]  ;;  %v4840_v43 = vld [vmem:[%s8294_s1 + $0x54] sm:$0xf0] }
 0x59c   :  { %v4660_v10 = vor.u32 %v4849_v29, %v4657_v2  ;;  %v4822_v47 = vld [vmem:[%s8294_s1 + $0x4c] sm:$0xf]  ;;  %v4648_v53 = vor.u32 %v4840_v43, %v4647_v41  ;;  %v4631_v2 = vld [vmem:[%s8294_s1 + $0x28] sm:$0xf] }
 0x59d   :  { %v4589_v12 = vmul.f32 -1.442695, %v2928_v35  ;;  %v4591_v13 = vmul.f32 -1.442695, %v2929_v5  ;;  %3267 = vmatpush.bf16.msra.mxu1 %v4676_v50  ;;  %v4663_v5 = vld [vmem:[%s8294_s1 + $0x68] sm:$0xf] }
 0x59e   :  { %v4664_v11 = vor.u32 %v4876_v4, %v4663_v5  ;;  %v4795_v50 = vld [vmem:[%s8294_s1 + $0x2c] sm:$0xf0]  ;;  %v4804_v4 = vld [vmem:[%s8294_s1 + $0x34] sm:$0xf0] }
 0x59f   :  { %5307 = vpow2.f32 %v4589_v12  ;;  %v4668_v12 = vor.u32 %v4858_v45, %v4665_v8  ;;  %v4633_v45 = vld [vmem:[%s8294_s1 + $0x38] sm:$0xf0] }
 0x5a0   :  { %5309 = vpow2.f32 %v4591_v13  ;;  %v4639_v13 = vld [vmem:[%s8294_s1 + $0x40] sm:$0xf]  ;;  %3282 = vmatpush.bf16.msra.mxu2 %v4664_v11  ;;  %v4759_v11 = vld [vmem:[%s8294_s1 + $0xc] sm:$0xf0] }
 0x5a1   :  { %v2923_v59 = vpop.f32.mrf.mxu3  ;;  %v2909_v31 = vpop.f32.mrf.mxu2  ;;  %3268 = vmatpush.bf16.msra.mxu1 %v4660_v10  ;;  %3296 = vmatpush.bf16.msra.mxu3 %v4668_v12  ;;  %v4607_v10 = vld [vmem:[%s8294_s1] sm:$0xf]  ;;  %v4741_v12 = vld [vmem:[%s8294_s1 + $0x4] sm:$0xf] }
 0x5a2   :  { %v2931_v60 = vadd.f32 %v4456_v14, %v2923_v59  ;;  %v2883_v33 = vpop.f32.mrf.mxu0  ;;  %v2897_v37 = vpop.f32.mrf.mxu1  ;;  %v4831_v14 = vld [vmem:[%s8294_s1 + $0x4c] sm:$0xf0] }
 0x5a3   :  { %v2932_v38 = vadd.f32 %v4457_v16, %v2883_v33  ;;  %v2933_v40 = vadd.f32 %v4458_v17, %v2897_v37  ;;  %v4640_v17 = vor.u32 %v4831_v14, %v4639_v13  ;;  %v4459_v33 = vld [vmem:[%s8295_s0 + $0x1f0] sm:$0xff] }
 0x5a4   :  { %v4593_v44 = vmul.f32 -1.442695, %v2931_v60  ;;  %3283 = vmatpush.bf16.msra.mxu2 %v4648_v53 }
 0x5a5   :  { %v5308_v58 = vpop.eup %5307  ;;  %v4590_v49 = vmul.f32 -1.442695, %v2932_v38  ;;  %v4592_v3 = vmul.f32 -1.442695, %v2933_v40  ;;  %3255 = vmatpush.bf16.msra.mxu0 %v4640_v17  ;;  %v2930_v40 = vadd.f32 %v4455_v55, %v2909_v31  ;;  %3269 = vmatpush.bf16.msra.mxu1 %v4644_v63  ;;  %v4768_v17 = vld [vmem:[%s8294_s1 + $0x14] sm:$0xf0] }
 0x5a6   :  { %v5310_v52 = vpop.eup %5309  ;;  %v8000_v30 = vadd.f32 1.0, %v5308_v58  ;;  %5311 = vpow2.f32 %v4593_v44 }
 0x5a7   :  { %v8008_v6 = vadd.f32 1.0, %v5310_v52  ;;  %5313 = vpow2.f32 %v4590_v49  ;;  %v4649_v49 = vld [vmem:[%s8294_s1 + $0x58] sm:$0xf0] }
 0x5a8   :  { %5315 = vrcp.f32 %v8000_v30  ;;  %v2953_v19 = vand.u32 2147483647, %v8000_v30  ;;  %v2955_v0 = vand.u32 2147483648, %v8000_v30  ;;  %vm2949_vm12 = vweird.f32 %v8000_v30 }
 0x5a9   :  { %5317 = vrcp.f32 %v8008_v6  ;;  %v2925_v35 = vpop.f32.mrf.mxu3  ;;  %v2993_v32 = vand.u32 2147483648, %v8008_v6  ;;  %v2991_v61 = vand.u32 2147483647, %v8008_v6  ;;  %v2911_v37 = vpop.f32.mrf.mxu2  ;;  %vm2987_vm11 = vweird.f32 %v8008_v6  ;;  %3270 = vmatpush.bf16.msra.mxu1 %v4628_v15  ;;  %v4598_v15 = vld [vmem:[%s8295_s0 + $0x208] sm:$0xff] }
 0x5aa   :  { %5319 = vpow2.f32 %v4592_v3  ;;  %v2935_v16 = vadd.f32 %v4460_v1, %v2925_v35  ;;  %vm8078_vm9 = vcmp.eq.f32.partialorder %v2953_v19, 8.507059e+37  ;;  %v2956_v46 = vor.u32 1.1754944e-38, %v2955_v0  ;;  %v4623_v3 = vld [vmem:[%s8294_s1 + $0x20] sm:$0xf] }
 0x5ab   :  { %v2934_v58 = vadd.f32 %v4459_v33, %v2911_v37  ;;  %v2994_v51 = vor.u32 1.1754944e-38, %v2993_v32  ;;  %vm8128_vm15 = vcmp.eq.f32.partialorder %v2991_v61, 8.507059e+37  ;;  %v4652_v35 = vor.u32 %v4822_v47, %v4649_v49 }
 0x5ac   :  { %v5312_v9 = vpop.eup %5311  ;;  %v4594_v42 = vmul.f32 -1.442695, %v2935_v16  ;;  %v4624_v5 = vor.u32 %v4795_v50, %v4623_v3  ;;  %v4615_v16 = vld [vmem:[%s8294_s1 + $0x8] sm:$0xf]  ;;  %v4608_v32 = vor.u32 %v4759_v11, %v4607_v10 }
 0x5ad   :  { %v5314_v62 = vpop.eup %5313  ;;  %v8048_v28 = vadd.f32 1.0, %v5312_v9  ;;  %3297 = vmatpush.bf16.msra.mxu3 %v4652_v35 }
 0x5ae   :  { %v8053_v56 = vpop.eup %5315  ;;  %v8056_v20 = vadd.f32 1.0, %v5314_v62  ;;  %3256 = vmatpush.bf16.msra.mxu0 %v4624_v5  ;;  %v4609_v62 = vld [vmem:[%s8294_s1 + $0x10] sm:$0xf0] }
 0x5af   :  { %v8058_v21 = vpop.eup %5317  ;;  %v2945_v23 = vmul.f32 %v8053_v56, %v8000_v30  ;;  %5321 = vrcp.f32 %v8048_v28  ;;  %vm2950_vm8 = vweird.f32 %v8053_v56 }
 0x5b0   :  { %v5320_v59 = vpop.eup %5319  ;;  %v2983_v34 = vmul.f32 %v8058_v21, %v8008_v6  ;;  %5323 = vrcp.f32 %v8056_v20  ;;  %vm2988_vm10 = vweird.f32 %v8058_v21  ;;  %vm8109_vm13 = vmor %vm2949_vm12, %vm2950_vm8  ;;  %v2968_v29 = vand.u32 2147483647, %v8056_v20 }
 0x5b1   :  { %v2946_v36 = vsub.f32 1.0, %v2945_v23  ;;  %v8072_v60 = vadd.f32 1.0, %v5320_v59  ;;  %vm8123_vm14 = vmor %vm2987_vm11, %vm2988_vm10  ;;  %vm2964_vm1 = vweird.f32 %v8056_v20  ;;  %v2970_v63 = vand.u32 2147483648, %v8056_v20  ;;  %v4617_v23 = vld [vmem:[%s8294_s1 + $0x18] sm:$0xf0] }
 0x5b2   :  { %v2984_v38 = vsub.f32 1.0, %v2983_v34  ;;  %v4632_v59 = vor.u32 %v4804_v4, %v4631_v2  ;;  %v4636_v34 = vor.u32 %v4786_v7, %v4633_v45  ;;  %3257 = vmatpush.bf16.msra.mxu0 %v4608_v32  ;;  %vm2969_vm5 = vcmp.eq.f32.partialorder %v2968_v29, 8.507059e+37 }
 0x5b3   :  { %v2947_v44 = vmul.f32 %v8053_v56, %v2946_v36  ;;  %5325 = vrcp.f32 %v8072_v60  ;;  %v3008_v27 = vand.u32 2147483648, %v8072_v60  ;;  %vm3002_vm0 = vweird.f32 %v8072_v60 }
 0x5b4   :  { %v2985_v48 = vmul.f32 %v8058_v21, %v2984_v38  ;;  %5327 = vpow2.f32 %v4594_v42  ;;  %3284 = vmatpush.bf16.msra.mxu2 %v4632_v59  ;;  %3298 = vmatpush.bf16.msra.mxu3 %v4636_v34  ;;  %v4612_v38 = vor.u32 %v4741_v12, %v4609_v62  ;;  %v3033_v29 = vand.u32 2147483648, %v8048_v28 }
 0x5b5   :  { %v2948_v52 = vadd.f32 %v8053_v56, %v2947_v44  ;;  %v8119_v6 = vpop.eup %5321  ;;  %5329 = vtanh.f32 %v2930_v40  ;;  %v4616_v40 = vor.u32 %v4768_v17, %v4615_v16 }
 0x5b6   :  { %v2986_v57 = vadd.f32 %v8058_v21, %v2985_v48  ;;  %v8137_v1 = vpop.eup %5323  ;;  %5331 = vtanh.f32 %v2934_v58  ;;  %v3023_v18 = vmul.f32 %v8119_v6, %v8048_v28  ;;  %v2971_v58 = vor.u32 1.1754944e-38, %v2970_v63  ;;  %3271 = vmatpush.bf16.msra.mxu1 %v4612_v38  ;;  %v4600_v63 = vld [vmem:[%s8295_s0 + $0x218] sm:$0xff] }
 0x5b7   :  { %v2952_v8 = vsel %vm8109_vm13, %v8053_v56, %v2948_v52  ;;  %v2960_v9 = vmul.f32 %v8137_v1, %v8056_v20  ;;  %vm2965_vm2 = vweird.f32 %v8137_v1  ;;  %vm3028_vm8 = vweird.f32 %v8119_v6 }
 0x5b8   :  { %v2990_v14 = vsel %vm8123_vm14, %v8058_v21, %v2986_v57  ;;  %v4750_v21 = vld [vmem:[%s8294_s1 + $0xc] sm:$0xf]  ;;  %v2957_v0 = vsel %vm8078_vm9, %v2956_v46, %v2952_v8  ;;  %v3006_v46 = vand.u32 2147483647, %v8072_v60  ;;  %vm2966_vm4 = vmor %vm2964_vm1, %vm2965_vm2  ;;  %v3024_v49 = vsub.f32 1.0, %v3023_v18  ;;  %3285 = vmatpush.bf16.msra.mxu2 %v4616_v40 }
 0x5b9   :  { %v5326_v13 = vpop.eup %5325  ;;  %v2961_v56 = vsub.f32 1.0, %v2960_v9  ;;  %v2995_v61 = vsel %vm8128_vm15, %v2994_v51, %v2990_v14  ;;  %v4620_v39 = vor.u32 %v4750_v21, %v4617_v23  ;;  %vm3027_vm9 = vweird.f32 %v8048_v28  ;;  %v4601_v21 = vld [vmem:[%s8295_s0 + $0x220] sm:$0xff]  ;;  %v4602_v23 = vld [vmem:[%s8295_s0 + $0x228] sm:$0xff] }
 0x5ba   :  { %v2998_v19 = vmul.f32 %v5326_v13, %v8072_v60  ;;  %v5328_v55 = vpop.eup %5327  ;;  %vm3003_vm3 = vweird.f32 %v5326_v13  ;;  %v3054_v47 = vmul.f32 %v2995_v61, %v7878_v22  ;;  %v3009_v22 = vor.u32 1.1754944e-38, %v3008_v27  ;;  %vm3029_vm11 = vmor %vm3027_vm9, %vm3028_vm8 }
 0x5bb   :  { %v2962_v33 = vmul.f32 %v8137_v1, %v2961_v56  ;;  %v5330_v37 = vpop.eup %5329  ;;  %v3021_v42 = vadd.f32 1.0, %v5328_v55  ;;  %vm3004_vm6 = vmor %vm3002_vm0, %vm3003_vm3  ;;  %3299 = vmatpush.bf16.msra.mxu3 %v4620_v39  ;;  %vm3007_vm7 = vcmp.eq.f32.partialorder %v3006_v46, 8.507059e+37  ;;  %v3025_v54 = vmul.f32 %v8119_v6, %v3024_v49 }
 0x5bc   :  { %v2999_v36 = vsub.f32 1.0, %v2998_v19  ;;  %v5332_v41 = vpop.eup %5331  ;;  %v3056_v48 = vmul.f32 %v5330_v37, %v2957_v0  ;;  %v3034_v45 = vor.u32 1.1754944e-38, %v3033_v29 }
 0x5bd   :  { %v2963_v44 = vadd.f32 %v8137_v1, %v2962_v33  ;;  %5333 = vrcp.f32 %v3021_v42  ;;  %v3026_v60 = vadd.f32 %v8119_v6, %v3025_v54  ;;  %v3048_v2 = vand.u32 2147483648, %v3021_v42 }
 0x5be   :  { %v3000_v43 = vmul.f32 %v5326_v13, %v2999_v36  ;;  %v8206_v53 = vadd.f32 %v3056_v48, %v3054_v47  ;;  %v3046_v35 = vand.u32 2147483647, %v3021_v42  ;;  %vm3042_vm12 = vweird.f32 %v3021_v42 }
 0x5bf   :  { %v2967_v3 = vsel %vm2966_vm4, %v8137_v1, %v2963_v44  ;;  %v3030_v4 = vsel %vm3029_vm11, %v8119_v6, %v3026_v60  ;;  %v3049_v8 = vor.u32 1.1754944e-38, %v3048_v2  ;;  %v4597_v6 = vld [vmem:[%s8295_s0 + $0x200] sm:$0xff] }
 0x5c0   :  { %v3001_v50 = vadd.f32 %v5326_v13, %v3000_v43  ;;  %v2972_v51 = vsel %vm2969_vm5, %v2971_v58, %v2967_v3  ;;  %5335 = vtanh.f32 %v8206_v53  ;;  %vm3047_vm15 = vcmp.eq.f32.partialorder %v3046_v35, 8.507059e+37  ;;  %v4604_v43 = vld [vmem:[%s8295_s0 + $0x238] sm:$0xff] }
 0x5c1   :  { %v3057_v30 = vmul.f32 %v5332_v41, %v2972_v51 }
 0x5c2   :  { %v3005_v52 = vsel %vm3004_vm6, %v5326_v13, %v3001_v50 }
 0x5c3   :  { %v3010_v25 = vsel %vm3007_vm7, %v3009_v22, %v3005_v52  ;;  %v5334_v31 = vpop.eup %5333 }
 0x5c4   :  { %v3055_v20 = vmul.f32 %v3010_v25, %v7882_v26  ;;  %v3038_v24 = vmul.f32 %v5334_v31, %v3021_v42  ;;  %v3031_v26 = vand.u32 2147483647, %v8048_v28  ;;  %vm3043_vm10 = vweird.f32 %v5334_v31 }
 0x5c5   :  { %vm3044_vm13 = vmor %vm3042_vm12, %vm3043_vm10 }
 0x5c6   :  { %v8210_v57 = vadd.f32 %v3057_v30, %v3055_v20  ;;  %v3039_v27 = vsub.f32 1.0, %v3038_v24  ;;  %v5336_v7 = vpop.eup %5335  ;;  %vm3032_vm14 = vcmp.eq.f32.partialorder %v3031_v26, 8.507059e+37  ;;  %v4599_v30 = vld [vmem:[%s8295_s0 + $0x210] sm:$0xff] }
 0x5c7   :  { %v3035_v11 = vsel %vm3032_vm14, %v3034_v45, %v3030_v4 }
 0x5c8   :  { %5337 = vtanh.f32 %v8210_v57  ;;  %v3040_v1 = vmul.f32 %v5334_v31, %v3039_v27  ;;  %v3062_v13 = vmul.f32 %v5336_v7, %v3035_v11  ;;  %v4603_v27 = vld [vmem:[%s8295_s0 + $0x230] sm:$0xff] }
 0x5ca   :  { %v3041_v5 = vadd.f32 %v5334_v31, %v3040_v1 }
 0x5cc   :  { %v3045_v10 = vsel %vm3044_vm13, %v5334_v31, %v3041_v5 }
 0x5cd   :  { %v3050_v12 = vsel %vm3047_vm15, %v3049_v8, %v3045_v10 }
 0x5ce   :  { %v5338_v9 = vpop.eup %5337 }
 0x5cf   :  { %v3063_v28 = vmul.f32 %v5338_v9, %v3050_v12 }
 0x5d1   :  { %v5067_v14 = vpack.c.bf16 %v3063_v28, %v3062_v13 }
 0x5d3   :  { %5080 = vst [vmem:[%s8296_s2 + $0x38] sm:$0xff] %v5067_v14   ;;  %3258 = vmatmul.bf16.vlgmr.msra.gmra.mxu0 %v5067_v14  ;;  %3272 = vmatmul.bf16.vlgmr.msra.gmra.mxu1 %v5067_v14 }
 0x5d4   :  { %3286 = vmatmul.bf16.vlgmr.msra.gmra.mxu2 %v5067_v14  ;;  %3300 = vmatmul.bf16.vlgmr.msra.gmra.mxu3 %v5067_v14 }
 0x650   :  { %v3259_v62 = vpop.f32.mrf.mxu0  ;;  %v3273_v16 = vpop.f32.mrf.mxu1 }
 0x651   :  { %v3306_v17 = vadd.f32 %v4597_v6, %v3259_v62  ;;  %v3307_v18 = vadd.f32 %v4598_v15, %v3273_v16 }
 0x653   :  { %v4733_v56 = vmul.f32 -1.442695, %v3306_v17  ;;  %v4735_v19 = vmul.f32 -1.442695, %v3307_v18 }
 0x655   :  { %5339 = vpow2.f32 %v4733_v56 }
 0x656   :  { %5341 = vpow2.f32 %v4735_v19 }
 0x657   :  { %v3301_v55 = vpop.f32.mrf.mxu3  ;;  %v3287_v41 = vpop.f32.mrf.mxu2 }
 0x658   :  { %v3309_v0 = vadd.f32 %v4600_v63, %v3301_v55  ;;  %v3261_v59 = vpop.f32.mrf.mxu0  ;;  %v3275_v34 = vpop.f32.mrf.mxu1  ;;  %v3308_v24 = vadd.f32 %v4599_v30, %v3287_v41 }
 0x659   :  { %v3310_v32 = vadd.f32 %v4601_v21, %v3261_v59  ;;  %v3311_v61 = vadd.f32 %v4602_v23, %v3275_v34 }
 0x65a   :  { %v4737_v36 = vmul.f32 -1.442695, %v3309_v0 }
 0x65b   :  { %v5340_v33 = vpop.eup %5339  ;;  %v4734_v37 = vmul.f32 -1.442695, %v3310_v32  ;;  %v4736_v40 = vmul.f32 -1.442695, %v3311_v61 }
 0x65c   :  { %v5342_v42 = vpop.eup %5341  ;;  %v3320_v38 = vadd.f32 1.0, %v5340_v33  ;;  %5343 = vpow2.f32 %v4737_v36 }
 0x65d   :  { %v3358_v39 = vadd.f32 1.0, %v5342_v42  ;;  %5345 = vpow2.f32 %v4734_v37 }
 0x65e   :  { %5347 = vrcp.f32 %v3320_v38  ;;  %v3331_v26 = vand.u32 2147483647, %v3320_v38  ;;  %v3333_v1 = vand.u32 2147483648, %v3320_v38  ;;  %vm3327_vm2 = vweird.f32 %v3320_v38 }
 0x65f   :  { %5349 = vrcp.f32 %v3358_v39  ;;  %v3303_v44 = vpop.f32.mrf.mxu3  ;;  %v3289_v29 = vpop.f32.mrf.mxu2  ;;  %v3371_v35 = vand.u32 2147483648, %v3358_v39  ;;  %v3369_v7 = vand.u32 2147483647, %v3358_v39  ;;  %vm3365_vm3 = vweird.f32 %v3358_v39 }
 0x660   :  { %5351 = vpow2.f32 %v4736_v40  ;;  %v3313_v48 = vadd.f32 %v4604_v43, %v3303_v44  ;;  %v3312_v45 = vadd.f32 %v4603_v27, %v3289_v29  ;;  %vm3332_vm6 = vcmp.eq.f32.partialorder %v3331_v26, 8.507059e+37 }
 0x661   :  { %v3372_v14 = vor.u32 1.1754944e-38, %v3371_v35  ;;  %v3334_v6 = vor.u32 1.1754944e-38, %v3333_v1  ;;  %vm3370_vm7 = vcmp.eq.f32.partialorder %v3369_v7, 8.507059e+37 }
 0x662   :  { %v5344_v46 = vpop.eup %5343  ;;  %v4738_v20 = vmul.f32 -1.442695, %v3313_v48 }
 0x663   :  { %v5346_v47 = vpop.eup %5345  ;;  %v8241_v49 = vadd.f32 1.0, %v5344_v46 }
 0x664   :  { %v5348_v58 = vpop.eup %5347  ;;  %v8243_v3 = vadd.f32 1.0, %v5346_v47 }
 0x665   :  { %v5350_v50 = vpop.eup %5349  ;;  %v3323_v22 = vmul.f32 %v5348_v58, %v3320_v38  ;;  %vm3328_vm0 = vweird.f32 %v5348_v58 }
 0x666   :  { %v5352_v51 = vpop.eup %5351  ;;  %v3361_v52 = vmul.f32 %v5350_v50, %v3358_v39  ;;  %5353 = vrcp.f32 %v8243_v3  ;;  %vm3366_vm1 = vweird.f32 %v5350_v50  ;;  %vm8256_vm4 = vmor %vm3327_vm2, %vm3328_vm0  ;;  %v3346_v19 = vand.u32 2147483647, %v8243_v3 }
 0x667   :  { %v3324_v25 = vsub.f32 1.0, %v3323_v22  ;;  %v8249_v54 = vadd.f32 1.0, %v5352_v51  ;;  %5355 = vrcp.f32 %v8241_v49  ;;  %vm8262_vm5 = vmor %vm3365_vm3, %vm3366_vm1  ;;  %v3348_v63 = vand.u32 2147483648, %v8243_v3 }
 0x668   :  { %v3362_v31 = vsub.f32 1.0, %v3361_v52  ;;  %vm3342_vm10 = vweird.f32 %v8243_v3  ;;  %vm3347_vm13 = vcmp.eq.f32.partialorder %v3346_v19, 8.507059e+37  ;;  %vm3405_vm1 = vweird.f32 %v8241_v49 }
 0x669   :  { %v3325_v60 = vmul.f32 %v5348_v58, %v3324_v25  ;;  %5357 = vrcp.f32 %v8249_v54  ;;  %vm3380_vm9 = vweird.f32 %v8249_v54  ;;  %v3386_v0 = vand.u32 2147483648, %v8249_v54 }
 0x66a   :  { %v3363_v2 = vmul.f32 %v5350_v50, %v3362_v31  ;;  %5359 = vpow2.f32 %v4738_v20  ;;  %v3384_v36 = vand.u32 2147483647, %v8249_v54  ;;  %v3349_v42 = vor.u32 1.1754944e-38, %v3348_v63 }
 0x66b   :  { %v3326_v5 = vadd.f32 %v5348_v58, %v3325_v60  ;;  %5361 = vtanh.f32 %v3308_v24  ;;  %v3387_v43 = vor.u32 1.1754944e-38, %v3386_v0  ;;  %v3411_v25 = vand.u32 2147483648, %v8241_v49 }
 0x66c   :  { %v3364_v4 = vadd.f32 %v5350_v50, %v3363_v2  ;;  %v5354_v8 = vpop.eup %5353  ;;  %5363 = vtanh.f32 %v3312_v45  ;;  %vm3385_vm15 = vcmp.eq.f32.partialorder %v3384_v36, 8.507059e+37  ;;  %v3409_v20 = vand.u32 2147483647, %v8241_v49 }
 0x66d   :  { %v8260_v10 = vpop.eup %5355  ;;  %v3330_v12 = vsel %vm8256_vm4, %v5348_v58, %v3326_v5  ;;  %v3338_v13 = vmul.f32 %v5354_v8, %v8243_v3  ;;  %vm3343_vm8 = vweird.f32 %v5354_v8  ;;  %v3412_v29 = vor.u32 1.1754944e-38, %v3411_v25 }
 0x66e   :  { %v3368_v15 = vsel %vm8262_vm5, %v5350_v50, %v3364_v4  ;;  %v3335_v18 = vsel %vm3332_vm6, %v3334_v6, %v3330_v12  ;;  %v3401_v56 = vmul.f32 %v8260_v10, %v8241_v49  ;;  %vm3344_vm12 = vmor %vm3342_vm10, %vm3343_vm8  ;;  %vm3406_vm0 = vweird.f32 %v8260_v10 }
 0x66f   :  { %v5358_v28 = vpop.eup %5357  ;;  %v3339_v62 = vsub.f32 1.0, %v3338_v13  ;;  %v3373_v21 = vsel %vm3370_vm7, %v3372_v14, %v3368_v15  ;;  %vm3407_vm3 = vmor %vm3405_vm1, %vm3406_vm0  ;;  %vm3410_vm6 = vcmp.eq.f32.partialorder %v3409_v20, 8.507059e+37 }
 0x670   :  { %v3376_v16 = vmul.f32 %v5358_v28, %v8249_v54  ;;  %v5360_v17 = vpop.eup %5359  ;;  %vm3381_vm11 = vweird.f32 %v5358_v28  ;;  %v3432_v33 = vmul.f32 %v3373_v21, %v8206_v53  ;;  %v3402_v40 = vsub.f32 1.0, %v3401_v56 }
 0x671   :  { %v3340_v55 = vmul.f32 %v5354_v8, %v3339_v62  ;;  %v3399_v59 = vadd.f32 1.0, %v5360_v17  ;;  %v5362_v34 = vpop.eup %5361  ;;  %vm3382_vm14 = vmor %vm3380_vm9, %vm3381_vm11 }
 0x672   :  { %v3377_v23 = vsub.f32 1.0, %v3376_v16  ;;  %v3434_v37 = vmul.f32 %v5362_v34, %v3335_v18  ;;  %v5364_v38 = vpop.eup %5363  ;;  %v3403_v53 = vmul.f32 %v8260_v10, %v3402_v40 }
 0x673   :  { %v3341_v61 = vadd.f32 %v5354_v8, %v3340_v55  ;;  %5365 = vrcp.f32 %v3399_v59  ;;  %v3426_v54 = vand.u32 2147483648, %v3399_v59  ;;  %vm3420_vm4 = vweird.f32 %v3399_v59 }
 0x674   :  { %v3378_v32 = vmul.f32 %v5358_v28, %v3377_v23  ;;  %v3436_v48 = vadd.f32 %v3434_v37, %v3432_v33  ;;  %v3404_v52 = vadd.f32 %v8260_v10, %v3403_v53 }
 0x675   :  { %v3345_v39 = vsel %vm3344_vm12, %v5354_v8, %v3341_v61  ;;  %v3427_v2 = vor.u32 1.1754944e-38, %v3426_v54 }
 0x676   :  { %v3379_v41 = vadd.f32 %v5358_v28, %v3378_v32  ;;  %v3350_v44 = vsel %vm3347_vm13, %v3349_v42, %v3345_v39  ;;  %5367 = vtanh.f32 %v3436_v48  ;;  %v3408_v24 = vsel %vm3407_vm3, %v8260_v10, %v3404_v52 }
 0x677   :  { %v3435_v47 = vmul.f32 %v5364_v38, %v3350_v44  ;;  %v3413_v35 = vsel %vm3410_vm6, %v3412_v29, %v3408_v24 }
 0x678   :  { %v3383_v46 = vsel %vm3382_vm14, %v5358_v28, %v3379_v41 }
 0x679   :  { %v3388_v58 = vsel %vm3385_vm15, %v3387_v43, %v3383_v46  ;;  %v5366_v50 = vpop.eup %5365 }
 0x67a   :  { %v3433_v3 = vmul.f32 %v3388_v58, %v8210_v57  ;;  %v3416_v51 = vmul.f32 %v5366_v50, %v3399_v59  ;;  %vm3421_vm2 = vweird.f32 %v5366_v50  ;;  %v3424_v57 = vand.u32 2147483647, %v3399_v59 }
 0x67b   :  { %vm3422_vm5 = vmor %vm3420_vm4, %vm3421_vm2 }
 0x67c   :  { %v3437_v22 = vadd.f32 %v3435_v47, %v3433_v3  ;;  %v3417_v30 = vsub.f32 1.0, %v3416_v51  ;;  %v5368_v27 = vpop.eup %5367  ;;  %vm3425_vm7 = vcmp.eq.f32.partialorder %v3424_v57, 8.507059e+37 }
 0x67d   :  { %v3440_v4 = vmul.f32 %v5368_v27, %v3413_v35 }
 0x67e   :  { %5369 = vtanh.f32 %v3437_v22  ;;  %v3418_v31 = vmul.f32 %v5366_v50, %v3417_v30 }
 0x680   :  { %v3419_v60 = vadd.f32 %v5366_v50, %v3418_v31 }
 0x682   :  { %v3423_v1 = vsel %vm3422_vm5, %v5366_v50, %v3419_v60 }
 0x683   :  { %v3428_v5 = vsel %vm3425_vm7, %v3427_v2, %v3423_v1 }
 0x684   :  { %v5370_v26 = vpop.eup %5369 }
 0x685   :  { %v3441_v49 = vmul.f32 %v5370_v26, %v3428_v5 }
 0x687   :  { %v5072_v7 = vpack.c.bf16 %v3441_v49, %v3440_v4 }
 0x689   :  { %5081 = vst [vmem:[%s8296_s2 + $0x40] sm:$0xff] %v5072_v7  }

</bundles_post_ra>
